<compile_context>
chip_gen: v6e
topology: v6e:2x2x1
jax: 0.10.0
libtpu: 0.0.40
codegen_flags: <defaults>
</compile_context>

<pallas_src>
import jax
import jax.numpy as jnp
from jax.experimental import pallas as pl
from jax.experimental.pallas import tpu as pltpu


# ----------------------------- Pallas kernels ------------------------------

def _fused_matmul_bias_lrelu_kernel(p_ref, w_ref, b_ref, o_ref):
    # p_ref: (tile_m, K) bf16 patches; w_ref: (K, N) bf16 packed weights
    # (BN scale folded in); b_ref: (1, N) f32 folded BN shift.
    acc = jnp.dot(p_ref[...], w_ref[...], preferred_element_type=jnp.float32)
    y = acc + b_ref[...]
    o_ref[...] = jnp.where(y >= 0.0, y, 0.2 * y).astype(o_ref.dtype)  # LeakyReLU(0.2)


def _matmul_sigmoid_kernel(p_ref, w_ref, o_ref):
    acc = jnp.dot(p_ref[...], w_ref[...], preferred_element_type=jnp.float32)
    o_ref[...] = jax.nn.sigmoid(acc)


# ------------------------------- JAX glue ----------------------------------

def _pick_tile_m(m):
    """Largest convenient M tile that divides m (multiples of 16), else full."""
    if m % 16 != 0:
        return m
    for t in (512, 256, 128, 64, 32, 16):
        if m % t == 0:
            return t
    return m


def _im2col_nhwc(x, k, s, p):
    """x: NHWC -> (B*Ho*Wo, k*k*C) with K ordered (kh, kw, c)."""
    B, H, W, C = x.shape
    xp = jnp.pad(x, ((0, 0), (p, p), (p, p), (0, 0)))
    Ho = (H + 2 * p - k) // s + 1
    Wo = (W + 2 * p - k) // s + 1
    cols = []
    for i in range(k):
        for j in range(k):
            cols.append(xp[:, i:i + s * Ho:s, j:j + s * Wo:s, :])  # (B, Ho, Wo, C)
    patches = jnp.concatenate(cols, axis=-1)                        # (B, Ho, Wo, k*k*C)
    return patches.reshape(B * Ho * Wo, k * k * C), Ho, Wo


def _fused_conv_block(patches, w_packed, shift):
    """conv-as-matmul + folded-BN bias + LeakyReLU, tiled over M, one pallas_call."""
    M, K = patches.shape
    N = w_packed.shape[1]
    tile_m = _pick_tile_m(M)
    grid = (M // tile_m,)
    return pl.pallas_call(
        _fused_matmul_bias_lrelu_kernel,
        out_shape=jax.ShapeDtypeStruct((M, N), jnp.bfloat16),
        grid=grid,
        in_specs=[pl.BlockSpec((tile_m, K), lambda i: (i, 0)),
                  pl.BlockSpec((K, N), lambda i: (0, 0)),
                  pl.BlockSpec((1, N), lambda i: (0, 0))],
        out_specs=pl.BlockSpec((tile_m, N), lambda i: (i, 0)),
        compiler_params=pltpu.CompilerParams(
            dimension_semantics=("parallel",)),
    )(patches, w_packed, shift)


def _final_block(patches, w_packed):
    """Final 4x4 conv as a (B, 8192) @ (8192, 1) matmul + sigmoid."""
    M, K = patches.shape
    N = w_packed.shape[1]
    return pl.pallas_call(
        _matmul_sigmoid_kernel,
        out_shape=jax.ShapeDtypeStruct((M, N), jnp.float32),
        grid=(1,),
        in_specs=[pl.BlockSpec((M, K), lambda i: (0, 0)),
                  pl.BlockSpec((K, N), lambda i: (0, 0))],
        out_specs=pl.BlockSpec((M, N), lambda i: (0, 0)),
    )(patches, w_packed)


# (cin, cout, kernel, stride, pad, batchnorm?)
_BLOCKS = [
    (3,   16,  3, 2, 1, False),   # block1 -> (B,16,16,16)
    (16,  32,  3, 1, 1, True),    # block2 -> (B,16,16,32)
    (32,  64,  3, 2, 1, False),   # block3 -> (B,8,8,64)
    (64,  128, 3, 1, 1, True),    # block4 -> (B,8,8,128)
    (128, 256, 3, 2, 1, False),   # block5 -> (B,4,4,256)
    (256, 512, 3, 1, 1, True),    # block6 -> (B,4,4,512)
]


def init_params(key):
    """PyTorch-style params, pre-packed for the Pallas kernels (done once)."""
    params = {}
    eps = 1e-5
    for idx, (cin, cout, k, _, _, bn) in enumerate(_BLOCKS):
        key, wk, gk, bk = jax.random.split(key, 4)
        w = 0.05 * jax.random.normal(wk, (cout, cin, k, k), jnp.float32)
        if bn:
            gamma = 1.0 + 0.01 * jax.random.normal(gk, (cout,), jnp.float32)
            beta = 0.01 * jax.random.normal(bk, (cout,), jnp.float32)
            running_mean = jnp.zeros((cout,), jnp.float32)
            running_var = jnp.ones((cout,), jnp.float32)
            scale = gamma / jnp.sqrt(running_var + eps)     # inference-form BN
            shift = beta - running_mean * scale
        else:
            scale = jnp.ones((cout,), jnp.float32)
            shift = jnp.zeros((cout,), jnp.float32)
        # Pack weight to (kh, kw, cin) x cout to match NHWC im2col K ordering,
        # fold the BN scale into the weight columns, cast to bf16.
        w_packed = w.transpose(2, 3, 1, 0).reshape(k * k * cin, cout) * scale[None, :]
        params[f"w{idx}"] = w_packed.astype(jnp.bfloat16)
        params[f"b{idx}"] = shift.reshape(1, cout).astype(jnp.float32)
    key, wk = jax.random.split(key)
    w_final = 0.05 * jax.random.normal(wk, (1, 512, 4, 4), jnp.float32)
    params["w_final"] = (
        w_final.transpose(2, 3, 1, 0).reshape(4 * 4 * 512, 1).astype(jnp.bfloat16))
    return params


@jax.jit
def discriminator_forward(img, params):
    """img: NCHW (B, 3, 32, 32) float32 -> (B, 1) sigmoid output."""
    # Single layout change: NCHW -> NHWC, cast to bf16 for the MXU.
    x = jnp.transpose(img, (0, 2, 3, 1)).astype(jnp.bfloat16)
    for idx, (cin, cout, k, s, p, _) in enumerate(_BLOCKS):
        B = x.shape[0]
        patches, Ho, Wo = _im2col_nhwc(x, k, s, p)          # (B*Ho*Wo, k*k*cin) bf16
        out = _fused_conv_block(patches, params[f"w{idx}"], params[f"b{idx}"])
        x = out.reshape(B, Ho, Wo, cout)                    # stay NHWC, bf16
        # TODO(synk): Dropout is identity (eval mode).
    # final: Conv2d(512, 1, 4, 1, 0) + Sigmoid. Input is (B,4,4,512) so the 4x4
    # window covers the whole feature map -> the patch is just a reshape
    # (ordering (kh, kw, c) matches the packed final weight).
    B = x.shape[0]
    patches = x.reshape(B, 4 * 4 * 512)
    out = _final_block(patches, params["w_final"])          # (B, 1) f32
    return out.reshape(-1, 1)


if __name__ == "__main__":
    key = jax.random.PRNGKey(0)
    key, pkey, xkey = jax.random.split(key, 3)
    params = init_params(pkey)
    # Input spatial size must be 32x32 (the conv chain hard-codes it); batch=2.
    img = jax.random.normal(xkey, (2, 3, 32, 32), jnp.float32)
    out = discriminator_forward(img, params)
    out = jax.block_until_ready(out)
    assert out.shape == (2, 1), out.shape
    assert bool(jnp.all(jnp.isfinite(out)))
    print("KERNEL_OK")
</pallas_src>

<mosaic_0001>
module attributes {stable_mosaic.version = 11 : i64} {
  func.func @_fused_matmul_bias_lrelu_kernel(%arg0: i32, %arg1: memref<512x27xbf16, #tpu.memory_space<vmem>>, %arg2: memref<27x16xbf16, #tpu.memory_space<vmem>>, %arg3: memref<1x16xf32, #tpu.memory_space<vmem>>, %arg4: memref<512x16xbf16, #tpu.memory_space<vmem>>) attributes {dimension_semantics = [#tpu.dimension_semantics<parallel>], iteration_bounds = array<i64: 1>, scalar_prefetch = 0 : i64, scratch_operands = 0 : i64, tpu.core_type = #tpu.core_type<tc>, window_params = [{transform_indices = @transform_0, window_bounds = array<i64: 512, 27>}, {pipeline_mode = #tpu.pipeline_mode<synchronous>, transform_indices = @transform_1, window_bounds = array<i64: 27, 16>}, {pipeline_mode = #tpu.pipeline_mode<synchronous>, transform_indices = @transform_2, window_bounds = array<i64: 1, 16>}, {transform_indices = @transform_3, window_bounds = array<i64: 512, 16>}]} {
    %c0 = arith.constant 0 : index
    %c0_0 = arith.constant 0 : index
    %0 = vector.load %arg1[%c0, %c0_0] : memref<512x27xbf16, #tpu.memory_space<vmem>>, vector<512x27xbf16>
    %c0_1 = arith.constant 0 : index
    %c0_2 = arith.constant 0 : index
    %1 = vector.load %arg2[%c0_1, %c0_2] : memref<27x16xbf16, #tpu.memory_space<vmem>>, vector<27x16xbf16>
    %cst = arith.constant dense<0.000000e+00> : vector<512x16xf32>
    %2 = tpu.matmul %0, %1, %cst {dimension_numbers = #tpu.dot_dimension_numbers<[1], [0], [0], [1], [0, 0, 1, 1], [], []>} : vector<512x27xbf16>, vector<27x16xbf16>, vector<512x16xf32> -> vector<512x16xf32>
    %c0_3 = arith.constant 0 : index
    %c0_4 = arith.constant 0 : index
    %3 = vector.load %arg3[%c0_3, %c0_4] : memref<1x16xf32, #tpu.memory_space<vmem>>, vector<1x16xf32>
    %4 = vector.broadcast %3 : vector<1x16xf32> to vector<512x16xf32>
    %5 = arith.addf %2, %4 : vector<512x16xf32>
    %cst_5 = arith.constant 0.000000e+00 : f32
    %6 = vector.broadcast %cst_5 : f32 to vector<512x16xf32>
    %7 = arith.cmpf oge, %5, %6 : vector<512x16xf32>
    %cst_6 = arith.constant 2.000000e-01 : f32
    %8 = vector.broadcast %cst_6 : f32 to vector<512x16xf32>
    %9 = arith.mulf %8, %5 : vector<512x16xf32>
    %10 = arith.select %7, %5, %9 : vector<512x16xi1>, vector<512x16xf32>
    %11 = arith.truncf %10 : vector<512x16xf32> to vector<512x16xbf16>
    %c0_7 = arith.constant 0 : index
    %c0_8 = arith.constant 0 : index
    %12 = vector.load %arg4[%c0_7, %c0_8] : memref<512x16xbf16, #tpu.memory_space<vmem>>, vector<512x16xbf16>
    tpu.vector_store %arg4[%c0_7, %c0_8], %11 {strides = array<i32>} : memref<512x16xbf16, #tpu.memory_space<vmem>>, vector<512x16xbf16>,
    return
  }
  func.func @transform_0(%arg0: i32) -> (i32, i32) {
    %c0_i32 = arith.constant 0 : i32
    %c0_i32_0 = arith.constant 0 : i32
    return %arg0, %c0_i32 : i32, i32
  }
  func.func @transform_1(%arg0: i32) -> (i32, i32) {
    %c0_i32 = arith.constant 0 : i32
    %c0_i32_0 = arith.constant 0 : i32
    %c0_i32_1 = arith.constant 0 : i32
    return %c0_i32, %c0_i32_0 : i32, i32
  }
  func.func @transform_2(%arg0: i32) -> (i32, i32) {
    %c0_i32 = arith.constant 0 : i32
    %c0_i32_0 = arith.constant 0 : i32
    %c0_i32_1 = arith.constant 0 : i32
    return %c0_i32, %c0_i32_0 : i32, i32
  }
  func.func @transform_3(%arg0: i32) -> (i32, i32) {
    %c0_i32 = arith.constant 0 : i32
    %c0_i32_0 = arith.constant 0 : i32
    return %arg0, %c0_i32 : i32, i32
  }
}

module attributes {stable_mosaic.version = 11 : i64} {
  func.func @_fused_matmul_bias_lrelu_kernel(%arg0: i32, %arg1: memref<512x144xbf16, #tpu.memory_space<vmem>>, %arg2: memref<144x32xbf16, #tpu.memory_space<vmem>>, %arg3: memref<1x32xf32, #tpu.memory_space<vmem>>, %arg4: memref<512x32xbf16, #tpu.memory_space<vmem>>) attributes {dimension_semantics = [#tpu.dimension_semantics<parallel>], iteration_bounds = array<i64: 1>, scalar_prefetch = 0 : i64, scratch_operands = 0 : i64, tpu.core_type = #tpu.core_type<tc>, window_params = [{transform_indices = @transform_0, window_bounds = array<i64: 512, 144>}, {pipeline_mode = #tpu.pipeline_mode<synchronous>, transform_indices = @transform_1, window_bounds = array<i64: 144, 32>}, {pipeline_mode = #tpu.pipeline_mode<synchronous>, transform_indices = @transform_2, window_bounds = array<i64: 1, 32>}, {transform_indices = @transform_3, window_bounds = array<i64: 512, 32>}]} {
    %c0 = arith.constant 0 : index
    %c0_0 = arith.constant 0 : index
    %0 = vector.load %arg1[%c0, %c0_0] : memref<512x144xbf16, #tpu.memory_space<vmem>>, vector<512x144xbf16>
    %c0_1 = arith.constant 0 : index
    %c0_2 = arith.constant 0 : index
    %1 = vector.load %arg2[%c0_1, %c0_2] : memref<144x32xbf16, #tpu.memory_space<vmem>>, vector<144x32xbf16>
    %cst = arith.constant dense<0.000000e+00> : vector<512x32xf32>
    %2 = tpu.matmul %0, %1, %cst {dimension_numbers = #tpu.dot_dimension_numbers<[1], [0], [0], [1], [0, 0, 1, 1], [], []>} : vector<512x144xbf16>, vector<144x32xbf16>, vector<512x32xf32> -> vector<512x32xf32>
    %c0_3 = arith.constant 0 : index
    %c0_4 = arith.constant 0 : index
    %3 = vector.load %arg3[%c0_3, %c0_4] : memref<1x32xf32, #tpu.memory_space<vmem>>, vector<1x32xf32>
    %4 = vector.broadcast %3 : vector<1x32xf32> to vector<512x32xf32>
    %5 = arith.addf %2, %4 : vector<512x32xf32>
    %cst_5 = arith.constant 0.000000e+00 : f32
    %6 = vector.broadcast %cst_5 : f32 to vector<512x32xf32>
    %7 = arith.cmpf oge, %5, %6 : vector<512x32xf32>
    %cst_6 = arith.constant 2.000000e-01 : f32
    %8 = vector.broadcast %cst_6 : f32 to vector<512x32xf32>
    %9 = arith.mulf %8, %5 : vector<512x32xf32>
    %10 = arith.select %7, %5, %9 : vector<512x32xi1>, vector<512x32xf32>
    %11 = arith.truncf %10 : vector<512x32xf32> to vector<512x32xbf16>
    %c0_7 = arith.constant 0 : index
    %c0_8 = arith.constant 0 : index
    %12 = vector.load %arg4[%c0_7, %c0_8] : memref<512x32xbf16, #tpu.memory_space<vmem>>, vector<512x32xbf16>
    tpu.vector_store %arg4[%c0_7, %c0_8], %11 {strides = array<i32>} : memref<512x32xbf16, #tpu.memory_space<vmem>>, vector<512x32xbf16>,
    return
  }
  func.func @transform_0(%arg0: i32) -> (i32, i32) {
    %c0_i32 = arith.constant 0 : i32
    %c0_i32_0 = arith.constant 0 : i32
    return %arg0, %c0_i32 : i32, i32
  }
  func.func @transform_1(%arg0: i32) -> (i32, i32) {
    %c0_i32 = arith.constant 0 : i32
    %c0_i32_0 = arith.constant 0 : i32
    %c0_i32_1 = arith.constant 0 : i32
    return %c0_i32, %c0_i32_0 : i32, i32
  }
  func.func @transform_2(%arg0: i32) -> (i32, i32) {
    %c0_i32 = arith.constant 0 : i32
    %c0_i32_0 = arith.constant 0 : i32
    %c0_i32_1 = arith.constant 0 : i32
    return %c0_i32, %c0_i32_0 : i32, i32
  }
  func.func @transform_3(%arg0: i32) -> (i32, i32) {
    %c0_i32 = arith.constant 0 : i32
    %c0_i32_0 = arith.constant 0 : i32
    return %arg0, %c0_i32 : i32, i32
  }
}

module attributes {stable_mosaic.version = 11 : i64} {
  func.func @_fused_matmul_bias_lrelu_kernel(%arg0: i32, %arg1: memref<128x288xbf16, #tpu.memory_space<vmem>>, %arg2: memref<288x64xbf16, #tpu.memory_space<vmem>>, %arg3: memref<1x64xf32, #tpu.memory_space<vmem>>, %arg4: memref<128x64xbf16, #tpu.memory_space<vmem>>) attributes {dimension_semantics = [#tpu.dimension_semantics<parallel>], iteration_bounds = array<i64: 1>, scalar_prefetch = 0 : i64, scratch_operands = 0 : i64, tpu.core_type = #tpu.core_type<tc>, window_params = [{transform_indices = @transform_0, window_bounds = array<i64: 128, 288>}, {pipeline_mode = #tpu.pipeline_mode<synchronous>, transform_indices = @transform_1, window_bounds = array<i64: 288, 64>}, {pipeline_mode = #tpu.pipeline_mode<synchronous>, transform_indices = @transform_2, window_bounds = array<i64: 1, 64>}, {transform_indices = @transform_3, window_bounds = array<i64: 128, 64>}]} {
    %c0 = arith.constant 0 : index
    %c0_0 = arith.constant 0 : index
    %0 = vector.load %arg1[%c0, %c0_0] : memref<128x288xbf16, #tpu.memory_space<vmem>>, vector<128x288xbf16>
    %c0_1 = arith.constant 0 : index
    %c0_2 = arith.constant 0 : index
    %1 = vector.load %arg2[%c0_1, %c0_2] : memref<288x64xbf16, #tpu.memory_space<vmem>>, vector<288x64xbf16>
    %cst = arith.constant dense<0.000000e+00> : vector<128x64xf32>
    %2 = tpu.matmul %0, %1, %cst {dimension_numbers = #tpu.dot_dimension_numbers<[1], [0], [0], [1], [0, 0, 1, 1], [], []>} : vector<128x288xbf16>, vector<288x64xbf16>, vector<128x64xf32> -> vector<128x64xf32>
    %c0_3 = arith.constant 0 : index
    %c0_4 = arith.constant 0 : index
    %3 = vector.load %arg3[%c0_3, %c0_4] : memref<1x64xf32, #tpu.memory_space<vmem>>, vector<1x64xf32>
    %4 = vector.broadcast %3 : vector<1x64xf32> to vector<128x64xf32>
    %5 = arith.addf %2, %4 : vector<128x64xf32>
    %cst_5 = arith.constant 0.000000e+00 : f32
    %6 = vector.broadcast %cst_5 : f32 to vector<128x64xf32>
    %7 = arith.cmpf oge, %5, %6 : vector<128x64xf32>
    %cst_6 = arith.constant 2.000000e-01 : f32
    %8 = vector.broadcast %cst_6 : f32 to vector<128x64xf32>
    %9 = arith.mulf %8, %5 : vector<128x64xf32>
    %10 = arith.select %7, %5, %9 : vector<128x64xi1>, vector<128x64xf32>
    %11 = arith.truncf %10 : vector<128x64xf32> to vector<128x64xbf16>
    %c0_7 = arith.constant 0 : index
    %c0_8 = arith.constant 0 : index
    %12 = vector.load %arg4[%c0_7, %c0_8] : memref<128x64xbf16, #tpu.memory_space<vmem>>, vector<128x64xbf16>
    tpu.vector_store %arg4[%c0_7, %c0_8], %11 {strides = array<i32>} : memref<128x64xbf16, #tpu.memory_space<vmem>>, vector<128x64xbf16>,
    return
  }
  func.func @transform_0(%arg0: i32) -> (i32, i32) {
    %c0_i32 = arith.constant 0 : i32
    %c0_i32_0 = arith.constant 0 : i32
    return %arg0, %c0_i32 : i32, i32
  }
  func.func @transform_1(%arg0: i32) -> (i32, i32) {
    %c0_i32 = arith.constant 0 : i32
    %c0_i32_0 = arith.constant 0 : i32
    %c0_i32_1 = arith.constant 0 : i32
    return %c0_i32, %c0_i32_0 : i32, i32
  }
  func.func @transform_2(%arg0: i32) -> (i32, i32) {
    %c0_i32 = arith.constant 0 : i32
    %c0_i32_0 = arith.constant 0 : i32
    %c0_i32_1 = arith.constant 0 : i32
    return %c0_i32, %c0_i32_0 : i32, i32
  }
  func.func @transform_3(%arg0: i32) -> (i32, i32) {
    %c0_i32 = arith.constant 0 : i32
    %c0_i32_0 = arith.constant 0 : i32
    return %arg0, %c0_i32 : i32, i32
  }
}

module attributes {stable_mosaic.version = 11 : i64} {
  func.func @_fused_matmul_bias_lrelu_kernel(%arg0: i32, %arg1: memref<128x576xbf16, #tpu.memory_space<vmem>>, %arg2: memref<576x128xbf16, #tpu.memory_space<vmem>>, %arg3: memref<1x128xf32, #tpu.memory_space<vmem>>, %arg4: memref<128x128xbf16, #tpu.memory_space<vmem>>) attributes {dimension_semantics = [#tpu.dimension_semantics<parallel>], iteration_bounds = array<i64: 1>, scalar_prefetch = 0 : i64, scratch_operands = 0 : i64, tpu.core_type = #tpu.core_type<tc>, window_params = [{transform_indices = @transform_0, window_bounds = array<i64: 128, 576>}, {pipeline_mode = #tpu.pipeline_mode<synchronous>, transform_indices = @transform_1, window_bounds = array<i64: 576, 128>}, {pipeline_mode = #tpu.pipeline_mode<synchronous>, transform_indices = @transform_2, window_bounds = array<i64: 1, 128>}, {transform_indices = @transform_3, window_bounds = array<i64: 128, 128>}]} {
    %c0 = arith.constant 0 : index
    %c0_0 = arith.constant 0 : index
    %0 = vector.load %arg1[%c0, %c0_0] : memref<128x576xbf16, #tpu.memory_space<vmem>>, vector<128x576xbf16>
    %c0_1 = arith.constant 0 : index
    %c0_2 = arith.constant 0 : index
    %1 = vector.load %arg2[%c0_1, %c0_2] : memref<576x128xbf16, #tpu.memory_space<vmem>>, vector<576x128xbf16>
    %cst = arith.constant dense<0.000000e+00> : vector<128x128xf32>
    %2 = tpu.matmul %0, %1, %cst {dimension_numbers = #tpu.dot_dimension_numbers<[1], [0], [0], [1], [0, 0, 1, 1], [], []>} : vector<128x576xbf16>, vector<576x128xbf16>, vector<128x128xf32> -> vector<128x128xf32>
    %c0_3 = arith.constant 0 : index
    %c0_4 = arith.constant 0 : index
    %3 = vector.load %arg3[%c0_3, %c0_4] : memref<1x128xf32, #tpu.memory_space<vmem>>, vector<1x128xf32>
    %4 = vector.broadcast %3 : vector<1x128xf32> to vector<128x128xf32>
    %5 = arith.addf %2, %4 : vector<128x128xf32>
    %cst_5 = arith.constant 0.000000e+00 : f32
    %6 = vector.broadcast %cst_5 : f32 to vector<128x128xf32>
    %7 = arith.cmpf oge, %5, %6 : vector<128x128xf32>
    %cst_6 = arith.constant 2.000000e-01 : f32
    %8 = vector.broadcast %cst_6 : f32 to vector<128x128xf32>
    %9 = arith.mulf %8, %5 : vector<128x128xf32>
    %10 = arith.select %7, %5, %9 : vector<128x128xi1>, vector<128x128xf32>
    %11 = arith.truncf %10 : vector<128x128xf32> to vector<128x128xbf16>
    %c0_7 = arith.constant 0 : index
    %c0_8 = arith.constant 0 : index
    %12 = vector.load %arg4[%c0_7, %c0_8] : memref<128x128xbf16, #tpu.memory_space<vmem>>, vector<128x128xbf16>
    tpu.vector_store %arg4[%c0_7, %c0_8], %11 {strides = array<i32>} : memref<128x128xbf16, #tpu.memory_space<vmem>>, vector<128x128xbf16>,
    return
  }
  func.func @transform_0(%arg0: i32) -> (i32, i32) {
    %c0_i32 = arith.constant 0 : i32
    %c0_i32_0 = arith.constant 0 : i32
    return %arg0, %c0_i32 : i32, i32
  }
  func.func @transform_1(%arg0: i32) -> (i32, i32) {
    %c0_i32 = arith.constant 0 : i32
    %c0_i32_0 = arith.constant 0 : i32
    %c0_i32_1 = arith.constant 0 : i32
    return %c0_i32, %c0_i32_0 : i32, i32
  }
  func.func @transform_2(%arg0: i32) -> (i32, i32) {
    %c0_i32 = arith.constant 0 : i32
    %c0_i32_0 = arith.constant 0 : i32
    %c0_i32_1 = arith.constant 0 : i32
    return %c0_i32, %c0_i32_0 : i32, i32
  }
  func.func @transform_3(%arg0: i32) -> (i32, i32) {
    %c0_i32 = arith.constant 0 : i32
    %c0_i32_0 = arith.constant 0 : i32
    return %arg0, %c0_i32 : i32, i32
  }
}

module attributes {stable_mosaic.version = 11 : i64} {
  func.func @_fused_matmul_bias_lrelu_kernel(%arg0: i32, %arg1: memref<32x1152xbf16, #tpu.memory_space<vmem>>, %arg2: memref<1152x256xbf16, #tpu.memory_space<vmem>>, %arg3: memref<1x256xf32, #tpu.memory_space<vmem>>, %arg4: memref<32x256xbf16, #tpu.memory_space<vmem>>) attributes {dimension_semantics = [#tpu.dimension_semantics<parallel>], iteration_bounds = array<i64: 1>, scalar_prefetch = 0 : i64, scratch_operands = 0 : i64, tpu.core_type = #tpu.core_type<tc>, window_params = [{transform_indices = @transform_0, window_bounds = array<i64: 32, 1152>}, {pipeline_mode = #tpu.pipeline_mode<synchronous>, transform_indices = @transform_1, window_bounds = array<i64: 1152, 256>}, {pipeline_mode = #tpu.pipeline_mode<synchronous>, transform_indices = @transform_2, window_bounds = array<i64: 1, 256>}, {transform_indices = @transform_3, window_bounds = array<i64: 32, 256>}]} {
    %c0 = arith.constant 0 : index
    %c0_0 = arith.constant 0 : index
    %0 = vector.load %arg1[%c0, %c0_0] : memref<32x1152xbf16, #tpu.memory_space<vmem>>, vector<32x1152xbf16>
    %c0_1 = arith.constant 0 : index
    %c0_2 = arith.constant 0 : index
    %1 = vector.load %arg2[%c0_1, %c0_2] : memref<1152x256xbf16, #tpu.memory_space<vmem>>, vector<1152x256xbf16>
    %cst = arith.constant dense<0.000000e+00> : vector<32x256xf32>
    %2 = tpu.matmul %0, %1, %cst {dimension_numbers = #tpu.dot_dimension_numbers<[1], [0], [0], [1], [0, 0, 1, 1], [], []>} : vector<32x1152xbf16>, vector<1152x256xbf16>, vector<32x256xf32> -> vector<32x256xf32>
    %c0_3 = arith.constant 0 : index
    %c0_4 = arith.constant 0 : index
    %3 = vector.load %arg3[%c0_3, %c0_4] : memref<1x256xf32, #tpu.memory_space<vmem>>, vector<1x256xf32>
    %4 = vector.broadcast %3 : vector<1x256xf32> to vector<32x256xf32>
    %5 = arith.addf %2, %4 : vector<32x256xf32>
    %cst_5 = arith.constant 0.000000e+00 : f32
    %6 = vector.broadcast %cst_5 : f32 to vector<32x256xf32>
    %7 = arith.cmpf oge, %5, %6 : vector<32x256xf32>
    %cst_6 = arith.constant 2.000000e-01 : f32
    %8 = vector.broadcast %cst_6 : f32 to vector<32x256xf32>
    %9 = arith.mulf %8, %5 : vector<32x256xf32>
    %10 = arith.select %7, %5, %9 : vector<32x256xi1>, vector<32x256xf32>
    %11 = arith.truncf %10 : vector<32x256xf32> to vector<32x256xbf16>
    %c0_7 = arith.constant 0 : index
    %c0_8 = arith.constant 0 : index
    %12 = vector.load %arg4[%c0_7, %c0_8] : memref<32x256xbf16, #tpu.memory_space<vmem>>, vector<32x256xbf16>
    tpu.vector_store %arg4[%c0_7, %c0_8], %11 {strides = array<i32>} : memref<32x256xbf16, #tpu.memory_space<vmem>>, vector<32x256xbf16>,
    return
  }
  func.func @transform_0(%arg0: i32) -> (i32, i32) {
    %c0_i32 = arith.constant 0 : i32
    %c0_i32_0 = arith.constant 0 : i32
    return %arg0, %c0_i32 : i32, i32
  }
  func.func @transform_1(%arg0: i32) -> (i32, i32) {
    %c0_i32 = arith.constant 0 : i32
    %c0_i32_0 = arith.constant 0 : i32
    %c0_i32_1 = arith.constant 0 : i32
    return %c0_i32, %c0_i32_0 : i32, i32
  }
  func.func @transform_2(%arg0: i32) -> (i32, i32) {
    %c0_i32 = arith.constant 0 : i32
    %c0_i32_0 = arith.constant 0 : i32
    %c0_i32_1 = arith.constant 0 : i32
    return %c0_i32, %c0_i32_0 : i32, i32
  }
  func.func @transform_3(%arg0: i32) -> (i32, i32) {
    %c0_i32 = arith.constant 0 : i32
    %c0_i32_0 = arith.constant 0 : i32
    return %arg0, %c0_i32 : i32, i32
  }
}

module attributes {stable_mosaic.version = 11 : i64} {
  func.func @_fused_matmul_bias_lrelu_kernel(%arg0: i32, %arg1: memref<32x2304xbf16, #tpu.memory_space<vmem>>, %arg2: memref<2304x512xbf16, #tpu.memory_space<vmem>>, %arg3: memref<1x512xf32, #tpu.memory_space<vmem>>, %arg4: memref<32x512xbf16, #tpu.memory_space<vmem>>) attributes {dimension_semantics = [#tpu.dimension_semantics<parallel>], iteration_bounds = array<i64: 1>, scalar_prefetch = 0 : i64, scratch_operands = 0 : i64, tpu.core_type = #tpu.core_type<tc>, window_params = [{transform_indices = @transform_0, window_bounds = array<i64: 32, 2304>}, {pipeline_mode = #tpu.pipeline_mode<synchronous>, transform_indices = @transform_1, window_bounds = array<i64: 2304, 512>}, {pipeline_mode = #tpu.pipeline_mode<synchronous>, transform_indices = @transform_2, window_bounds = array<i64: 1, 512>}, {transform_indices = @transform_3, window_bounds = array<i64: 32, 512>}]} {
    %c0 = arith.constant 0 : index
    %c0_0 = arith.constant 0 : index
    %0 = vector.load %arg1[%c0, %c0_0] : memref<32x2304xbf16, #tpu.memory_space<vmem>>, vector<32x2304xbf16>
    %c0_1 = arith.constant 0 : index
    %c0_2 = arith.constant 0 : index
    %1 = vector.load %arg2[%c0_1, %c0_2] : memref<2304x512xbf16, #tpu.memory_space<vmem>>, vector<2304x512xbf16>
    %cst = arith.constant dense<0.000000e+00> : vector<32x512xf32>
    %2 = tpu.matmul %0, %1, %cst {dimension_numbers = #tpu.dot_dimension_numbers<[1], [0], [0], [1], [0, 0, 1, 1], [], []>} : vector<32x2304xbf16>, vector<2304x512xbf16>, vector<32x512xf32> -> vector<32x512xf32>
    %c0_3 = arith.constant 0 : index
    %c0_4 = arith.constant 0 : index
    %3 = vector.load %arg3[%c0_3, %c0_4] : memref<1x512xf32, #tpu.memory_space<vmem>>, vector<1x512xf32>
    %4 = vector.broadcast %3 : vector<1x512xf32> to vector<32x512xf32>
    %5 = arith.addf %2, %4 : vector<32x512xf32>
    %cst_5 = arith.constant 0.000000e+00 : f32
    %6 = vector.broadcast %cst_5 : f32 to vector<32x512xf32>
    %7 = arith.cmpf oge, %5, %6 : vector<32x512xf32>
    %cst_6 = arith.constant 2.000000e-01 : f32
    %8 = vector.broadcast %cst_6 : f32 to vector<32x512xf32>
    %9 = arith.mulf %8, %5 : vector<32x512xf32>
    %10 = arith.select %7, %5, %9 : vector<32x512xi1>, vector<32x512xf32>
    %11 = arith.truncf %10 : vector<32x512xf32> to vector<32x512xbf16>
    %c0_7 = arith.constant 0 : index
    %c0_8 = arith.constant 0 : index
    %12 = vector.load %arg4[%c0_7, %c0_8] : memref<32x512xbf16, #tpu.memory_space<vmem>>, vector<32x512xbf16>
    tpu.vector_store %arg4[%c0_7, %c0_8], %11 {strides = array<i32>} : memref<32x512xbf16, #tpu.memory_space<vmem>>, vector<32x512xbf16>,
    return
  }
  func.func @transform_0(%arg0: i32) -> (i32, i32) {
    %c0_i32 = arith.constant 0 : i32
    %c0_i32_0 = arith.constant 0 : i32
    return %arg0, %c0_i32 : i32, i32
  }
  func.func @transform_1(%arg0: i32) -> (i32, i32) {
    %c0_i32 = arith.constant 0 : i32
    %c0_i32_0 = arith.constant 0 : i32
    %c0_i32_1 = arith.constant 0 : i32
    return %c0_i32, %c0_i32_0 : i32, i32
  }
  func.func @transform_2(%arg0: i32) -> (i32, i32) {
    %c0_i32 = arith.constant 0 : i32
    %c0_i32_0 = arith.constant 0 : i32
    %c0_i32_1 = arith.constant 0 : i32
    return %c0_i32, %c0_i32_0 : i32, i32
  }
  func.func @transform_3(%arg0: i32) -> (i32, i32) {
    %c0_i32 = arith.constant 0 : i32
    %c0_i32_0 = arith.constant 0 : i32
    return %arg0, %c0_i32 : i32, i32
  }
}

module attributes {stable_mosaic.version = 11 : i64} {
  func.func @_matmul_sigmoid_kernel(%arg0: i32, %arg1: memref<2x8192xbf16, #tpu.memory_space<vmem>>, %arg2: memref<8192x1xbf16, #tpu.memory_space<vmem>>, %arg3: memref<2x1xf32, #tpu.memory_space<vmem>>) attributes {dimension_semantics = [#tpu.dimension_semantics<arbitrary>], iteration_bounds = array<i64: 1>, scalar_prefetch = 0 : i64, scratch_operands = 0 : i64, tpu.core_type = #tpu.core_type<tc>, window_params = [{pipeline_mode = #tpu.pipeline_mode<synchronous>, transform_indices = @transform_0, window_bounds = array<i64: 2, 8192>}, {pipeline_mode = #tpu.pipeline_mode<synchronous>, transform_indices = @transform_1, window_bounds = array<i64: 8192, 1>}, {pipeline_mode = #tpu.pipeline_mode<synchronous>, transform_indices = @transform_2, window_bounds = array<i64: 2, 1>}]} {
    %c0 = arith.constant 0 : index
    %c0_0 = arith.constant 0 : index
    %0 = vector.load %arg1[%c0, %c0_0] : memref<2x8192xbf16, #tpu.memory_space<vmem>>, vector<2x8192xbf16>
    %c0_1 = arith.constant 0 : index
    %c0_2 = arith.constant 0 : index
    %1 = vector.load %arg2[%c0_1, %c0_2] : memref<8192x1xbf16, #tpu.memory_space<vmem>>, vector<8192x1xbf16>
    %cst = arith.constant dense<0.000000e+00> : vector<2x1xf32>
    %2 = tpu.matmul %0, %1, %cst {dimension_numbers = #tpu.dot_dimension_numbers<[1], [0], [0], [1], [0, 0, 1, 1], [], []>} : vector<2x8192xbf16>, vector<8192x1xbf16>, vector<2x1xf32> -> vector<2x1xf32>
    %3 = arith.negf %2 : vector<2x1xf32>
    %4 = math.exp %3 : vector<2x1xf32>
    %cst_3 = arith.constant 1.000000e+00 : f32
    %5 = vector.broadcast %cst_3 : f32 to vector<2x1xf32>
    %6 = arith.addf %5, %4 : vector<2x1xf32>
    %7 = arith.divf %5, %6 : vector<2x1xf32>
    %c0_4 = arith.constant 0 : index
    %c0_5 = arith.constant 0 : index
    %8 = vector.load %arg3[%c0_4, %c0_5] : memref<2x1xf32, #tpu.memory_space<vmem>>, vector<2x1xf32>
    tpu.vector_store %arg3[%c0_4, %c0_5], %7 {strides = array<i32>} : memref<2x1xf32, #tpu.memory_space<vmem>>, vector<2x1xf32>,
    return
  }
  func.func @transform_0(%arg0: i32) -> (i32, i32) {
    %c0_i32 = arith.constant 0 : i32
    %c0_i32_0 = arith.constant 0 : i32
    %c0_i32_1 = arith.constant 0 : i32
    return %c0_i32, %c0_i32_0 : i32, i32
  }
  func.func @transform_1(%arg0: i32) -> (i32, i32) {
    %c0_i32 = arith.constant 0 : i32
    %c0_i32_0 = arith.constant 0 : i32
    %c0_i32_1 = arith.constant 0 : i32
    return %c0_i32, %c0_i32_0 : i32, i32
  }
  func.func @transform_2(%arg0: i32) -> (i32, i32) {
    %c0_i32 = arith.constant 0 : i32
    %c0_i32_0 = arith.constant 0 : i32
    %c0_i32_1 = arith.constant 0 : i32
    return %c0_i32, %c0_i32_0 : i32, i32
  }
}

</mosaic_0001>

<bundles_post_ra>
// kernel: discriminator_forward.7
= control target key start
LH: loop header
LB: loop body
LE: loop exit
PB: predicated region body
PF: predicated region fallthrough
CT: control target
= control target key end

     0   :  { %8 = vsyncpa [#allocation3], 0  ;;  %s1543_s12 = smov [#allocation2]   ;;  %s2051_s0 = inlined_call_operand.vmem [shape: bf16[512,27], index: 0, kind: input, shape index: {}]   ;;  %s2052_s1 = inlined_call_operand.vmem [shape: bf16[27,16], index: 1, kind: input, shape index: {}]   ;;  %s2053_s2 = inlined_call_operand.hbm [shape: f32[1,16], index: 2, kind: input, shape index: {}]   ;;  %s2054_s3 = inlined_call_operand.vmem [shape: bf16[512,16], index: 3, kind: output, shape index: {}]  }
   0x1   :  { %s19_s13 = sshll.u32 %s1543_s12, 4  ;;  %s20_s13 = int_to_ptr.vmem [resolvable:$true] %s19_s13 }
   0x2   :  { %s1529_s14 = scalar_lea.vmem %s20_s13, 16  ;;  %s1533_s15 = scalar_lea.vmem %s20_s13, 32 }
   0x3   :  { %p1530_p0 = scmp.ne.s32.totalorder %s20_s13, %s1529_s14  ;;  %p1534_p1 = scmp.lt.s32.totalorder %s20_s13, %s20_s13 }
   0x4   :  { %p1535_p2 = scmp.lt.s32.totalorder %s1533_s15, %s1529_s14 }
   0x6   :  { %p1536_p3 = por %p1535_p2, %p1534_p1 }
   0x8   :  { %p1537_p4 = pnand %p1536_p3, %p1530_p0 }
   0xa   :  { %1540 = shalt.err (!%p1537_p4)
}
   0xb   :  { %22 = dma.hbm_to_vmem [thread:$0]  %s2053_s2, 16, %s20_s13, [#allocation3]  }
   0xc   :  { %1541 = dma.done.wait [#allocation3], 16  }
   0xd   :  { %1542 = vsyncadd [#allocation3], 4294967280  ;;  %vm370_vm0 = vcmask 1044480   ;;  %vm371_vm1 = vcmask 1045504   ;;  %v1544_v0 = vmov 65535   ;;  %v1488_v4 = vld [vmem:[%s2052_s1] sm:$0xff]  }
   0xe   :  { %v372_v1 = vsel %vm370_vm0, 4294967295, %v1544_v0  ;;  %v1487_v3 = vld [vmem:[%s2052_s1 + $0x8] sm:$0x3f]   ;;  %v1489_v6 = vld [vmem:[%s2051_s0] sm:$0xff]   ;;  %vm273_vm2 = vcmask 220160   ;;  %v1493_v10 = vld [vmem:[%s2051_s0 + $0x10] sm:$0xff]  }
   0xf   :  { %v373_v2 = vsel %vm371_vm1, %v372_v1, 0  ;;  %v1490_v7 = vld [vmem:[%s2051_s0 + $0x80] sm:$0xff]   ;;  %v1491_v8 = vld [vmem:[%s2051_s0 + $0x8] sm:$0xff]   ;;  %1417 = vmatprep.mubr.msk.bf16.mxu0 %vm273_vm2, %v1489_v6  ;;  %v1494_v11 = vld [vmem:[%s2051_s0 + $0x90] sm:$0xff]   ;;  %vm1114_vm5 = vcmask 125952  }
  0x10   :  { %v375_v5 = vand.u32 %v1487_v3, %v373_v2  ;;  %1449 = vmatprep.mubr.msk.bf16.mxu1 %vm273_vm2, %v1490_v7  ;;  %v1492_v9 = vld [vmem:[%s2051_s0 + $0x88] sm:$0xff]   ;;  %v1495_v12 = vld [vmem:[%s2051_s0 + $0x18] sm:$0xff]   ;;  %v1497_v14 = vld [vmem:[%s2051_s0 + $0x20] sm:$0xff]  }
  0x11   :  { %v1496_v13 = vld [vmem:[%s2051_s0 + $0x98] sm:$0xff]   ;;  %v1498_v15 = vld [vmem:[%s2051_s0 + $0xa0] sm:$0xff]   ;;  %v1499_v16 = vld [vmem:[%s2051_s0 + $0x28] sm:$0xff]  }
  0x12   :  { %1413 = vmatprep.subr.bf16.mxu0 %v375_v5  ;;  %1481 = vmatprep.subr.bf16.mxu1 %v375_v5  ;;  %v1500_v17 = vld [vmem:[%s2051_s0 + $0xa8] sm:$0xff]   ;;  %v1501_v18 = vld [vmem:[%s2051_s0 + $0x30] sm:$0xff]   ;;  %v1503_v20 = vld [vmem:[%s2051_s0 + $0x38] sm:$0xff]  }
  0x13   :  { %1414 = vmatpush3.bf16.msra.mxu0 %v375_v5  ;;  %1483 = vmatpush3.bf16.msra.mxu1 %v375_v5  ;;  %v1502_v19 = vld [vmem:[%s2051_s0 + $0xb0] sm:$0xff]   ;;  %v1504_v21 = vld [vmem:[%s2051_s0 + $0xb8] sm:$0xff]   ;;  %v1505_v22 = vld [vmem:[%s2051_s0 + $0x40] sm:$0xff]  }
  0x14   :  { %1415 = vmatprep.subr.bf16.mxu0 %v1488_v4  ;;  %1482 = vmatprep.subr.bf16.mxu1 %v1488_v4  ;;  %v1506_v23 = vld [vmem:[%s2051_s0 + $0xc0] sm:$0xff]   ;;  %v1507_v24 = vld [vmem:[%s2051_s0 + $0x48] sm:$0xff]   ;;  %v1509_v26 = vld [vmem:[%s2051_s0 + $0x50] sm:$0xff]  }
  0x15   :  { %v1508_v25 = vld [vmem:[%s2051_s0 + $0xc8] sm:$0xff]   ;;  %v1510_v27 = vld [vmem:[%s2051_s0 + $0xd0] sm:$0xff]   ;;  %v1511_v28 = vld [vmem:[%s2051_s0 + $0x58] sm:$0xff]  }
  0x16   :  { %v1512_v29 = vld [vmem:[%s2051_s0 + $0xd8] sm:$0xff]   ;;  %v1513_v30 = vld [vmem:[%s2051_s0 + $0x60] sm:$0xff]   ;;  %v1515_v32 = vld [vmem:[%s2051_s0 + $0x68] sm:$0xff]  }
  0x17   :  { %1416 = vmatpush3.bf16.msra.mxu0 %v1488_v4  ;;  %1484 = vmatpush3.bf16.msra.mxu1 %v1488_v4  ;;  %v1514_v31 = vld [vmem:[%s2051_s0 + $0xe0] sm:$0xff]   ;;  %v1516_v33 = vld [vmem:[%s2051_s0 + $0xe8] sm:$0xff]   ;;  %v1517_v34 = vld [vmem:[%s2051_s0 + $0x70] sm:$0xff]  }
  0x18   :  { %v1518_v35 = vld [vmem:[%s2051_s0 + $0xf0] sm:$0xff]   ;;  %v1519_v36 = vld [vmem:[%s2051_s0 + $0x78] sm:$0xff]   ;;  %v1702_v38 = vld [vmem:[#allocation2] ss:$0 sm:$0xff] }
  0x19   :  { %v1520_v37 = vld [vmem:[%s2051_s0 + $0xf8] sm:$0xff]  }
  0x1a   :  { %1418 = vmatmul.mubr.msk.bf16.vlgmr.msra.gmra.mxu0 %vm273_vm2, %v1491_v8  ;;  %1450 = vmatmul.mubr.msk.bf16.vlgmr.msra.gmra.mxu1 %vm273_vm2, %v1492_v9 }
  0x1b   :  { %1421 = vmatprep.mubr.msk.bf16.mxu0 %vm273_vm2, %v1493_v10  ;;  %1453 = vmatprep.mubr.msk.bf16.mxu1 %vm273_vm2, %v1494_v11 }
  0x22   :  { %1422 = vmatmul.mubr.msk.bf16.gmra.mxu0 %vm273_vm2, %v1495_v12  ;;  %1454 = vmatmul.mubr.msk.bf16.gmra.mxu1 %vm273_vm2, %v1496_v13 }
  0x23   :  { %1425 = vmatprep.mubr.msk.bf16.mxu0 %vm273_vm2, %v1497_v14  ;;  %1457 = vmatprep.mubr.msk.bf16.mxu1 %vm273_vm2, %v1498_v15 }
  0x2a   :  { %1426 = vmatmul.mubr.msk.bf16.gmra.mxu0 %vm273_vm2, %v1499_v16  ;;  %1458 = vmatmul.mubr.msk.bf16.gmra.mxu1 %vm273_vm2, %v1500_v17 }
  0x2b   :  { %1429 = vmatprep.mubr.msk.bf16.mxu0 %vm273_vm2, %v1501_v18  ;;  %1461 = vmatprep.mubr.msk.bf16.mxu1 %vm273_vm2, %v1502_v19 }
  0x32   :  { %1430 = vmatmul.mubr.msk.bf16.gmra.mxu0 %vm273_vm2, %v1503_v20  ;;  %1462 = vmatmul.mubr.msk.bf16.gmra.mxu1 %vm273_vm2, %v1504_v21 }
  0x33   :  { %1433 = vmatprep.mubr.msk.bf16.mxu0 %vm273_vm2, %v1505_v22  ;;  %1465 = vmatprep.mubr.msk.bf16.mxu1 %vm273_vm2, %v1506_v23 }
  0x3a   :  { %1434 = vmatmul.mubr.msk.bf16.gmra.mxu0 %vm273_vm2, %v1507_v24  ;;  %1466 = vmatmul.mubr.msk.bf16.gmra.mxu1 %vm273_vm2, %v1508_v25 }
  0x3b   :  { %1437 = vmatprep.mubr.msk.bf16.mxu0 %vm273_vm2, %v1509_v26  ;;  %1469 = vmatprep.mubr.msk.bf16.mxu1 %vm273_vm2, %v1510_v27 }
  0x42   :  { %1438 = vmatmul.mubr.msk.bf16.gmra.mxu0 %vm273_vm2, %v1511_v28  ;;  %1470 = vmatmul.mubr.msk.bf16.gmra.mxu1 %vm273_vm2, %v1512_v29 }
  0x43   :  { %1441 = vmatprep.mubr.msk.bf16.mxu0 %vm273_vm2, %v1513_v30  ;;  %1473 = vmatprep.mubr.msk.bf16.mxu1 %vm273_vm2, %v1514_v31 }
  0x4a   :  { %1442 = vmatmul.mubr.msk.bf16.gmra.mxu0 %vm273_vm2, %v1515_v32  ;;  %1474 = vmatmul.mubr.msk.bf16.gmra.mxu1 %vm273_vm2, %v1516_v33 }
  0x4b   :  { %1445 = vmatprep.mubr.msk.bf16.mxu0 %vm273_vm2, %v1517_v34  ;;  %1477 = vmatprep.mubr.msk.bf16.mxu1 %vm273_vm2, %v1518_v35 }
  0x52   :  { %1446 = vmatmul.mubr.msk.bf16.gmra.mxu0 %vm273_vm2, %v1519_v36  ;;  %1478 = vmatmul.mubr.msk.bf16.gmra.mxu1 %vm273_vm2, %v1520_v37 }
  0xda   :  { %v1419_v39 = vpop.f32.mrf.mxu0  ;;  %v1451_v40 = vpop.f32.mrf.mxu1 }
  0xdb   :  { %v420_v41 = vadd.f32 %v1419_v39, %v1702_v38  ;;  %v548_v42 = vadd.f32 %v1451_v40, %v1702_v38 }
  0xdc   :  { %v411_v43 = vpop.f32.mrf.mxu0  ;;  %v539_v44 = vpop.f32.mrf.mxu1 }
  0xdd   :  { %vm668_vm3 = vcmp.ge.f32.partialorder %v420_v41, 0.0  ;;  %v732_v45 = vmul.f32 0.2, %v420_v41  ;;  %vm700_vm4 = vcmp.ge.f32.partialorder %v548_v42, 0.0  ;;  %v764_v46 = vmul.f32 0.2, %v548_v42 }
  0xde   :  { %v412_v47 = vadd.f32 %v1702_v38, %v411_v43  ;;  %v540_v48 = vadd.f32 %v1702_v38, %v539_v44  ;;  %v1420_v49 = vpop.f32.mrf.mxu0  ;;  %v1452_v50 = vpop.f32.mrf.mxu1 }
  0xdf   :  { %v796_v51 = vsel %vm668_vm3, %v420_v41, %v732_v45  ;;  %v828_v52 = vsel %vm700_vm4, %v548_v42, %v764_v46  ;;  %v423_v53 = vadd.f32 %v1420_v49, %v1702_v38  ;;  %v551_v54 = vadd.f32 %v1452_v50, %v1702_v38 }
  0xe0   :  { %v1317_v55 = vpack.c.bf16 %v796_v51, %v796_v51  ;;  %v1349_v56 = vpack.c.bf16 %v828_v52, %v828_v52  ;;  %vm666_vm6 = vcmp.ge.f32.partialorder %v412_v47, 0.0  ;;  %v730_v57 = vmul.f32 0.2, %v412_v47  ;;  %v414_v58 = vpop.f32.mrf.mxu0  ;;  %v542_v59 = vpop.f32.mrf.mxu1 }
  0xe1   :  { %vm698_vm7 = vcmp.ge.f32.partialorder %v540_v48, 0.0  ;;  %v762_v60 = vmul.f32 0.2, %v540_v48  ;;  %vm669_vm8 = vcmp.ge.f32.partialorder %v423_v53, 0.0  ;;  %v733_v61 = vmul.f32 0.2, %v423_v53 }
  0xe2   :  { %1117 = vst.msk [vmem:[%s2054_s3 + $0x8] sm:$0xf] %vm1114_vm5, %v1317_v55  ;;  %1149 = vst.msk [vmem:[%s2054_s3 + $0x88] sm:$0xf] %vm1114_vm5, %v1349_v56  ;;  %v794_v62 = vsel %vm666_vm6, %v412_v47, %v730_v57  ;;  %vm701_vm9 = vcmp.ge.f32.partialorder %v551_v54, 0.0  ;;  %v415_v0 = vadd.f32 %v1702_v38, %v414_v58  ;;  %v1423_v1 = vpop.f32.mrf.mxu0  ;;  %v1455_v2 = vpop.f32.mrf.mxu1  ;;  %v543_v6 = vadd.f32 %v1702_v38, %v542_v59 }
  0xe3   :  { %v765_v63 = vmul.f32 0.2, %v551_v54  ;;  %v1315_v3 = vpack.c.bf16 %v794_v62, %v794_v62  ;;  %v826_v4 = vsel %vm698_vm7, %v540_v48, %v762_v60  ;;  %v797_v5 = vsel %vm669_vm8, %v423_v53, %v733_v61 }
  0xe4   :  { %v1347_v7 = vpack.c.bf16 %v826_v4, %v826_v4  ;;  %v1318_v8 = vpack.c.bf16 %v797_v5, %v797_v5  ;;  %vm667_vm10 = vcmp.ge.f32.partialorder %v415_v0, 0.0  ;;  %v427_v10 = vpop.f32.mrf.mxu0  ;;  %v555_v11 = vpop.f32.mrf.mxu1  ;;  %v731_v13 = vmul.f32 0.2, %v415_v0 }
  0xe5   :  { %v829_v9 = vsel %vm701_vm9, %v551_v54, %v765_v63  ;;  %1115 = vst.msk [vmem:[%s2054_s3] sm:$0xf] %vm1114_vm5, %v1315_v3  ;;  %vm699_vm11 = vcmp.ge.f32.partialorder %v543_v6, 0.0  ;;  %v763_v14 = vmul.f32 0.2, %v543_v6  ;;  %v436_v15 = vadd.f32 %v1423_v1, %v1702_v38 }
  0xe6   :  { %v1350_v12 = vpack.c.bf16 %v829_v9, %v829_v9  ;;  %1147 = vst.msk [vmem:[%s2054_s3 + $0x80] sm:$0xf] %vm1114_vm5, %v1347_v7  ;;  %1118 = vst.msk [vmem:[%s2054_s3 + $0xc] sm:$0xf] %vm1114_vm5, %v1318_v8  ;;  %v564_v16 = vadd.f32 %v1455_v2, %v1702_v38  ;;  %v428_v17 = vadd.f32 %v1702_v38, %v427_v10  ;;  %v1424_v19 = vpop.f32.mrf.mxu0  ;;  %v1456_v20 = vpop.f32.mrf.mxu1 }
  0xe7   :  { %v556_v18 = vadd.f32 %v1702_v38, %v555_v11  ;;  %v795_v21 = vsel %vm667_vm10, %v415_v0, %v731_v13  ;;  %v827_v22 = vsel %vm699_vm11, %v543_v6, %v763_v14  ;;  %v439_v23 = vadd.f32 %v1424_v19, %v1702_v38 }
  0xe8   :  { %1150 = vst.msk [vmem:[%s2054_s3 + $0x8c] sm:$0xf] %vm1114_vm5, %v1350_v12  ;;  %v567_v24 = vadd.f32 %v1456_v20, %v1702_v38  ;;  %v1316_v25 = vpack.c.bf16 %v795_v21, %v795_v21  ;;  %v1348_v26 = vpack.c.bf16 %v827_v22, %v827_v22  ;;  %vm672_vm12 = vcmp.ge.f32.partialorder %v436_v15, 0.0  ;;  %v430_v28 = vpop.f32.mrf.mxu0  ;;  %v558_v29 = vpop.f32.mrf.mxu1 }
  0xe9   :  { %v736_v27 = vmul.f32 0.2, %v436_v15  ;;  %vm704_vm13 = vcmp.ge.f32.partialorder %v564_v16, 0.0  ;;  %v768_v30 = vmul.f32 0.2, %v564_v16  ;;  %vm670_vm14 = vcmp.ge.f32.partialorder %v428_v17, 0.0 }
  0xea   :  { %v734_v31 = vmul.f32 0.2, %v428_v17  ;;  %1116 = vst.msk [vmem:[%s2054_s3 + $0x4] sm:$0xf] %vm1114_vm5, %v1316_v25  ;;  %1148 = vst.msk [vmem:[%s2054_s3 + $0x84] sm:$0xf] %vm1114_vm5, %v1348_v26  ;;  %v1427_v34 = vpop.f32.mrf.mxu0  ;;  %v1459_v35 = vpop.f32.mrf.mxu1  ;;  %v431_v49 = vadd.f32 %v1702_v38, %v430_v28  ;;  %v559_v51 = vadd.f32 %v1702_v38, %v558_v29 }
  0xeb   :  { %v800_v32 = vsel %vm672_vm12, %v436_v15, %v736_v27  ;;  %vm702_vm15 = vcmp.ge.f32.partialorder %v556_v18, 0.0  ;;  %v766_v33 = vmul.f32 0.2, %v556_v18  ;;  %vm673_vm0 = vcmp.ge.f32.partialorder %v439_v23, 0.0 }
  0xec   :  { %v1321_v36 = vpack.c.bf16 %v800_v32, %v800_v32  ;;  %v832_v37 = vsel %vm704_vm13, %v564_v16, %v768_v30  ;;  %v798_v39 = vsel %vm670_vm14, %v428_v17, %v734_v31  ;;  %v737_v40 = vmul.f32 0.2, %v439_v23  ;;  %v443_v44 = vpop.f32.mrf.mxu0  ;;  %v571_v45 = vpop.f32.mrf.mxu1 }
  0xed   :  { %v1353_v41 = vpack.c.bf16 %v832_v37, %v832_v37  ;;  %v1319_v42 = vpack.c.bf16 %v798_v39, %v798_v39  ;;  %v830_v43 = vsel %vm702_vm15, %v556_v18, %v766_v33  ;;  %vm705_vm1 = vcmp.ge.f32.partialorder %v567_v24, 0.0 }
  0xee   :  { %1121 = vst.msk [vmem:[%s2054_s3 + $0x18] sm:$0xf] %vm1114_vm5, %v1321_v36  ;;  %v1351_v46 = vpack.c.bf16 %v830_v43, %v830_v43  ;;  %v801_v47 = vsel %vm673_vm0, %v439_v23, %v737_v40  ;;  %v769_v48 = vmul.f32 0.2, %v567_v24  ;;  %v452_v52 = vadd.f32 %v1427_v34, %v1702_v38  ;;  %v1428_v54 = vpop.f32.mrf.mxu0  ;;  %v1460_v55 = vpop.f32.mrf.mxu1 }
  0xef   :  { %1153 = vst.msk [vmem:[%s2054_s3 + $0x98] sm:$0xf] %vm1114_vm5, %v1353_v41  ;;  %1119 = vst.msk [vmem:[%s2054_s3 + $0x10] sm:$0xf] %vm1114_vm5, %v1319_v42  ;;  %v1322_v50 = vpack.c.bf16 %v801_v47, %v801_v47  ;;  %v580_v53 = vadd.f32 %v1459_v35, %v1702_v38  ;;  %vm671_vm2 = vcmp.ge.f32.partialorder %v431_v49, 0.0  ;;  %v444_v58 = vadd.f32 %v1702_v38, %v443_v44 }
  0xf0   :  { %1151 = vst.msk [vmem:[%s2054_s3 + $0x90] sm:$0xf] %vm1114_vm5, %v1351_v46  ;;  %v833_v56 = vsel %vm705_vm1, %v567_v24, %v769_v48  ;;  %v735_v57 = vmul.f32 0.2, %v431_v49  ;;  %vm703_vm3 = vcmp.ge.f32.partialorder %v559_v51, 0.0  ;;  %vm676_vm4 = vcmp.ge.f32.partialorder %v452_v52, 0.0  ;;  %v446_v61 = vpop.f32.mrf.mxu0  ;;  %v574_v62 = vpop.f32.mrf.mxu1 }
  0xf1   :  { %1122 = vst.msk [vmem:[%s2054_s3 + $0x1c] sm:$0xf] %vm1114_vm5, %v1322_v50  ;;  %v1354_v59 = vpack.c.bf16 %v833_v56, %v833_v56  ;;  %v767_v60 = vmul.f32 0.2, %v559_v51  ;;  %v740_v0 = vmul.f32 0.2, %v452_v52  ;;  %v572_v10 = vadd.f32 %v1702_v38, %v571_v45 }
  0xf2   :  { %v799_v63 = vsel %vm671_vm2, %v431_v49, %v735_v57  ;;  %vm708_vm6 = vcmp.ge.f32.partialorder %v580_v53, 0.0  ;;  %v772_v1 = vmul.f32 0.2, %v580_v53  ;;  %vm674_vm7 = vcmp.ge.f32.partialorder %v444_v58, 0.0  ;;  %v1431_v5 = vpop.f32.mrf.mxu0  ;;  %v1463_v6 = vpop.f32.mrf.mxu1 }
  0xf3   :  { %1154 = vst.msk [vmem:[%s2054_s3 + $0x9c] sm:$0xf] %vm1114_vm5, %v1354_v59  ;;  %v1320_v2 = vpack.c.bf16 %v799_v63, %v799_v63  ;;  %v831_v3 = vsel %vm703_vm3, %v559_v51, %v767_v60  ;;  %v738_v4 = vmul.f32 0.2, %v444_v58  ;;  %v804_v8 = vsel %vm676_vm4, %v452_v52, %v740_v0 }
  0xf4   :  { %v1352_v7 = vpack.c.bf16 %v831_v3, %v831_v3  ;;  %v836_v9 = vsel %vm708_vm6, %v580_v53, %v772_v1  ;;  %v1325_v11 = vpack.c.bf16 %v804_v8, %v804_v8  ;;  %v455_v14 = vadd.f32 %v1428_v54, %v1702_v38  ;;  %v459_v15 = vpop.f32.mrf.mxu0  ;;  %v587_v16 = vpop.f32.mrf.mxu1 }
  0xf5   :  { %1120 = vst.msk [vmem:[%s2054_s3 + $0x14] sm:$0xf] %vm1114_vm5, %v1320_v2  ;;  %v1357_v12 = vpack.c.bf16 %v836_v9, %v836_v9  ;;  %v802_v13 = vsel %vm674_vm7, %v444_v58, %v738_v4  ;;  %vm706_vm8 = vcmp.ge.f32.partialorder %v572_v10, 0.0  ;;  %v770_v18 = vmul.f32 0.2, %v572_v10 }
  0xf6   :  { %1152 = vst.msk [vmem:[%s2054_s3 + $0x94] sm:$0xf] %vm1114_vm5, %v1352_v7  ;;  %v1323_v17 = vpack.c.bf16 %v802_v13, %v802_v13  ;;  %v583_v19 = vadd.f32 %v1460_v55, %v1702_v38  ;;  %1125 = vst.msk [vmem:[%s2054_s3 + $0x28] sm:$0xf] %vm1114_vm5, %v1325_v11  ;;  %vm677_vm9 = vcmp.ge.f32.partialorder %v455_v14, 0.0  ;;  %v447_v21 = vadd.f32 %v1702_v38, %v446_v61  ;;  %v1432_v23 = vpop.f32.mrf.mxu0  ;;  %v1464_v24 = vpop.f32.mrf.mxu1 }
  0xf7   :  { %1157 = vst.msk [vmem:[%s2054_s3 + $0xa8] sm:$0xf] %vm1114_vm5, %v1357_v12  ;;  %v741_v20 = vmul.f32 0.2, %v455_v14  ;;  %v575_v22 = vadd.f32 %v1702_v38, %v574_v62  ;;  %v834_v25 = vsel %vm706_vm8, %v572_v10, %v770_v18  ;;  %v468_v27 = vadd.f32 %v1431_v5, %v1702_v38 }
  0xf8   :  { %1123 = vst.msk [vmem:[%s2054_s3 + $0x20] sm:$0xf] %vm1114_vm5, %v1323_v17  ;;  %vm709_vm10 = vcmp.ge.f32.partialorder %v583_v19, 0.0  ;;  %v773_v26 = vmul.f32 0.2, %v583_v19  ;;  %v1355_v28 = vpack.c.bf16 %v834_v25, %v834_v25  ;;  %vm675_vm11 = vcmp.ge.f32.partialorder %v447_v21, 0.0  ;;  %v462_v31 = vpop.f32.mrf.mxu0  ;;  %v590_v32 = vpop.f32.mrf.mxu1 }
  0xf9   :  { %v805_v29 = vsel %vm677_vm9, %v455_v14, %v741_v20  ;;  %v739_v30 = vmul.f32 0.2, %v447_v21  ;;  %vm707_vm12 = vcmp.ge.f32.partialorder %v575_v22, 0.0  ;;  %v771_v35 = vmul.f32 0.2, %v575_v22 }
  0xfa   :  { %v1326_v33 = vpack.c.bf16 %v805_v29, %v805_v29  ;;  %v837_v34 = vsel %vm709_vm10, %v583_v19, %v773_v26  ;;  %1155 = vst.msk [vmem:[%s2054_s3 + $0xa0] sm:$0xf] %vm1114_vm5, %v1355_v28  ;;  %vm680_vm13 = vcmp.ge.f32.partialorder %v468_v27, 0.0  ;;  %v744_v39 = vmul.f32 0.2, %v468_v27  ;;  %v1435_v40 = vpop.f32.mrf.mxu0  ;;  %v1467_v41 = vpop.f32.mrf.mxu1 }
  0xfb   :  { %v1358_v36 = vpack.c.bf16 %v837_v34, %v837_v34  ;;  %v803_v37 = vsel %vm675_vm11, %v447_v21, %v739_v30  ;;  %v835_v43 = vsel %vm707_vm12, %v575_v22, %v771_v35  ;;  %v596_v44 = vadd.f32 %v1463_v6, %v1702_v38 }
  0xfc   :  { %1126 = vst.msk [vmem:[%s2054_s3 + $0x2c] sm:$0xf] %vm1114_vm5, %v1326_v33  ;;  %v1324_v42 = vpack.c.bf16 %v803_v37, %v803_v37  ;;  %v460_v45 = vadd.f32 %v1702_v38, %v459_v15  ;;  %v1356_v46 = vpack.c.bf16 %v835_v43, %v835_v43  ;;  %v808_v47 = vsel %vm680_vm13, %v468_v27, %v744_v39  ;;  %v475_v50 = vpop.f32.mrf.mxu0  ;;  %v603_v51 = vpop.f32.mrf.mxu1 }
  0xfd   :  { %1158 = vst.msk [vmem:[%s2054_s3 + $0xac] sm:$0xf] %vm1114_vm5, %v1358_v36  ;;  %v588_v48 = vadd.f32 %v1702_v38, %v587_v16  ;;  %v471_v49 = vadd.f32 %v1432_v23, %v1702_v38  ;;  %v1329_v52 = vpack.c.bf16 %v808_v47, %v808_v47  ;;  %vm712_vm14 = vcmp.ge.f32.partialorder %v596_v44, 0.0 }
  0xfe   :  { %1124 = vst.msk [vmem:[%s2054_s3 + $0x24] sm:$0xf] %vm1114_vm5, %v1324_v42  ;;  %v776_v53 = vmul.f32 0.2, %v596_v44  ;;  %vm678_vm15 = vcmp.ge.f32.partialorder %v460_v45, 0.0  ;;  %v1436_v56 = vpop.f32.mrf.mxu0  ;;  %v1468_v57 = vpop.f32.mrf.mxu1  ;;  %v599_v60 = vadd.f32 %v1464_v24, %v1702_v38  ;;  %v463_v61 = vadd.f32 %v1702_v38, %v462_v31 }
  0xff   :  { %1156 = vst.msk [vmem:[%s2054_s3 + $0xa4] sm:$0xf] %vm1114_vm5, %v1356_v46  ;;  %v742_v54 = vmul.f32 0.2, %v460_v45  ;;  %vm710_vm0 = vcmp.ge.f32.partialorder %v588_v48, 0.0  ;;  %vm681_vm1 = vcmp.ge.f32.partialorder %v471_v49, 0.0  ;;  %v591_v1 = vadd.f32 %v1702_v38, %v590_v32 }
 0x100   :  { %v774_v55 = vmul.f32 0.2, %v588_v48  ;;  %1129 = vst.msk [vmem:[%s2054_s3 + $0x38] sm:$0xf] %vm1114_vm5, %v1329_v52  ;;  %v840_v58 = vsel %vm712_vm14, %v596_v44, %v776_v53  ;;  %v745_v59 = vmul.f32 0.2, %v471_v49  ;;  %v1838_v2 = vpop.f32.mrf.mxu0  ;;  %v1840_v3 = vpop.f32.mrf.mxu1  ;;  %v484_v13 = vadd.f32 %v1435_v40, %v1702_v38 }
 0x101   :  { %v1361_v62 = vpack.c.bf16 %v840_v58, %v840_v58  ;;  %v806_v63 = vsel %vm678_vm15, %v460_v45, %v742_v54  ;;  %vm713_vm2 = vcmp.ge.f32.partialorder %v599_v60, 0.0  ;;  %v777_v8 = vmul.f32 0.2, %v599_v60 }
 0x102   :  { %v838_v0 = vsel %vm710_vm0, %v588_v48, %v774_v55  ;;  %v1327_v4 = vpack.c.bf16 %v806_v63, %v806_v63  ;;  %v809_v6 = vsel %vm681_vm1, %v471_v49, %v745_v59  ;;  %vm679_vm3 = vcmp.ge.f32.partialorder %v463_v61, 0.0  ;;  %v1439_v10 = vpop.f32.mrf.mxu0  ;;  %v1471_v11 = vpop.f32.mrf.mxu1 }
 0x103   :  { %v1359_v5 = vpack.c.bf16 %v838_v0, %v838_v0  ;;  %1161 = vst.msk [vmem:[%s2054_s3 + $0xb8] sm:$0xf] %vm1114_vm5, %v1361_v62  ;;  %v1330_v7 = vpack.c.bf16 %v809_v6, %v809_v6  ;;  %v743_v9 = vmul.f32 0.2, %v463_v61  ;;  %vm711_vm4 = vcmp.ge.f32.partialorder %v591_v1, 0.0 }
 0x104   :  { %1127 = vst.msk [vmem:[%s2054_s3 + $0x30] sm:$0xf] %vm1114_vm5, %v1327_v4  ;;  %v775_v12 = vmul.f32 0.2, %v591_v1  ;;  %v612_v14 = vadd.f32 %v1467_v41, %v1702_v38  ;;  %v841_v15 = vsel %vm713_vm2, %v599_v60, %v777_v8  ;;  %v476_v17 = vadd.f32 %v1702_v38, %v475_v50  ;;  %v491_v19 = vpop.f32.mrf.mxu0  ;;  %v1863_v20 = vpop.f32.mrf.mxu1 }
 0x105   :  { %1159 = vst.msk [vmem:[%s2054_s3 + $0xb0] sm:$0xf] %vm1114_vm5, %v1359_v5  ;;  %1130 = vst.msk [vmem:[%s2054_s3 + $0x3c] sm:$0xf] %vm1114_vm5, %v1330_v7  ;;  %v807_v16 = vsel %vm679_vm3, %v463_v61, %v743_v9  ;;  %v604_v18 = vadd.f32 %v1702_v38, %v603_v51  ;;  %v1362_v21 = vpack.c.bf16 %v841_v15, %v841_v15  ;;  %vm684_vm6 = vcmp.ge.f32.partialorder %v484_v13, 0.0 }
 0x106   :  { %v1328_v22 = vpack.c.bf16 %v807_v16, %v807_v16  ;;  %v839_v23 = vsel %vm711_vm4, %v591_v1, %v775_v12  ;;  %v748_v25 = vmul.f32 0.2, %v484_v13  ;;  %vm716_vm7 = vcmp.ge.f32.partialorder %v612_v14, 0.0  ;;  %v1865_v27 = vpop.f32.mrf.mxu0  ;;  %v1867_v28 = vpop.f32.mrf.mxu1 }
 0x107   :  { %v1360_v24 = vpack.c.bf16 %v839_v23, %v839_v23  ;;  %v780_v26 = vmul.f32 0.2, %v612_v14  ;;  %1162 = vst.msk [vmem:[%s2054_s3 + $0xbc] sm:$0xf] %vm1114_vm5, %v1362_v21  ;;  %vm682_vm8 = vcmp.ge.f32.partialorder %v476_v17, 0.0  ;;  %vm714_vm9 = vcmp.ge.f32.partialorder %v604_v18, 0.0 }
 0x108   :  { %1128 = vst.msk [vmem:[%s2054_s3 + $0x34] sm:$0xf] %vm1114_vm5, %v1328_v22  ;;  %v746_v29 = vmul.f32 0.2, %v476_v17  ;;  %v778_v30 = vmul.f32 0.2, %v604_v18  ;;  %v812_v31 = vsel %vm684_vm6, %v484_v13, %v748_v25  ;;  %v487_v33 = vadd.f32 %v1436_v56, %v1702_v38  ;;  %v1883_v35 = vpop.f32.mrf.mxu0  ;;  %v1885_v36 = vpop.f32.mrf.mxu1 }
 0x109   :  { %1160 = vst.msk [vmem:[%s2054_s3 + $0xb4] sm:$0xf] %vm1114_vm5, %v1360_v24  ;;  %v844_v32 = vsel %vm716_vm7, %v612_v14, %v780_v26  ;;  %v615_v34 = vadd.f32 %v1468_v57, %v1702_v38  ;;  %v1333_v37 = vpack.c.bf16 %v812_v31, %v812_v31  ;;  %v479_v48 = vadd.f32 %v1702_v38, %v1838_v2 }
 0x10a   :  { %v1365_v39 = vpack.c.bf16 %v844_v32, %v844_v32  ;;  %v810_v40 = vsel %vm682_vm8, %v476_v17, %v746_v29  ;;  %v842_v41 = vsel %vm714_vm9, %v604_v18, %v778_v30  ;;  %vm685_vm10 = vcmp.ge.f32.partialorder %v487_v33, 0.0  ;;  %v1443_v45 = vpop.f32.mrf.mxu0  ;;  %v1887_v46 = vpop.f32.mrf.mxu1 }
 0x10b   :  { %v1331_v42 = vpack.c.bf16 %v810_v40, %v810_v40  ;;  %v1363_v43 = vpack.c.bf16 %v842_v41, %v842_v41  ;;  %v749_v44 = vmul.f32 0.2, %v487_v33  ;;  %1133 = vst.msk [vmem:[%s2054_s3 + $0x48] sm:$0xf] %vm1114_vm5, %v1333_v37  ;;  %vm717_vm11 = vcmp.ge.f32.partialorder %v615_v34, 0.0 }
 0x10c   :  { %1165 = vst.msk [vmem:[%s2054_s3 + $0xc8] sm:$0xf] %vm1114_vm5, %v1365_v39  ;;  %v781_v47 = vmul.f32 0.2, %v615_v34  ;;  %v607_v49 = vadd.f32 %v1702_v38, %v1840_v3  ;;  %v500_v51 = vadd.f32 %v1439_v10, %v1702_v38  ;;  %v628_v52 = vadd.f32 %v1471_v11, %v1702_v38  ;;  %v507_v59 = vpop.f32.mrf.mxu0  ;;  %v635_v60 = vpop.f32.mrf.mxu1 }
 0x10d   :  { %1131 = vst.msk [vmem:[%s2054_s3 + $0x40] sm:$0xf] %vm1114_vm5, %v1331_v42  ;;  %1163 = vst.msk [vmem:[%s2054_s3 + $0xc0] sm:$0xf] %vm1114_vm5, %v1363_v43  ;;  %v813_v50 = vsel %vm685_vm10, %v487_v33, %v749_v44  ;;  %v492_v53 = vadd.f32 %v1702_v38, %v491_v19  ;;  %vm683_vm12 = vcmp.ge.f32.partialorder %v479_v48, 0.0  ;;  %v620_v6 = vadd.f32 %v1702_v38, %v1863_v20 }
 0x10e   :  { %v1334_v54 = vpack.c.bf16 %v813_v50, %v813_v50  ;;  %v845_v55 = vsel %vm717_vm11, %v615_v34, %v781_v47  ;;  %v747_v56 = vmul.f32 0.2, %v479_v48  ;;  %vm715_vm13 = vcmp.ge.f32.partialorder %v607_v49, 0.0  ;;  %v1444_v11 = vpop.f32.mrf.mxu0  ;;  %v1476_v12 = vpop.f32.mrf.mxu1 }
 0x10f   :  { %v1366_v57 = vpack.c.bf16 %v845_v55, %v845_v55  ;;  %v779_v58 = vmul.f32 0.2, %v607_v49  ;;  %vm688_vm14 = vcmp.ge.f32.partialorder %v500_v51, 0.0  ;;  %v752_v62 = vmul.f32 0.2, %v500_v51 }
 0x110   :  { %1134 = vst.msk [vmem:[%s2054_s3 + $0x4c] sm:$0xf] %vm1114_vm5, %v1334_v54  ;;  %v811_v61 = vsel %vm683_vm12, %v479_v48, %v747_v56  ;;  %vm720_vm15 = vcmp.ge.f32.partialorder %v628_v52, 0.0  ;;  %v784_v63 = vmul.f32 0.2, %v628_v52  ;;  %vm686_vm0 = vcmp.ge.f32.partialorder %v492_v53, 0.0  ;;  %v510_v25 = vpop.f32.mrf.mxu0  ;;  %v638_v26 = vpop.f32.mrf.mxu1 }
 0x111   :  { %1166 = vst.msk [vmem:[%s2054_s3 + $0xcc] sm:$0xf] %vm1114_vm5, %v1366_v57  ;;  %v1332_v0 = vpack.c.bf16 %v811_v61, %v811_v61  ;;  %v843_v1 = vsel %vm715_vm13, %v607_v49, %v779_v58  ;;  %v750_v2 = vmul.f32 0.2, %v492_v53  ;;  %v816_v4 = vsel %vm688_vm14, %v500_v51, %v752_v62 }
 0x112   :  { %v1364_v3 = vpack.c.bf16 %v843_v1, %v843_v1  ;;  %v848_v5 = vsel %vm720_vm15, %v628_v52, %v784_v63  ;;  %v1337_v7 = vpack.c.bf16 %v816_v4, %v816_v4  ;;  %v503_v10 = vadd.f32 %v1865_v27, %v1702_v38  ;;  %v1447_v42 = vpop.f32.mrf.mxu0  ;;  %v1479_v43 = vpop.f32.mrf.mxu1 }
 0x113   :  { %1132 = vst.msk [vmem:[%s2054_s3 + $0x44] sm:$0xf] %vm1114_vm5, %v1332_v0  ;;  %v1369_v8 = vpack.c.bf16 %v848_v5, %v848_v5  ;;  %v814_v9 = vsel %vm686_vm0, %v492_v53, %v750_v2  ;;  %vm718_vm1 = vcmp.ge.f32.partialorder %v620_v6, 0.0  ;;  %v782_v14 = vmul.f32 0.2, %v620_v6 }
 0x114   :  { %1164 = vst.msk [vmem:[%s2054_s3 + $0xc4] sm:$0xf] %vm1114_vm5, %v1364_v3  ;;  %v1335_v13 = vpack.c.bf16 %v814_v9, %v814_v9  ;;  %v631_v15 = vadd.f32 %v1867_v28, %v1702_v38  ;;  %1137 = vst.msk [vmem:[%s2054_s3 + $0x58] sm:$0xf] %vm1114_vm5, %v1337_v7  ;;  %vm689_vm2 = vcmp.ge.f32.partialorder %v503_v10, 0.0  ;;  %v495_v17 = vadd.f32 %v1702_v38, %v1883_v35  ;;  %v523_v56 = vpop.f32.mrf.mxu0  ;;  %v651_v57 = vpop.f32.mrf.mxu1 }
 0x115   :  { %1169 = vst.msk [vmem:[%s2054_s3 + $0xd8] sm:$0xf] %vm1114_vm5, %v1369_v8  ;;  %v753_v16 = vmul.f32 0.2, %v503_v10  ;;  %v623_v18 = vadd.f32 %v1702_v38, %v1885_v36  ;;  %v846_v19 = vsel %vm718_vm1, %v620_v6, %v782_v14  ;;  %v516_v21 = vadd.f32 %v1443_v45, %v1702_v38 }
 0x116   :  { %1135 = vst.msk [vmem:[%s2054_s3 + $0x50] sm:$0xf] %vm1114_vm5, %v1335_v13  ;;  %vm721_vm3 = vcmp.ge.f32.partialorder %v631_v15, 0.0  ;;  %v785_v20 = vmul.f32 0.2, %v631_v15  ;;  %v1367_v22 = vpack.c.bf16 %v846_v19, %v846_v19  ;;  %vm687_vm4 = vcmp.ge.f32.partialorder %v495_v17, 0.0  ;;  %v1448_v7 = vpop.f32.mrf.mxu0  ;;  %v1480_v8 = vpop.f32.mrf.mxu1 }
 0x117   :  { %v817_v23 = vsel %vm689_vm2, %v503_v10, %v753_v16  ;;  %v751_v24 = vmul.f32 0.2, %v495_v17  ;;  %vm719_vm6 = vcmp.ge.f32.partialorder %v623_v18, 0.0  ;;  %v783_v29 = vmul.f32 0.2, %v623_v18 }
 0x118   :  { %v1338_v27 = vpack.c.bf16 %v817_v23, %v817_v23  ;;  %v849_v28 = vsel %vm721_vm3, %v631_v15, %v785_v20  ;;  %1167 = vst.msk [vmem:[%s2054_s3 + $0xd0] sm:$0xf] %vm1114_vm5, %v1367_v22  ;;  %vm692_vm7 = vcmp.ge.f32.partialorder %v516_v21, 0.0  ;;  %v756_v32 = vmul.f32 0.2, %v516_v21  ;;  %v654_v22 = vpop.f32.mrf.mxu1 }
 0x119   :  { %v1370_v30 = vpack.c.bf16 %v849_v28, %v849_v28  ;;  %v815_v31 = vsel %vm687_vm4, %v495_v17, %v751_v24  ;;  %v847_v34 = vsel %vm719_vm6, %v623_v18, %v783_v29  ;;  %v644_v35 = vadd.f32 %v1887_v46, %v1702_v38 }
 0x11a   :  { %1138 = vst.msk [vmem:[%s2054_s3 + $0x5c] sm:$0xf] %vm1114_vm5, %v1338_v27  ;;  %v1336_v33 = vpack.c.bf16 %v815_v31, %v815_v31  ;;  %v508_v36 = vadd.f32 %v1702_v38, %v507_v59  ;;  %v1368_v37 = vpack.c.bf16 %v847_v34, %v847_v34  ;;  %v820_v39 = vsel %vm692_vm7, %v516_v21, %v756_v32  ;;  %v526_v21 = vpop.f32.mrf.mxu0 }
 0x11b   :  { %1170 = vst.msk [vmem:[%s2054_s3 + $0xdc] sm:$0xf] %vm1114_vm5, %v1370_v30  ;;  %v636_v40 = vadd.f32 %v1702_v38, %v635_v60  ;;  %v519_v41 = vadd.f32 %v1444_v11, %v1702_v38  ;;  %v1341_v44 = vpack.c.bf16 %v820_v39, %v820_v39  ;;  %vm724_vm8 = vcmp.ge.f32.partialorder %v644_v35, 0.0 }
 0x11c   :  { %1136 = vst.msk [vmem:[%s2054_s3 + $0x54] sm:$0xf] %vm1114_vm5, %v1336_v33  ;;  %v788_v45 = vmul.f32 0.2, %v644_v35  ;;  %vm690_vm9 = vcmp.ge.f32.partialorder %v508_v36, 0.0  ;;  %v647_v50 = vadd.f32 %v1476_v12, %v1702_v38  ;;  %v511_v51 = vadd.f32 %v1702_v38, %v510_v25 }
 0x11d   :  { %1168 = vst.msk [vmem:[%s2054_s3 + $0xd4] sm:$0xf] %vm1114_vm5, %v1368_v37  ;;  %v754_v46 = vmul.f32 0.2, %v508_v36  ;;  %vm722_vm10 = vcmp.ge.f32.partialorder %v636_v40, 0.0  ;;  %vm693_vm11 = vcmp.ge.f32.partialorder %v519_v41, 0.0  ;;  %v639_v55 = vadd.f32 %v1702_v38, %v638_v26 }
 0x11e   :  { %v786_v47 = vmul.f32 0.2, %v636_v40  ;;  %1141 = vst.msk [vmem:[%s2054_s3 + $0x68] sm:$0xf] %vm1114_vm5, %v1341_v44  ;;  %v852_v48 = vsel %vm724_vm8, %v644_v35, %v788_v45  ;;  %v757_v49 = vmul.f32 0.2, %v519_v41  ;;  %v532_v1 = vadd.f32 %v1447_v42, %v1702_v38 }
 0x11f   :  { %v1373_v52 = vpack.c.bf16 %v852_v48, %v852_v48  ;;  %v818_v53 = vsel %vm690_vm9, %v508_v36, %v754_v46  ;;  %vm725_vm12 = vcmp.ge.f32.partialorder %v647_v50, 0.0  ;;  %v789_v62 = vmul.f32 0.2, %v647_v50 }
 0x120   :  { %v850_v54 = vsel %vm722_vm10, %v636_v40, %v786_v47  ;;  %v1339_v58 = vpack.c.bf16 %v818_v53, %v818_v53  ;;  %v821_v60 = vsel %vm693_vm11, %v519_v41, %v757_v49  ;;  %vm691_vm13 = vcmp.ge.f32.partialorder %v511_v51, 0.0 }
 0x121   :  { %v1371_v59 = vpack.c.bf16 %v850_v54, %v850_v54  ;;  %1173 = vst.msk [vmem:[%s2054_s3 + $0xe8] sm:$0xf] %vm1114_vm5, %v1373_v52  ;;  %v1342_v61 = vpack.c.bf16 %v821_v60, %v821_v60  ;;  %v755_v63 = vmul.f32 0.2, %v511_v51  ;;  %vm723_vm14 = vcmp.ge.f32.partialorder %v639_v55, 0.0 }
 0x122   :  { %1139 = vst.msk [vmem:[%s2054_s3 + $0x60] sm:$0xf] %vm1114_vm5, %v1339_v58  ;;  %v787_v0 = vmul.f32 0.2, %v639_v55  ;;  %v660_v2 = vadd.f32 %v1479_v43, %v1702_v38  ;;  %v853_v3 = vsel %vm725_vm12, %v647_v50, %v789_v62  ;;  %v524_v5 = vadd.f32 %v1702_v38, %v523_v56 }
 0x123   :  { %1171 = vst.msk [vmem:[%s2054_s3 + $0xe0] sm:$0xf] %vm1114_vm5, %v1371_v59  ;;  %1142 = vst.msk [vmem:[%s2054_s3 + $0x6c] sm:$0xf] %vm1114_vm5, %v1342_v61  ;;  %v819_v4 = vsel %vm691_vm13, %v511_v51, %v755_v63  ;;  %v652_v6 = vadd.f32 %v1702_v38, %v651_v57  ;;  %v1374_v9 = vpack.c.bf16 %v853_v3, %v853_v3  ;;  %vm696_vm15 = vcmp.ge.f32.partialorder %v532_v1, 0.0 }
 0x124   :  { %v1340_v10 = vpack.c.bf16 %v819_v4, %v819_v4  ;;  %v851_v11 = vsel %vm723_vm14, %v639_v55, %v787_v0  ;;  %v760_v13 = vmul.f32 0.2, %v532_v1  ;;  %vm728_vm0 = vcmp.ge.f32.partialorder %v660_v2, 0.0 }
 0x125   :  { %v1372_v12 = vpack.c.bf16 %v851_v11, %v851_v11  ;;  %v792_v14 = vmul.f32 0.2, %v660_v2  ;;  %1174 = vst.msk [vmem:[%s2054_s3 + $0xec] sm:$0xf] %vm1114_vm5, %v1374_v9  ;;  %vm694_vm1 = vcmp.ge.f32.partialorder %v524_v5, 0.0  ;;  %vm726_vm2 = vcmp.ge.f32.partialorder %v652_v6, 0.0 }
 0x126   :  { %1140 = vst.msk [vmem:[%s2054_s3 + $0x64] sm:$0xf] %vm1114_vm5, %v1340_v10  ;;  %v758_v15 = vmul.f32 0.2, %v524_v5  ;;  %v790_v16 = vmul.f32 0.2, %v652_v6  ;;  %v824_v17 = vsel %vm696_vm15, %v532_v1, %v760_v13  ;;  %v535_v19 = vadd.f32 %v1448_v7, %v1702_v38 }
 0x127   :  { %1172 = vst.msk [vmem:[%s2054_s3 + $0xe4] sm:$0xf] %vm1114_vm5, %v1372_v12  ;;  %v856_v18 = vsel %vm728_vm0, %v660_v2, %v792_v14  ;;  %v663_v20 = vadd.f32 %v1480_v8, %v1702_v38  ;;  %v1345_v23 = vpack.c.bf16 %v824_v17, %v824_v17  ;;  %v527_v31 = vadd.f32 %v1702_v38, %v526_v21 }
 0x128   :  { %v1377_v24 = vpack.c.bf16 %v856_v18, %v856_v18  ;;  %v822_v25 = vsel %vm694_vm1, %v524_v5, %v758_v15  ;;  %v854_v26 = vsel %vm726_vm2, %v652_v6, %v790_v16  ;;  %vm697_vm3 = vcmp.ge.f32.partialorder %v535_v19, 0.0 }
 0x129   :  { %v1343_v27 = vpack.c.bf16 %v822_v25, %v822_v25  ;;  %v1375_v28 = vpack.c.bf16 %v854_v26, %v854_v26  ;;  %v761_v29 = vmul.f32 0.2, %v535_v19  ;;  %1145 = vst.msk [vmem:[%s2054_s3 + $0x78] sm:$0xf] %vm1114_vm5, %v1345_v23  ;;  %vm729_vm4 = vcmp.ge.f32.partialorder %v663_v20, 0.0 }
 0x12a   :  { %1177 = vst.msk [vmem:[%s2054_s3 + $0xf8] sm:$0xf] %vm1114_vm5, %v1377_v24  ;;  %v793_v30 = vmul.f32 0.2, %v663_v20  ;;  %v655_v32 = vadd.f32 %v1702_v38, %v654_v22  ;;  %vm695_vm6 = vcmp.ge.f32.partialorder %v527_v31, 0.0 }
 0x12b   :  { %1143 = vst.msk [vmem:[%s2054_s3 + $0x70] sm:$0xf] %vm1114_vm5, %v1343_v27  ;;  %1175 = vst.msk [vmem:[%s2054_s3 + $0xf0] sm:$0xf] %vm1114_vm5, %v1375_v28  ;;  %v825_v33 = vsel %vm697_vm3, %v535_v19, %v761_v29  ;;  %v759_v36 = vmul.f32 0.2, %v527_v31 }
 0x12c   :  { %v1346_v34 = vpack.c.bf16 %v825_v33, %v825_v33  ;;  %v857_v35 = vsel %vm729_vm4, %v663_v20, %v793_v30  ;;  %vm727_vm7 = vcmp.ge.f32.partialorder %v655_v32, 0.0  ;;  %v791_v39 = vmul.f32 0.2, %v655_v32 }
 0x12d   :  { %v1378_v37 = vpack.c.bf16 %v857_v35, %v857_v35  ;;  %v823_v38 = vsel %vm695_vm6, %v527_v31, %v759_v36 }
 0x12e   :  { %1146 = vst.msk [vmem:[%s2054_s3 + $0x7c] sm:$0xf] %vm1114_vm5, %v1346_v34  ;;  %v1344_v40 = vpack.c.bf16 %v823_v38, %v823_v38  ;;  %v855_v41 = vsel %vm727_vm7, %v655_v32, %v791_v39 }
 0x12f   :  { %1178 = vst.msk [vmem:[%s2054_s3 + $0xfc] sm:$0xf] %vm1114_vm5, %v1378_v37  ;;  %v1376_v42 = vpack.c.bf16 %v855_v41, %v855_v41 }
 0x130   :  { %1144 = vst.msk [vmem:[%s2054_s3 + $0x74] sm:$0xf] %vm1114_vm5, %v1344_v40 }
 0x131   :  { %1176 = vst.msk [vmem:[%s2054_s3 + $0xf4] sm:$0xf] %vm1114_vm5, %v1376_v42 }
 0x132   :  { %1183 = vsyncpa [#allocation3], 1 }

// kernel: discriminator_forward.8
= control target key start
LH: loop header
LB: loop body
LE: loop exit
PB: predicated region body
PF: predicated region fallthrough
CT: control target
= control target key end

     0   :  { %v1707_v0 = vmov 0   ;;  %vm446_vm0 = vcmask 130048   ;;  %vm1280_vm3 = vcmask 257024   ;;  %s2304_s1 = inlined_call_operand.vmem [shape: bf16[144,32], index: 1, kind: input, shape index: {}]   ;;  %s2305_s0 = inlined_call_operand.vmem [shape: bf16[512,144], index: 0, kind: input, shape index: {}]   ;;  %s2306_s2 = inlined_call_operand.vmem [shape: f32[1,32], index: 2, kind: input, shape index: {}]   ;;  %s2307_s3 = inlined_call_operand.vmem [shape: bf16[512,32], index: 3, kind: output, shape index: {}]  }
   0x1   :  { %543 = vmatprep.subr.bf16.mxu0 %v1707_v0  ;;  %1583 = vmatprep.subr.bf16.mxu1 %v1707_v0  ;;  %v1602_v1 = vld [vmem:[%s2304_s1 + $0x38] sm:$0xff]   ;;  %v1603_v2 = vld [vmem:[%s2304_s1 + $0x30] sm:$0xff]   ;;  %v1604_v3 = vld [vmem:[%s2304_s1 + $0x28] sm:$0xff]  }
   0x2   :  { %544 = vmatpush1.bf16.msra.mxu0 %v1602_v1  ;;  %1592 = vmatpush1.bf16.msra.mxu1 %v1602_v1  ;;  %v1605_v4 = vld [vmem:[%s2304_s1 + $0x20] sm:$0xff]   ;;  %v1606_v7 = vld [vmem:[%s2304_s1 + $0x18] sm:$0xff]   ;;  %v1607_v8 = vld [vmem:[%s2304_s1 + $0x10] sm:$0xff]  }
   0x3   :  { %545 = vmatprep.subr.bf16.mxu0 %v1707_v0  ;;  %1584 = vmatprep.subr.bf16.mxu1 %v1707_v0  ;;  %v1613_v5 = vld [vmem:[%s2305_s0 + $0x4] ss:$8 sps:$4 sm:$0xff]   ;;  %v1611_v12 = vld [vmem:[%s2305_s0] ss:$8 sps:$4 sm:$0xff]   ;;  %v1617_v14 = vld [vmem:[%s2305_s0 + $0x14] ss:$8 sps:$4 sm:$0xff]  }
   0x4   :  { %v1616_v6 = vld [vmem:[%s2305_s0 + $0x104] ss:$8 sps:$4 sm:$0xff]   ;;  %1423 = vmatprep.mubr.msk.bf16.mxu0 %vm446_vm0, %v1613_v5  ;;  %v1614_v13 = vld [vmem:[%s2305_s0 + $0x100] ss:$8 sps:$4 sm:$0xff]   ;;  %v1619_v15 = vld [vmem:[%s2305_s0 + $0x114] ss:$8 sps:$4 sm:$0xff]  }
   0x5   :  { %1439 = vmatprep.mubr.msk.bf16.mxu1 %vm446_vm0, %v1616_v6  ;;  %v1608_v9 = vld [vmem:[%s2304_s1 + $0x8] sm:$0xff]   ;;  %v1609_v10 = vld [vmem:[%s2304_s1] sm:$0xff]   ;;  %v1621_v16 = vld [vmem:[%s2305_s0 + $0x10] ss:$8 sps:$4 sm:$0xff]  }
   0x6   :  { %546 = vmatpush1.bf16.msra.mxu0 %v1603_v2  ;;  %1593 = vmatpush1.bf16.msra.mxu1 %v1603_v2  ;;  %v1610_v11 = vld [vmem:[%s2304_s1 + $0x40] sm:$0xff]   ;;  %v1622_v17 = vld [vmem:[%s2305_s0 + $0x110] ss:$8 sps:$4 sm:$0xff]   ;;  %v1629_v22 = vld [vmem:[%s2305_s0 + $0x34] ss:$8 sps:$4 sm:$0xff]  }
   0x7   :  { %547 = vmatprep.subr.bf16.mxu0 %v1707_v0  ;;  %1585 = vmatprep.subr.bf16.mxu1 %v1707_v0  ;;  %v1623_v18 = vld [vmem:[%s2305_s0 + $0x24] ss:$8 sps:$4 sm:$0xff]   ;;  %v1627_v20 = vld [vmem:[%s2305_s0 + $0x20] ss:$8 sps:$4 sm:$0xff]   ;;  %v1631_v23 = vld [vmem:[%s2305_s0 + $0x134] ss:$8 sps:$4 sm:$0xff]  }
   0x8   :  { %v1625_v19 = vld [vmem:[%s2305_s0 + $0x124] ss:$8 sps:$4 sm:$0xff]   ;;  %v1628_v21 = vld [vmem:[%s2305_s0 + $0x120] ss:$8 sps:$4 sm:$0xff]   ;;  %v1633_v24 = vld [vmem:[%s2305_s0 + $0x30] ss:$8 sps:$4 sm:$0xff]  }
   0x9   :  { %v1634_v25 = vld [vmem:[%s2305_s0 + $0x130] ss:$8 sps:$4 sm:$0xff]   ;;  %v1635_v26 = vld [vmem:[%s2305_s0 + $0x44] ss:$8 sps:$4 sm:$0xff]   ;;  %v1639_v28 = vld [vmem:[%s2305_s0 + $0x40] ss:$8 sps:$4 sm:$0xff]  }
   0xa   :  { %548 = vmatpush1.bf16.msra.mxu0 %v1604_v3  ;;  %1594 = vmatpush1.bf16.msra.mxu1 %v1604_v3  ;;  %v1637_v27 = vld [vmem:[%s2305_s0 + $0x144] ss:$8 sps:$4 sm:$0xff]   ;;  %v1640_v29 = vld [vmem:[%s2305_s0 + $0x140] ss:$8 sps:$4 sm:$0xff]   ;;  %v1641_v30 = vld [vmem:[%s2305_s0 + $0x54] ss:$8 sps:$4 sm:$0xff]  }
   0xb   :  { %549 = vmatprep.subr.bf16.mxu0 %v1707_v0  ;;  %1586 = vmatprep.subr.bf16.mxu1 %v1707_v0  ;;  %v1643_v31 = vld [vmem:[%s2305_s0 + $0x154] ss:$8 sps:$4 sm:$0xff]   ;;  %v1645_v32 = vld [vmem:[%s2305_s0 + $0x50] ss:$8 sps:$4 sm:$0xff]   ;;  %v1647_v34 = vld [vmem:[%s2305_s0 + $0x64] ss:$8 sps:$4 sm:$0xff]  }
   0xc   :  { %v1646_v33 = vld [vmem:[%s2305_s0 + $0x150] ss:$8 sps:$4 sm:$0xff]   ;;  %v1649_v35 = vld [vmem:[%s2305_s0 + $0x164] ss:$8 sps:$4 sm:$0xff]   ;;  %v1651_v36 = vld [vmem:[%s2305_s0 + $0x60] ss:$8 sps:$4 sm:$0xff]  }
   0xd   :  { %v1652_v37 = vld [vmem:[%s2305_s0 + $0x160] ss:$8 sps:$4 sm:$0xff]   ;;  %v1653_v38 = vld [vmem:[%s2305_s0 + $0x74] ss:$8 sps:$4 sm:$0xff]   ;;  %v1657_v40 = vld [vmem:[%s2305_s0 + $0x70] ss:$8 sps:$4 sm:$0xff]  }
   0xe   :  { %550 = vmatpush1.bf16.msra.mxu0 %v1605_v4  ;;  %1595 = vmatpush1.bf16.msra.mxu1 %v1605_v4  ;;  %v1655_v39 = vld [vmem:[%s2305_s0 + $0x174] ss:$8 sps:$4 sm:$0xff]   ;;  %v1658_v41 = vld [vmem:[%s2305_s0 + $0x170] ss:$8 sps:$4 sm:$0xff]   ;;  %v1659_v42 = vld [vmem:[%s2305_s0 + $0x84] ss:$8 sps:$4 sm:$0xff]  }
   0xf   :  { %551 = vmatprep.subr.bf16.mxu0 %v1707_v0  ;;  %1587 = vmatprep.subr.bf16.mxu1 %v1707_v0  ;;  %v1661_v43 = vld [vmem:[%s2305_s0 + $0x184] ss:$8 sps:$4 sm:$0xff]   ;;  %v1663_v44 = vld [vmem:[%s2305_s0 + $0x80] ss:$8 sps:$4 sm:$0xff]   ;;  %v1665_v46 = vld [vmem:[%s2305_s0 + $0x94] ss:$8 sps:$4 sm:$0xff]  }
  0x10   :  { %v1664_v45 = vld [vmem:[%s2305_s0 + $0x180] ss:$8 sps:$4 sm:$0xff]   ;;  %v1667_v47 = vld [vmem:[%s2305_s0 + $0x194] ss:$8 sps:$4 sm:$0xff]   ;;  %v1669_v48 = vld [vmem:[%s2305_s0 + $0x90] ss:$8 sps:$4 sm:$0xff]  }
  0x11   :  { %v1670_v49 = vld [vmem:[%s2305_s0 + $0x190] ss:$8 sps:$4 sm:$0xff]   ;;  %v1671_v50 = vld [vmem:[%s2305_s0 + $0xa4] ss:$8 sps:$4 sm:$0xff]   ;;  %v1675_v52 = vld [vmem:[%s2305_s0 + $0xa0] ss:$8 sps:$4 sm:$0xff]  }
  0x12   :  { %552 = vmatpush1.bf16.msra.mxu0 %v1606_v7  ;;  %1596 = vmatpush1.bf16.msra.mxu1 %v1606_v7  ;;  %v1673_v51 = vld [vmem:[%s2305_s0 + $0x1a4] ss:$8 sps:$4 sm:$0xff]   ;;  %v1676_v53 = vld [vmem:[%s2305_s0 + $0x1a0] ss:$8 sps:$4 sm:$0xff]   ;;  %v1677_v54 = vld [vmem:[%s2305_s0 + $0xb4] ss:$8 sps:$4 sm:$0xff]  }
  0x13   :  { %553 = vmatprep.subr.bf16.mxu0 %v1707_v0  ;;  %1588 = vmatprep.subr.bf16.mxu1 %v1707_v0  ;;  %v1679_v55 = vld [vmem:[%s2305_s0 + $0x1b4] ss:$8 sps:$4 sm:$0xff]   ;;  %v1681_v56 = vld [vmem:[%s2305_s0 + $0xb0] ss:$8 sps:$4 sm:$0xff]   ;;  %v1683_v58 = vld [vmem:[%s2305_s0 + $0xc4] ss:$8 sps:$4 sm:$0xff]  }
  0x14   :  { %v1682_v57 = vld [vmem:[%s2305_s0 + $0x1b0] ss:$8 sps:$4 sm:$0xff]   ;;  %v1685_v59 = vld [vmem:[%s2305_s0 + $0x1c4] ss:$8 sps:$4 sm:$0xff]   ;;  %v1687_v60 = vld [vmem:[%s2305_s0 + $0xc0] ss:$8 sps:$4 sm:$0xff]  }
  0x15   :  { %v1688_v61 = vld [vmem:[%s2305_s0 + $0x1c0] ss:$8 sps:$4 sm:$0xff]   ;;  %v1689_v62 = vld [vmem:[%s2305_s0 + $0xd4] ss:$8 sps:$4 sm:$0xff]   ;;  %v1694_v1 = vld [vmem:[%s2305_s0 + $0x1d0] ss:$8 sps:$4 sm:$0xff]  }
  0x16   :  { %554 = vmatpush1.bf16.msra.mxu0 %v1607_v8  ;;  %1597 = vmatpush1.bf16.msra.mxu1 %v1607_v8  ;;  %v1691_v63 = vld [vmem:[%s2305_s0 + $0x1d4] ss:$8 sps:$4 sm:$0xff]   ;;  %v1695_v2 = vld [vmem:[%s2305_s0 + $0xe4] ss:$8 sps:$4 sm:$0xff]   ;;  %v1699_v4 = vld [vmem:[%s2305_s0 + $0xe0] ss:$8 sps:$4 sm:$0xff]  }
  0x17   :  { %555 = vmatprep.subr.bf16.mxu0 %v1707_v0  ;;  %1589 = vmatprep.subr.bf16.mxu1 %v1707_v0  ;;  %v1697_v3 = vld [vmem:[%s2305_s0 + $0x1e4] ss:$8 sps:$4 sm:$0xff]   ;;  %v1700_v5 = vld [vmem:[%s2305_s0 + $0x1e0] ss:$8 sps:$4 sm:$0xff]   ;;  %v1701_v6 = vld [vmem:[%s2305_s0 + $0xf4] ss:$8 sps:$4 sm:$0xff]  }
  0x18   :  { %v1703_v7 = vld [vmem:[%s2305_s0 + $0x1f4] ss:$8 sps:$4 sm:$0xff]   ;;  %v1705_v8 = vld [vmem:[%s2305_s0 + $0xf0] ss:$8 sps:$4 sm:$0xff]  }
  0x1a   :  { %556 = vmatpush1.bf16.msra.mxu0 %v1608_v9  ;;  %1598 = vmatpush1.bf16.msra.mxu1 %v1608_v9  ;;  %v1706_v9 = vld [vmem:[%s2305_s0 + $0x1f0] ss:$8 sps:$4 sm:$0xff]  }
  0x1b   :  { %557 = vmatprep.subr.bf16.mxu0 %v1707_v0  ;;  %1590 = vmatprep.subr.bf16.mxu1 %v1707_v0 }
  0x1e   :  { %558 = vmatpush1.bf16.msra.mxu0 %v1609_v10  ;;  %1599 = vmatpush1.bf16.msra.mxu1 %v1609_v10  ;;  %v1982_v10 = vld [vmem:[%s2306_s2] ss:$0 sm:$0xff] }
  0x1f   :  { %573 = vmatprep.subr.bf16.mxu0 %v1707_v0  ;;  %1591 = vmatprep.subr.bf16.mxu1 %v1707_v0  ;;  %v1693_v0 = vld [vmem:[%s2305_s0 + $0xd0] ss:$8 sps:$4 sm:$0xff]  }
  0x22   :  { %574 = vmatpush2.bf16.msra.mxu0 %v1610_v11  ;;  %1600 = vmatpush2.bf16.msra.mxu1 %v1610_v11 }
  0x25   :  { %576 = vmatmul.mubr.bf16.vlgmr.msra.gmra.mxu0 %v1611_v12  ;;  %704 = vmatmul.mubr.bf16.vlgmr.msra.gmra.mxu1 %v1614_v13 }
  0x26   :  { %1424 = vmatprep.mubr.msk.bf16.mxu0 %vm446_vm0, %v1617_v14  ;;  %1440 = vmatprep.mubr.msk.bf16.mxu1 %vm446_vm0, %v1619_v15 }
  0x2d   :  { %584 = vmatmul.mubr.bf16.gmra.mxu0 %v1621_v16  ;;  %712 = vmatmul.mubr.bf16.gmra.mxu1 %v1622_v17 }
  0x2e   :  { %1425 = vmatprep.mubr.msk.bf16.mxu0 %vm446_vm0, %v1623_v18  ;;  %1441 = vmatprep.mubr.msk.bf16.mxu1 %vm446_vm0, %v1625_v19 }
  0x35   :  { %592 = vmatmul.mubr.bf16.gmra.mxu0 %v1627_v20  ;;  %720 = vmatmul.mubr.bf16.gmra.mxu1 %v1628_v21 }
  0x36   :  { %1426 = vmatprep.mubr.msk.bf16.mxu0 %vm446_vm0, %v1629_v22  ;;  %1442 = vmatprep.mubr.msk.bf16.mxu1 %vm446_vm0, %v1631_v23 }
  0x3d   :  { %600 = vmatmul.mubr.bf16.gmra.mxu0 %v1633_v24  ;;  %728 = vmatmul.mubr.bf16.gmra.mxu1 %v1634_v25 }
  0x3e   :  { %1427 = vmatprep.mubr.msk.bf16.mxu0 %vm446_vm0, %v1635_v26  ;;  %1443 = vmatprep.mubr.msk.bf16.mxu1 %vm446_vm0, %v1637_v27 }
  0x45   :  { %608 = vmatmul.mubr.bf16.gmra.mxu0 %v1639_v28  ;;  %736 = vmatmul.mubr.bf16.gmra.mxu1 %v1640_v29 }
  0x46   :  { %1428 = vmatprep.mubr.msk.bf16.mxu0 %vm446_vm0, %v1641_v30  ;;  %1444 = vmatprep.mubr.msk.bf16.mxu1 %vm446_vm0, %v1643_v31 }
  0x4d   :  { %616 = vmatmul.mubr.bf16.gmra.mxu0 %v1645_v32  ;;  %744 = vmatmul.mubr.bf16.gmra.mxu1 %v1646_v33 }
  0x4e   :  { %1429 = vmatprep.mubr.msk.bf16.mxu0 %vm446_vm0, %v1647_v34  ;;  %1445 = vmatprep.mubr.msk.bf16.mxu1 %vm446_vm0, %v1649_v35 }
  0x55   :  { %624 = vmatmul.mubr.bf16.gmra.mxu0 %v1651_v36  ;;  %752 = vmatmul.mubr.bf16.gmra.mxu1 %v1652_v37 }
  0x56   :  { %1430 = vmatprep.mubr.msk.bf16.mxu0 %vm446_vm0, %v1653_v38  ;;  %1446 = vmatprep.mubr.msk.bf16.mxu1 %vm446_vm0, %v1655_v39 }
  0x5d   :  { %632 = vmatmul.mubr.bf16.gmra.mxu0 %v1657_v40  ;;  %760 = vmatmul.mubr.bf16.gmra.mxu1 %v1658_v41 }
  0x5e   :  { %1431 = vmatprep.mubr.msk.bf16.mxu0 %vm446_vm0, %v1659_v42  ;;  %1447 = vmatprep.mubr.msk.bf16.mxu1 %vm446_vm0, %v1661_v43 }
  0x65   :  { %640 = vmatmul.mubr.bf16.gmra.mxu0 %v1663_v44  ;;  %768 = vmatmul.mubr.bf16.gmra.mxu1 %v1664_v45 }
  0x66   :  { %1432 = vmatprep.mubr.msk.bf16.mxu0 %vm446_vm0, %v1665_v46  ;;  %1448 = vmatprep.mubr.msk.bf16.mxu1 %vm446_vm0, %v1667_v47 }
  0x6d   :  { %648 = vmatmul.mubr.bf16.gmra.mxu0 %v1669_v48  ;;  %776 = vmatmul.mubr.bf16.gmra.mxu1 %v1670_v49 }
  0x6e   :  { %1433 = vmatprep.mubr.msk.bf16.mxu0 %vm446_vm0, %v1671_v50  ;;  %1449 = vmatprep.mubr.msk.bf16.mxu1 %vm446_vm0, %v1673_v51 }
  0x75   :  { %656 = vmatmul.mubr.bf16.gmra.mxu0 %v1675_v52  ;;  %784 = vmatmul.mubr.bf16.gmra.mxu1 %v1676_v53 }
  0x76   :  { %1434 = vmatprep.mubr.msk.bf16.mxu0 %vm446_vm0, %v1677_v54  ;;  %1450 = vmatprep.mubr.msk.bf16.mxu1 %vm446_vm0, %v1679_v55 }
  0x7d   :  { %664 = vmatmul.mubr.bf16.gmra.mxu0 %v1681_v56  ;;  %792 = vmatmul.mubr.bf16.gmra.mxu1 %v1682_v57 }
  0x7e   :  { %1435 = vmatprep.mubr.msk.bf16.mxu0 %vm446_vm0, %v1683_v58  ;;  %1451 = vmatprep.mubr.msk.bf16.mxu1 %vm446_vm0, %v1685_v59 }
  0x85   :  { %672 = vmatmul.mubr.bf16.gmra.mxu0 %v1687_v60  ;;  %800 = vmatmul.mubr.bf16.gmra.mxu1 %v1688_v61 }
  0x86   :  { %1436 = vmatprep.mubr.msk.bf16.mxu0 %vm446_vm0, %v1689_v62  ;;  %1452 = vmatprep.mubr.msk.bf16.mxu1 %vm446_vm0, %v1691_v63 }
  0x8d   :  { %680 = vmatmul.mubr.bf16.gmra.mxu0 %v1693_v0  ;;  %808 = vmatmul.mubr.bf16.gmra.mxu1 %v1694_v1 }
  0x8e   :  { %1437 = vmatprep.mubr.msk.bf16.mxu0 %vm446_vm0, %v1695_v2  ;;  %1453 = vmatprep.mubr.msk.bf16.mxu1 %vm446_vm0, %v1697_v3 }
  0x95   :  { %688 = vmatmul.mubr.bf16.gmra.mxu0 %v1699_v4  ;;  %816 = vmatmul.mubr.bf16.gmra.mxu1 %v1700_v5 }
  0x96   :  { %1438 = vmatprep.mubr.msk.bf16.mxu0 %vm446_vm0, %v1701_v6  ;;  %1454 = vmatprep.mubr.msk.bf16.mxu1 %vm446_vm0, %v1703_v7 }
  0x9d   :  { %696 = vmatmul.mubr.bf16.gmra.mxu0 %v1705_v8  ;;  %824 = vmatmul.mubr.bf16.gmra.mxu1 %v1706_v9 }
  0xe5   :  { %v577_v11 = vpop.f32.mrf.mxu0  ;;  %v705_v12 = vpop.f32.mrf.mxu1 }
  0xe6   :  { %v578_v13 = vadd.f32 %v1982_v10, %v577_v11  ;;  %v706_v14 = vadd.f32 %v1982_v10, %v705_v12 }
  0xe7   :  { %v579_v15 = vpop.f32.mrf.mxu0  ;;  %v707_v16 = vpop.f32.mrf.mxu1 }
  0xe8   :  { %vm832_vm1 = vcmp.ge.f32.partialorder %v578_v13, 0.0  ;;  %v896_v17 = vmul.f32 0.2, %v578_v13  ;;  %vm864_vm2 = vcmp.ge.f32.partialorder %v706_v14, 0.0  ;;  %v928_v18 = vmul.f32 0.2, %v706_v14 }
  0xe9   :  { %v580_v19 = vpop.f32.mrf.mxu0  ;;  %v708_v20 = vpop.f32.mrf.mxu1 }
  0xea   :  { %v960_v21 = vsel %vm832_vm1, %v578_v13, %v896_v17  ;;  %v992_v22 = vsel %vm864_vm2, %v706_v14, %v928_v18  ;;  %v581_v23 = vadd.f32 %v1982_v10, %v580_v19  ;;  %v709_v24 = vadd.f32 %v1982_v10, %v708_v20 }
  0xeb   :  { %v1519_v25 = vpack.c.bf16 %v960_v21, %v960_v21  ;;  %v1551_v26 = vpack.c.bf16 %v992_v22, %v992_v22  ;;  %v582_v27 = vpop.f32.mrf.mxu0  ;;  %v710_v28 = vpop.f32.mrf.mxu1 }
  0xec   :  { %vm833_vm4 = vcmp.ge.f32.partialorder %v581_v23, 0.0  ;;  %v897_v29 = vmul.f32 0.2, %v581_v23  ;;  %vm865_vm5 = vcmp.ge.f32.partialorder %v709_v24, 0.0  ;;  %v929_v30 = vmul.f32 0.2, %v709_v24 }
  0xed   :  { %1281 = vst.msk [vmem:[%s2307_s3] sm:$0xf] %vm1280_vm3, %v1519_v25  ;;  %1313 = vst.msk [vmem:[%s2307_s3 + $0x80] sm:$0xf] %vm1280_vm3, %v1551_v26  ;;  %v585_v31 = vpop.f32.mrf.mxu0  ;;  %v713_v32 = vpop.f32.mrf.mxu1 }
  0xee   :  { %v961_v33 = vsel %vm833_vm4, %v581_v23, %v897_v29  ;;  %v993_v34 = vsel %vm865_vm5, %v709_v24, %v929_v30  ;;  %v586_v35 = vadd.f32 %v1982_v10, %v585_v31  ;;  %v714_v36 = vadd.f32 %v1982_v10, %v713_v32 }
  0xef   :  { %v1520_v37 = vpack.c.bf16 %v961_v33, %v961_v33  ;;  %v1552_v38 = vpack.c.bf16 %v993_v34, %v993_v34  ;;  %v587_v39 = vpop.f32.mrf.mxu0  ;;  %v715_v40 = vpop.f32.mrf.mxu1 }
  0xf0   :  { %vm834_vm6 = vcmp.ge.f32.partialorder %v586_v35, 0.0  ;;  %v898_v41 = vmul.f32 0.2, %v586_v35  ;;  %vm866_vm7 = vcmp.ge.f32.partialorder %v714_v36, 0.0  ;;  %v930_v42 = vmul.f32 0.2, %v714_v36 }
  0xf1   :  { %1282 = vst.msk [vmem:[%s2307_s3 + $0x4] sm:$0xf] %vm1280_vm3, %v1520_v37  ;;  %1314 = vst.msk [vmem:[%s2307_s3 + $0x84] sm:$0xf] %vm1280_vm3, %v1552_v38  ;;  %v588_v43 = vpop.f32.mrf.mxu0  ;;  %v716_v44 = vpop.f32.mrf.mxu1 }
  0xf2   :  { %v962_v45 = vsel %vm834_vm6, %v586_v35, %v898_v41  ;;  %v994_v46 = vsel %vm866_vm7, %v714_v36, %v930_v42  ;;  %v589_v47 = vadd.f32 %v1982_v10, %v588_v43  ;;  %v717_v48 = vadd.f32 %v1982_v10, %v716_v44 }
  0xf3   :  { %v1521_v49 = vpack.c.bf16 %v962_v45, %v962_v45  ;;  %v1553_v50 = vpack.c.bf16 %v994_v46, %v994_v46  ;;  %v590_v51 = vpop.f32.mrf.mxu0  ;;  %v718_v52 = vpop.f32.mrf.mxu1 }
  0xf4   :  { %vm835_vm8 = vcmp.ge.f32.partialorder %v589_v47, 0.0  ;;  %v899_v53 = vmul.f32 0.2, %v589_v47  ;;  %vm867_vm9 = vcmp.ge.f32.partialorder %v717_v48, 0.0  ;;  %v931_v54 = vmul.f32 0.2, %v717_v48 }
  0xf5   :  { %1283 = vst.msk [vmem:[%s2307_s3 + $0x8] sm:$0xf] %vm1280_vm3, %v1521_v49  ;;  %1315 = vst.msk [vmem:[%s2307_s3 + $0x88] sm:$0xf] %vm1280_vm3, %v1553_v50  ;;  %v593_v55 = vpop.f32.mrf.mxu0  ;;  %v721_v56 = vpop.f32.mrf.mxu1 }
  0xf6   :  { %v963_v57 = vsel %vm835_vm8, %v589_v47, %v899_v53  ;;  %v995_v58 = vsel %vm867_vm9, %v717_v48, %v931_v54  ;;  %v594_v59 = vadd.f32 %v1982_v10, %v593_v55  ;;  %v722_v60 = vadd.f32 %v1982_v10, %v721_v56 }
  0xf7   :  { %v1522_v61 = vpack.c.bf16 %v963_v57, %v963_v57  ;;  %v1554_v62 = vpack.c.bf16 %v995_v58, %v995_v58  ;;  %v595_v63 = vpop.f32.mrf.mxu0  ;;  %v723_v0 = vpop.f32.mrf.mxu1 }
  0xf8   :  { %vm836_vm10 = vcmp.ge.f32.partialorder %v594_v59, 0.0  ;;  %v900_v1 = vmul.f32 0.2, %v594_v59  ;;  %vm868_vm11 = vcmp.ge.f32.partialorder %v722_v60, 0.0  ;;  %v932_v2 = vmul.f32 0.2, %v722_v60 }
  0xf9   :  { %1284 = vst.msk [vmem:[%s2307_s3 + $0xc] sm:$0xf] %vm1280_vm3, %v1522_v61  ;;  %1316 = vst.msk [vmem:[%s2307_s3 + $0x8c] sm:$0xf] %vm1280_vm3, %v1554_v62  ;;  %v596_v3 = vpop.f32.mrf.mxu0  ;;  %v724_v4 = vpop.f32.mrf.mxu1 }
  0xfa   :  { %v964_v5 = vsel %vm836_vm10, %v594_v59, %v900_v1  ;;  %v996_v6 = vsel %vm868_vm11, %v722_v60, %v932_v2  ;;  %v597_v7 = vadd.f32 %v1982_v10, %v596_v3  ;;  %v725_v8 = vadd.f32 %v1982_v10, %v724_v4 }
  0xfb   :  { %v1523_v9 = vpack.c.bf16 %v964_v5, %v964_v5  ;;  %v1555_v11 = vpack.c.bf16 %v996_v6, %v996_v6  ;;  %v598_v12 = vpop.f32.mrf.mxu0  ;;  %v726_v13 = vpop.f32.mrf.mxu1 }
  0xfc   :  { %vm837_vm12 = vcmp.ge.f32.partialorder %v597_v7, 0.0  ;;  %v901_v14 = vmul.f32 0.2, %v597_v7  ;;  %vm869_vm13 = vcmp.ge.f32.partialorder %v725_v8, 0.0  ;;  %v933_v15 = vmul.f32 0.2, %v725_v8 }
  0xfd   :  { %1285 = vst.msk [vmem:[%s2307_s3 + $0x10] sm:$0xf] %vm1280_vm3, %v1523_v9  ;;  %1317 = vst.msk [vmem:[%s2307_s3 + $0x90] sm:$0xf] %vm1280_vm3, %v1555_v11  ;;  %v601_v16 = vpop.f32.mrf.mxu0  ;;  %v729_v17 = vpop.f32.mrf.mxu1 }
  0xfe   :  { %v965_v18 = vsel %vm837_vm12, %v597_v7, %v901_v14  ;;  %v997_v19 = vsel %vm869_vm13, %v725_v8, %v933_v15  ;;  %v602_v20 = vadd.f32 %v1982_v10, %v601_v16  ;;  %v730_v21 = vadd.f32 %v1982_v10, %v729_v17 }
  0xff   :  { %v1524_v22 = vpack.c.bf16 %v965_v18, %v965_v18  ;;  %v1556_v23 = vpack.c.bf16 %v997_v19, %v997_v19  ;;  %v603_v24 = vpop.f32.mrf.mxu0  ;;  %v731_v25 = vpop.f32.mrf.mxu1 }
 0x100   :  { %vm838_vm14 = vcmp.ge.f32.partialorder %v602_v20, 0.0  ;;  %v902_v26 = vmul.f32 0.2, %v602_v20  ;;  %vm870_vm15 = vcmp.ge.f32.partialorder %v730_v21, 0.0  ;;  %v934_v27 = vmul.f32 0.2, %v730_v21 }
 0x101   :  { %1286 = vst.msk [vmem:[%s2307_s3 + $0x14] sm:$0xf] %vm1280_vm3, %v1524_v22  ;;  %1318 = vst.msk [vmem:[%s2307_s3 + $0x94] sm:$0xf] %vm1280_vm3, %v1556_v23  ;;  %v604_v28 = vpop.f32.mrf.mxu0  ;;  %v732_v29 = vpop.f32.mrf.mxu1 }
 0x102   :  { %v966_v30 = vsel %vm838_vm14, %v602_v20, %v902_v26  ;;  %v998_v31 = vsel %vm870_vm15, %v730_v21, %v934_v27  ;;  %v605_v32 = vadd.f32 %v1982_v10, %v604_v28  ;;  %v733_v33 = vadd.f32 %v1982_v10, %v732_v29 }
 0x103   :  { %v1525_v34 = vpack.c.bf16 %v966_v30, %v966_v30  ;;  %v1557_v35 = vpack.c.bf16 %v998_v31, %v998_v31  ;;  %v606_v36 = vpop.f32.mrf.mxu0  ;;  %v734_v37 = vpop.f32.mrf.mxu1 }
 0x104   :  { %vm839_vm0 = vcmp.ge.f32.partialorder %v605_v32, 0.0  ;;  %v903_v38 = vmul.f32 0.2, %v605_v32  ;;  %vm871_vm1 = vcmp.ge.f32.partialorder %v733_v33, 0.0  ;;  %v935_v39 = vmul.f32 0.2, %v733_v33 }
 0x105   :  { %1287 = vst.msk [vmem:[%s2307_s3 + $0x18] sm:$0xf] %vm1280_vm3, %v1525_v34  ;;  %1319 = vst.msk [vmem:[%s2307_s3 + $0x98] sm:$0xf] %vm1280_vm3, %v1557_v35  ;;  %v609_v40 = vpop.f32.mrf.mxu0  ;;  %v737_v41 = vpop.f32.mrf.mxu1 }
 0x106   :  { %v967_v42 = vsel %vm839_vm0, %v605_v32, %v903_v38  ;;  %v999_v43 = vsel %vm871_vm1, %v733_v33, %v935_v39  ;;  %v610_v44 = vadd.f32 %v1982_v10, %v609_v40  ;;  %v738_v45 = vadd.f32 %v1982_v10, %v737_v41 }
 0x107   :  { %v1526_v46 = vpack.c.bf16 %v967_v42, %v967_v42  ;;  %v1558_v47 = vpack.c.bf16 %v999_v43, %v999_v43  ;;  %v611_v48 = vpop.f32.mrf.mxu0  ;;  %v739_v49 = vpop.f32.mrf.mxu1 }
 0x108   :  { %vm840_vm2 = vcmp.ge.f32.partialorder %v610_v44, 0.0  ;;  %v904_v50 = vmul.f32 0.2, %v610_v44  ;;  %vm872_vm4 = vcmp.ge.f32.partialorder %v738_v45, 0.0  ;;  %v936_v51 = vmul.f32 0.2, %v738_v45 }
 0x109   :  { %1288 = vst.msk [vmem:[%s2307_s3 + $0x1c] sm:$0xf] %vm1280_vm3, %v1526_v46  ;;  %1320 = vst.msk [vmem:[%s2307_s3 + $0x9c] sm:$0xf] %vm1280_vm3, %v1558_v47  ;;  %v612_v52 = vpop.f32.mrf.mxu0  ;;  %v740_v53 = vpop.f32.mrf.mxu1 }
 0x10a   :  { %v968_v54 = vsel %vm840_vm2, %v610_v44, %v904_v50  ;;  %v1000_v55 = vsel %vm872_vm4, %v738_v45, %v936_v51  ;;  %v613_v56 = vadd.f32 %v1982_v10, %v612_v52  ;;  %v741_v57 = vadd.f32 %v1982_v10, %v740_v53 }
 0x10b   :  { %v1527_v58 = vpack.c.bf16 %v968_v54, %v968_v54  ;;  %v1559_v59 = vpack.c.bf16 %v1000_v55, %v1000_v55  ;;  %v614_v60 = vpop.f32.mrf.mxu0  ;;  %v742_v61 = vpop.f32.mrf.mxu1 }
 0x10c   :  { %vm841_vm5 = vcmp.ge.f32.partialorder %v613_v56, 0.0  ;;  %v905_v62 = vmul.f32 0.2, %v613_v56  ;;  %vm873_vm6 = vcmp.ge.f32.partialorder %v741_v57, 0.0  ;;  %v937_v63 = vmul.f32 0.2, %v741_v57 }
 0x10d   :  { %1289 = vst.msk [vmem:[%s2307_s3 + $0x20] sm:$0xf] %vm1280_vm3, %v1527_v58  ;;  %1321 = vst.msk [vmem:[%s2307_s3 + $0xa0] sm:$0xf] %vm1280_vm3, %v1559_v59  ;;  %v617_v0 = vpop.f32.mrf.mxu0  ;;  %v745_v1 = vpop.f32.mrf.mxu1 }
 0x10e   :  { %v969_v2 = vsel %vm841_vm5, %v613_v56, %v905_v62  ;;  %v1001_v3 = vsel %vm873_vm6, %v741_v57, %v937_v63  ;;  %v618_v4 = vadd.f32 %v1982_v10, %v617_v0  ;;  %v746_v5 = vadd.f32 %v1982_v10, %v745_v1 }
 0x10f   :  { %v1528_v6 = vpack.c.bf16 %v969_v2, %v969_v2  ;;  %v1560_v7 = vpack.c.bf16 %v1001_v3, %v1001_v3  ;;  %v619_v8 = vpop.f32.mrf.mxu0  ;;  %v747_v9 = vpop.f32.mrf.mxu1 }
 0x110   :  { %vm842_vm7 = vcmp.ge.f32.partialorder %v618_v4, 0.0  ;;  %v906_v11 = vmul.f32 0.2, %v618_v4  ;;  %vm874_vm8 = vcmp.ge.f32.partialorder %v746_v5, 0.0  ;;  %v938_v12 = vmul.f32 0.2, %v746_v5 }
 0x111   :  { %1290 = vst.msk [vmem:[%s2307_s3 + $0x24] sm:$0xf] %vm1280_vm3, %v1528_v6  ;;  %1322 = vst.msk [vmem:[%s2307_s3 + $0xa4] sm:$0xf] %vm1280_vm3, %v1560_v7  ;;  %v620_v13 = vpop.f32.mrf.mxu0  ;;  %v748_v14 = vpop.f32.mrf.mxu1 }
 0x112   :  { %v970_v15 = vsel %vm842_vm7, %v618_v4, %v906_v11  ;;  %v1002_v16 = vsel %vm874_vm8, %v746_v5, %v938_v12  ;;  %v621_v17 = vadd.f32 %v1982_v10, %v620_v13  ;;  %v749_v18 = vadd.f32 %v1982_v10, %v748_v14 }
 0x113   :  { %v1529_v19 = vpack.c.bf16 %v970_v15, %v970_v15  ;;  %v1561_v20 = vpack.c.bf16 %v1002_v16, %v1002_v16  ;;  %v622_v21 = vpop.f32.mrf.mxu0  ;;  %v750_v22 = vpop.f32.mrf.mxu1 }
 0x114   :  { %vm843_vm9 = vcmp.ge.f32.partialorder %v621_v17, 0.0  ;;  %v907_v23 = vmul.f32 0.2, %v621_v17  ;;  %vm875_vm10 = vcmp.ge.f32.partialorder %v749_v18, 0.0  ;;  %v939_v24 = vmul.f32 0.2, %v749_v18 }
 0x115   :  { %1291 = vst.msk [vmem:[%s2307_s3 + $0x28] sm:$0xf] %vm1280_vm3, %v1529_v19  ;;  %1323 = vst.msk [vmem:[%s2307_s3 + $0xa8] sm:$0xf] %vm1280_vm3, %v1561_v20  ;;  %v625_v25 = vpop.f32.mrf.mxu0  ;;  %v753_v26 = vpop.f32.mrf.mxu1 }
 0x116   :  { %v971_v27 = vsel %vm843_vm9, %v621_v17, %v907_v23  ;;  %v1003_v28 = vsel %vm875_vm10, %v749_v18, %v939_v24  ;;  %v626_v29 = vadd.f32 %v1982_v10, %v625_v25  ;;  %v754_v30 = vadd.f32 %v1982_v10, %v753_v26 }
 0x117   :  { %v1530_v31 = vpack.c.bf16 %v971_v27, %v971_v27  ;;  %v1562_v32 = vpack.c.bf16 %v1003_v28, %v1003_v28  ;;  %v627_v33 = vpop.f32.mrf.mxu0  ;;  %v755_v34 = vpop.f32.mrf.mxu1 }
 0x118   :  { %vm844_vm11 = vcmp.ge.f32.partialorder %v626_v29, 0.0  ;;  %v908_v35 = vmul.f32 0.2, %v626_v29  ;;  %vm876_vm12 = vcmp.ge.f32.partialorder %v754_v30, 0.0  ;;  %v940_v36 = vmul.f32 0.2, %v754_v30 }
 0x119   :  { %1292 = vst.msk [vmem:[%s2307_s3 + $0x2c] sm:$0xf] %vm1280_vm3, %v1530_v31  ;;  %1324 = vst.msk [vmem:[%s2307_s3 + $0xac] sm:$0xf] %vm1280_vm3, %v1562_v32  ;;  %v628_v37 = vpop.f32.mrf.mxu0  ;;  %v756_v38 = vpop.f32.mrf.mxu1 }
 0x11a   :  { %v972_v39 = vsel %vm844_vm11, %v626_v29, %v908_v35  ;;  %v1004_v40 = vsel %vm876_vm12, %v754_v30, %v940_v36  ;;  %v629_v41 = vadd.f32 %v1982_v10, %v628_v37  ;;  %v757_v42 = vadd.f32 %v1982_v10, %v756_v38 }
 0x11b   :  { %v1531_v43 = vpack.c.bf16 %v972_v39, %v972_v39  ;;  %v1563_v44 = vpack.c.bf16 %v1004_v40, %v1004_v40  ;;  %v630_v45 = vpop.f32.mrf.mxu0  ;;  %v758_v46 = vpop.f32.mrf.mxu1 }
 0x11c   :  { %vm845_vm13 = vcmp.ge.f32.partialorder %v629_v41, 0.0  ;;  %v909_v47 = vmul.f32 0.2, %v629_v41  ;;  %vm877_vm14 = vcmp.ge.f32.partialorder %v757_v42, 0.0  ;;  %v941_v48 = vmul.f32 0.2, %v757_v42 }
 0x11d   :  { %1293 = vst.msk [vmem:[%s2307_s3 + $0x30] sm:$0xf] %vm1280_vm3, %v1531_v43  ;;  %1325 = vst.msk [vmem:[%s2307_s3 + $0xb0] sm:$0xf] %vm1280_vm3, %v1563_v44  ;;  %v633_v49 = vpop.f32.mrf.mxu0  ;;  %v761_v50 = vpop.f32.mrf.mxu1 }
 0x11e   :  { %v973_v51 = vsel %vm845_vm13, %v629_v41, %v909_v47  ;;  %v1005_v52 = vsel %vm877_vm14, %v757_v42, %v941_v48  ;;  %v634_v53 = vadd.f32 %v1982_v10, %v633_v49  ;;  %v762_v54 = vadd.f32 %v1982_v10, %v761_v50 }
 0x11f   :  { %v1532_v55 = vpack.c.bf16 %v973_v51, %v973_v51  ;;  %v1564_v56 = vpack.c.bf16 %v1005_v52, %v1005_v52  ;;  %v635_v57 = vpop.f32.mrf.mxu0  ;;  %v763_v58 = vpop.f32.mrf.mxu1 }
 0x120   :  { %vm846_vm15 = vcmp.ge.f32.partialorder %v634_v53, 0.0  ;;  %v910_v59 = vmul.f32 0.2, %v634_v53  ;;  %vm878_vm0 = vcmp.ge.f32.partialorder %v762_v54, 0.0  ;;  %v942_v60 = vmul.f32 0.2, %v762_v54 }
 0x121   :  { %1294 = vst.msk [vmem:[%s2307_s3 + $0x34] sm:$0xf] %vm1280_vm3, %v1532_v55  ;;  %1326 = vst.msk [vmem:[%s2307_s3 + $0xb4] sm:$0xf] %vm1280_vm3, %v1564_v56  ;;  %v636_v61 = vpop.f32.mrf.mxu0  ;;  %v764_v62 = vpop.f32.mrf.mxu1 }
 0x122   :  { %v974_v63 = vsel %vm846_vm15, %v634_v53, %v910_v59  ;;  %v1006_v0 = vsel %vm878_vm0, %v762_v54, %v942_v60  ;;  %v637_v1 = vadd.f32 %v1982_v10, %v636_v61  ;;  %v765_v2 = vadd.f32 %v1982_v10, %v764_v62 }
 0x123   :  { %v1533_v3 = vpack.c.bf16 %v974_v63, %v974_v63  ;;  %v1565_v4 = vpack.c.bf16 %v1006_v0, %v1006_v0  ;;  %v638_v5 = vpop.f32.mrf.mxu0  ;;  %v766_v6 = vpop.f32.mrf.mxu1 }
 0x124   :  { %vm847_vm1 = vcmp.ge.f32.partialorder %v637_v1, 0.0  ;;  %v911_v7 = vmul.f32 0.2, %v637_v1  ;;  %vm879_vm2 = vcmp.ge.f32.partialorder %v765_v2, 0.0  ;;  %v943_v8 = vmul.f32 0.2, %v765_v2 }
 0x125   :  { %1295 = vst.msk [vmem:[%s2307_s3 + $0x38] sm:$0xf] %vm1280_vm3, %v1533_v3  ;;  %1327 = vst.msk [vmem:[%s2307_s3 + $0xb8] sm:$0xf] %vm1280_vm3, %v1565_v4  ;;  %v641_v9 = vpop.f32.mrf.mxu0  ;;  %v769_v11 = vpop.f32.mrf.mxu1 }
 0x126   :  { %v975_v12 = vsel %vm847_vm1, %v637_v1, %v911_v7  ;;  %v1007_v13 = vsel %vm879_vm2, %v765_v2, %v943_v8  ;;  %v642_v14 = vadd.f32 %v1982_v10, %v641_v9  ;;  %v770_v15 = vadd.f32 %v1982_v10, %v769_v11 }
 0x127   :  { %v1534_v16 = vpack.c.bf16 %v975_v12, %v975_v12  ;;  %v1566_v17 = vpack.c.bf16 %v1007_v13, %v1007_v13  ;;  %v643_v18 = vpop.f32.mrf.mxu0  ;;  %v771_v19 = vpop.f32.mrf.mxu1 }
 0x128   :  { %vm848_vm4 = vcmp.ge.f32.partialorder %v642_v14, 0.0  ;;  %v912_v20 = vmul.f32 0.2, %v642_v14  ;;  %vm880_vm5 = vcmp.ge.f32.partialorder %v770_v15, 0.0  ;;  %v944_v21 = vmul.f32 0.2, %v770_v15 }
 0x129   :  { %1296 = vst.msk [vmem:[%s2307_s3 + $0x3c] sm:$0xf] %vm1280_vm3, %v1534_v16  ;;  %1328 = vst.msk [vmem:[%s2307_s3 + $0xbc] sm:$0xf] %vm1280_vm3, %v1566_v17  ;;  %v644_v22 = vpop.f32.mrf.mxu0  ;;  %v772_v23 = vpop.f32.mrf.mxu1 }
 0x12a   :  { %v976_v24 = vsel %vm848_vm4, %v642_v14, %v912_v20  ;;  %v1008_v25 = vsel %vm880_vm5, %v770_v15, %v944_v21  ;;  %v645_v26 = vadd.f32 %v1982_v10, %v644_v22  ;;  %v773_v27 = vadd.f32 %v1982_v10, %v772_v23 }
 0x12b   :  { %v1535_v28 = vpack.c.bf16 %v976_v24, %v976_v24  ;;  %v1567_v29 = vpack.c.bf16 %v1008_v25, %v1008_v25  ;;  %v646_v30 = vpop.f32.mrf.mxu0  ;;  %v774_v31 = vpop.f32.mrf.mxu1 }
 0x12c   :  { %vm849_vm6 = vcmp.ge.f32.partialorder %v645_v26, 0.0  ;;  %v913_v32 = vmul.f32 0.2, %v645_v26  ;;  %vm881_vm7 = vcmp.ge.f32.partialorder %v773_v27, 0.0  ;;  %v945_v33 = vmul.f32 0.2, %v773_v27 }
 0x12d   :  { %1297 = vst.msk [vmem:[%s2307_s3 + $0x40] sm:$0xf] %vm1280_vm3, %v1535_v28  ;;  %1329 = vst.msk [vmem:[%s2307_s3 + $0xc0] sm:$0xf] %vm1280_vm3, %v1567_v29  ;;  %v649_v34 = vpop.f32.mrf.mxu0  ;;  %v777_v35 = vpop.f32.mrf.mxu1 }
 0x12e   :  { %v977_v36 = vsel %vm849_vm6, %v645_v26, %v913_v32  ;;  %v1009_v37 = vsel %vm881_vm7, %v773_v27, %v945_v33  ;;  %v650_v38 = vadd.f32 %v1982_v10, %v649_v34  ;;  %v778_v39 = vadd.f32 %v1982_v10, %v777_v35 }
 0x12f   :  { %v1536_v40 = vpack.c.bf16 %v977_v36, %v977_v36  ;;  %v1568_v41 = vpack.c.bf16 %v1009_v37, %v1009_v37  ;;  %v651_v42 = vpop.f32.mrf.mxu0  ;;  %v779_v43 = vpop.f32.mrf.mxu1 }
 0x130   :  { %vm850_vm8 = vcmp.ge.f32.partialorder %v650_v38, 0.0  ;;  %v914_v44 = vmul.f32 0.2, %v650_v38  ;;  %vm882_vm9 = vcmp.ge.f32.partialorder %v778_v39, 0.0  ;;  %v946_v45 = vmul.f32 0.2, %v778_v39 }
 0x131   :  { %1298 = vst.msk [vmem:[%s2307_s3 + $0x44] sm:$0xf] %vm1280_vm3, %v1536_v40  ;;  %1330 = vst.msk [vmem:[%s2307_s3 + $0xc4] sm:$0xf] %vm1280_vm3, %v1568_v41  ;;  %v652_v46 = vpop.f32.mrf.mxu0  ;;  %v780_v47 = vpop.f32.mrf.mxu1 }
 0x132   :  { %v978_v48 = vsel %vm850_vm8, %v650_v38, %v914_v44  ;;  %v1010_v49 = vsel %vm882_vm9, %v778_v39, %v946_v45  ;;  %v653_v50 = vadd.f32 %v1982_v10, %v652_v46  ;;  %v781_v51 = vadd.f32 %v1982_v10, %v780_v47 }
 0x133   :  { %v1537_v52 = vpack.c.bf16 %v978_v48, %v978_v48  ;;  %v1569_v53 = vpack.c.bf16 %v1010_v49, %v1010_v49  ;;  %v654_v54 = vpop.f32.mrf.mxu0  ;;  %v782_v55 = vpop.f32.mrf.mxu1 }
 0x134   :  { %vm851_vm10 = vcmp.ge.f32.partialorder %v653_v50, 0.0  ;;  %v915_v56 = vmul.f32 0.2, %v653_v50  ;;  %vm883_vm11 = vcmp.ge.f32.partialorder %v781_v51, 0.0  ;;  %v947_v57 = vmul.f32 0.2, %v781_v51 }
 0x135   :  { %1299 = vst.msk [vmem:[%s2307_s3 + $0x48] sm:$0xf] %vm1280_vm3, %v1537_v52  ;;  %1331 = vst.msk [vmem:[%s2307_s3 + $0xc8] sm:$0xf] %vm1280_vm3, %v1569_v53  ;;  %v657_v58 = vpop.f32.mrf.mxu0  ;;  %v785_v59 = vpop.f32.mrf.mxu1 }
 0x136   :  { %v979_v60 = vsel %vm851_vm10, %v653_v50, %v915_v56  ;;  %v1011_v61 = vsel %vm883_vm11, %v781_v51, %v947_v57  ;;  %v658_v62 = vadd.f32 %v1982_v10, %v657_v58  ;;  %v786_v63 = vadd.f32 %v1982_v10, %v785_v59 }
 0x137   :  { %v1538_v0 = vpack.c.bf16 %v979_v60, %v979_v60  ;;  %v1570_v1 = vpack.c.bf16 %v1011_v61, %v1011_v61  ;;  %v659_v2 = vpop.f32.mrf.mxu0  ;;  %v787_v3 = vpop.f32.mrf.mxu1 }
 0x138   :  { %vm852_vm12 = vcmp.ge.f32.partialorder %v658_v62, 0.0  ;;  %v916_v4 = vmul.f32 0.2, %v658_v62  ;;  %vm884_vm13 = vcmp.ge.f32.partialorder %v786_v63, 0.0  ;;  %v948_v5 = vmul.f32 0.2, %v786_v63 }
 0x139   :  { %1300 = vst.msk [vmem:[%s2307_s3 + $0x4c] sm:$0xf] %vm1280_vm3, %v1538_v0  ;;  %1332 = vst.msk [vmem:[%s2307_s3 + $0xcc] sm:$0xf] %vm1280_vm3, %v1570_v1  ;;  %v660_v6 = vpop.f32.mrf.mxu0  ;;  %v788_v7 = vpop.f32.mrf.mxu1 }
 0x13a   :  { %v980_v8 = vsel %vm852_vm12, %v658_v62, %v916_v4  ;;  %v1012_v9 = vsel %vm884_vm13, %v786_v63, %v948_v5  ;;  %v661_v11 = vadd.f32 %v1982_v10, %v660_v6  ;;  %v789_v12 = vadd.f32 %v1982_v10, %v788_v7 }
 0x13b   :  { %v1539_v13 = vpack.c.bf16 %v980_v8, %v980_v8  ;;  %v1571_v14 = vpack.c.bf16 %v1012_v9, %v1012_v9  ;;  %v662_v15 = vpop.f32.mrf.mxu0  ;;  %v790_v16 = vpop.f32.mrf.mxu1 }
 0x13c   :  { %vm853_vm14 = vcmp.ge.f32.partialorder %v661_v11, 0.0  ;;  %v917_v17 = vmul.f32 0.2, %v661_v11  ;;  %vm885_vm15 = vcmp.ge.f32.partialorder %v789_v12, 0.0  ;;  %v949_v18 = vmul.f32 0.2, %v789_v12 }
 0x13d   :  { %1301 = vst.msk [vmem:[%s2307_s3 + $0x50] sm:$0xf] %vm1280_vm3, %v1539_v13  ;;  %1333 = vst.msk [vmem:[%s2307_s3 + $0xd0] sm:$0xf] %vm1280_vm3, %v1571_v14  ;;  %v665_v19 = vpop.f32.mrf.mxu0  ;;  %v793_v20 = vpop.f32.mrf.mxu1 }
 0x13e   :  { %v981_v21 = vsel %vm853_vm14, %v661_v11, %v917_v17  ;;  %v1013_v22 = vsel %vm885_vm15, %v789_v12, %v949_v18  ;;  %v666_v23 = vadd.f32 %v1982_v10, %v665_v19  ;;  %v794_v24 = vadd.f32 %v1982_v10, %v793_v20 }
 0x13f   :  { %v1540_v25 = vpack.c.bf16 %v981_v21, %v981_v21  ;;  %v1572_v26 = vpack.c.bf16 %v1013_v22, %v1013_v22  ;;  %v667_v27 = vpop.f32.mrf.mxu0  ;;  %v795_v28 = vpop.f32.mrf.mxu1 }
 0x140   :  { %vm854_vm0 = vcmp.ge.f32.partialorder %v666_v23, 0.0  ;;  %v918_v29 = vmul.f32 0.2, %v666_v23  ;;  %vm886_vm1 = vcmp.ge.f32.partialorder %v794_v24, 0.0  ;;  %v950_v30 = vmul.f32 0.2, %v794_v24 }
 0x141   :  { %1302 = vst.msk [vmem:[%s2307_s3 + $0x54] sm:$0xf] %vm1280_vm3, %v1540_v25  ;;  %1334 = vst.msk [vmem:[%s2307_s3 + $0xd4] sm:$0xf] %vm1280_vm3, %v1572_v26  ;;  %v668_v31 = vpop.f32.mrf.mxu0  ;;  %v796_v32 = vpop.f32.mrf.mxu1 }
 0x142   :  { %v982_v33 = vsel %vm854_vm0, %v666_v23, %v918_v29  ;;  %v1014_v34 = vsel %vm886_vm1, %v794_v24, %v950_v30  ;;  %v669_v35 = vadd.f32 %v1982_v10, %v668_v31  ;;  %v797_v36 = vadd.f32 %v1982_v10, %v796_v32 }
 0x143   :  { %v1541_v37 = vpack.c.bf16 %v982_v33, %v982_v33  ;;  %v1573_v38 = vpack.c.bf16 %v1014_v34, %v1014_v34  ;;  %v670_v39 = vpop.f32.mrf.mxu0  ;;  %v798_v40 = vpop.f32.mrf.mxu1 }
 0x144   :  { %vm855_vm2 = vcmp.ge.f32.partialorder %v669_v35, 0.0  ;;  %v919_v41 = vmul.f32 0.2, %v669_v35  ;;  %vm887_vm4 = vcmp.ge.f32.partialorder %v797_v36, 0.0  ;;  %v951_v42 = vmul.f32 0.2, %v797_v36 }
 0x145   :  { %1303 = vst.msk [vmem:[%s2307_s3 + $0x58] sm:$0xf] %vm1280_vm3, %v1541_v37  ;;  %1335 = vst.msk [vmem:[%s2307_s3 + $0xd8] sm:$0xf] %vm1280_vm3, %v1573_v38  ;;  %v673_v43 = vpop.f32.mrf.mxu0  ;;  %v801_v44 = vpop.f32.mrf.mxu1 }
 0x146   :  { %v983_v45 = vsel %vm855_vm2, %v669_v35, %v919_v41  ;;  %v1015_v46 = vsel %vm887_vm4, %v797_v36, %v951_v42  ;;  %v674_v47 = vadd.f32 %v1982_v10, %v673_v43  ;;  %v802_v48 = vadd.f32 %v1982_v10, %v801_v44 }
 0x147   :  { %v1542_v49 = vpack.c.bf16 %v983_v45, %v983_v45  ;;  %v1574_v50 = vpack.c.bf16 %v1015_v46, %v1015_v46  ;;  %v675_v51 = vpop.f32.mrf.mxu0  ;;  %v803_v52 = vpop.f32.mrf.mxu1 }
 0x148   :  { %vm856_vm5 = vcmp.ge.f32.partialorder %v674_v47, 0.0  ;;  %v920_v53 = vmul.f32 0.2, %v674_v47  ;;  %vm888_vm6 = vcmp.ge.f32.partialorder %v802_v48, 0.0  ;;  %v952_v54 = vmul.f32 0.2, %v802_v48 }
 0x149   :  { %1304 = vst.msk [vmem:[%s2307_s3 + $0x5c] sm:$0xf] %vm1280_vm3, %v1542_v49  ;;  %1336 = vst.msk [vmem:[%s2307_s3 + $0xdc] sm:$0xf] %vm1280_vm3, %v1574_v50  ;;  %v676_v55 = vpop.f32.mrf.mxu0  ;;  %v804_v56 = vpop.f32.mrf.mxu1 }
 0x14a   :  { %v984_v57 = vsel %vm856_vm5, %v674_v47, %v920_v53  ;;  %v1016_v58 = vsel %vm888_vm6, %v802_v48, %v952_v54  ;;  %v677_v59 = vadd.f32 %v1982_v10, %v676_v55  ;;  %v805_v60 = vadd.f32 %v1982_v10, %v804_v56 }
 0x14b   :  { %v1543_v61 = vpack.c.bf16 %v984_v57, %v984_v57  ;;  %v1575_v62 = vpack.c.bf16 %v1016_v58, %v1016_v58  ;;  %v678_v63 = vpop.f32.mrf.mxu0  ;;  %v806_v0 = vpop.f32.mrf.mxu1 }
 0x14c   :  { %vm857_vm7 = vcmp.ge.f32.partialorder %v677_v59, 0.0  ;;  %v921_v1 = vmul.f32 0.2, %v677_v59  ;;  %vm889_vm8 = vcmp.ge.f32.partialorder %v805_v60, 0.0  ;;  %v953_v2 = vmul.f32 0.2, %v805_v60 }
 0x14d   :  { %1305 = vst.msk [vmem:[%s2307_s3 + $0x60] sm:$0xf] %vm1280_vm3, %v1543_v61  ;;  %1337 = vst.msk [vmem:[%s2307_s3 + $0xe0] sm:$0xf] %vm1280_vm3, %v1575_v62  ;;  %v681_v3 = vpop.f32.mrf.mxu0  ;;  %v809_v4 = vpop.f32.mrf.mxu1 }
 0x14e   :  { %v985_v5 = vsel %vm857_vm7, %v677_v59, %v921_v1  ;;  %v1017_v6 = vsel %vm889_vm8, %v805_v60, %v953_v2  ;;  %v682_v7 = vadd.f32 %v1982_v10, %v681_v3  ;;  %v810_v8 = vadd.f32 %v1982_v10, %v809_v4 }
 0x14f   :  { %v1544_v9 = vpack.c.bf16 %v985_v5, %v985_v5  ;;  %v1576_v11 = vpack.c.bf16 %v1017_v6, %v1017_v6  ;;  %v683_v12 = vpop.f32.mrf.mxu0  ;;  %v811_v13 = vpop.f32.mrf.mxu1 }
 0x150   :  { %vm858_vm9 = vcmp.ge.f32.partialorder %v682_v7, 0.0  ;;  %v922_v14 = vmul.f32 0.2, %v682_v7  ;;  %vm890_vm10 = vcmp.ge.f32.partialorder %v810_v8, 0.0  ;;  %v954_v15 = vmul.f32 0.2, %v810_v8 }
 0x151   :  { %1306 = vst.msk [vmem:[%s2307_s3 + $0x64] sm:$0xf] %vm1280_vm3, %v1544_v9  ;;  %1338 = vst.msk [vmem:[%s2307_s3 + $0xe4] sm:$0xf] %vm1280_vm3, %v1576_v11  ;;  %v684_v16 = vpop.f32.mrf.mxu0  ;;  %v812_v17 = vpop.f32.mrf.mxu1 }
 0x152   :  { %v986_v18 = vsel %vm858_vm9, %v682_v7, %v922_v14  ;;  %v1018_v19 = vsel %vm890_vm10, %v810_v8, %v954_v15  ;;  %v685_v20 = vadd.f32 %v1982_v10, %v684_v16  ;;  %v813_v21 = vadd.f32 %v1982_v10, %v812_v17 }
 0x153   :  { %v1545_v22 = vpack.c.bf16 %v986_v18, %v986_v18  ;;  %v1577_v23 = vpack.c.bf16 %v1018_v19, %v1018_v19  ;;  %v686_v24 = vpop.f32.mrf.mxu0  ;;  %v814_v25 = vpop.f32.mrf.mxu1 }
 0x154   :  { %vm859_vm11 = vcmp.ge.f32.partialorder %v685_v20, 0.0  ;;  %v923_v26 = vmul.f32 0.2, %v685_v20  ;;  %vm891_vm12 = vcmp.ge.f32.partialorder %v813_v21, 0.0  ;;  %v955_v27 = vmul.f32 0.2, %v813_v21 }
 0x155   :  { %1307 = vst.msk [vmem:[%s2307_s3 + $0x68] sm:$0xf] %vm1280_vm3, %v1545_v22  ;;  %1339 = vst.msk [vmem:[%s2307_s3 + $0xe8] sm:$0xf] %vm1280_vm3, %v1577_v23  ;;  %v689_v28 = vpop.f32.mrf.mxu0  ;;  %v817_v29 = vpop.f32.mrf.mxu1 }
 0x156   :  { %v987_v30 = vsel %vm859_vm11, %v685_v20, %v923_v26  ;;  %v1019_v31 = vsel %vm891_vm12, %v813_v21, %v955_v27  ;;  %v690_v32 = vadd.f32 %v1982_v10, %v689_v28  ;;  %v818_v33 = vadd.f32 %v1982_v10, %v817_v29 }
 0x157   :  { %v1546_v34 = vpack.c.bf16 %v987_v30, %v987_v30  ;;  %v1578_v35 = vpack.c.bf16 %v1019_v31, %v1019_v31  ;;  %v691_v36 = vpop.f32.mrf.mxu0  ;;  %v819_v37 = vpop.f32.mrf.mxu1 }
 0x158   :  { %vm860_vm13 = vcmp.ge.f32.partialorder %v690_v32, 0.0  ;;  %v924_v38 = vmul.f32 0.2, %v690_v32  ;;  %vm892_vm14 = vcmp.ge.f32.partialorder %v818_v33, 0.0  ;;  %v956_v39 = vmul.f32 0.2, %v818_v33 }
 0x159   :  { %1308 = vst.msk [vmem:[%s2307_s3 + $0x6c] sm:$0xf] %vm1280_vm3, %v1546_v34  ;;  %1340 = vst.msk [vmem:[%s2307_s3 + $0xec] sm:$0xf] %vm1280_vm3, %v1578_v35  ;;  %v692_v40 = vpop.f32.mrf.mxu0  ;;  %v820_v41 = vpop.f32.mrf.mxu1 }
 0x15a   :  { %v988_v42 = vsel %vm860_vm13, %v690_v32, %v924_v38  ;;  %v1020_v43 = vsel %vm892_vm14, %v818_v33, %v956_v39  ;;  %v693_v44 = vadd.f32 %v1982_v10, %v692_v40  ;;  %v821_v45 = vadd.f32 %v1982_v10, %v820_v41 }
 0x15b   :  { %v1547_v46 = vpack.c.bf16 %v988_v42, %v988_v42  ;;  %v1579_v47 = vpack.c.bf16 %v1020_v43, %v1020_v43  ;;  %v694_v48 = vpop.f32.mrf.mxu0  ;;  %v822_v49 = vpop.f32.mrf.mxu1 }
 0x15c   :  { %vm861_vm15 = vcmp.ge.f32.partialorder %v693_v44, 0.0  ;;  %v925_v50 = vmul.f32 0.2, %v693_v44  ;;  %vm893_vm0 = vcmp.ge.f32.partialorder %v821_v45, 0.0  ;;  %v957_v51 = vmul.f32 0.2, %v821_v45 }
 0x15d   :  { %1309 = vst.msk [vmem:[%s2307_s3 + $0x70] sm:$0xf] %vm1280_vm3, %v1547_v46  ;;  %1341 = vst.msk [vmem:[%s2307_s3 + $0xf0] sm:$0xf] %vm1280_vm3, %v1579_v47  ;;  %v697_v52 = vpop.f32.mrf.mxu0  ;;  %v825_v53 = vpop.f32.mrf.mxu1 }
 0x15e   :  { %v989_v54 = vsel %vm861_vm15, %v693_v44, %v925_v50  ;;  %v1021_v55 = vsel %vm893_vm0, %v821_v45, %v957_v51  ;;  %v698_v56 = vadd.f32 %v1982_v10, %v697_v52  ;;  %v826_v57 = vadd.f32 %v1982_v10, %v825_v53 }
 0x15f   :  { %v1548_v58 = vpack.c.bf16 %v989_v54, %v989_v54  ;;  %v1580_v59 = vpack.c.bf16 %v1021_v55, %v1021_v55  ;;  %v699_v60 = vpop.f32.mrf.mxu0  ;;  %v827_v61 = vpop.f32.mrf.mxu1 }
 0x160   :  { %vm862_vm1 = vcmp.ge.f32.partialorder %v698_v56, 0.0  ;;  %v926_v62 = vmul.f32 0.2, %v698_v56  ;;  %vm894_vm2 = vcmp.ge.f32.partialorder %v826_v57, 0.0  ;;  %v958_v63 = vmul.f32 0.2, %v826_v57 }
 0x161   :  { %1310 = vst.msk [vmem:[%s2307_s3 + $0x74] sm:$0xf] %vm1280_vm3, %v1548_v58  ;;  %1342 = vst.msk [vmem:[%s2307_s3 + $0xf4] sm:$0xf] %vm1280_vm3, %v1580_v59  ;;  %v700_v0 = vpop.f32.mrf.mxu0  ;;  %v828_v1 = vpop.f32.mrf.mxu1 }
 0x162   :  { %v990_v2 = vsel %vm862_vm1, %v698_v56, %v926_v62  ;;  %v1022_v3 = vsel %vm894_vm2, %v826_v57, %v958_v63  ;;  %v701_v4 = vadd.f32 %v1982_v10, %v700_v0  ;;  %v829_v5 = vadd.f32 %v1982_v10, %v828_v1 }
 0x163   :  { %v1549_v6 = vpack.c.bf16 %v990_v2, %v990_v2  ;;  %v1581_v7 = vpack.c.bf16 %v1022_v3, %v1022_v3  ;;  %v702_v8 = vpop.f32.mrf.mxu0  ;;  %v830_v9 = vpop.f32.mrf.mxu1 }
 0x164   :  { %vm863_vm4 = vcmp.ge.f32.partialorder %v701_v4, 0.0  ;;  %v927_v11 = vmul.f32 0.2, %v701_v4  ;;  %vm895_vm5 = vcmp.ge.f32.partialorder %v829_v5, 0.0  ;;  %v959_v12 = vmul.f32 0.2, %v829_v5 }
 0x165   :  { %1311 = vst.msk [vmem:[%s2307_s3 + $0x78] sm:$0xf] %vm1280_vm3, %v1549_v6  ;;  %1343 = vst.msk [vmem:[%s2307_s3 + $0xf8] sm:$0xf] %vm1280_vm3, %v1581_v7 }
 0x166   :  { %v991_v13 = vsel %vm863_vm4, %v701_v4, %v927_v11  ;;  %v1023_v10 = vsel %vm895_vm5, %v829_v5, %v959_v12 }
 0x167   :  { %v1550_v14 = vpack.c.bf16 %v991_v13, %v991_v13  ;;  %v1582_v15 = vpack.c.bf16 %v1023_v10, %v1023_v10 }
 0x169   :  { %1312 = vst.msk [vmem:[%s2307_s3 + $0x7c] sm:$0xf] %vm1280_vm3, %v1550_v14  ;;  %1344 = vst.msk [vmem:[%s2307_s3 + $0xfc] sm:$0xf] %vm1280_vm3, %v1582_v15 }

// kernel: discriminator_forward.9
= control target key start
LH: loop header
LB: loop body
LE: loop exit
PB: predicated region body
PF: predicated region fallthrough
CT: control target
= control target key end

     0   :  { %vm318_vm0 = vcmask 261120   ;;  %vm649_vm2 = vcmask 519168   ;;  %s1182_s1 = inlined_call_operand.vmem [shape: bf16[288,64], index: 1, kind: input, shape index: {}]   ;;  %s1183_s0 = inlined_call_operand.vmem [shape: bf16[128,288], index: 0, kind: input, shape index: {}]   ;;  %s1184_s2 = inlined_call_operand.vmem [shape: f32[1,64], index: 2, kind: input, shape index: {}]   ;;  %s1185_s3 = inlined_call_operand.vmem [shape: bf16[128,64], index: 3, kind: output, shape index: {}]  }
   0x1   :  { %v863_v0 = vld [vmem:[%s1182_s1 + $0x78] sm:$0xff]   ;;  %v865_v2 = vld [vmem:[%s1182_s1 + $0x70] sm:$0xff]   ;;  %v867_v4 = vld [vmem:[%s1182_s1 + $0x68] sm:$0xff]  }
   0x2   :  { %v864_v1 = vld [vmem:[%s1182_s1 + $0x38] sm:$0xff]   ;;  %753 = vmatprep.subr.bf16.mxu0 %v863_v0  ;;  %847 = vmatprep.subr.bf16.mxu1 %v863_v0  ;;  %v866_v3 = vld [vmem:[%s1182_s1 + $0x30] sm:$0xff]   ;;  %v868_v5 = vld [vmem:[%s1182_s1 + $0x28] sm:$0xff]  }
   0x3   :  { %754 = vmatpush3.bf16.msra.mxu0 %v864_v1  ;;  %855 = vmatpush3.bf16.msra.mxu1 %v864_v1  ;;  %v869_v6 = vld [vmem:[%s1182_s1 + $0x60] sm:$0xff]   ;;  %v871_v8 = vld [vmem:[%s1182_s1 + $0x58] sm:$0xff]   ;;  %v873_v10 = vld [vmem:[%s1182_s1 + $0x50] sm:$0xff]  }
   0x4   :  { %755 = vmatprep.subr.bf16.mxu0 %v865_v2  ;;  %848 = vmatprep.subr.bf16.mxu1 %v865_v2  ;;  %v870_v7 = vld [vmem:[%s1182_s1 + $0x20] sm:$0xff]   ;;  %v872_v9 = vld [vmem:[%s1182_s1 + $0x18] sm:$0xff]   ;;  %v874_v13 = vld [vmem:[%s1182_s1 + $0x10] sm:$0xff]  }
   0x5   :  { %v881_v11 = vld [vmem:[%s1183_s0 + $0x4] ss:$12 sps:$4 sm:$0xff]   ;;  %v884_v12 = vld [vmem:[%s1183_s0 + $0x94] ss:$12 sps:$4 sm:$0xff]   ;;  %v875_v14 = vld [vmem:[%s1182_s1 + $0x48] sm:$0xff]  }
   0x6   :  { %375 = vmatprep.mubr.bf16.mxu0 %v881_v11  ;;  %423 = vmatprep.mubr.bf16.mxu1 %v884_v12  ;;  %v876_v15 = vld [vmem:[%s1182_s1 + $0x8] sm:$0xff]   ;;  %v877_v16 = vld [vmem:[%s1182_s1 + $0x40] sm:$0xff]   ;;  %v882_v20 = vld [vmem:[%s1183_s0 + $0x90] ss:$12 sps:$4 sm:$0xff]  }
   0x7   :  { %756 = vmatpush3.bf16.msra.mxu0 %v866_v3  ;;  %856 = vmatpush3.bf16.msra.mxu1 %v866_v3  ;;  %v878_v17 = vld [vmem:[%s1182_s1] sm:$0xff]   ;;  %v885_v19 = vld [vmem:[%s1182_s1 + $0x88] sm:$0xff]   ;;  %v896_v28 = vld [vmem:[%s1183_s0 + $0x30] ss:$12 sps:$4 sm:$0xff]  }
   0x8   :  { %757 = vmatprep.subr.bf16.mxu0 %v867_v4  ;;  %849 = vmatprep.subr.bf16.mxu1 %v867_v4  ;;  %v879_v18 = vld [vmem:[%s1183_s0] ss:$12 sps:$4 sm:$0xff]   ;;  %v886_v21 = vld [vmem:[%s1183_s0 + $0x1c] ss:$12 sps:$4 sm:$0xff]   ;;  %v890_v24 = vld [vmem:[%s1183_s0 + $0x18] ss:$12 sps:$4 sm:$0xff]  }
   0x9   :  { %v888_v22 = vld [vmem:[%s1183_s0 + $0xac] ss:$12 sps:$4 sm:$0xff]   ;;  %v892_v23 = vld [vmem:[%s1182_s1 + $0x80] sm:$0xff]   ;;  %v891_v25 = vld [vmem:[%s1183_s0 + $0xa8] ss:$12 sps:$4 sm:$0xff]  }
   0xa   :  { %v893_v26 = vld [vmem:[%s1183_s0 + $0x34] ss:$12 sps:$4 sm:$0xff]   ;;  %v898_v30 = vld [vmem:[%s1183_s0 + $0x4c] ss:$12 sps:$4 sm:$0xff]   ;;  %v902_v33 = vld [vmem:[%s1183_s0 + $0x50] ss:$12 sps:$4 sm:$0xff]  }
   0xb   :  { %758 = vmatpush3.bf16.msra.mxu0 %v868_v5  ;;  %857 = vmatpush3.bf16.msra.mxu1 %v868_v5  ;;  %v895_v27 = vld [vmem:[%s1183_s0 + $0x8] ss:$12 sps:$4 sm:$0xff]   ;;  %v897_v29 = vld [vmem:[%s1183_s0 + $0x20] ss:$12 sps:$4 sm:$0xff]   ;;  %v900_v31 = vld [vmem:[%s1183_s0 + $0x38] ss:$12 sps:$4 sm:$0xff]  }
   0xc   :  { %759 = vmatprep.subr.bf16.mxu0 %v869_v6  ;;  %850 = vmatprep.subr.bf16.mxu1 %v869_v6  ;;  %v901_v32 = vld [vmem:[%s1183_s0 + $0x48] ss:$12 sps:$4 sm:$0xff]   ;;  %v903_v34 = vld [vmem:[%s1183_s0 + $0x64] ss:$12 sps:$4 sm:$0xff]   ;;  %v906_v36 = vld [vmem:[%s1183_s0 + $0x60] ss:$12 sps:$4 sm:$0xff]  }
   0xd   :  { %v905_v35 = vld [vmem:[%s1183_s0 + $0x68] ss:$12 sps:$4 sm:$0xff]   ;;  %v907_v37 = vld [vmem:[%s1183_s0 + $0x80] ss:$12 sps:$4 sm:$0xff]   ;;  %v910_v39 = vld [vmem:[%s1183_s0 + $0x98] ss:$12 sps:$4 sm:$0xff]  }
   0xe   :  { %v908_v38 = vld [vmem:[%s1183_s0 + $0x7c] ss:$12 sps:$4 sm:$0xff]   ;;  %v911_v40 = vld [vmem:[%s1183_s0 + $0x78] ss:$12 sps:$4 sm:$0xff]   ;;  %v1086_v60 = vld [vmem:[%s1184_s2] ss:$0 sm:$0xff] }
   0xf   :  { %760 = vmatpush3.bf16.msra.mxu0 %v870_v7  ;;  %858 = vmatpush3.bf16.msra.mxu1 %v870_v7  ;;  %v912_v41 = vld [vmem:[%s1183_s0 + $0xb0] ss:$12 sps:$4 sm:$0xff]  }
  0x10   :  { %761 = vmatprep.subr.bf16.mxu0 %v871_v8  ;;  %851 = vmatprep.subr.bf16.mxu1 %v871_v8 }
  0x13   :  { %762 = vmatpush3.bf16.msra.mxu0 %v872_v9  ;;  %859 = vmatpush3.bf16.msra.mxu1 %v872_v9 }
  0x14   :  { %763 = vmatprep.subr.bf16.mxu0 %v873_v10  ;;  %852 = vmatprep.subr.bf16.mxu1 %v873_v10 }
  0x17   :  { %764 = vmatpush3.bf16.msra.mxu0 %v874_v13  ;;  %860 = vmatpush3.bf16.msra.mxu1 %v874_v13 }
  0x18   :  { %765 = vmatprep.subr.bf16.mxu0 %v875_v14  ;;  %853 = vmatprep.subr.bf16.mxu1 %v875_v14 }
  0x1b   :  { %766 = vmatpush3.bf16.msra.mxu0 %v876_v15  ;;  %861 = vmatpush3.bf16.msra.mxu1 %v876_v15 }
  0x1c   :  { %767 = vmatprep.subr.bf16.mxu0 %v877_v16  ;;  %854 = vmatprep.subr.bf16.mxu1 %v877_v16 }
  0x1f   :  { %768 = vmatpush3.bf16.msra.mxu0 %v878_v17  ;;  %862 = vmatpush3.bf16.msra.mxu1 %v878_v17 }
  0x20   :  { %827 = vmatprep.subr.bf16.mxu1 %v885_v19 }
  0x22   :  { %376 = vmatmul.mubr.bf16.vlgmr.msra.gmra.mxu0 %v879_v18  ;;  %424 = vmatmul.mubr.bf16.vlgmr.msra.gmra.mxu1 %v882_v20 }
  0x23   :  { %828 = vmatpush3.bf16.msra.mxu1 %v885_v19  ;;  %383 = vmatprep.mubr.bf16.mxu0 %v886_v21 }
  0x24   :  { %431 = vmatprep.mubr.bf16.mxu1 %v888_v22  ;;  %829 = vmatprep.subr.bf16.mxu1 %v892_v23 }
  0x27   :  { %830 = vmatpush3.bf16.msra.mxu1 %v892_v23 }
  0x2a   :  { %384 = vmatmul.mubr.bf16.gmra.mxu0 %v890_v24  ;;  %432 = vmatmul.mubr.bf16.gmra.mxu1 %v891_v25 }
  0x2b   :  { %391 = vmatprep.mubr.bf16.mxu0 %v893_v26  ;;  %831 = vmatprep.mubr.msk.bf16.mxu1 %vm318_vm0, %v895_v27 }
  0x32   :  { %392 = vmatmul.mubr.bf16.gmra.mxu0 %v896_v28  ;;  %832 = vmatmul.mubr.msk.bf16.vlgmr.msra.gmra.mxu1 %vm318_vm0, %v897_v29 }
  0x33   :  { %399 = vmatprep.mubr.bf16.mxu0 %v898_v30  ;;  %835 = vmatprep.mubr.msk.bf16.mxu1 %vm318_vm0, %v900_v31 }
  0x3a   :  { %400 = vmatmul.mubr.bf16.gmra.mxu0 %v901_v32  ;;  %836 = vmatmul.mubr.msk.bf16.gmra.mxu1 %vm318_vm0, %v902_v33 }
  0x3b   :  { %407 = vmatprep.mubr.bf16.mxu0 %v903_v34  ;;  %839 = vmatprep.mubr.msk.bf16.mxu1 %vm318_vm0, %v905_v35 }
  0x42   :  { %408 = vmatmul.mubr.bf16.gmra.mxu0 %v906_v36  ;;  %840 = vmatmul.mubr.msk.bf16.gmra.mxu1 %vm318_vm0, %v907_v37 }
  0x43   :  { %415 = vmatprep.mubr.bf16.mxu0 %v908_v38  ;;  %843 = vmatprep.mubr.msk.bf16.mxu1 %vm318_vm0, %v910_v39 }
  0x4a   :  { %416 = vmatmul.mubr.bf16.gmra.mxu0 %v911_v40  ;;  %844 = vmatmul.mubr.msk.bf16.gmra.mxu1 %vm318_vm0, %v912_v41 }
  0xe2   :  { %v769_v42 = vpop.f32.mrf.mxu0  ;;  %v1067_v43 = vpop.f32.mrf.mxu1 }
  0xe4   :  { %v770_v44 = vpop.f32.mrf.mxu0  ;;  %v1069_v45 = vpop.f32.mrf.mxu1 }
  0xe5   :  { %v771_v57 = vadd.f32 %v770_v44, %v769_v42 }
  0xe6   :  { %v772_v46 = vpop.f32.mrf.mxu0  ;;  %v1071_v47 = vpop.f32.mrf.mxu1 }
  0xe7   :  { %v378_v2 = vadd.f32 %v771_v57, %v1086_v60 }
  0xe8   :  { %v773_v48 = vpop.f32.mrf.mxu0  ;;  %v1073_v49 = vpop.f32.mrf.mxu1 }
  0xe9   :  { %v774_v3 = vadd.f32 %v773_v48, %v772_v46 }
  0xea   :  { %v775_v50 = vpop.f32.mrf.mxu0  ;;  %v1075_v51 = vpop.f32.mrf.mxu1 }
  0xeb   :  { %v381_v17 = vadd.f32 %v774_v3, %v1086_v60 }
  0xec   :  { %v776_v52 = vpop.f32.mrf.mxu0  ;;  %v1077_v53 = vpop.f32.mrf.mxu1 }
  0xed   :  { %v777_v54 = vadd.f32 %v776_v52, %v775_v50 }
  0xee   :  { %v778_v55 = vpop.f32.mrf.mxu0  ;;  %v1079_v56 = vpop.f32.mrf.mxu1 }
  0xef   :  { %v386_v62 = vadd.f32 %v777_v54, %v1086_v60 }
  0xf0   :  { %v779_v58 = vpop.f32.mrf.mxu0  ;;  %v1081_v59 = vpop.f32.mrf.mxu1 }
  0xf1   :  { %v780_v61 = vadd.f32 %v779_v58, %v778_v55 }
  0xf2   :  { %v781_v63 = vpop.f32.mrf.mxu0  ;;  %v833_v0 = vpop.f32.mrf.mxu1 }
  0xf3   :  { %v483_v1 = vadd.f32 %v833_v0, %v386_v62  ;;  %v389_v8 = vadd.f32 %v780_v61, %v1086_v60  ;;  %v813_v0 = vadd.f32 %v1077_v53, %v1075_v51 }
  0xf4   :  { %v782_v4 = vpop.f32.mrf.mxu0  ;;  %v474_v5 = vpop.f32.mrf.mxu1 }
  0xf5   :  { %vm539_vm1 = vcmp.ge.f32.partialorder %v483_v1, 0.0  ;;  %v555_v6 = vmul.f32 0.2, %v483_v1  ;;  %v475_v7 = vadd.f32 %v474_v5, %v378_v2  ;;  %v783_v9 = vadd.f32 %v782_v4, %v781_v63 }
  0xf6   :  { %v784_v10 = vpop.f32.mrf.mxu0  ;;  %v834_v11 = vpop.f32.mrf.mxu1 }
  0xf7   :  { %v571_v12 = vsel %vm539_vm1, %v483_v1, %v555_v6  ;;  %vm537_vm3 = vcmp.ge.f32.partialorder %v475_v7, 0.0  ;;  %v553_v13 = vmul.f32 0.2, %v475_v7  ;;  %v486_v14 = vadd.f32 %v834_v11, %v389_v8 }
  0xf8   :  { %v739_v15 = vpack.c.bf16 %v571_v12, %v571_v12  ;;  %v785_v16 = vpop.f32.mrf.mxu0  ;;  %v477_v18 = vpop.f32.mrf.mxu1  ;;  %v394_v27 = vadd.f32 %v783_v9, %v1086_v60  ;;  %v807_v11 = vadd.f32 %v1069_v45, %v1067_v43  ;;  %v816_v12 = vadd.f32 %v1081_v59, %v1079_v56 }
  0xf9   :  { %v569_v19 = vsel %vm537_vm3, %v475_v7, %v553_v13  ;;  %vm540_vm4 = vcmp.ge.f32.partialorder %v486_v14, 0.0  ;;  %v556_v20 = vmul.f32 0.2, %v486_v14  ;;  %v786_v22 = vadd.f32 %v785_v16, %v784_v10 }
  0xfa   :  { %652 = vst.msk [vmem:[%s1185_s3 + $0x8] sm:$0xf] %vm649_vm2, %v739_v15  ;;  %v737_v21 = vpack.c.bf16 %v569_v19, %v569_v19  ;;  %v478_v23 = vadd.f32 %v477_v18, %v381_v17  ;;  %v787_v24 = vpop.f32.mrf.mxu0  ;;  %v837_v25 = vpop.f32.mrf.mxu1  ;;  %v434_v43 = vadd.f32 %v813_v0, %v1086_v60  ;;  %v810_v45 = vadd.f32 %v1073_v49, %v1071_v47 }
  0xfb   :  { %v572_v26 = vsel %vm540_vm4, %v486_v14, %v556_v20  ;;  %v397_v37 = vadd.f32 %v786_v22, %v1086_v60 }
  0xfc   :  { %650 = vst.msk [vmem:[%s1185_s3] sm:$0xf] %vm649_vm2, %v737_v21  ;;  %v740_v28 = vpack.c.bf16 %v572_v26, %v572_v26  ;;  %vm538_vm5 = vcmp.ge.f32.partialorder %v478_v23, 0.0  ;;  %v554_v29 = vmul.f32 0.2, %v478_v23  ;;  %v788_v30 = vpop.f32.mrf.mxu0  ;;  %v490_v31 = vpop.f32.mrf.mxu1  ;;  %v426_v21 = vadd.f32 %v807_v11, %v1086_v60 }
  0xfd   :  { %v789_v32 = vadd.f32 %v788_v30, %v787_v24  ;;  %v491_v33 = vadd.f32 %v490_v31, %v394_v27  ;;  %v429_v30 = vadd.f32 %v810_v45, %v1086_v60 }
  0xfe   :  { %653 = vst.msk [vmem:[%s1185_s3 + $0xc] sm:$0xf] %vm649_vm2, %v740_v28  ;;  %v570_v34 = vsel %vm538_vm5, %v478_v23, %v554_v29  ;;  %v790_v35 = vpop.f32.mrf.mxu0  ;;  %v838_v36 = vpop.f32.mrf.mxu1  ;;  %v437_v23 = vadd.f32 %v816_v12, %v1086_v60 }
  0xff   :  { %v738_v38 = vpack.c.bf16 %v570_v34, %v570_v34  ;;  %v402_v39 = vadd.f32 %v789_v32, %v1086_v60  ;;  %vm541_vm6 = vcmp.ge.f32.partialorder %v491_v33, 0.0  ;;  %v557_v40 = vmul.f32 0.2, %v491_v33 }
 0x100   :  { %v791_v41 = vpop.f32.mrf.mxu0  ;;  %v493_v42 = vpop.f32.mrf.mxu1 }
 0x101   :  { %651 = vst.msk [vmem:[%s1185_s3 + $0x4] sm:$0xf] %vm649_vm2, %v738_v38  ;;  %v499_v44 = vadd.f32 %v837_v25, %v402_v39  ;;  %v573_v46 = vsel %vm541_vm6, %v491_v33, %v557_v40  ;;  %v792_v48 = vadd.f32 %v791_v41, %v790_v35  ;;  %v494_v50 = vadd.f32 %v493_v42, %v397_v37 }
 0x102   :  { %v741_v52 = vpack.c.bf16 %v573_v46, %v573_v46  ;;  %v793_v54 = vpop.f32.mrf.mxu0  ;;  %v1111_v55 = vpop.f32.mrf.mxu1 }
 0x103   :  { %vm543_vm7 = vcmp.ge.f32.partialorder %v499_v44, 0.0  ;;  %v559_v57 = vmul.f32 0.2, %v499_v44  ;;  %v405_v58 = vadd.f32 %v792_v48, %v1086_v60  ;;  %vm542_vm8 = vcmp.ge.f32.partialorder %v494_v50, 0.0 }
 0x104   :  { %654 = vst.msk [vmem:[%s1185_s3 + $0x10] sm:$0xf] %vm649_vm2, %v741_v52  ;;  %v558_v61 = vmul.f32 0.2, %v494_v50  ;;  %v794_v62 = vpop.f32.mrf.mxu0  ;;  %v506_v63 = vpop.f32.mrf.mxu1 }
 0x105   :  { %v575_v1 = vsel %vm543_vm7, %v499_v44, %v559_v57  ;;  %v502_v2 = vadd.f32 %v838_v36, %v405_v58  ;;  %v795_v3 = vadd.f32 %v794_v62, %v793_v54 }
 0x106   :  { %v743_v4 = vpack.c.bf16 %v575_v1, %v575_v1  ;;  %v574_v5 = vsel %vm542_vm8, %v494_v50, %v558_v61  ;;  %v796_v6 = vpop.f32.mrf.mxu0  ;;  %v1120_v7 = vpop.f32.mrf.mxu1 }
 0x107   :  { %vm544_vm9 = vcmp.ge.f32.partialorder %v502_v2, 0.0  ;;  %v560_v8 = vmul.f32 0.2, %v502_v2  ;;  %v742_v9 = vpack.c.bf16 %v574_v5, %v574_v5  ;;  %v410_v10 = vadd.f32 %v795_v3, %v1086_v60 }
 0x108   :  { %656 = vst.msk [vmem:[%s1185_s3 + $0x18] sm:$0xf] %vm649_vm2, %v743_v4  ;;  %v797_v51 = vpop.f32.mrf.mxu0  ;;  %v509_v53 = vpop.f32.mrf.mxu1 }
 0x109   :  { %v576_v13 = vsel %vm544_vm9, %v502_v2, %v560_v8  ;;  %655 = vst.msk [vmem:[%s1185_s3 + $0x14] sm:$0xf] %vm649_vm2, %v742_v9  ;;  %v507_v14 = vadd.f32 %v506_v63, %v410_v10  ;;  %v798_v15 = vadd.f32 %v797_v51, %v796_v6 }
 0x10a   :  { %v744_v56 = vpack.c.bf16 %v576_v13, %v576_v13  ;;  %v799_v59 = vpop.f32.mrf.mxu0  ;;  %v845_v16 = vpop.f32.mrf.mxu1 }
 0x10b   :  { %vm545_vm10 = vcmp.ge.f32.partialorder %v507_v14, 0.0  ;;  %v561_v17 = vmul.f32 0.2, %v507_v14  ;;  %v413_v18 = vadd.f32 %v798_v15, %v1086_v60  ;;  %v531_v19 = vadd.f32 %v845_v16, %v434_v43 }
 0x10c   :  { %657 = vst.msk [vmem:[%s1185_s3 + $0x1c] sm:$0xf] %vm649_vm2, %v744_v56  ;;  %v800_v20 = vpop.f32.mrf.mxu0  ;;  %v522_v22 = vpop.f32.mrf.mxu1 }
 0x10d   :  { %v577_v47 = vsel %vm545_vm10, %v507_v14, %v561_v17  ;;  %v510_v49 = vadd.f32 %v509_v53, %v413_v18  ;;  %vm551_vm11 = vcmp.ge.f32.partialorder %v531_v19, 0.0  ;;  %v567_v24 = vmul.f32 0.2, %v531_v19 }
 0x10e   :  { %v745_v25 = vpack.c.bf16 %v577_v47, %v577_v47  ;;  %v801_v26 = vadd.f32 %v800_v20, %v799_v59  ;;  %v523_v27 = vadd.f32 %v522_v22, %v426_v21  ;;  %v802_v28 = vpop.f32.mrf.mxu0  ;;  %v846_v29 = vpop.f32.mrf.mxu1 }
 0x10f   :  { %vm546_vm12 = vcmp.ge.f32.partialorder %v510_v49, 0.0  ;;  %v562_v31 = vmul.f32 0.2, %v510_v49  ;;  %v583_v32 = vsel %vm551_vm11, %v531_v19, %v567_v24  ;;  %v534_v33 = vadd.f32 %v846_v29, %v437_v23 }
 0x110   :  { %658 = vst.msk [vmem:[%s1185_s3 + $0x20] sm:$0xf] %vm649_vm2, %v745_v25  ;;  %v751_v34 = vpack.c.bf16 %v583_v32, %v583_v32  ;;  %v418_v35 = vadd.f32 %v801_v26, %v1086_v60  ;;  %vm549_vm13 = vcmp.ge.f32.partialorder %v523_v27, 0.0  ;;  %v565_v36 = vmul.f32 0.2, %v523_v27  ;;  %v803_v37 = vpop.f32.mrf.mxu0  ;;  %v525_v38 = vpop.f32.mrf.mxu1 }
 0x111   :  { %v578_v39 = vsel %vm546_vm12, %v510_v49, %v562_v31  ;;  %vm552_vm14 = vcmp.ge.f32.partialorder %v534_v33, 0.0  ;;  %v568_v40 = vmul.f32 0.2, %v534_v33  ;;  %v804_v41 = vadd.f32 %v803_v37, %v802_v28 }
 0x112   :  { %v746_v42 = vpack.c.bf16 %v578_v39, %v578_v39  ;;  %664 = vst.msk [vmem:[%s1185_s3 + $0x38] sm:$0xf] %vm649_vm2, %v751_v34  ;;  %v515_v44 = vadd.f32 %v1111_v55, %v418_v35  ;;  %v581_v46 = vsel %vm549_vm13, %v523_v27, %v565_v36  ;;  %v526_v48 = vadd.f32 %v525_v38, %v429_v30 }
 0x113   :  { %v749_v50 = vpack.c.bf16 %v581_v46, %v581_v46  ;;  %v584_v52 = vsel %vm552_vm14, %v534_v33, %v568_v40  ;;  %v421_v54 = vadd.f32 %v804_v41, %v1086_v60 }
 0x114   :  { %659 = vst.msk [vmem:[%s1185_s3 + $0x24] sm:$0xf] %vm649_vm2, %v746_v42  ;;  %vm547_vm15 = vcmp.ge.f32.partialorder %v515_v44, 0.0  ;;  %v563_v57 = vmul.f32 0.2, %v515_v44  ;;  %v752_v58 = vpack.c.bf16 %v584_v52, %v584_v52  ;;  %vm550_vm0 = vcmp.ge.f32.partialorder %v526_v48, 0.0 }
 0x115   :  { %662 = vst.msk [vmem:[%s1185_s3 + $0x30] sm:$0xf] %vm649_vm2, %v749_v50  ;;  %v518_v55 = vadd.f32 %v1120_v7, %v421_v54  ;;  %v566_v61 = vmul.f32 0.2, %v526_v48 }
 0x116   :  { %v579_v62 = vsel %vm547_vm15, %v515_v44, %v563_v57  ;;  %665 = vst.msk [vmem:[%s1185_s3 + $0x3c] sm:$0xf] %vm649_vm2, %v752_v58 }
 0x117   :  { %v747_v60 = vpack.c.bf16 %v579_v62, %v579_v62  ;;  %vm548_vm1 = vcmp.ge.f32.partialorder %v518_v55, 0.0  ;;  %v564_v63 = vmul.f32 0.2, %v518_v55  ;;  %v582_v0 = vsel %vm550_vm0, %v526_v48, %v566_v61 }
 0x118   :  { %v750_v1 = vpack.c.bf16 %v582_v0, %v582_v0 }
 0x119   :  { %660 = vst.msk [vmem:[%s1185_s3 + $0x28] sm:$0xf] %vm649_vm2, %v747_v60  ;;  %v580_v2 = vsel %vm548_vm1, %v518_v55, %v564_v63 }
 0x11a   :  { %v748_v3 = vpack.c.bf16 %v580_v2, %v580_v2  ;;  %663 = vst.msk [vmem:[%s1185_s3 + $0x34] sm:$0xf] %vm649_vm2, %v750_v1 }
 0x11c   :  { %661 = vst.msk [vmem:[%s1185_s3 + $0x2c] sm:$0xf] %vm649_vm2, %v748_v3 }

// kernel: discriminator_forward.10
= control target key start
LH: loop header
LB: loop body
LE: loop exit
PB: predicated region body
PF: predicated region fallthrough
CT: control target
= control target key end

     0   :  { %vm558_vm0 = vcmask 523264   ;;  %s1785_s1 = inlined_call_operand.vmem [shape: bf16[576,128], index: 1, kind: input, shape index: {}]   ;;  %s1786_s0 = inlined_call_operand.vmem [shape: bf16[128,576], index: 0, kind: input, shape index: {}]   ;;  %s1787_s2 = inlined_call_operand.vmem [shape: f32[1,128], index: 2, kind: input, shape index: {}]   ;;  %s1788_s3 = inlined_call_operand.vmem [shape: bf16[128,128], index: 3, kind: output, shape index: {}]  }
   0x1   :  { %v1342_v0 = vld [vmem:[%s1785_s1 + $0x78] sm:$0xff]   ;;  %v1346_v4 = vld [vmem:[%s1785_s1 + $0x70] sm:$0xff]   ;;  %v1350_v8 = vld [vmem:[%s1785_s1 + $0x68] sm:$0xff]  }
   0x2   :  { %v1343_v1 = vld [vmem:[%s1785_s1 + $0xf8] sm:$0xff]   ;;  %1170 = vmatprep.subr.bf16.mxu0 %v1342_v0  ;;  %v1347_v5 = vld [vmem:[%s1785_s1 + $0xf0] sm:$0xff]   ;;  %v1351_v9 = vld [vmem:[%s1785_s1 + $0xe8] sm:$0xff]  }
   0x3   :  { %v1344_v2 = vld [vmem:[%s1785_s1 + $0x38] sm:$0xff]   ;;  %1234 = vmatprep.subr.bf16.mxu1 %v1343_v1  ;;  %v1348_v6 = vld [vmem:[%s1785_s1 + $0x30] sm:$0xff]   ;;  %v1352_v10 = vld [vmem:[%s1785_s1 + $0x28] sm:$0xff]  }
   0x4   :  { %v1345_v3 = vld [vmem:[%s1785_s1 + $0xb8] sm:$0xff]   ;;  %1171 = vmatpush3.bf16.msra.mxu0 %v1344_v2  ;;  %v1349_v7 = vld [vmem:[%s1785_s1 + $0xb0] sm:$0xff]   ;;  %v1353_v11 = vld [vmem:[%s1785_s1 + $0xa8] sm:$0xff]  }
   0x5   :  { %1235 = vmatpush3.bf16.msra.mxu1 %v1345_v3  ;;  %1172 = vmatprep.subr.bf16.mxu0 %v1346_v4  ;;  %v1354_v12 = vld [vmem:[%s1785_s1 + $0x60] sm:$0xff]   ;;  %v1358_v16 = vld [vmem:[%s1785_s1 + $0x58] sm:$0xff]   ;;  %v1362_v20 = vld [vmem:[%s1785_s1 + $0x50] sm:$0xff]  }
   0x6   :  { %1236 = vmatprep.subr.bf16.mxu1 %v1347_v5  ;;  %v1355_v13 = vld [vmem:[%s1785_s1 + $0xe0] sm:$0xff]   ;;  %v1359_v17 = vld [vmem:[%s1785_s1 + $0xd8] sm:$0xff]   ;;  %v1363_v21 = vld [vmem:[%s1785_s1 + $0xd0] sm:$0xff]  }
   0x7   :  { %v1356_v14 = vld [vmem:[%s1785_s1 + $0x20] sm:$0xff]   ;;  %v1360_v18 = vld [vmem:[%s1785_s1 + $0x18] sm:$0xff]   ;;  %v1364_v22 = vld [vmem:[%s1785_s1 + $0x10] sm:$0xff]  }
   0x8   :  { %1173 = vmatpush3.bf16.msra.mxu0 %v1348_v6  ;;  %v1357_v15 = vld [vmem:[%s1785_s1 + $0xa0] sm:$0xff]   ;;  %v1361_v19 = vld [vmem:[%s1785_s1 + $0x98] sm:$0xff]   ;;  %v1365_v23 = vld [vmem:[%s1785_s1 + $0x90] sm:$0xff]  }
   0x9   :  { %1237 = vmatpush3.bf16.msra.mxu1 %v1349_v7  ;;  %1174 = vmatprep.subr.bf16.mxu0 %v1350_v8  ;;  %v1366_v24 = vld [vmem:[%s1785_s1 + $0x48] sm:$0xff]   ;;  %v1370_v28 = vld [vmem:[%s1785_s1 + $0x40] sm:$0xff]   ;;  %v1380_v36 = vld [vmem:[%s1785_s1 + $0x118] sm:$0xff]  }
   0xa   :  { %1238 = vmatprep.subr.bf16.mxu1 %v1351_v9  ;;  %v1367_v25 = vld [vmem:[%s1785_s1 + $0xc8] sm:$0xff]   ;;  %v1371_v29 = vld [vmem:[%s1785_s1 + $0xc0] sm:$0xff]   ;;  %v1393_v42 = vld [vmem:[%s1785_s1 + $0x110] sm:$0xff]  }
   0xb   :  { %v1368_v26 = vld [vmem:[%s1785_s1 + $0x8] sm:$0xff]   ;;  %v1372_v30 = vld [vmem:[%s1785_s1] sm:$0xff]   ;;  %v1389_v43 = vld [vmem:[%s1786_s0 + $0x5c] ss:$20 sps:$4 sm:$0xff]  }
   0xc   :  { %1175 = vmatpush3.bf16.msra.mxu0 %v1352_v10  ;;  %v1369_v27 = vld [vmem:[%s1785_s1 + $0x88] sm:$0xff]   ;;  %v1373_v31 = vld [vmem:[%s1785_s1 + $0x80] sm:$0xff]   ;;  %v1394_v47 = vld [vmem:[%s1786_s0 + $0x7c] ss:$20 sps:$4 sm:$0xff]  }
   0xd   :  { %1239 = vmatpush3.bf16.msra.mxu1 %v1353_v11  ;;  %1176 = vmatprep.subr.bf16.mxu0 %v1354_v12  ;;  %v1374_v32 = vld [vmem:[%s1786_s0] ss:$20 sps:$4 sm:$0xff]   ;;  %v1376_v33 = vld [vmem:[%s1786_s0 + $0x4] ss:$20 sps:$4 sm:$0xff]   ;;  %v1377_v34 = vld [vmem:[%s1786_s0 + $0x8] ss:$20 sps:$4 sm:$0xff]  }
   0xe   :  { %1240 = vmatprep.subr.bf16.mxu1 %v1355_v13  ;;  %v1379_v35 = vld [vmem:[%s1786_s0 + $0xc] ss:$20 sps:$4 sm:$0xff]   ;;  %615 = vmatprep.mubr.bf16.mxu0 %v1376_v33  ;;  %v1383_v38 = vld [vmem:[%s1786_s0 + $0x34] ss:$20 sps:$4 sm:$0xff]   ;;  %v1386_v40 = vld [vmem:[%s1786_s0 + $0x30] ss:$20 sps:$4 sm:$0xff]  }
   0xf   :  { %712 = vmatprep.mubr.bf16.mxu1 %v1379_v35  ;;  %v1381_v37 = vld [vmem:[%s1786_s0 + $0x2c] ss:$20 sps:$4 sm:$0xff]   ;;  %v1385_v39 = vld [vmem:[%s1786_s0 + $0x28] ss:$20 sps:$4 sm:$0xff]   ;;  %v1391_v44 = vld [vmem:[%s1786_s0 + $0x50] ss:$20 sps:$4 sm:$0xff]  }
  0x10   :  { %1177 = vmatpush3.bf16.msra.mxu0 %v1356_v14  ;;  %v1387_v41 = vld [vmem:[%s1786_s0 + $0x54] ss:$20 sps:$4 sm:$0xff]   ;;  %v1392_v45 = vld [vmem:[%s1786_s0 + $0x58] ss:$20 sps:$4 sm:$0xff]   ;;  %v1419_v49 = vld [vmem:[%s1785_s1 + $0x100] sm:$0xff]  }
  0x11   :  { %1241 = vmatpush3.bf16.msra.mxu1 %v1357_v15  ;;  %1178 = vmatprep.subr.bf16.mxu0 %v1358_v16  ;;  %v1406_v46 = vld [vmem:[%s1785_s1 + $0x108] sm:$0xff]   ;;  %v1396_v48 = vld [vmem:[%s1786_s0 + $0x84] ss:$20 sps:$4 sm:$0xff]   ;;  %v1399_v51 = vld [vmem:[%s1786_s0 + $0x80] ss:$20 sps:$4 sm:$0xff]  }
  0x12   :  { %1242 = vmatprep.subr.bf16.mxu1 %v1359_v17  ;;  %v1398_v50 = vld [vmem:[%s1786_s0 + $0x78] ss:$20 sps:$4 sm:$0xff]   ;;  %v1404_v54 = vld [vmem:[%s1786_s0 + $0xa0] ss:$20 sps:$4 sm:$0xff]   ;;  %v1405_v55 = vld [vmem:[%s1786_s0 + $0xa8] ss:$20 sps:$4 sm:$0xff]  }
  0x13   :  { %v1400_v52 = vld [vmem:[%s1786_s0 + $0xa4] ss:$20 sps:$4 sm:$0xff]   ;;  %v1402_v53 = vld [vmem:[%s1786_s0 + $0xac] ss:$20 sps:$4 sm:$0xff]   ;;  %v1409_v57 = vld [vmem:[%s1786_s0 + $0xd4] ss:$20 sps:$4 sm:$0xff]  }
  0x14   :  { %1179 = vmatpush3.bf16.msra.mxu0 %v1360_v18  ;;  %v1407_v56 = vld [vmem:[%s1786_s0 + $0xcc] ss:$20 sps:$4 sm:$0xff]   ;;  %v1411_v58 = vld [vmem:[%s1786_s0 + $0xc8] ss:$20 sps:$4 sm:$0xff]   ;;  %v1412_v59 = vld [vmem:[%s1786_s0 + $0xd0] ss:$20 sps:$4 sm:$0xff]  }
  0x15   :  { %1243 = vmatpush3.bf16.msra.mxu1 %v1361_v19  ;;  %1180 = vmatprep.subr.bf16.mxu0 %v1362_v20  ;;  %v1413_v60 = vld [vmem:[%s1786_s0 + $0xf4] ss:$20 sps:$4 sm:$0xff]   ;;  %v1415_v61 = vld [vmem:[%s1786_s0 + $0xfc] ss:$20 sps:$4 sm:$0xff]   ;;  %v1418_v63 = vld [vmem:[%s1786_s0 + $0xf8] ss:$20 sps:$4 sm:$0xff]  }
  0x16   :  { %1244 = vmatprep.subr.bf16.mxu1 %v1363_v21  ;;  %v1417_v62 = vld [vmem:[%s1786_s0 + $0xf0] ss:$20 sps:$4 sm:$0xff]   ;;  %v1424_v2 = vld [vmem:[%s1786_s0 + $0x118] ss:$20 sps:$4 sm:$0xff]   ;;  %v1425_v3 = vld [vmem:[%s1786_s0 + $0x120] ss:$20 sps:$4 sm:$0xff]  }
  0x17   :  { %v1420_v0 = vld [vmem:[%s1786_s0 + $0x11c] ss:$20 sps:$4 sm:$0xff]   ;;  %v1422_v1 = vld [vmem:[%s1786_s0 + $0x124] ss:$20 sps:$4 sm:$0xff]   ;;  %v1430_v8 = vld [vmem:[%s1786_s0 + $0x60] ss:$20 sps:$4 sm:$0xff]  }
  0x18   :  { %1181 = vmatpush3.bf16.msra.mxu0 %v1364_v22  ;;  %v1426_v4 = vld [vmem:[%s1786_s0 + $0x10] ss:$20 sps:$4 sm:$0xff]   ;;  %v1428_v6 = vld [vmem:[%s1786_s0 + $0x38] ss:$20 sps:$4 sm:$0xff]   ;;  %v1431_v9 = vld [vmem:[%s1786_s0 + $0x100] ss:$20 sps:$4 sm:$0xff]  }
  0x19   :  { %1245 = vmatpush3.bf16.msra.mxu1 %v1365_v23  ;;  %1182 = vmatprep.subr.bf16.mxu0 %v1366_v24  ;;  %v1427_v5 = vld [vmem:[%s1786_s0 + $0xb0] ss:$20 sps:$4 sm:$0xff]   ;;  %v1429_v7 = vld [vmem:[%s1786_s0 + $0xd8] ss:$20 sps:$4 sm:$0xff]   ;;  %v1432_v10 = vld [vmem:[%s1786_s0 + $0x88] ss:$20 sps:$4 sm:$0xff]  }
  0x1a   :  { %1246 = vmatprep.subr.bf16.mxu1 %v1367_v25  ;;  %v1433_v11 = vld [vmem:[%s1786_s0 + $0x128] ss:$20 sps:$4 sm:$0xff]   ;;  %v1693_v14 = vld [vmem:[%s1787_s2] ss:$0 sm:$0xff] }
  0x1c   :  { %1183 = vmatpush3.bf16.msra.mxu0 %v1368_v26 }
  0x1d   :  { %1247 = vmatpush3.bf16.msra.mxu1 %v1369_v27  ;;  %1184 = vmatprep.subr.bf16.mxu0 %v1370_v28 }
  0x1e   :  { %1248 = vmatprep.subr.bf16.mxu1 %v1371_v29 }
  0x20   :  { %1185 = vmatpush3.bf16.msra.mxu0 %v1372_v30 }
  0x21   :  { %1249 = vmatpush3.bf16.msra.mxu1 %v1373_v31  ;;  %1310 = vmatprep.subr.bf16.mxu0 %v1380_v36 }
  0x22   :  { %1334 = vmatprep.subr.bf16.mxu1 %v1380_v36 }
  0x23   :  { %616 = vmatmul.mubr.bf16.vlgmr.msra.gmra.mxu0 %v1374_v32 }
  0x24   :  { %713 = vmatmul.mubr.bf16.vlgmr.msra.gmra.mxu1 %v1377_v34  ;;  %1311 = vmatpush3.bf16.msra.mxu0 %v1380_v36 }
  0x25   :  { %1338 = vmatpush3.bf16.msra.mxu1 %v1380_v36  ;;  %623 = vmatprep.mubr.bf16.mxu0 %v1381_v37 }
  0x26   :  { %720 = vmatprep.mubr.bf16.mxu1 %v1383_v38  ;;  %1312 = vmatprep.subr.bf16.mxu0 %v1393_v42 }
  0x27   :  { %1335 = vmatprep.subr.bf16.mxu1 %v1393_v42 }
  0x28   :  { %1313 = vmatpush3.bf16.msra.mxu0 %v1393_v42 }
  0x29   :  { %1339 = vmatpush3.bf16.msra.mxu1 %v1393_v42  ;;  %1314 = vmatprep.subr.bf16.mxu0 %v1406_v46 }
  0x2a   :  { %1336 = vmatprep.subr.bf16.mxu1 %v1406_v46 }
  0x2b   :  { %624 = vmatmul.mubr.bf16.gmra.mxu0 %v1385_v39 }
  0x2c   :  { %721 = vmatmul.mubr.bf16.gmra.mxu1 %v1386_v40  ;;  %631 = vmatprep.mubr.bf16.mxu0 %v1387_v41 }
  0x2d   :  { %728 = vmatprep.mubr.bf16.mxu1 %v1389_v43  ;;  %1315 = vmatpush3.bf16.msra.mxu0 %v1406_v46 }
  0x2e   :  { %1340 = vmatpush3.bf16.msra.mxu1 %v1406_v46  ;;  %1316 = vmatprep.subr.bf16.mxu0 %v1419_v49 }
  0x2f   :  { %1337 = vmatprep.subr.bf16.mxu1 %v1419_v49 }
  0x31   :  { %1317 = vmatpush3.bf16.msra.mxu0 %v1419_v49 }
  0x32   :  { %1341 = vmatpush3.bf16.msra.mxu1 %v1419_v49 }
  0x33   :  { %632 = vmatmul.mubr.bf16.gmra.mxu0 %v1391_v44 }
  0x34   :  { %729 = vmatmul.mubr.bf16.gmra.mxu1 %v1392_v45  ;;  %639 = vmatprep.mubr.bf16.mxu0 %v1394_v47 }
  0x35   :  { %736 = vmatprep.mubr.bf16.mxu1 %v1396_v48 }
  0x3b   :  { %640 = vmatmul.mubr.bf16.gmra.mxu0 %v1398_v50 }
  0x3c   :  { %737 = vmatmul.mubr.bf16.gmra.mxu1 %v1399_v51  ;;  %647 = vmatprep.mubr.bf16.mxu0 %v1400_v52 }
  0x3d   :  { %744 = vmatprep.mubr.bf16.mxu1 %v1402_v53 }
  0x43   :  { %648 = vmatmul.mubr.bf16.gmra.mxu0 %v1404_v54 }
  0x44   :  { %745 = vmatmul.mubr.bf16.gmra.mxu1 %v1405_v55  ;;  %655 = vmatprep.mubr.bf16.mxu0 %v1407_v56 }
  0x45   :  { %752 = vmatprep.mubr.bf16.mxu1 %v1409_v57 }
  0x4b   :  { %656 = vmatmul.mubr.bf16.gmra.mxu0 %v1411_v58 }
  0x4c   :  { %753 = vmatmul.mubr.bf16.gmra.mxu1 %v1412_v59  ;;  %663 = vmatprep.mubr.bf16.mxu0 %v1413_v60 }
  0x4d   :  { %760 = vmatprep.mubr.bf16.mxu1 %v1415_v61 }
  0x53   :  { %664 = vmatmul.mubr.bf16.gmra.mxu0 %v1417_v62 }
  0x54   :  { %761 = vmatmul.mubr.bf16.gmra.mxu1 %v1418_v63  ;;  %671 = vmatprep.mubr.bf16.mxu0 %v1420_v0 }
  0x55   :  { %768 = vmatprep.mubr.bf16.mxu1 %v1422_v1 }
  0x5b   :  { %672 = vmatmul.mubr.bf16.gmra.mxu0 %v1424_v2 }
  0x5c   :  { %769 = vmatmul.mubr.bf16.gmra.mxu1 %v1425_v3  ;;  %1318 = vmatprep.mubr.msk.bf16.mxu0 %vm558_vm0, %v1426_v4 }
  0x5d   :  { %1326 = vmatprep.mubr.msk.bf16.mxu1 %vm558_vm0, %v1427_v5 }
  0x63   :  { %1319 = vmatmul.mubr.msk.bf16.vlgmr.msra.gmra.mxu0 %vm558_vm0, %v1428_v6 }
  0x64   :  { %1327 = vmatmul.mubr.msk.bf16.vlgmr.msra.gmra.mxu1 %vm558_vm0, %v1429_v7  ;;  %1322 = vmatprep.mubr.msk.bf16.mxu0 %vm558_vm0, %v1430_v8 }
  0x65   :  { %1330 = vmatprep.mubr.msk.bf16.mxu1 %vm558_vm0, %v1431_v9 }
  0x6b   :  { %1323 = vmatmul.mubr.msk.bf16.gmra.mxu0 %vm558_vm0, %v1432_v10 }
  0x6c   :  { %1331 = vmatmul.mubr.msk.bf16.gmra.mxu1 %vm558_vm0, %v1433_v11 }
  0xe3   :  { %v1186_v12 = vpop.f32.mrf.mxu0 }
  0xe4   :  { %v1250_v13 = vpop.f32.mrf.mxu1 }
  0xe5   :  { %v1187_v15 = vpop.f32.mrf.mxu0 }
  0xe6   :  { %v1188_v16 = vadd.f32 %v1187_v15, %v1186_v12  ;;  %v1251_v17 = vpop.f32.mrf.mxu1 }
  0xe7   :  { %v1189_v18 = vpop.f32.mrf.mxu0  ;;  %v1252_v20 = vadd.f32 %v1251_v17, %v1250_v13 }
  0xe8   :  { %v618_v19 = vadd.f32 %v1188_v16, %v1693_v14  ;;  %v1253_v21 = vpop.f32.mrf.mxu1 }
  0xe9   :  { %v1190_v22 = vpop.f32.mrf.mxu0 }
  0xea   :  { %v1254_v23 = vpop.f32.mrf.mxu1  ;;  %v1696_v24 = vadd.f32 %v1252_v20, %v618_v19  ;;  %v1191_v3 = vadd.f32 %v1190_v22, %v1189_v18 }
  0xeb   :  { %v1192_v25 = vpop.f32.mrf.mxu0  ;;  %v1255_v13 = vadd.f32 %v1254_v23, %v1253_v21 }
  0xec   :  { %1789 = vst [vmem:[#allocation2_spill] sm:$0xff] %v1696_v24  ;;  %v1256_v26 = vpop.f32.mrf.mxu1  ;;  %v621_v12 = vadd.f32 %v1191_v3, %v1693_v14 }
  0xed   :  { %v1193_v27 = vpop.f32.mrf.mxu0 }
  0xee   :  { %v1257_v28 = vpop.f32.mrf.mxu1  ;;  %v1194_v4 = vadd.f32 %v1193_v27, %v1192_v25 }
  0xef   :  { %v1195_v29 = vpop.f32.mrf.mxu0  ;;  %v1258_v19 = vadd.f32 %v1257_v28, %v1256_v26  ;;  %v1717_v28 = vadd.f32 %v1255_v13, %v621_v12 }
  0xf0   :  { %v1259_v30 = vpop.f32.mrf.mxu1  ;;  %v626_v15 = vadd.f32 %v1194_v4, %v1693_v14 }
  0xf1   :  { %v1196_v31 = vpop.f32.mrf.mxu0 }
  0xf2   :  { %v1260_v32 = vpop.f32.mrf.mxu1  ;;  %v1197_v5 = vadd.f32 %v1196_v31, %v1195_v29  ;;  %v723_v24 = vadd.f32 %v1258_v19, %v626_v15 }
  0xf3   :  { %v1198_v33 = vpop.f32.mrf.mxu0  ;;  %v1261_v20 = vadd.f32 %v1260_v32, %v1259_v30 }
  0xf4   :  { %v1262_v34 = vpop.f32.mrf.mxu1  ;;  %v629_v16 = vadd.f32 %v1197_v5, %v1693_v14 }
  0xf5   :  { %v1199_v35 = vpop.f32.mrf.mxu0 }
  0xf6   :  { %v1263_v36 = vpop.f32.mrf.mxu1  ;;  %v1200_v7 = vadd.f32 %v1199_v35, %v1198_v33  ;;  %v726_v26 = vadd.f32 %v1261_v20, %v629_v16 }
  0xf7   :  { %v1201_v37 = vpop.f32.mrf.mxu0 }
  0xf8   :  { %v1698_v38 = vpop.f32.mrf.mxu1  ;;  %v634_v18 = vadd.f32 %v1200_v7, %v1693_v14 }
  0xf9   :  { %v1202_v39 = vpop.f32.mrf.mxu0 }
  0xfa   :  { %v1266_v40 = vpop.f32.mrf.mxu1  ;;  %v1203_v27 = vadd.f32 %v1202_v39, %v1201_v37 }
  0xfb   :  { %v1204_v41 = vpop.f32.mrf.mxu0  ;;  %v1720_v30 = vadd.f32 %v1266_v40, %v1698_v38 }
  0xfc   :  { %v1268_v42 = vpop.f32.mrf.mxu1 }
  0xfd   :  { %v1205_v43 = vpop.f32.mrf.mxu0 }
  0xfe   :  { %v1269_v44 = vpop.f32.mrf.mxu1  ;;  %v1206_v9 = vadd.f32 %v1205_v43, %v1204_v41  ;;  %v1264_v41 = vadd.f32 %v1263_v36, %v1262_v34  ;;  %v1726_v34 = vadd.f32 %v1203_v27, %v1693_v14 }
  0xff   :  { %v1207_v45 = vpop.f32.mrf.mxu0  ;;  %v1270_v4 = vadd.f32 %v1269_v44, %v1268_v42 }
 0x100   :  { %v1700_v46 = vpop.f32.mrf.mxu1  ;;  %v642_v29 = vadd.f32 %v1206_v9, %v1693_v14 }
 0x101   :  { %v1208_v47 = vpop.f32.mrf.mxu0 }
 0x102   :  { %v1702_v48 = vpop.f32.mrf.mxu1  ;;  %v1209_v22 = vadd.f32 %v1208_v47, %v1207_v45  ;;  %v1723_v45 = vadd.f32 %v1264_v41, %v634_v18  ;;  %v1730_v47 = vadd.f32 %v1270_v4, %v642_v29 }
 0x103   :  { %v1210_v49 = vpop.f32.mrf.mxu0  ;;  %v1273_v38 = vadd.f32 %v1702_v48, %v1700_v46 }
 0x104   :  { %v1704_v50 = vpop.f32.mrf.mxu1  ;;  %v645_v32 = vadd.f32 %v1209_v22, %v1693_v14 }
 0x105   :  { %v1211_v51 = vpop.f32.mrf.mxu0 }
 0x106   :  { %v1706_v52 = vpop.f32.mrf.mxu1  ;;  %v1212_v31 = vadd.f32 %v1211_v51, %v1210_v49  ;;  %v1742_v7 = vadd.f32 %v1273_v38, %v645_v32 }
 0x107   :  { %v1213_v53 = vpop.f32.mrf.mxu0 }
 0x108   :  { %v1708_v54 = vpop.f32.mrf.mxu1  ;;  %v650_v36 = vadd.f32 %v1212_v31, %v1693_v14 }
 0x109   :  { %v1214_v55 = vpop.f32.mrf.mxu0 }
 0x10a   :  { %v1710_v56 = vpop.f32.mrf.mxu1  ;;  %v1215_v43 = vadd.f32 %v1214_v55, %v1213_v53  ;;  %v1276_v55 = vadd.f32 %v1706_v52, %v1704_v50 }
 0x10b   :  { %v1216_v57 = vpop.f32.mrf.mxu0 }
 0x10c   :  { %v1280_v58 = vpop.f32.mrf.mxu1  ;;  %v653_v40 = vadd.f32 %v1215_v43, %v1693_v14  ;;  %v747_v16 = vadd.f32 %v1276_v55, %v650_v36 }
 0x10d   :  { %v1217_v59 = vpop.f32.mrf.mxu0 }
 0x10e   :  { %v1281_v60 = vpop.f32.mrf.mxu1  ;;  %v1218_v33 = vadd.f32 %v1217_v59, %v1216_v57 }
 0x10f   :  { %v1219_v61 = vpop.f32.mrf.mxu0  ;;  %v1282_v57 = vadd.f32 %v1281_v60, %v1280_v58 }
 0x110   :  { %v1283_v62 = vpop.f32.mrf.mxu1  ;;  %v658_v42 = vadd.f32 %v1218_v33, %v1693_v14 }
 0x111   :  { %v1220_v63 = vpop.f32.mrf.mxu0 }
 0x112   :  { %v1284_v0 = vpop.f32.mrf.mxu1  ;;  %v1221_v21 = vadd.f32 %v1220_v63, %v1219_v61  ;;  %v755_v15 = vadd.f32 %v1282_v57, %v658_v42 }
 0x113   :  { %v1222_v1 = vpop.f32.mrf.mxu0 }
 0x114   :  { %v1286_v2 = vpop.f32.mrf.mxu1  ;;  %v661_v49 = vadd.f32 %v1221_v21, %v1693_v14 }
 0x115   :  { %v1223_v6 = vpop.f32.mrf.mxu0 }
 0x116   :  { %v1287_v8 = vpop.f32.mrf.mxu1  ;;  %v1224_v23 = vadd.f32 %v1223_v6, %v1222_v1  ;;  %v1279_v1 = vadd.f32 %v1710_v56, %v1708_v54  ;;  %v1285_v6 = vadd.f32 %v1284_v0, %v1283_v62 }
 0x117   :  { %v1225_v10 = vpop.f32.mrf.mxu0  ;;  %v1288_v46 = vadd.f32 %v1287_v8, %v1286_v2  ;;  %v1790_v8 = vld [vmem:[#allocation2_spill] sm:$0xff] }
 0x118   :  { %v1289_v11 = vpop.f32.mrf.mxu1  ;;  %v666_v51 = vadd.f32 %v1224_v23, %v1693_v14  ;;  %v758_v52 = vadd.f32 %v1285_v6, %v661_v49  ;;  %v750_v58 = vadd.f32 %v1279_v1, %v653_v40 }
 0x119   :  { %v1226_v17 = vpop.f32.mrf.mxu0 }
 0x11a   :  { %v1290_v25 = vpop.f32.mrf.mxu1  ;;  %v1227_v59 = vadd.f32 %v1226_v17, %v1225_v10  ;;  %v763_v60 = vadd.f32 %v1288_v46, %v666_v51 }
 0x11b   :  { %v1228_v35 = vpop.f32.mrf.mxu0  ;;  %v1747_v17 = vadd.f32 %v1290_v25, %v1289_v11 }
 0x11c   :  { %v1292_v3 = vpop.f32.mrf.mxu1  ;;  %v1745_v10 = vadd.f32 %v1227_v59, %v1693_v14 }
 0x11d   :  { %v1229_v5 = vpop.f32.mrf.mxu0 }
 0x11e   :  { %v1230_v37 = vadd.f32 %v1229_v5, %v1228_v35  ;;  %v1293_v39 = vpop.f32.mrf.mxu1 }
 0x11f   :  { %v1231_v44 = vpop.f32.mrf.mxu0  ;;  %v1294_v9 = vadd.f32 %v1293_v39, %v1292_v3 }
 0x120   :  { %v1295_v53 = vpop.f32.mrf.mxu1  ;;  %v674_v61 = vadd.f32 %v1230_v37, %v1693_v14 }
 0x121   :  { %v1232_v63 = vpop.f32.mrf.mxu0 }
 0x122   :  { %v1296_v48 = vpop.f32.mrf.mxu1  ;;  %v1233_v12 = vadd.f32 %v1232_v63, %v1231_v44  ;;  %v771_v62 = vadd.f32 %v1294_v9, %v674_v61 }
 0x123   :  { %v1320_v13 = vpop.f32.mrf.mxu0  ;;  %v1297_v0 = vadd.f32 %v1296_v48, %v1295_v53 }
 0x124   :  { %v820_v19 = vadd.f32 %v1320_v13, %v723_v24  ;;  %v1328_v50 = vpop.f32.mrf.mxu1  ;;  %v677_v24 = vadd.f32 %v1233_v12, %v1693_v14 }
 0x125   :  { %v852_v54 = vadd.f32 %v1328_v50, %v755_v15  ;;  %v811_v56 = vpop.f32.mrf.mxu0  ;;  %v734_v15 = vadd.f32 %v1720_v30, %v1726_v34 }
 0x126   :  { %vm876_vm1 = vcmp.ge.f32.partialorder %v820_v19, 0.0  ;;  %v892_v2 = vmul.f32 0.2, %v820_v19  ;;  %v812_v20 = vadd.f32 %v811_v56, %v1790_v8  ;;  %v843_v18 = vpop.f32.mrf.mxu1  ;;  %v774_v13 = vadd.f32 %v1297_v0, %v677_v24 }
 0x127   :  { %vm884_vm2 = vcmp.ge.f32.partialorder %v852_v54, 0.0  ;;  %v900_v22 = vmul.f32 0.2, %v852_v54  ;;  %v844_v27 = vadd.f32 %v843_v18, %v747_v16  ;;  %v1321_v29 = vpop.f32.mrf.mxu0  ;;  %v766_v16 = vadd.f32 %v1747_v17, %v1745_v10 }
 0x128   :  { %v908_v31 = vsel %vm876_vm1, %v820_v19, %v892_v2  ;;  %vm874_vm3 = vcmp.ge.f32.partialorder %v812_v20, 0.0  ;;  %v890_v33 = vmul.f32 0.2, %v812_v20  ;;  %v823_v11 = vadd.f32 %v1321_v29, %v726_v26  ;;  %v1329_v25 = vpop.f32.mrf.mxu1 }
 0x129   :  { %v916_v35 = vsel %vm884_vm2, %v852_v54, %v900_v22  ;;  %vm882_vm4 = vcmp.ge.f32.partialorder %v844_v27, 0.0  ;;  %v898_v41 = vmul.f32 0.2, %v844_v27  ;;  %v855_v43 = vadd.f32 %v1329_v25, %v758_v52  ;;  %v814_v21 = vpop.f32.mrf.mxu0 }
 0x12a   :  { %v906_v23 = vsel %vm874_vm3, %v812_v20, %v890_v33  ;;  %vm877_vm5 = vcmp.ge.f32.partialorder %v823_v11, 0.0  ;;  %v893_v3 = vmul.f32 0.2, %v823_v11  ;;  %v815_v4 = vadd.f32 %v814_v21, %v1717_v28  ;;  %v846_v14 = vpop.f32.mrf.mxu1 }
 0x12b   :  { %v914_v5 = vsel %vm882_vm4, %v844_v27, %v898_v41  ;;  %vm885_vm6 = vcmp.ge.f32.partialorder %v855_v43, 0.0  ;;  %v901_v32 = vmul.f32 0.2, %v855_v43  ;;  %v847_v37 = vadd.f32 %v846_v14, %v750_v58  ;;  %v1324_v39 = vpop.f32.mrf.mxu0 }
 0x12c   :  { %v909_v36 = vsel %vm877_vm5, %v823_v11, %v893_v3  ;;  %vm875_vm7 = vcmp.ge.f32.partialorder %v815_v4, 0.0  ;;  %v891_v26 = vmul.f32 0.2, %v815_v4  ;;  %v836_v42 = vadd.f32 %v1324_v39, %v1730_v47  ;;  %v1332_v44 = vpop.f32.mrf.mxu1 }
 0x12d   :  { %v1131_v38 = vpack.c.bf16 %v909_v36, %v908_v31  ;;  %v917_v40 = vsel %vm885_vm6, %v855_v43, %v901_v32  ;;  %vm883_vm8 = vcmp.ge.f32.partialorder %v847_v37, 0.0  ;;  %v899_v49 = vmul.f32 0.2, %v847_v37  ;;  %v827_v51 = vpop.f32.mrf.mxu0 }
 0x12e   :  { %v1151_v53 = vpack.c.bf16 %v917_v40, %v916_v35  ;;  %v907_v55 = vsel %vm875_vm7, %v815_v4, %v891_v26  ;;  %vm880_vm9 = vcmp.ge.f32.partialorder %v836_v42, 0.0  ;;  %v896_v28 = vmul.f32 0.2, %v836_v42  ;;  %v859_v57 = vpop.f32.mrf.mxu1 }
 0x12f   :  { %1163 = vst [vmem:[%s1788_s3 + $0x8] sm:$0xff] %v1131_v38   ;;  %v1126_v59 = vpack.c.bf16 %v907_v55, %v906_v23  ;;  %v915_v61 = vsel %vm883_vm8, %v847_v37, %v899_v49  ;;  %v868_v63 = vadd.f32 %v1332_v44, %v771_v62  ;;  %v828_v47 = vadd.f32 %v827_v51, %v1723_v45  ;;  %v1325_v1 = vpop.f32.mrf.mxu0 }
 0x130   :  { %1167 = vst [vmem:[%s1788_s3 + $0x28] sm:$0xff] %v1151_v53   ;;  %v1146_v6 = vpack.c.bf16 %v915_v61, %v914_v5  ;;  %v860_v46 = vadd.f32 %v859_v57, %v763_v60  ;;  %v839_v48 = vadd.f32 %v1325_v1, %v1742_v7  ;;  %v1333_v9 = vpop.f32.mrf.mxu1  ;;  %v912_v12 = vsel %vm880_vm9, %v836_v42, %v896_v28 }
 0x131   :  { %1127 = vst [vmem:[%s1788_s3] sm:$0xff] %v1126_v59   ;;  %v830_v45 = vpop.f32.mrf.mxu0  ;;  %vm888_vm10 = vcmp.ge.f32.partialorder %v868_v63, 0.0  ;;  %v904_v7 = vmul.f32 0.2, %v868_v63  ;;  %vm878_vm12 = vcmp.ge.f32.partialorder %v828_v47, 0.0  ;;  %v894_v52 = vmul.f32 0.2, %v828_v47 }
 0x132   :  { %1166 = vst [vmem:[%s1788_s3 + $0x20] sm:$0xff] %v1146_v6   ;;  %vm881_vm11 = vcmp.ge.f32.partialorder %v839_v48, 0.0  ;;  %v897_v19 = vmul.f32 0.2, %v839_v48  ;;  %v862_v50 = vpop.f32.mrf.mxu1  ;;  %v871_v58 = vadd.f32 %v1333_v9, %v774_v13  ;;  %v831_v60 = vadd.f32 %v830_v45, %v734_v15 }
 0x133   :  { %vm886_vm13 = vcmp.ge.f32.partialorder %v860_v46, 0.0  ;;  %v902_v54 = vmul.f32 0.2, %v860_v46  ;;  %v863_v34 = vadd.f32 %v862_v50, %v766_v16  ;;  %v920_v0 = vsel %vm888_vm10, %v868_v63, %v904_v7 }
 0x134   :  { %v913_v30 = vsel %vm881_vm11, %v839_v48, %v897_v19  ;;  %vm889_vm14 = vcmp.ge.f32.partialorder %v871_v58, 0.0  ;;  %v905_v10 = vmul.f32 0.2, %v871_v58  ;;  %vm879_vm15 = vcmp.ge.f32.partialorder %v831_v60, 0.0 }
 0x135   :  { %v1141_v56 = vpack.c.bf16 %v913_v30, %v912_v12  ;;  %v895_v17 = vmul.f32 0.2, %v831_v60  ;;  %vm887_vm0 = vcmp.ge.f32.partialorder %v863_v34, 0.0  ;;  %v903_v62 = vmul.f32 0.2, %v863_v34 }
 0x136   :  { %v910_v2 = vsel %vm878_vm12, %v828_v47, %v894_v52  ;;  %v921_v8 = vsel %vm889_vm14, %v871_v58, %v905_v10  ;;  %v918_v20 = vsel %vm886_vm13, %v860_v46, %v902_v54 }
 0x137   :  { %1165 = vst [vmem:[%s1788_s3 + $0x18] sm:$0xff] %v1141_v56   ;;  %v1161_v18 = vpack.c.bf16 %v921_v8, %v920_v0  ;;  %v911_v24 = vsel %vm879_vm15, %v831_v60, %v895_v17  ;;  %v919_v22 = vsel %vm887_vm0, %v863_v34, %v903_v62 }
 0x138   :  { %v1136_v27 = vpack.c.bf16 %v911_v24, %v910_v2  ;;  %v1156_v29 = vpack.c.bf16 %v919_v22, %v918_v20 }
 0x139   :  { %1169 = vst [vmem:[%s1788_s3 + $0x38] sm:$0xff] %v1161_v18  }
 0x13a   :  { %1164 = vst [vmem:[%s1788_s3 + $0x10] sm:$0xff] %v1136_v27   ;;  %1168 = vst [vmem:[%s1788_s3 + $0x30] sm:$0xff] %v1156_v29  }

// kernel: discriminator_forward.11
= control target key start
LH: loop header
LB: loop body
LE: loop exit
PB: predicated region body
PF: predicated region fallthrough
CT: control target
= control target key end

     0   :  { %s2277_s1 = inlined_call_operand.vmem [shape: bf16[1152,256], index: 1, kind: input, shape index: {}]   ;;  %s2278_s0 = inlined_call_operand.vmem [shape: bf16[32,1152], index: 0, kind: input, shape index: {}]   ;;  %s2279_s2 = inlined_call_operand.vmem [shape: f32[1,256], index: 2, kind: input, shape index: {}]   ;;  %s2280_s3 = inlined_call_operand.vmem [shape: bf16[32,256], index: 3, kind: output, shape index: {}]  }
   0x1   :  { %v1511_v0 = vld [vmem:[%s2277_s1 + $0x74] ss:$8 sps:$4 sm:$0xff]   ;;  %v1515_v2 = vld [vmem:[%s2277_s1 + $0x70] ss:$8 sps:$4 sm:$0xff]   ;;  %v1517_v4 = vld [vmem:[%s2277_s1 + $0x64] ss:$8 sps:$4 sm:$0xff]  }
   0x2   :  { %v1513_v1 = vld [vmem:[%s2277_s1 + $0x174] ss:$8 sps:$4 sm:$0xff]   ;;  %1003 = vmatprep.subr.bf16.mxu0 %v1511_v0  ;;  %v1516_v3 = vld [vmem:[%s2277_s1 + $0x170] ss:$8 sps:$4 sm:$0xff]   ;;  %v1519_v5 = vld [vmem:[%s2277_s1 + $0x164] ss:$8 sps:$4 sm:$0xff]  }
   0x3   :  { %1056 = vmatprep.subr.bf16.mxu1 %v1513_v1  ;;  %1004 = vmatpush1.bf16.msra.mxu0 %v1515_v2  ;;  %v1521_v6 = vld [vmem:[%s2277_s1 + $0x60] ss:$8 sps:$4 sm:$0xff]   ;;  %v1523_v8 = vld [vmem:[%s2277_s1 + $0x54] ss:$8 sps:$4 sm:$0xff]   ;;  %v1527_v10 = vld [vmem:[%s2277_s1 + $0x50] ss:$8 sps:$4 sm:$0xff]  }
   0x4   :  { %1057 = vmatpush1.bf16.msra.mxu1 %v1516_v3  ;;  %1005 = vmatprep.subr.bf16.mxu0 %v1517_v4  ;;  %v1522_v7 = vld [vmem:[%s2277_s1 + $0x160] ss:$8 sps:$4 sm:$0xff]   ;;  %v1525_v9 = vld [vmem:[%s2277_s1 + $0x154] ss:$8 sps:$4 sm:$0xff]   ;;  %v1528_v11 = vld [vmem:[%s2277_s1 + $0x150] ss:$8 sps:$4 sm:$0xff]  }
   0x5   :  { %1058 = vmatprep.subr.bf16.mxu1 %v1519_v5  ;;  %v1529_v12 = vld [vmem:[%s2277_s1 + $0x44] ss:$8 sps:$4 sm:$0xff]   ;;  %v1533_v14 = vld [vmem:[%s2277_s1 + $0x40] ss:$8 sps:$4 sm:$0xff]   ;;  %v1535_v16 = vld [vmem:[%s2277_s1 + $0x34] ss:$8 sps:$4 sm:$0xff]  }
   0x6   :  { %v1531_v13 = vld [vmem:[%s2277_s1 + $0x144] ss:$8 sps:$4 sm:$0xff]   ;;  %v1534_v15 = vld [vmem:[%s2277_s1 + $0x140] ss:$8 sps:$4 sm:$0xff]   ;;  %v1537_v17 = vld [vmem:[%s2277_s1 + $0x134] ss:$8 sps:$4 sm:$0xff]  }
   0x7   :  { %1006 = vmatpush1.bf16.msra.mxu0 %v1521_v6  ;;  %v1539_v18 = vld [vmem:[%s2277_s1 + $0x30] ss:$8 sps:$4 sm:$0xff]   ;;  %v1541_v20 = vld [vmem:[%s2277_s1 + $0x24] ss:$8 sps:$4 sm:$0xff]   ;;  %v1545_v22 = vld [vmem:[%s2277_s1 + $0x20] ss:$8 sps:$4 sm:$0xff]  }
   0x8   :  { %1059 = vmatpush1.bf16.msra.mxu1 %v1522_v7  ;;  %1007 = vmatprep.subr.bf16.mxu0 %v1523_v8  ;;  %v1540_v19 = vld [vmem:[%s2277_s1 + $0x130] ss:$8 sps:$4 sm:$0xff]   ;;  %v1543_v21 = vld [vmem:[%s2277_s1 + $0x124] ss:$8 sps:$4 sm:$0xff]   ;;  %v1546_v23 = vld [vmem:[%s2277_s1 + $0x120] ss:$8 sps:$4 sm:$0xff]  }
   0x9   :  { %1060 = vmatprep.subr.bf16.mxu1 %v1525_v9  ;;  %v1547_v24 = vld [vmem:[%s2277_s1 + $0x14] ss:$8 sps:$4 sm:$0xff]   ;;  %v1551_v26 = vld [vmem:[%s2277_s1 + $0x10] ss:$8 sps:$4 sm:$0xff]   ;;  %v1553_v28 = vld [vmem:[%s2277_s1 + $0x4] ss:$8 sps:$4 sm:$0xff]  }
   0xa   :  { %v1549_v25 = vld [vmem:[%s2277_s1 + $0x114] ss:$8 sps:$4 sm:$0xff]   ;;  %v1552_v27 = vld [vmem:[%s2277_s1 + $0x110] ss:$8 sps:$4 sm:$0xff]   ;;  %v1555_v29 = vld [vmem:[%s2277_s1 + $0x104] ss:$8 sps:$4 sm:$0xff]  }
   0xb   :  { %1008 = vmatpush1.bf16.msra.mxu0 %v1527_v10  ;;  %v1557_v30 = vld [vmem:[%s2277_s1] ss:$8 sps:$4 sm:$0xff]   ;;  %v1559_v32 = vld [vmem:[%s2277_s1 + $0xf4] ss:$8 sps:$4 sm:$0xff]   ;;  %v1563_v34 = vld [vmem:[%s2277_s1 + $0xf0] ss:$8 sps:$4 sm:$0xff]  }
   0xc   :  { %1061 = vmatpush1.bf16.msra.mxu1 %v1528_v11  ;;  %1009 = vmatprep.subr.bf16.mxu0 %v1529_v12  ;;  %v1558_v31 = vld [vmem:[%s2277_s1 + $0x100] ss:$8 sps:$4 sm:$0xff]   ;;  %v1561_v33 = vld [vmem:[%s2277_s1 + $0x1f4] ss:$8 sps:$4 sm:$0xff]   ;;  %v1564_v35 = vld [vmem:[%s2277_s1 + $0x1f0] ss:$8 sps:$4 sm:$0xff]  }
   0xd   :  { %1062 = vmatprep.subr.bf16.mxu1 %v1531_v13  ;;  %v1565_v36 = vld [vmem:[%s2277_s1 + $0xe4] ss:$8 sps:$4 sm:$0xff]   ;;  %v1569_v38 = vld [vmem:[%s2277_s1 + $0xe0] ss:$8 sps:$4 sm:$0xff]   ;;  %v1571_v40 = vld [vmem:[%s2277_s1 + $0xd4] ss:$8 sps:$4 sm:$0xff]  }
   0xe   :  { %v1567_v37 = vld [vmem:[%s2277_s1 + $0x1e4] ss:$8 sps:$4 sm:$0xff]   ;;  %v1570_v39 = vld [vmem:[%s2277_s1 + $0x1e0] ss:$8 sps:$4 sm:$0xff]   ;;  %v1573_v41 = vld [vmem:[%s2277_s1 + $0x1d4] ss:$8 sps:$4 sm:$0xff]  }
   0xf   :  { %1010 = vmatpush1.bf16.msra.mxu0 %v1533_v14  ;;  %v1575_v42 = vld [vmem:[%s2277_s1 + $0xd0] ss:$8 sps:$4 sm:$0xff]   ;;  %v1577_v44 = vld [vmem:[%s2277_s1 + $0xc4] ss:$8 sps:$4 sm:$0xff]   ;;  %v1581_v46 = vld [vmem:[%s2277_s1 + $0xc0] ss:$8 sps:$4 sm:$0xff]  }
  0x10   :  { %1063 = vmatpush1.bf16.msra.mxu1 %v1534_v15  ;;  %1011 = vmatprep.subr.bf16.mxu0 %v1535_v16  ;;  %v1576_v43 = vld [vmem:[%s2277_s1 + $0x1d0] ss:$8 sps:$4 sm:$0xff]   ;;  %v1579_v45 = vld [vmem:[%s2277_s1 + $0x1c4] ss:$8 sps:$4 sm:$0xff]   ;;  %v1582_v47 = vld [vmem:[%s2277_s1 + $0x1c0] ss:$8 sps:$4 sm:$0xff]  }
  0x11   :  { %1064 = vmatprep.subr.bf16.mxu1 %v1537_v17  ;;  %v1583_v48 = vld [vmem:[%s2277_s1 + $0xb4] ss:$8 sps:$4 sm:$0xff]   ;;  %v1609_v49 = vld [vmem:[%s2278_s0 + $0x4] ss:$36 sps:$4 sm:$0xff]   ;;  %v1612_v51 = vld [vmem:[%s2278_s0 + $0xc] ss:$36 sps:$4 sm:$0xff]  }
  0x12   :  { %v1585_v50 = vld [vmem:[%s2277_s1 + $0x1b4] ss:$8 sps:$4 sm:$0xff]   ;;  %1035 = vmatprep.mubr.bf16.mxu0 %v1609_v49  ;;  %v1587_v52 = vld [vmem:[%s2277_s1 + $0xb0] ss:$8 sps:$4 sm:$0xff]   ;;  %1088 = vmatprep.mubr.bf16.mxu1 %v1612_v51  ;;  %v1589_v54 = vld [vmem:[%s2277_s1 + $0xa4] ss:$8 sps:$4 sm:$0xff]  }
  0x13   :  { %1012 = vmatpush1.bf16.msra.mxu0 %v1539_v18  ;;  %v1588_v53 = vld [vmem:[%s2277_s1 + $0x1b0] ss:$8 sps:$4 sm:$0xff]   ;;  %v1591_v55 = vld [vmem:[%s2277_s1 + $0x1a4] ss:$8 sps:$4 sm:$0xff]   ;;  %v1593_v56 = vld [vmem:[%s2277_s1 + $0xa0] ss:$8 sps:$4 sm:$0xff]  }
  0x14   :  { %1065 = vmatpush1.bf16.msra.mxu1 %v1540_v19  ;;  %1013 = vmatprep.subr.bf16.mxu0 %v1541_v20  ;;  %v1594_v57 = vld [vmem:[%s2277_s1 + $0x1a0] ss:$8 sps:$4 sm:$0xff]   ;;  %v1595_v58 = vld [vmem:[%s2277_s1 + $0x94] ss:$8 sps:$4 sm:$0xff]   ;;  %v1599_v60 = vld [vmem:[%s2277_s1 + $0x90] ss:$8 sps:$4 sm:$0xff]  }
  0x15   :  { %1066 = vmatprep.subr.bf16.mxu1 %v1543_v21  ;;  %v1597_v59 = vld [vmem:[%s2277_s1 + $0x194] ss:$8 sps:$4 sm:$0xff]   ;;  %v1600_v61 = vld [vmem:[%s2277_s1 + $0x190] ss:$8 sps:$4 sm:$0xff]   ;;  %v1601_v62 = vld [vmem:[%s2277_s1 + $0x84] ss:$8 sps:$4 sm:$0xff]  }
  0x16   :  { %v1603_v63 = vld [vmem:[%s2277_s1 + $0x184] ss:$8 sps:$4 sm:$0xff]   ;;  %v1605_v0 = vld [vmem:[%s2277_s1 + $0x80] ss:$8 sps:$4 sm:$0xff]   ;;  %v1615_v2 = vld [vmem:[%s2277_s1 + $0x274] ss:$8 sps:$4 sm:$0xff]  }
  0x17   :  { %1014 = vmatpush1.bf16.msra.mxu0 %v1545_v22  ;;  %v1606_v1 = vld [vmem:[%s2277_s1 + $0x180] ss:$8 sps:$4 sm:$0xff]   ;;  %v1618_v3 = vld [vmem:[%s2277_s1 + $0x374] ss:$8 sps:$4 sm:$0xff]   ;;  %v1613_v6 = vld [vmem:[%s2277_s1 + $0x270] ss:$8 sps:$4 sm:$0xff]  }
  0x18   :  { %1067 = vmatpush1.bf16.msra.mxu1 %v1546_v23  ;;  %1015 = vmatprep.subr.bf16.mxu0 %v1547_v24  ;;  %v1607_v4 = vld [vmem:[%s2278_s0] ss:$36 sps:$4 sm:$0xff]   ;;  %v1610_v5 = vld [vmem:[%s2278_s0 + $0x8] ss:$36 sps:$4 sm:$0xff]   ;;  %v1616_v7 = vld [vmem:[%s2277_s1 + $0x370] ss:$8 sps:$4 sm:$0xff]  }
  0x19   :  { %1068 = vmatprep.subr.bf16.mxu1 %v1549_v25  ;;  %v1621_v8 = vld [vmem:[%s2277_s1 + $0x264] ss:$8 sps:$4 sm:$0xff]   ;;  %v1619_v10 = vld [vmem:[%s2277_s1 + $0x260] ss:$8 sps:$4 sm:$0xff]   ;;  %v1627_v12 = vld [vmem:[%s2277_s1 + $0x254] ss:$8 sps:$4 sm:$0xff]  }
  0x1a   :  { %v1624_v9 = vld [vmem:[%s2277_s1 + $0x364] ss:$8 sps:$4 sm:$0xff]   ;;  %v1622_v11 = vld [vmem:[%s2277_s1 + $0x360] ss:$8 sps:$4 sm:$0xff]   ;;  %v1630_v13 = vld [vmem:[%s2277_s1 + $0x354] ss:$8 sps:$4 sm:$0xff]  }
  0x1b   :  { %1016 = vmatpush1.bf16.msra.mxu0 %v1551_v26  ;;  %v1625_v14 = vld [vmem:[%s2277_s1 + $0x250] ss:$8 sps:$4 sm:$0xff]   ;;  %v1633_v16 = vld [vmem:[%s2277_s1 + $0x244] ss:$8 sps:$4 sm:$0xff]   ;;  %v1631_v18 = vld [vmem:[%s2277_s1 + $0x240] ss:$8 sps:$4 sm:$0xff]  }
  0x1c   :  { %1069 = vmatpush1.bf16.msra.mxu1 %v1552_v27  ;;  %1017 = vmatprep.subr.bf16.mxu0 %v1553_v28  ;;  %v1628_v15 = vld [vmem:[%s2277_s1 + $0x350] ss:$8 sps:$4 sm:$0xff]   ;;  %v1636_v17 = vld [vmem:[%s2277_s1 + $0x344] ss:$8 sps:$4 sm:$0xff]   ;;  %v1634_v19 = vld [vmem:[%s2277_s1 + $0x340] ss:$8 sps:$4 sm:$0xff]  }
  0x1d   :  { %1070 = vmatprep.subr.bf16.mxu1 %v1555_v29  ;;  %v1639_v20 = vld [vmem:[%s2277_s1 + $0x234] ss:$8 sps:$4 sm:$0xff]   ;;  %v1685_v22 = vld [vmem:[%s2278_s0 + $0x4c] ss:$36 sps:$4 sm:$0xff]   ;;  %v1643_v28 = vld [vmem:[%s2277_s1 + $0x220] ss:$8 sps:$4 sm:$0xff]  }
  0x1e   :  { %v1642_v21 = vld [vmem:[%s2277_s1 + $0x334] ss:$8 sps:$4 sm:$0xff]   ;;  %v1637_v23 = vld [vmem:[%s2277_s1 + $0x230] ss:$8 sps:$4 sm:$0xff]   ;;  %v1645_v25 = vld [vmem:[%s2277_s1 + $0x224] ss:$8 sps:$4 sm:$0xff]  }
  0x1f   :  { %1018 = vmatpush1.bf16.msra.mxu0 %v1557_v30  ;;  %v1640_v24 = vld [vmem:[%s2277_s1 + $0x330] ss:$8 sps:$4 sm:$0xff]   ;;  %v1648_v26 = vld [vmem:[%s2277_s1 + $0x324] ss:$8 sps:$4 sm:$0xff]   ;;  %v1646_v30 = vld [vmem:[%s2277_s1 + $0x320] ss:$8 sps:$4 sm:$0xff]  }
  0x20   :  { %1071 = vmatpush1.bf16.msra.mxu1 %v1558_v31  ;;  %1019 = vmatprep.subr.bf16.mxu0 %v1559_v32  ;;  %v1693_v27 = vld [vmem:[%s2278_s0 + $0x48] ss:$36 sps:$4 sm:$0xff]   ;;  %v1694_v29 = vld [vmem:[%s2278_s0 + $0x54] ss:$36 sps:$4 sm:$0xff]  }
  0x21   :  { %1072 = vmatprep.subr.bf16.mxu1 %v1561_v33  ;;  %v1696_v31 = vld [vmem:[%s2278_s0 + $0x50] ss:$36 sps:$4 sm:$0xff]   ;;  %v1670_v49 = vld [vmem:[%s2277_s1 + $0x3e0] ss:$8 sps:$4 sm:$0xff]  }
  0x22   :  { %v1651_v32 = vld [vmem:[%s2277_s1 + $0x214] ss:$8 sps:$4 sm:$0xff]  }
  0x23   :  { %1020 = vmatpush2.bf16.msra.mxu0 %v1563_v34  ;;  %v1654_v33 = vld [vmem:[%s2277_s1 + $0x314] ss:$8 sps:$4 sm:$0xff]   ;;  %v1649_v34 = vld [vmem:[%s2277_s1 + $0x210] ss:$8 sps:$4 sm:$0xff]  }
  0x24   :  { %1073 = vmatpush2.bf16.msra.mxu1 %v1564_v35  ;;  %1021 = vmatprep.subr.bf16.mxu0 %v1565_v36  ;;  %v1652_v35 = vld [vmem:[%s2277_s1 + $0x310] ss:$8 sps:$4 sm:$0xff]   ;;  %v1657_v36 = vld [vmem:[%s2277_s1 + $0x204] ss:$8 sps:$4 sm:$0xff]   ;;  %v1678_v51 = vld [vmem:[%s2277_s1 + $0x3d4] ss:$8 sps:$4 sm:$0xff]  }
  0x25   :  { %1074 = vmatprep.subr.bf16.mxu1 %v1567_v37  ;;  %v1660_v37 = vld [vmem:[%s2277_s1 + $0x304] ss:$8 sps:$4 sm:$0xff]  }
  0x27   :  { %1022 = vmatpush2.bf16.msra.mxu0 %v1569_v38  ;;  %v1655_v38 = vld [vmem:[%s2277_s1 + $0x200] ss:$8 sps:$4 sm:$0xff]  }
  0x28   :  { %1075 = vmatpush2.bf16.msra.mxu1 %v1570_v39  ;;  %1023 = vmatprep.subr.bf16.mxu0 %v1571_v40  ;;  %v1658_v39 = vld [vmem:[%s2277_s1 + $0x300] ss:$8 sps:$4 sm:$0xff]   ;;  %v1663_v40 = vld [vmem:[%s2277_s1 + $0x2f4] ss:$8 sps:$4 sm:$0xff]  }
  0x29   :  { %1076 = vmatprep.subr.bf16.mxu1 %v1573_v41  ;;  %v1717_v41 = vld [vmem:[%s2278_s0 + $0x14] ss:$36 sps:$4 sm:$0xff]  }
  0x2b   :  { %1024 = vmatpush2.bf16.msra.mxu0 %v1575_v42  ;;  %v1666_v42 = vld [vmem:[%s2277_s1 + $0x3f4] ss:$8 sps:$4 sm:$0xff]  }
  0x2c   :  { %1077 = vmatpush2.bf16.msra.mxu1 %v1576_v43  ;;  %1025 = vmatprep.subr.bf16.mxu0 %v1577_v44  ;;  %v1720_v43 = vld [vmem:[%s2278_s0 + $0x1c] ss:$36 sps:$4 sm:$0xff]   ;;  %v1661_v44 = vld [vmem:[%s2277_s1 + $0x2f0] ss:$8 sps:$4 sm:$0xff]  }
  0x2d   :  { %1078 = vmatprep.subr.bf16.mxu1 %v1579_v45  ;;  %v1664_v45 = vld [vmem:[%s2277_s1 + $0x3f0] ss:$8 sps:$4 sm:$0xff]  }
  0x2f   :  { %1026 = vmatpush2.bf16.msra.mxu0 %v1581_v46  ;;  %v1669_v46 = vld [vmem:[%s2277_s1 + $0x2e4] ss:$8 sps:$4 sm:$0xff]  }
  0x30   :  { %1079 = vmatpush2.bf16.msra.mxu1 %v1582_v47  ;;  %1027 = vmatprep.subr.bf16.mxu0 %v1583_v48  ;;  %v1672_v47 = vld [vmem:[%s2277_s1 + $0x3e4] ss:$8 sps:$4 sm:$0xff]   ;;  %v1667_v48 = vld [vmem:[%s2277_s1 + $0x2e0] ss:$8 sps:$4 sm:$0xff]  }
  0x31   :  { %1080 = vmatprep.subr.bf16.mxu1 %v1585_v50  ;;  %v1675_v50 = vld [vmem:[%s2277_s1 + $0x2d4] ss:$8 sps:$4 sm:$0xff]  }
  0x33   :  { %1028 = vmatpush2.bf16.msra.mxu0 %v1587_v52  ;;  %v1673_v52 = vld [vmem:[%s2277_s1 + $0x2d0] ss:$8 sps:$4 sm:$0xff]  }
  0x34   :  { %1081 = vmatpush2.bf16.msra.mxu1 %v1588_v53  ;;  %1029 = vmatprep.subr.bf16.mxu0 %v1589_v54  ;;  %v1676_v53 = vld [vmem:[%s2277_s1 + $0x3d0] ss:$8 sps:$4 sm:$0xff]   ;;  %v1681_v54 = vld [vmem:[%s2277_s1 + $0x2c4] ss:$8 sps:$4 sm:$0xff]  }
  0x35   :  { %1082 = vmatprep.subr.bf16.mxu1 %v1591_v55  ;;  %v1684_v55 = vld [vmem:[%s2277_s1 + $0x3c4] ss:$8 sps:$4 sm:$0xff]  }
  0x37   :  { %1030 = vmatpush2.bf16.msra.mxu0 %v1593_v56  ;;  %v1679_v56 = vld [vmem:[%s2277_s1 + $0x2c0] ss:$8 sps:$4 sm:$0xff]  }
  0x38   :  { %1083 = vmatpush2.bf16.msra.mxu1 %v1594_v57  ;;  %1031 = vmatprep.subr.bf16.mxu0 %v1595_v58  ;;  %v1682_v57 = vld [vmem:[%s2277_s1 + $0x3c0] ss:$8 sps:$4 sm:$0xff]   ;;  %v1689_v58 = vld [vmem:[%s2277_s1 + $0x2b4] ss:$8 sps:$4 sm:$0xff]  }
  0x39   :  { %1084 = vmatprep.subr.bf16.mxu1 %v1597_v59  ;;  %v1692_v59 = vld [vmem:[%s2277_s1 + $0x3b4] ss:$8 sps:$4 sm:$0xff]  }
  0x3b   :  { %1032 = vmatpush2.bf16.msra.mxu0 %v1599_v60  ;;  %v1687_v60 = vld [vmem:[%s2277_s1 + $0x2b0] ss:$8 sps:$4 sm:$0xff]  }
  0x3c   :  { %1085 = vmatpush2.bf16.msra.mxu1 %v1600_v61  ;;  %1033 = vmatprep.subr.bf16.mxu0 %v1601_v62  ;;  %v1690_v61 = vld [vmem:[%s2277_s1 + $0x3b0] ss:$8 sps:$4 sm:$0xff]   ;;  %v1699_v62 = vld [vmem:[%s2277_s1 + $0x2a4] ss:$8 sps:$4 sm:$0xff]  }
  0x3d   :  { %1086 = vmatprep.subr.bf16.mxu1 %v1603_v63  ;;  %v1702_v63 = vld [vmem:[%s2277_s1 + $0x3a4] ss:$8 sps:$4 sm:$0xff]  }
  0x3f   :  { %1034 = vmatpush2.bf16.msra.mxu0 %v1605_v0  ;;  %v1697_v0 = vld [vmem:[%s2277_s1 + $0x2a0] ss:$8 sps:$4 sm:$0xff]  }
  0x40   :  { %1087 = vmatpush2.bf16.msra.mxu1 %v1606_v1  ;;  %1109 = vmatprep.subr.bf16.mxu0 %v1615_v2  ;;  %v1700_v1 = vld [vmem:[%s2277_s1 + $0x3a0] ss:$8 sps:$4 sm:$0xff]   ;;  %v1705_v2 = vld [vmem:[%s2277_s1 + $0x294] ss:$8 sps:$4 sm:$0xff]  }
  0x41   :  { %1162 = vmatprep.subr.bf16.mxu1 %v1618_v3  ;;  %v1708_v3 = vld [vmem:[%s2277_s1 + $0x394] ss:$8 sps:$4 sm:$0xff]  }
  0x42   :  { %1036 = vmatmul.mubr.bf16.vlgmr.msra.gmra.mxu0 %v1607_v4  ;;  %v1703_v4 = vld [vmem:[%s2277_s1 + $0x290] ss:$8 sps:$4 sm:$0xff]  }
  0x43   :  { %1089 = vmatmul.mubr.bf16.vlgmr.msra.gmra.mxu1 %v1610_v5  ;;  %1110 = vmatpush1.bf16.msra.mxu0 %v1613_v6  ;;  %v1706_v5 = vld [vmem:[%s2277_s1 + $0x390] ss:$8 sps:$4 sm:$0xff]   ;;  %v1711_v6 = vld [vmem:[%s2277_s1 + $0x284] ss:$8 sps:$4 sm:$0xff]  }
  0x44   :  { %1163 = vmatpush1.bf16.msra.mxu1 %v1616_v7  ;;  %1111 = vmatprep.subr.bf16.mxu0 %v1621_v8  ;;  %v1714_v7 = vld [vmem:[%s2277_s1 + $0x384] ss:$8 sps:$4 sm:$0xff]   ;;  %v1709_v8 = vld [vmem:[%s2277_s1 + $0x280] ss:$8 sps:$4 sm:$0xff]  }
  0x45   :  { %1164 = vmatprep.subr.bf16.mxu1 %v1624_v9  ;;  %1045 = vmatprep.mubr.bf16.mxu0 %v1685_v22  ;;  %v1712_v9 = vld [vmem:[%s2277_s1 + $0x380] ss:$8 sps:$4 sm:$0xff]   ;;  %v1738_v22 = vld [vmem:[%s2277_s1 + $0x444] ss:$8 sps:$4 sm:$0xff]  }
  0x46   :  { %1098 = vmatprep.mubr.bf16.mxu1 %v1694_v29  ;;  %v1747_v29 = vld [vmem:[%s2277_s1 + $0x414] ss:$8 sps:$4 sm:$0xff]  }
  0x47   :  { %1112 = vmatpush1.bf16.msra.mxu0 %v1619_v10  ;;  %v1723_v10 = vld [vmem:[%s2277_s1 + $0x474] ss:$8 sps:$4 sm:$0xff]  }
  0x48   :  { %1165 = vmatpush1.bf16.msra.mxu1 %v1622_v11  ;;  %1113 = vmatprep.subr.bf16.mxu0 %v1627_v12  ;;  %v1715_v11 = vld [vmem:[%s2278_s0 + $0x10] ss:$36 sps:$4 sm:$0xff]   ;;  %v1718_v12 = vld [vmem:[%s2278_s0 + $0x18] ss:$36 sps:$4 sm:$0xff]  }
  0x49   :  { %1166 = vmatprep.subr.bf16.mxu1 %v1630_v13  ;;  %v1721_v13 = vld [vmem:[%s2277_s1 + $0x470] ss:$8 sps:$4 sm:$0xff]  }
  0x4a   :  { %1046 = vmatmul.mubr.bf16.gmra.mxu0 %v1693_v27  ;;  %v1744_v27 = vld [vmem:[%s2277_s1 + $0x424] ss:$8 sps:$4 sm:$0xff]  }
  0x4b   :  { %1114 = vmatpush1.bf16.msra.mxu0 %v1625_v14  ;;  %1099 = vmatmul.mubr.bf16.gmra.mxu1 %v1696_v31  ;;  %v1726_v14 = vld [vmem:[%s2277_s1 + $0x464] ss:$8 sps:$4 sm:$0xff]  }
  0x4c   :  { %1167 = vmatpush1.bf16.msra.mxu1 %v1628_v15  ;;  %1115 = vmatprep.subr.bf16.mxu0 %v1633_v16  ;;  %v1727_v15 = vld [vmem:[%s2278_s0 + $0x5c] ss:$36 sps:$4 sm:$0xff]   ;;  %v1733_v16 = vld [vmem:[%s2278_s0 + $0x64] ss:$36 sps:$4 sm:$0xff]  }
  0x4d   :  { %1168 = vmatprep.subr.bf16.mxu1 %v1636_v17  ;;  %1141 = vmatprep.mubr.bf16.mxu0 %v1717_v41  ;;  %v1724_v17 = vld [vmem:[%s2277_s1 + $0x460] ss:$8 sps:$4 sm:$0xff]   ;;  %v1750_v31 = vld [vmem:[%s2277_s1 + $0x404] ss:$8 sps:$4 sm:$0xff]  }
  0x4e   :  { %1194 = vmatprep.mubr.bf16.mxu1 %v1720_v43 }
  0x4f   :  { %1116 = vmatpush1.bf16.msra.mxu0 %v1631_v18  ;;  %v1732_v18 = vld [vmem:[%s2277_s1 + $0x454] ss:$8 sps:$4 sm:$0xff]  }
  0x50   :  { %1169 = vmatpush1.bf16.msra.mxu1 %v1634_v19  ;;  %1117 = vmatprep.subr.bf16.mxu0 %v1639_v20  ;;  %v1729_v19 = vld [vmem:[%s2278_s0 + $0x58] ss:$36 sps:$4 sm:$0xff]   ;;  %v1735_v20 = vld [vmem:[%s2278_s0 + $0x60] ss:$36 sps:$4 sm:$0xff]  }
  0x51   :  { %1170 = vmatprep.subr.bf16.mxu1 %v1642_v21  ;;  %v1730_v21 = vld [vmem:[%s2277_s1 + $0x450] ss:$8 sps:$4 sm:$0xff]  }
  0x53   :  { %1118 = vmatpush1.bf16.msra.mxu0 %v1637_v23  ;;  %v1736_v23 = vld [vmem:[%s2277_s1 + $0x440] ss:$8 sps:$4 sm:$0xff]  }
  0x54   :  { %1171 = vmatpush1.bf16.msra.mxu1 %v1640_v24  ;;  %1119 = vmatprep.subr.bf16.mxu0 %v1645_v25  ;;  %v1741_v24 = vld [vmem:[%s2277_s1 + $0x434] ss:$8 sps:$4 sm:$0xff]   ;;  %v1753_v25 = vmov 0  }
  0x55   :  { %1172 = vmatprep.subr.bf16.mxu1 %v1648_v26  ;;  %v1739_v26 = vld [vmem:[%s2277_s1 + $0x430] ss:$8 sps:$4 sm:$0xff]  }
  0x57   :  { %1120 = vmatpush1.bf16.msra.mxu0 %v1643_v28  ;;  %v1742_v28 = vld [vmem:[%s2277_s1 + $0x420] ss:$8 sps:$4 sm:$0xff]  }
  0x58   :  { %1173 = vmatpush1.bf16.msra.mxu1 %v1646_v30  ;;  %1121 = vmatprep.subr.bf16.mxu0 %v1651_v32  ;;  %v1745_v30 = vld [vmem:[%s2277_s1 + $0x410] ss:$8 sps:$4 sm:$0xff]   ;;  %v1748_v32 = vld [vmem:[%s2277_s1 + $0x400] ss:$8 sps:$4 sm:$0xff]  }
  0x59   :  { %1174 = vmatprep.subr.bf16.mxu1 %v1654_v33  ;;  %v1751_v33 = vld [vmem:[%s2278_s0 + $0x20] ss:$36 sps:$4 sm:$0xff]  }
  0x5b   :  { %1122 = vmatpush1.bf16.msra.mxu0 %v1649_v34  ;;  %v1752_v34 = vld [vmem:[%s2278_s0 + $0x68] ss:$36 sps:$4 sm:$0xff]  }
  0x5c   :  { %1175 = vmatpush1.bf16.msra.mxu1 %v1652_v35  ;;  %1123 = vmatprep.subr.bf16.mxu0 %v1657_v36 }
  0x5d   :  { %1176 = vmatprep.subr.bf16.mxu1 %v1660_v37 }
  0x5f   :  { %1124 = vmatpush1.bf16.msra.mxu0 %v1655_v38 }
  0x60   :  { %1177 = vmatpush1.bf16.msra.mxu1 %v1658_v39  ;;  %1125 = vmatprep.subr.bf16.mxu0 %v1663_v40 }
  0x61   :  { %1178 = vmatprep.subr.bf16.mxu1 %v1666_v42 }
  0x63   :  { %1126 = vmatpush2.bf16.msra.mxu0 %v1661_v44 }
  0x64   :  { %1179 = vmatpush2.bf16.msra.mxu1 %v1664_v45  ;;  %1127 = vmatprep.subr.bf16.mxu0 %v1669_v46 }
  0x65   :  { %1180 = vmatprep.subr.bf16.mxu1 %v1672_v47 }
  0x67   :  { %1128 = vmatpush2.bf16.msra.mxu0 %v1667_v48 }
  0x68   :  { %1181 = vmatpush2.bf16.msra.mxu1 %v1670_v49  ;;  %1129 = vmatprep.subr.bf16.mxu0 %v1675_v50 }
  0x69   :  { %1182 = vmatprep.subr.bf16.mxu1 %v1678_v51 }
  0x6b   :  { %1130 = vmatpush2.bf16.msra.mxu0 %v1673_v52 }
  0x6c   :  { %1183 = vmatpush2.bf16.msra.mxu1 %v1676_v53  ;;  %1131 = vmatprep.subr.bf16.mxu0 %v1681_v54  ;;  %v181_v53 = vlaneseq }
  0x6d   :  { %1184 = vmatprep.subr.bf16.mxu1 %v1684_v55 }
  0x6f   :  { %1132 = vmatpush2.bf16.msra.mxu0 %v1679_v56  ;;  %v182_v56 = vshrl.u32 %v181_v53, 7 }
  0x70   :  { %1185 = vmatpush2.bf16.msra.mxu1 %v1682_v57  ;;  %1133 = vmatprep.subr.bf16.mxu0 %v1689_v58 }
  0x71   :  { %1186 = vmatprep.subr.bf16.mxu1 %v1692_v59  ;;  %v183_v59 = vsub.s32 0, %v182_v56 }
  0x73   :  { %1134 = vmatpush2.bf16.msra.mxu0 %v1687_v60  ;;  %v179_v60 = vld [vmem:[%s2279_s2] sm:$0x3] }
  0x74   :  { %1187 = vmatpush2.bf16.msra.mxu1 %v1690_v61  ;;  %1135 = vmatprep.subr.bf16.mxu0 %v1699_v62  ;;  %v187_v62 = vsub.s32 1, %v182_v56 }
  0x75   :  { %1188 = vmatprep.subr.bf16.mxu1 %v1702_v63 }
  0x77   :  { %1136 = vmatpush2.bf16.msra.mxu0 %v1697_v0  ;;  %v184_v0 = vrot.slane %v179_v60, %v183_v59 }
  0x78   :  { %1189 = vmatpush2.bf16.msra.mxu1 %v1700_v1  ;;  %1137 = vmatprep.subr.bf16.mxu0 %v1705_v2 }
  0x79   :  { %1190 = vmatprep.subr.bf16.mxu1 %v1708_v3  ;;  %v188_v3 = vrot.slane %v179_v60, %v187_v62 }
  0x7b   :  { %1138 = vmatpush2.bf16.msra.mxu0 %v1703_v4 }
  0x7c   :  { %1191 = vmatpush2.bf16.msra.mxu1 %v1706_v5  ;;  %1139 = vmatprep.subr.bf16.mxu0 %v1711_v6 }
  0x7d   :  { %1192 = vmatprep.subr.bf16.mxu1 %v1714_v7 }
  0x7f   :  { %1140 = vmatpush2.bf16.msra.mxu0 %v1709_v8 }
  0x80   :  { %1193 = vmatpush2.bf16.msra.mxu1 %v1712_v9  ;;  %1215 = vmatprep.subr.bf16.mxu0 %v1723_v10 }
  0x81   :  { %1494 = vmatprep.subr.bf16.mxu1 %v1723_v10 }
  0x82   :  { %1142 = vmatmul.mubr.bf16.vlgmr.msra.gmra.mxu0 %v1715_v11 }
  0x83   :  { %1195 = vmatmul.mubr.bf16.vlgmr.msra.gmra.mxu1 %v1718_v12  ;;  %1216 = vmatpush1.bf16.msra.mxu0 %v1721_v13 }
  0x84   :  { %1502 = vmatpush1.bf16.msra.mxu1 %v1721_v13  ;;  %1217 = vmatprep.subr.bf16.mxu0 %v1726_v14 }
  0x85   :  { %1495 = vmatprep.subr.bf16.mxu1 %v1726_v14  ;;  %1151 = vmatprep.mubr.bf16.mxu0 %v1727_v15 }
  0x86   :  { %1204 = vmatprep.mubr.bf16.mxu1 %v1733_v16 }
  0x87   :  { %1218 = vmatpush1.bf16.msra.mxu0 %v1724_v17 }
  0x88   :  { %1503 = vmatpush1.bf16.msra.mxu1 %v1724_v17  ;;  %1219 = vmatprep.subr.bf16.mxu0 %v1732_v18 }
  0x89   :  { %1496 = vmatprep.subr.bf16.mxu1 %v1732_v18 }
  0x8a   :  { %1152 = vmatmul.mubr.bf16.gmra.mxu0 %v1729_v19 }
  0x8b   :  { %1205 = vmatmul.mubr.bf16.gmra.mxu1 %v1735_v20  ;;  %1220 = vmatpush1.bf16.msra.mxu0 %v1730_v21 }
  0x8c   :  { %1504 = vmatpush1.bf16.msra.mxu1 %v1730_v21  ;;  %1221 = vmatprep.subr.bf16.mxu0 %v1738_v22 }
  0x8d   :  { %1497 = vmatprep.subr.bf16.mxu1 %v1738_v22  ;;  %1247 = vmatprep.mubr.bf16.mxu0 %v1753_v25 }
  0x8e   :  { %1257 = vmatprep.mubr.bf16.mxu1 %v1753_v25 }
  0x8f   :  { %1222 = vmatpush1.bf16.msra.mxu0 %v1736_v23 }
  0x90   :  { %1505 = vmatpush1.bf16.msra.mxu1 %v1736_v23  ;;  %1223 = vmatprep.subr.bf16.mxu0 %v1741_v24 }
  0x91   :  { %1498 = vmatprep.subr.bf16.mxu1 %v1741_v24 }
  0x93   :  { %1224 = vmatpush1.bf16.msra.mxu0 %v1739_v26 }
  0x94   :  { %1506 = vmatpush1.bf16.msra.mxu1 %v1739_v26  ;;  %1225 = vmatprep.subr.bf16.mxu0 %v1744_v27 }
  0x95   :  { %1499 = vmatprep.subr.bf16.mxu1 %v1744_v27 }
  0x97   :  { %1226 = vmatpush1.bf16.msra.mxu0 %v1742_v28 }
  0x98   :  { %1507 = vmatpush1.bf16.msra.mxu1 %v1742_v28  ;;  %1227 = vmatprep.subr.bf16.mxu0 %v1747_v29 }
  0x99   :  { %1500 = vmatprep.subr.bf16.mxu1 %v1747_v29 }
  0x9b   :  { %1228 = vmatpush1.bf16.msra.mxu0 %v1745_v30 }
  0x9c   :  { %1508 = vmatpush1.bf16.msra.mxu1 %v1745_v30  ;;  %1229 = vmatprep.subr.bf16.mxu0 %v1750_v31 }
  0x9d   :  { %1501 = vmatprep.subr.bf16.mxu1 %v1750_v31 }
  0x9f   :  { %1230 = vmatpush1.bf16.msra.mxu0 %v1748_v32 }
  0xa0   :  { %1509 = vmatpush1.bf16.msra.mxu1 %v1748_v32 }
  0xa2   :  { %1248 = vmatmul.mubr.bf16.vlgmr.msra.gmra.mxu0 %v1751_v33 }
  0xa3   :  { %1258 = vmatmul.mubr.bf16.vlgmr.msra.gmra.mxu1 %v1752_v34 }
 0x102   :  { %v1037_v35 = vpop.f32.mrf.mxu0 }
 0x103   :  { %v1090_v36 = vpop.f32.mrf.mxu1  ;;  %v1038_v4 = vadd.f32 %v1037_v35, %v184_v0 }
 0x104   :  { %v1039_v37 = vpop.f32.mrf.mxu0 }
 0x105   :  { %v1092_v38 = vpop.f32.mrf.mxu1  ;;  %v1040_v8 = vadd.f32 %v1039_v37, %v188_v3  ;;  %v1091_v10 = vadd.f32 %v1090_v36, %v1038_v4 }
 0x106   :  { %v1041_v39 = vpop.f32.mrf.mxu0 }
 0x107   :  { %v1094_v40 = vpop.f32.mrf.mxu1  ;;  %v1042_v11 = vadd.f32 %v1041_v39, %v184_v0  ;;  %v1093_v20 = vadd.f32 %v1092_v38, %v1040_v8 }
 0x108   :  { %v1043_v41 = vpop.f32.mrf.mxu0 }
 0x109   :  { %v1096_v42 = vpop.f32.mrf.mxu1  ;;  %v1044_v14 = vadd.f32 %v1043_v41, %v188_v3  ;;  %v1095_v22 = vadd.f32 %v1094_v40, %v1042_v11 }
 0x10a   :  { %v1047_v43 = vpop.f32.mrf.mxu0 }
 0x10b   :  { %v1100_v44 = vpop.f32.mrf.mxu1  ;;  %v1048_v5 = vadd.f32 %v1047_v43, %v184_v0  ;;  %v1097_v24 = vadd.f32 %v1096_v42, %v1044_v14 }
 0x10c   :  { %v1049_v45 = vpop.f32.mrf.mxu0 }
 0x10d   :  { %v1102_v46 = vpop.f32.mrf.mxu1  ;;  %v1050_v9 = vadd.f32 %v1049_v45, %v188_v3  ;;  %v1101_v12 = vadd.f32 %v1100_v44, %v1048_v5 }
 0x10e   :  { %v1051_v47 = vpop.f32.mrf.mxu0 }
 0x10f   :  { %v1104_v48 = vpop.f32.mrf.mxu1  ;;  %v1052_v13 = vadd.f32 %v1051_v47, %v184_v0  ;;  %v1103_v21 = vadd.f32 %v1102_v46, %v1050_v9 }
 0x110   :  { %v1053_v49 = vpop.f32.mrf.mxu0 }
 0x111   :  { %v1106_v50 = vpop.f32.mrf.mxu1  ;;  %v1054_v15 = vadd.f32 %v1053_v49, %v188_v3  ;;  %v1105_v23 = vadd.f32 %v1104_v48, %v1052_v13 }
 0x113   :  { %v1107_v25 = vadd.f32 %v1106_v50, %v1054_v15 }
 0x142   :  { %v1143_v51 = vpop.f32.mrf.mxu0 }
 0x143   :  { %v1196_v52 = vpop.f32.mrf.mxu1  ;;  %v1144_v18 = vadd.f32 %v1143_v51, %v1091_v10 }
 0x144   :  { %v1145_v54 = vpop.f32.mrf.mxu0 }
 0x145   :  { %v1198_v55 = vpop.f32.mrf.mxu1  ;;  %v1146_v26 = vadd.f32 %v1145_v54, %v1093_v20  ;;  %v1197_v30 = vadd.f32 %v1196_v52, %v1144_v18 }
 0x146   :  { %v1147_v57 = vpop.f32.mrf.mxu0 }
 0x147   :  { %v1200_v58 = vpop.f32.mrf.mxu1  ;;  %v1148_v31 = vadd.f32 %v1147_v57, %v1095_v22  ;;  %v1199_v38 = vadd.f32 %v1198_v55, %v1146_v26 }
 0x148   :  { %v1149_v61 = vpop.f32.mrf.mxu0 }
 0x149   :  { %v1202_v63 = vpop.f32.mrf.mxu1  ;;  %v1150_v36 = vadd.f32 %v1149_v61, %v1097_v24  ;;  %v1201_v42 = vadd.f32 %v1200_v58, %v1148_v31 }
 0x14a   :  { %v1153_v1 = vpop.f32.mrf.mxu0 }
 0x14b   :  { %v1206_v2 = vpop.f32.mrf.mxu1  ;;  %v1154_v19 = vadd.f32 %v1153_v1, %v1101_v12  ;;  %v1203_v52 = vadd.f32 %v1202_v63, %v1150_v36 }
 0x14c   :  { %v1155_v6 = vpop.f32.mrf.mxu0 }
 0x14d   :  { %v1208_v7 = vpop.f32.mrf.mxu1  ;;  %v1156_v27 = vadd.f32 %v1155_v6, %v1103_v21  ;;  %v1207_v32 = vadd.f32 %v1206_v2, %v1154_v19 }
 0x14e   :  { %v1157_v16 = vpop.f32.mrf.mxu0 }
 0x14f   :  { %v1210_v17 = vpop.f32.mrf.mxu1  ;;  %v1158_v33 = vadd.f32 %v1157_v16, %v1105_v23  ;;  %v1209_v43 = vadd.f32 %v1208_v7, %v1156_v27 }
 0x150   :  { %v1159_v28 = vpop.f32.mrf.mxu0 }
 0x151   :  { %v1212_v29 = vpop.f32.mrf.mxu1  ;;  %v1160_v37 = vadd.f32 %v1159_v28, %v1107_v25  ;;  %v1211_v45 = vadd.f32 %v1210_v17, %v1158_v33 }
 0x153   :  { %v1213_v53 = vadd.f32 %v1212_v29, %v1160_v37 }
 0x162   :  { %v1249_v34 = vpop.f32.mrf.mxu0 }
 0x163   :  { %v1259_v35 = vpop.f32.mrf.mxu1  ;;  %v1250_v39 = vadd.f32 %v1249_v34, %v1197_v30 }
 0x164   :  { %v1260_v41 = vadd.f32 %v1259_v35, %v1207_v32  ;;  %v1251_v40 = vpop.f32.mrf.mxu0 }
 0x165   :  { %v1261_v44 = vpop.f32.mrf.mxu1  ;;  %v1276_v46 = vmul.f32 0.2, %v1250_v39  ;;  %vm1268_vm0 = vcmp.ge.f32.partialorder %v1250_v39, 0.0  ;;  %v1252_v48 = vadd.f32 %v1251_v40, %v1199_v38 }
 0x166   :  { %v1280_v47 = vmul.f32 0.2, %v1260_v41  ;;  %vm1272_vm1 = vcmp.ge.f32.partialorder %v1260_v41, 0.0  ;;  %v1262_v49 = vadd.f32 %v1261_v44, %v1209_v43  ;;  %v1253_v50 = vpop.f32.mrf.mxu0 }
 0x167   :  { %v1263_v51 = vpop.f32.mrf.mxu1  ;;  %v1254_v54 = vadd.f32 %v1253_v50, %v1201_v42  ;;  %vm1269_vm2 = vcmp.ge.f32.partialorder %v1252_v48, 0.0  ;;  %v1277_v57 = vmul.f32 0.2, %v1252_v48  ;;  %v1284_v58 = vsel %vm1268_vm0, %v1250_v39, %v1276_v46 }
 0x168   :  { %v1264_v56 = vadd.f32 %v1263_v51, %v1211_v45  ;;  %vm1273_vm3 = vcmp.ge.f32.partialorder %v1262_v49, 0.0  ;;  %v1281_v55 = vmul.f32 0.2, %v1262_v49  ;;  %v1255_v59 = vpop.f32.mrf.mxu0  ;;  %v1288_v61 = vsel %vm1272_vm1, %v1260_v41, %v1280_v47 }
 0x169   :  { %v1265_v60 = vpop.f32.mrf.mxu1  ;;  %v1278_v62 = vmul.f32 0.2, %v1254_v54  ;;  %v1285_v1 = vsel %vm1269_vm2, %v1252_v48, %v1277_v57  ;;  %v1256_v3 = vadd.f32 %v1255_v59, %v1203_v52  ;;  %vm1270_vm4 = vcmp.ge.f32.partialorder %v1254_v54, 0.0 }
 0x16a   :  { %v1282_v0 = vmul.f32 0.2, %v1264_v56  ;;  %v1289_v2 = vsel %vm1273_vm3, %v1262_v49, %v1281_v55  ;;  %v1266_v4 = vadd.f32 %v1265_v60, %v1213_v53  ;;  %v1490_v63 = vpack.c.bf16 %v1285_v1, %v1284_v58 }
 0x16b   :  { %v1492_v5 = vpack.c.bf16 %v1289_v2, %v1288_v61  ;;  %vm1274_vm5 = vcmp.ge.f32.partialorder %v1264_v56, 0.0  ;;  %vm1271_vm6 = vcmp.ge.f32.partialorder %v1256_v3, 0.0  ;;  %v1279_v6 = vmul.f32 0.2, %v1256_v3 }
 0x16c   :  { %vm1275_vm7 = vcmp.ge.f32.partialorder %v1266_v4, 0.0  ;;  %v1283_v7 = vmul.f32 0.2, %v1266_v4  ;;  %1316 = vst [vmem:[%s2280_s3] sm:$0xff] %v1490_v63  ;;  %v1286_v8 = vsel %vm1270_vm4, %v1254_v54, %v1278_v62  ;;  %v1290_v9 = vsel %vm1274_vm5, %v1264_v56, %v1282_v0 }
 0x16d   :  { %1318 = vst [vmem:[%s2280_s3 + $0x10] sm:$0xff] %v1492_v5  ;;  %v1287_v10 = vsel %vm1271_vm6, %v1256_v3, %v1279_v6 }
 0x16e   :  { %v1291_v11 = vsel %vm1275_vm7, %v1266_v4, %v1283_v7  ;;  %v1491_v12 = vpack.c.bf16 %v1287_v10, %v1286_v8 }
 0x16f   :  { %v1493_v13 = vpack.c.bf16 %v1291_v11, %v1290_v9 }
 0x170   :  { %1317 = vst [vmem:[%s2280_s3 + $0x8] sm:$0xff] %v1491_v12 }
 0x171   :  { %1319 = vst [vmem:[%s2280_s3 + $0x18] sm:$0xff] %v1493_v13 }

// kernel: discriminator_forward.12
= control target key start
LH: loop header
LB: loop body
LE: loop exit
PB: predicated region body
PF: predicated region fallthrough
CT: control target
= control target key end

     0   :  { %s8590_s1 = inlined_call_operand.vmem [shape: bf16[2304,512], index: 1, kind: input, shape index: {}]   ;;  %s8591_s0 = inlined_call_operand.vmem [shape: bf16[32,2304], index: 0, kind: input, shape index: {}]   ;;  %s8592_s2 = inlined_call_operand.vmem [shape: f32[1,512], index: 2, kind: input, shape index: {}]   ;;  %s8593_s3 = inlined_call_operand.vmem [shape: bf16[32,512], index: 3, kind: output, shape index: {}]  }
   0x1   :  { %v5398_v0 = vld [vmem:[%s8590_s1 + $0xe4] ss:$16 sps:$4 sm:$0xff]   ;;  %v5402_v2 = vld [vmem:[%s8590_s1 + $0xe0] ss:$16 sps:$4 sm:$0xff]  }
   0x2   :  { %v5400_v1 = vld [vmem:[%s8590_s1 + $0x2e4] ss:$16 sps:$4 sm:$0xff]   ;;  %3708 = vmatprep.subr.bf16.mxu0 %v5398_v0  ;;  %v5403_v3 = vld [vmem:[%s8590_s1 + $0x2e0] ss:$16 sps:$4 sm:$0xff]  }
   0x3   :  { %3761 = vmatprep.subr.bf16.mxu1 %v5400_v1  ;;  %v5404_v4 = vld [vmem:[%s8590_s1 + $0xc4] ss:$16 sps:$4 sm:$0xff]   ;;  %3709 = vmatpush1.bf16.msra.mxu0 %v5402_v2  ;;  %v5408_v6 = vld [vmem:[%s8590_s1 + $0xc0] ss:$16 sps:$4 sm:$0xff]  }
   0x4   :  { %3762 = vmatpush1.bf16.msra.mxu1 %v5403_v3  ;;  %v5406_v5 = vld [vmem:[%s8590_s1 + $0x2c4] ss:$16 sps:$4 sm:$0xff]   ;;  %3710 = vmatprep.subr.bf16.mxu0 %v5404_v4  ;;  %v5409_v7 = vld [vmem:[%s8590_s1 + $0x2c0] ss:$16 sps:$4 sm:$0xff]  }
   0x5   :  { %3763 = vmatprep.subr.bf16.mxu1 %v5406_v5  ;;  %v5410_v8 = vld [vmem:[%s8590_s1 + $0xa4] ss:$16 sps:$4 sm:$0xff]   ;;  %v5414_v10 = vld [vmem:[%s8590_s1 + $0xa0] ss:$16 sps:$4 sm:$0xff]  }
   0x6   :  { %v5412_v9 = vld [vmem:[%s8590_s1 + $0x2a4] ss:$16 sps:$4 sm:$0xff]   ;;  %v5415_v11 = vld [vmem:[%s8590_s1 + $0x2a0] ss:$16 sps:$4 sm:$0xff]  }
   0x7   :  { %3711 = vmatpush1.bf16.msra.mxu0 %v5408_v6  ;;  %v5416_v12 = vld [vmem:[%s8590_s1 + $0x84] ss:$16 sps:$4 sm:$0xff]   ;;  %v5420_v14 = vld [vmem:[%s8590_s1 + $0x80] ss:$16 sps:$4 sm:$0xff]  }
   0x8   :  { %3764 = vmatpush1.bf16.msra.mxu1 %v5409_v7  ;;  %3712 = vmatprep.subr.bf16.mxu0 %v5410_v8  ;;  %v5418_v13 = vld [vmem:[%s8590_s1 + $0x284] ss:$16 sps:$4 sm:$0xff]   ;;  %v5421_v15 = vld [vmem:[%s8590_s1 + $0x280] ss:$16 sps:$4 sm:$0xff]  }
   0x9   :  { %3765 = vmatprep.subr.bf16.mxu1 %v5412_v9  ;;  %v5422_v16 = vld [vmem:[%s8590_s1 + $0x64] ss:$16 sps:$4 sm:$0xff]   ;;  %v5426_v18 = vld [vmem:[%s8590_s1 + $0x60] ss:$16 sps:$4 sm:$0xff]  }
   0xa   :  { %v5424_v17 = vld [vmem:[%s8590_s1 + $0x264] ss:$16 sps:$4 sm:$0xff]   ;;  %v5427_v19 = vld [vmem:[%s8590_s1 + $0x260] ss:$16 sps:$4 sm:$0xff]  }
   0xb   :  { %3713 = vmatpush1.bf16.msra.mxu0 %v5414_v10  ;;  %v5428_v20 = vld [vmem:[%s8590_s1 + $0x44] ss:$16 sps:$4 sm:$0xff]   ;;  %v5432_v22 = vld [vmem:[%s8590_s1 + $0x40] ss:$16 sps:$4 sm:$0xff]  }
   0xc   :  { %3766 = vmatpush1.bf16.msra.mxu1 %v5415_v11  ;;  %3714 = vmatprep.subr.bf16.mxu0 %v5416_v12  ;;  %v5430_v21 = vld [vmem:[%s8590_s1 + $0x244] ss:$16 sps:$4 sm:$0xff]   ;;  %v5433_v23 = vld [vmem:[%s8590_s1 + $0x240] ss:$16 sps:$4 sm:$0xff]  }
   0xd   :  { %3767 = vmatprep.subr.bf16.mxu1 %v5418_v13  ;;  %v5434_v24 = vld [vmem:[%s8590_s1 + $0x24] ss:$16 sps:$4 sm:$0xff]   ;;  %v5438_v26 = vld [vmem:[%s8590_s1 + $0x20] ss:$16 sps:$4 sm:$0xff]  }
   0xe   :  { %v5436_v25 = vld [vmem:[%s8590_s1 + $0x224] ss:$16 sps:$4 sm:$0xff]   ;;  %v5439_v27 = vld [vmem:[%s8590_s1 + $0x220] ss:$16 sps:$4 sm:$0xff]  }
   0xf   :  { %3715 = vmatpush1.bf16.msra.mxu0 %v5420_v14  ;;  %v5440_v28 = vld [vmem:[%s8590_s1 + $0x4] ss:$16 sps:$4 sm:$0xff]   ;;  %v5444_v30 = vld [vmem:[%s8590_s1] ss:$16 sps:$4 sm:$0xff]  }
  0x10   :  { %3768 = vmatpush1.bf16.msra.mxu1 %v5421_v15  ;;  %3716 = vmatprep.subr.bf16.mxu0 %v5422_v16  ;;  %v5442_v29 = vld [vmem:[%s8590_s1 + $0x204] ss:$16 sps:$4 sm:$0xff]   ;;  %v5445_v31 = vld [vmem:[%s8590_s1 + $0x200] ss:$16 sps:$4 sm:$0xff]  }
  0x11   :  { %3769 = vmatprep.subr.bf16.mxu1 %v5424_v17  ;;  %v5446_v32 = vld [vmem:[%s8590_s1 + $0x1e4] ss:$16 sps:$4 sm:$0xff]   ;;  %v5450_v34 = vld [vmem:[%s8590_s1 + $0x1e0] ss:$16 sps:$4 sm:$0xff]  }
  0x12   :  { %v5448_v33 = vld [vmem:[%s8590_s1 + $0x3e4] ss:$16 sps:$4 sm:$0xff]   ;;  %v5451_v35 = vld [vmem:[%s8590_s1 + $0x3e0] ss:$16 sps:$4 sm:$0xff]  }
  0x13   :  { %3717 = vmatpush1.bf16.msra.mxu0 %v5426_v18  ;;  %v5452_v36 = vld [vmem:[%s8590_s1 + $0x1c4] ss:$16 sps:$4 sm:$0xff]   ;;  %v5456_v38 = vld [vmem:[%s8590_s1 + $0x1c0] ss:$16 sps:$4 sm:$0xff]  }
  0x14   :  { %3770 = vmatpush1.bf16.msra.mxu1 %v5427_v19  ;;  %3718 = vmatprep.subr.bf16.mxu0 %v5428_v20  ;;  %v5454_v37 = vld [vmem:[%s8590_s1 + $0x3c4] ss:$16 sps:$4 sm:$0xff]   ;;  %v5457_v39 = vld [vmem:[%s8590_s1 + $0x3c0] ss:$16 sps:$4 sm:$0xff]  }
  0x15   :  { %3771 = vmatprep.subr.bf16.mxu1 %v5430_v21  ;;  %v5458_v40 = vld [vmem:[%s8590_s1 + $0x1a4] ss:$16 sps:$4 sm:$0xff]   ;;  %v5462_v42 = vld [vmem:[%s8590_s1 + $0x1a0] ss:$16 sps:$4 sm:$0xff]  }
  0x16   :  { %v5460_v41 = vld [vmem:[%s8590_s1 + $0x3a4] ss:$16 sps:$4 sm:$0xff]   ;;  %v5463_v43 = vld [vmem:[%s8590_s1 + $0x3a0] ss:$16 sps:$4 sm:$0xff]  }
  0x17   :  { %3719 = vmatpush1.bf16.msra.mxu0 %v5432_v22  ;;  %v5464_v44 = vld [vmem:[%s8590_s1 + $0x184] ss:$16 sps:$4 sm:$0xff]   ;;  %v5468_v46 = vld [vmem:[%s8590_s1 + $0x180] ss:$16 sps:$4 sm:$0xff]  }
  0x18   :  { %3772 = vmatpush1.bf16.msra.mxu1 %v5433_v23  ;;  %3720 = vmatprep.subr.bf16.mxu0 %v5434_v24  ;;  %v5466_v45 = vld [vmem:[%s8590_s1 + $0x384] ss:$16 sps:$4 sm:$0xff]   ;;  %v5469_v47 = vld [vmem:[%s8590_s1 + $0x380] ss:$16 sps:$4 sm:$0xff]  }
  0x19   :  { %3773 = vmatprep.subr.bf16.mxu1 %v5436_v25  ;;  %v5470_v48 = vld [vmem:[%s8590_s1 + $0x164] ss:$16 sps:$4 sm:$0xff]   ;;  %v5474_v52 = vld [vmem:[%s8590_s1 + $0x160] ss:$16 sps:$4 sm:$0xff]  }
  0x1a   :  { %v5496_v49 = vld [vmem:[%s8591_s0 + $0x4] ss:$72 sps:$4 sm:$0xff]   ;;  %v5475_v53 = vld [vmem:[%s8590_s1 + $0x360] ss:$16 sps:$4 sm:$0xff]  }
  0x1b   :  { %3721 = vmatpush1.bf16.msra.mxu0 %v5438_v26  ;;  %v5472_v50 = vld [vmem:[%s8590_s1 + $0x364] ss:$16 sps:$4 sm:$0xff]   ;;  %3740 = vmatprep.mubr.bf16.mxu0 %v5496_v49  ;;  %v5480_v56 = vld [vmem:[%s8590_s1 + $0x140] ss:$16 sps:$4 sm:$0xff]  }
  0x1c   :  { %3774 = vmatpush1.bf16.msra.mxu1 %v5439_v27  ;;  %3722 = vmatprep.subr.bf16.mxu0 %v5440_v28  ;;  %v5499_v51 = vld [vmem:[%s8591_s0 + $0xc] ss:$72 sps:$4 sm:$0xff]   ;;  %v5481_v57 = vld [vmem:[%s8590_s1 + $0x340] ss:$16 sps:$4 sm:$0xff]   ;;  %v5581_v28 = vld [vmem:[%s8591_s0 + $0x9c] ss:$72 sps:$4 sm:$0xff]  }
  0x1d   :  { %3775 = vmatprep.subr.bf16.mxu1 %v5442_v29  ;;  %3793 = vmatprep.mubr.bf16.mxu1 %v5499_v51  ;;  %v5476_v54 = vld [vmem:[%s8590_s1 + $0x144] ss:$16 sps:$4 sm:$0xff]   ;;  %v5486_v60 = vld [vmem:[%s8590_s1 + $0x120] ss:$16 sps:$4 sm:$0xff]  }
  0x1e   :  { %v5478_v55 = vld [vmem:[%s8590_s1 + $0x344] ss:$16 sps:$4 sm:$0xff]   ;;  %v5487_v61 = vld [vmem:[%s8590_s1 + $0x320] ss:$16 sps:$4 sm:$0xff]  }
  0x1f   :  { %3723 = vmatpush1.bf16.msra.mxu0 %v5444_v30  ;;  %v5482_v58 = vld [vmem:[%s8590_s1 + $0x124] ss:$16 sps:$4 sm:$0xff]   ;;  %v5492_v0 = vld [vmem:[%s8590_s1 + $0x100] ss:$16 sps:$4 sm:$0xff]  }
  0x20   :  { %3776 = vmatpush1.bf16.msra.mxu1 %v5445_v31  ;;  %3724 = vmatprep.subr.bf16.mxu0 %v5446_v32  ;;  %v5484_v59 = vld [vmem:[%s8590_s1 + $0x324] ss:$16 sps:$4 sm:$0xff]   ;;  %v5493_v1 = vld [vmem:[%s8590_s1 + $0x300] ss:$16 sps:$4 sm:$0xff]  }
  0x21   :  { %3777 = vmatprep.subr.bf16.mxu1 %v5448_v33  ;;  %v5488_v62 = vld [vmem:[%s8590_s1 + $0x104] ss:$16 sps:$4 sm:$0xff]   ;;  %v5494_v4 = vld [vmem:[%s8591_s0] ss:$72 sps:$4 sm:$0xff]   ;;  %v5580_v27 = vld [vmem:[%s8591_s0 + $0x90] ss:$72 sps:$4 sm:$0xff]  }
  0x22   :  { %v5490_v63 = vld [vmem:[%s8590_s1 + $0x304] ss:$16 sps:$4 sm:$0xff]   ;;  %v5497_v5 = vld [vmem:[%s8591_s0 + $0x8] ss:$72 sps:$4 sm:$0xff]   ;;  %v5589_v33 = vld [vmem:[%s8591_s0 + $0x98] ss:$72 sps:$4 sm:$0xff]  }
  0x23   :  { %3725 = vmatpush2.bf16.msra.mxu0 %v5450_v34  ;;  %v5502_v2 = vld [vmem:[%s8590_s1 + $0x4e4] ss:$16 sps:$4 sm:$0xff]   ;;  %v5500_v6 = vld [vmem:[%s8590_s1 + $0x4e0] ss:$16 sps:$4 sm:$0xff]  }
  0x24   :  { %3778 = vmatpush2.bf16.msra.mxu1 %v5451_v35  ;;  %3726 = vmatprep.subr.bf16.mxu0 %v5452_v36  ;;  %v5505_v3 = vld [vmem:[%s8590_s1 + $0x6e4] ss:$16 sps:$4 sm:$0xff]   ;;  %v5503_v7 = vld [vmem:[%s8590_s1 + $0x6e0] ss:$16 sps:$4 sm:$0xff]  }
  0x25   :  { %3779 = vmatprep.subr.bf16.mxu1 %v5454_v37  ;;  %v5508_v8 = vld [vmem:[%s8590_s1 + $0x4c4] ss:$16 sps:$4 sm:$0xff]   ;;  %v5506_v10 = vld [vmem:[%s8590_s1 + $0x4c0] ss:$16 sps:$4 sm:$0xff]  }
  0x26   :  { %v5511_v9 = vld [vmem:[%s8590_s1 + $0x6c4] ss:$16 sps:$4 sm:$0xff]   ;;  %v5509_v11 = vld [vmem:[%s8590_s1 + $0x6c0] ss:$16 sps:$4 sm:$0xff]  }
  0x27   :  { %3727 = vmatpush2.bf16.msra.mxu0 %v5456_v38  ;;  %v5514_v12 = vld [vmem:[%s8590_s1 + $0x4a4] ss:$16 sps:$4 sm:$0xff]   ;;  %v5512_v14 = vld [vmem:[%s8590_s1 + $0x4a0] ss:$16 sps:$4 sm:$0xff]  }
  0x28   :  { %3780 = vmatpush2.bf16.msra.mxu1 %v5457_v39  ;;  %3728 = vmatprep.subr.bf16.mxu0 %v5458_v40  ;;  %v5517_v13 = vld [vmem:[%s8590_s1 + $0x6a4] ss:$16 sps:$4 sm:$0xff]   ;;  %v5515_v15 = vld [vmem:[%s8590_s1 + $0x6a0] ss:$16 sps:$4 sm:$0xff]  }
  0x29   :  { %3781 = vmatprep.subr.bf16.mxu1 %v5460_v41  ;;  %v5520_v16 = vld [vmem:[%s8590_s1 + $0x484] ss:$16 sps:$4 sm:$0xff]   ;;  %v5518_v18 = vld [vmem:[%s8590_s1 + $0x480] ss:$16 sps:$4 sm:$0xff]  }
  0x2a   :  { %v5523_v17 = vld [vmem:[%s8590_s1 + $0x684] ss:$16 sps:$4 sm:$0xff]   ;;  %v5521_v19 = vld [vmem:[%s8590_s1 + $0x680] ss:$16 sps:$4 sm:$0xff]  }
  0x2b   :  { %3729 = vmatpush2.bf16.msra.mxu0 %v5462_v42  ;;  %v5526_v20 = vld [vmem:[%s8590_s1 + $0x464] ss:$16 sps:$4 sm:$0xff]   ;;  %v5524_v22 = vld [vmem:[%s8590_s1 + $0x460] ss:$16 sps:$4 sm:$0xff]  }
  0x2c   :  { %3782 = vmatpush2.bf16.msra.mxu1 %v5463_v43  ;;  %3730 = vmatprep.subr.bf16.mxu0 %v5464_v44  ;;  %v5529_v21 = vld [vmem:[%s8590_s1 + $0x664] ss:$16 sps:$4 sm:$0xff]   ;;  %v5527_v23 = vld [vmem:[%s8590_s1 + $0x660] ss:$16 sps:$4 sm:$0xff]  }
  0x2d   :  { %3783 = vmatprep.subr.bf16.mxu1 %v5466_v45  ;;  %v5532_v24 = vld [vmem:[%s8590_s1 + $0x444] ss:$16 sps:$4 sm:$0xff]   ;;  %v5530_v29 = vld [vmem:[%s8590_s1 + $0x440] ss:$16 sps:$4 sm:$0xff]  }
  0x2e   :  { %v5535_v25 = vld [vmem:[%s8590_s1 + $0x644] ss:$16 sps:$4 sm:$0xff]   ;;  %v5533_v30 = vld [vmem:[%s8590_s1 + $0x640] ss:$16 sps:$4 sm:$0xff]  }
  0x2f   :  { %3731 = vmatpush2.bf16.msra.mxu0 %v5468_v46  ;;  %v5578_v26 = vld [vmem:[%s8591_s0 + $0x94] ss:$72 sps:$4 sm:$0xff]   ;;  %v5536_v34 = vld [vmem:[%s8590_s1 + $0x420] ss:$16 sps:$4 sm:$0xff]  }
  0x30   :  { %3784 = vmatpush2.bf16.msra.mxu1 %v5469_v47  ;;  %3732 = vmatprep.subr.bf16.mxu0 %v5470_v48  ;;  %v5538_v31 = vld [vmem:[%s8590_s1 + $0x424] ss:$16 sps:$4 sm:$0xff]   ;;  %v5539_v35 = vld [vmem:[%s8590_s1 + $0x620] ss:$16 sps:$4 sm:$0xff]  }
  0x31   :  { %3785 = vmatprep.subr.bf16.mxu1 %v5472_v50  ;;  %v5541_v32 = vld [vmem:[%s8590_s1 + $0x624] ss:$16 sps:$4 sm:$0xff]   ;;  %v5542_v38 = vld [vmem:[%s8590_s1 + $0x400] ss:$16 sps:$4 sm:$0xff]  }
  0x32   :  { %v5544_v36 = vld [vmem:[%s8590_s1 + $0x404] ss:$16 sps:$4 sm:$0xff]   ;;  %v5545_v39 = vld [vmem:[%s8590_s1 + $0x600] ss:$16 sps:$4 sm:$0xff]  }
  0x33   :  { %3733 = vmatpush2.bf16.msra.mxu0 %v5474_v52  ;;  %v5547_v37 = vld [vmem:[%s8590_s1 + $0x604] ss:$16 sps:$4 sm:$0xff]   ;;  %v5548_v44 = vld [vmem:[%s8590_s1 + $0x5e0] ss:$16 sps:$4 sm:$0xff]  }
  0x34   :  { %3786 = vmatpush2.bf16.msra.mxu1 %v5475_v53  ;;  %3734 = vmatprep.subr.bf16.mxu0 %v5476_v54  ;;  %v5550_v40 = vld [vmem:[%s8590_s1 + $0x5e4] ss:$16 sps:$4 sm:$0xff]   ;;  %v5551_v45 = vld [vmem:[%s8590_s1 + $0x7e0] ss:$16 sps:$4 sm:$0xff]  }
  0x35   :  { %3787 = vmatprep.subr.bf16.mxu1 %v5478_v55  ;;  %v5604_v41 = vld [vmem:[%s8591_s0 + $0x14] ss:$72 sps:$4 sm:$0xff]   ;;  %v5554_v48 = vld [vmem:[%s8590_s1 + $0x5c0] ss:$16 sps:$4 sm:$0xff]  }
  0x36   :  { %v5553_v42 = vld [vmem:[%s8590_s1 + $0x7e4] ss:$16 sps:$4 sm:$0xff]   ;;  %v5557_v49 = vld [vmem:[%s8590_s1 + $0x7c0] ss:$16 sps:$4 sm:$0xff]  }
  0x37   :  { %3735 = vmatpush2.bf16.msra.mxu0 %v5480_v56  ;;  %v5607_v43 = vld [vmem:[%s8591_s0 + $0x1c] ss:$72 sps:$4 sm:$0xff]   ;;  %v5560_v52 = vld [vmem:[%s8590_s1 + $0x5a0] ss:$16 sps:$4 sm:$0xff]  }
  0x38   :  { %3788 = vmatpush2.bf16.msra.mxu1 %v5481_v57  ;;  %3736 = vmatprep.subr.bf16.mxu0 %v5482_v58  ;;  %v5556_v46 = vld [vmem:[%s8590_s1 + $0x5c4] ss:$16 sps:$4 sm:$0xff]   ;;  %v5563_v53 = vld [vmem:[%s8590_s1 + $0x7a0] ss:$16 sps:$4 sm:$0xff]  }
  0x39   :  { %3789 = vmatprep.subr.bf16.mxu1 %v5484_v59  ;;  %v5559_v47 = vld [vmem:[%s8590_s1 + $0x7c4] ss:$16 sps:$4 sm:$0xff]   ;;  %v5566_v56 = vld [vmem:[%s8590_s1 + $0x580] ss:$16 sps:$4 sm:$0xff]  }
  0x3a   :  { %v5562_v50 = vld [vmem:[%s8590_s1 + $0x5a4] ss:$16 sps:$4 sm:$0xff]   ;;  %v5569_v57 = vld [vmem:[%s8590_s1 + $0x780] ss:$16 sps:$4 sm:$0xff]  }
  0x3b   :  { %3737 = vmatpush2.bf16.msra.mxu0 %v5486_v60  ;;  %v5565_v51 = vld [vmem:[%s8590_s1 + $0x7a4] ss:$16 sps:$4 sm:$0xff]   ;;  %v5572_v60 = vld [vmem:[%s8590_s1 + $0x560] ss:$16 sps:$4 sm:$0xff]  }
  0x3c   :  { %3790 = vmatpush2.bf16.msra.mxu1 %v5487_v61  ;;  %3738 = vmatprep.subr.bf16.mxu0 %v5488_v62  ;;  %v5568_v54 = vld [vmem:[%s8590_s1 + $0x584] ss:$16 sps:$4 sm:$0xff]   ;;  %v5575_v61 = vld [vmem:[%s8590_s1 + $0x760] ss:$16 sps:$4 sm:$0xff]  }
  0x3d   :  { %3791 = vmatprep.subr.bf16.mxu1 %v5490_v63  ;;  %v5571_v55 = vld [vmem:[%s8590_s1 + $0x784] ss:$16 sps:$4 sm:$0xff]  }
  0x3e   :  { %v5574_v58 = vld [vmem:[%s8590_s1 + $0x564] ss:$16 sps:$4 sm:$0xff]  }
  0x3f   :  { %3739 = vmatpush2.bf16.msra.mxu0 %v5492_v0  ;;  %v5577_v59 = vld [vmem:[%s8590_s1 + $0x764] ss:$16 sps:$4 sm:$0xff]   ;;  %v5583_v0 = vld [vmem:[%s8590_s1 + $0x540] ss:$16 sps:$4 sm:$0xff]  }
  0x40   :  { %3792 = vmatpush2.bf16.msra.mxu1 %v5493_v1  ;;  %3814 = vmatprep.subr.bf16.mxu0 %v5502_v2  ;;  %v5585_v62 = vld [vmem:[%s8590_s1 + $0x544] ss:$16 sps:$4 sm:$0xff]   ;;  %v5586_v1 = vld [vmem:[%s8590_s1 + $0x740] ss:$16 sps:$4 sm:$0xff]  }
  0x41   :  { %3867 = vmatprep.subr.bf16.mxu1 %v5505_v3  ;;  %v5588_v63 = vld [vmem:[%s8590_s1 + $0x744] ss:$16 sps:$4 sm:$0xff]  }
  0x42   :  { %3741 = vmatmul.mubr.bf16.vlgmr.msra.gmra.mxu0 %v5494_v4  ;;  %v5592_v2 = vld [vmem:[%s8590_s1 + $0x524] ss:$16 sps:$4 sm:$0xff]   ;;  %v5590_v4 = vld [vmem:[%s8590_s1 + $0x520] ss:$16 sps:$4 sm:$0xff]  }
  0x43   :  { %3794 = vmatmul.mubr.bf16.vlgmr.msra.gmra.mxu1 %v5497_v5  ;;  %3815 = vmatpush1.bf16.msra.mxu0 %v5500_v6  ;;  %v5595_v3 = vld [vmem:[%s8590_s1 + $0x724] ss:$16 sps:$4 sm:$0xff]   ;;  %v5593_v5 = vld [vmem:[%s8590_s1 + $0x720] ss:$16 sps:$4 sm:$0xff]  }
  0x44   :  { %3868 = vmatpush1.bf16.msra.mxu1 %v5503_v7  ;;  %3816 = vmatprep.subr.bf16.mxu0 %v5508_v8  ;;  %v5598_v6 = vld [vmem:[%s8590_s1 + $0x504] ss:$16 sps:$4 sm:$0xff]   ;;  %v5596_v8 = vld [vmem:[%s8590_s1 + $0x500] ss:$16 sps:$4 sm:$0xff]  }
  0x45   :  { %3869 = vmatprep.subr.bf16.mxu1 %v5511_v9  ;;  %3750 = vmatprep.mubr.bf16.mxu0 %v5578_v26  ;;  %v5601_v7 = vld [vmem:[%s8590_s1 + $0x704] ss:$16 sps:$4 sm:$0xff]   ;;  %v5599_v9 = vld [vmem:[%s8590_s1 + $0x700] ss:$16 sps:$4 sm:$0xff]  }
  0x46   :  { %3803 = vmatprep.mubr.bf16.mxu1 %v5581_v28  ;;  %v5626_v26 = vld [vmem:[%s8590_s1 + $0xaa0] ss:$16 sps:$4 sm:$0xff]   ;;  %v5634_v28 = vld [vmem:[%s8590_s1 + $0x884] ss:$16 sps:$4 sm:$0xff]  }
  0x47   :  { %3817 = vmatpush1.bf16.msra.mxu0 %v5506_v10  ;;  %v5610_v10 = vld [vmem:[%s8590_s1 + $0x8e4] ss:$16 sps:$4 sm:$0xff]  }
  0x48   :  { %3870 = vmatpush1.bf16.msra.mxu1 %v5509_v11  ;;  %3818 = vmatprep.subr.bf16.mxu0 %v5514_v12  ;;  %v5613_v11 = vld [vmem:[%s8590_s1 + $0xae4] ss:$16 sps:$4 sm:$0xff]   ;;  %v5602_v12 = vld [vmem:[%s8591_s0 + $0x10] ss:$72 sps:$4 sm:$0xff]  }
  0x49   :  { %3871 = vmatprep.subr.bf16.mxu1 %v5517_v13  ;;  %v5605_v13 = vld [vmem:[%s8591_s0 + $0x18] ss:$72 sps:$4 sm:$0xff]  }
  0x4a   :  { %3751 = vmatmul.mubr.bf16.gmra.mxu0 %v5580_v27  ;;  %v5631_v27 = vld [vmem:[%s8591_s0 + $0xa8] ss:$72 sps:$4 sm:$0xff]  }
  0x4b   :  { %3819 = vmatpush1.bf16.msra.mxu0 %v5512_v14  ;;  %3804 = vmatmul.mubr.bf16.gmra.mxu1 %v5589_v33  ;;  %v5608_v14 = vld [vmem:[%s8590_s1 + $0x8e0] ss:$16 sps:$4 sm:$0xff]   ;;  %v5712_v33 = vld [vmem:[%s8591_s0 + $0x24] ss:$72 sps:$4 sm:$0xff]  }
  0x4c   :  { %3872 = vmatpush1.bf16.msra.mxu1 %v5515_v15  ;;  %3820 = vmatprep.subr.bf16.mxu0 %v5520_v16  ;;  %v5611_v15 = vld [vmem:[%s8590_s1 + $0xae0] ss:$16 sps:$4 sm:$0xff]   ;;  %v5616_v16 = vld [vmem:[%s8590_s1 + $0x8c4] ss:$16 sps:$4 sm:$0xff]  }
  0x4d   :  { %3873 = vmatprep.subr.bf16.mxu1 %v5523_v17  ;;  %3846 = vmatprep.mubr.bf16.mxu0 %v5604_v41  ;;  %v5619_v17 = vld [vmem:[%s8590_s1 + $0xac4] ss:$16 sps:$4 sm:$0xff]   ;;  %v5647_v41 = vld [vmem:[%s8590_s1 + $0xa40] ss:$16 sps:$4 sm:$0xff]  }
  0x4e   :  { %3899 = vmatprep.mubr.bf16.mxu1 %v5607_v43  ;;  %v5655_v43 = vld [vmem:[%s8590_s1 + $0xa24] ss:$16 sps:$4 sm:$0xff]  }
  0x4f   :  { %3821 = vmatpush1.bf16.msra.mxu0 %v5518_v18  ;;  %v5620_v18 = vld [vmem:[%s8591_s0 + $0xa4] ss:$72 sps:$4 sm:$0xff]  }
  0x50   :  { %3874 = vmatpush1.bf16.msra.mxu1 %v5521_v19  ;;  %3822 = vmatprep.subr.bf16.mxu0 %v5526_v20  ;;  %v5629_v19 = vld [vmem:[%s8591_s0 + $0xac] ss:$72 sps:$4 sm:$0xff]   ;;  %v5614_v20 = vld [vmem:[%s8590_s1 + $0x8c0] ss:$16 sps:$4 sm:$0xff]  }
  0x51   :  { %3875 = vmatprep.subr.bf16.mxu1 %v5529_v21  ;;  %v5617_v21 = vld [vmem:[%s8590_s1 + $0xac0] ss:$16 sps:$4 sm:$0xff]  }
  0x53   :  { %3823 = vmatpush1.bf16.msra.mxu0 %v5524_v22  ;;  %v5625_v22 = vld [vmem:[%s8590_s1 + $0x8a4] ss:$16 sps:$4 sm:$0xff]  }
  0x54   :  { %3876 = vmatpush1.bf16.msra.mxu1 %v5527_v23  ;;  %3824 = vmatprep.subr.bf16.mxu0 %v5532_v24  ;;  %v5628_v23 = vld [vmem:[%s8590_s1 + $0xaa4] ss:$16 sps:$4 sm:$0xff]   ;;  %v5622_v24 = vld [vmem:[%s8591_s0 + $0xa0] ss:$72 sps:$4 sm:$0xff]  }
  0x55   :  { %3877 = vmatprep.subr.bf16.mxu1 %v5535_v25  ;;  %v5623_v25 = vld [vmem:[%s8590_s1 + $0x8a0] ss:$16 sps:$4 sm:$0xff]  }
  0x57   :  { %3825 = vmatpush1.bf16.msra.mxu0 %v5530_v29  ;;  %v5637_v29 = vld [vmem:[%s8590_s1 + $0xa84] ss:$16 sps:$4 sm:$0xff]  }
  0x58   :  { %3878 = vmatpush1.bf16.msra.mxu1 %v5533_v30  ;;  %3826 = vmatprep.subr.bf16.mxu0 %v5538_v31  ;;  %v5632_v30 = vld [vmem:[%s8590_s1 + $0x880] ss:$16 sps:$4 sm:$0xff]  }
  0x59   :  { %3879 = vmatprep.subr.bf16.mxu1 %v5541_v32  ;;  %v5635_v31 = vld [vmem:[%s8590_s1 + $0xa80] ss:$16 sps:$4 sm:$0xff]   ;;  %v5640_v32 = vld [vmem:[%s8590_s1 + $0x864] ss:$16 sps:$4 sm:$0xff]  }
  0x5b   :  { %3827 = vmatpush1.bf16.msra.mxu0 %v5536_v34  ;;  %v5643_v34 = vld [vmem:[%s8590_s1 + $0xa64] ss:$16 sps:$4 sm:$0xff]  }
  0x5c   :  { %3880 = vmatpush1.bf16.msra.mxu1 %v5539_v35  ;;  %3828 = vmatprep.subr.bf16.mxu0 %v5544_v36  ;;  %v5715_v35 = vld [vmem:[%s8591_s0 + $0x2c] ss:$72 sps:$4 sm:$0xff]   ;;  %v5638_v36 = vld [vmem:[%s8590_s1 + $0x860] ss:$16 sps:$4 sm:$0xff]  }
  0x5d   :  { %3881 = vmatprep.subr.bf16.mxu1 %v5547_v37  ;;  %v5641_v37 = vld [vmem:[%s8590_s1 + $0xa60] ss:$16 sps:$4 sm:$0xff]  }
  0x5f   :  { %3829 = vmatpush1.bf16.msra.mxu0 %v5542_v38  ;;  %v5646_v38 = vld [vmem:[%s8590_s1 + $0x844] ss:$16 sps:$4 sm:$0xff]  }
  0x60   :  { %3882 = vmatpush1.bf16.msra.mxu1 %v5545_v39  ;;  %3830 = vmatprep.subr.bf16.mxu0 %v5550_v40  ;;  %v5649_v39 = vld [vmem:[%s8590_s1 + $0xa44] ss:$16 sps:$4 sm:$0xff]   ;;  %v5644_v40 = vld [vmem:[%s8590_s1 + $0x840] ss:$16 sps:$4 sm:$0xff]  }
  0x61   :  { %3883 = vmatprep.subr.bf16.mxu1 %v5553_v42  ;;  %v5652_v42 = vld [vmem:[%s8590_s1 + $0x824] ss:$16 sps:$4 sm:$0xff]  }
  0x63   :  { %3831 = vmatpush2.bf16.msra.mxu0 %v5548_v44  ;;  %v5650_v44 = vld [vmem:[%s8590_s1 + $0x820] ss:$16 sps:$4 sm:$0xff]  }
  0x64   :  { %3884 = vmatpush2.bf16.msra.mxu1 %v5551_v45  ;;  %3832 = vmatprep.subr.bf16.mxu0 %v5556_v46  ;;  %v5653_v45 = vld [vmem:[%s8590_s1 + $0xa20] ss:$16 sps:$4 sm:$0xff]   ;;  %v5658_v46 = vld [vmem:[%s8590_s1 + $0x804] ss:$16 sps:$4 sm:$0xff]  }
  0x65   :  { %3885 = vmatprep.subr.bf16.mxu1 %v5559_v47  ;;  %v5661_v47 = vld [vmem:[%s8590_s1 + $0xa04] ss:$16 sps:$4 sm:$0xff]  }
  0x67   :  { %3833 = vmatpush2.bf16.msra.mxu0 %v5554_v48  ;;  %v5656_v48 = vld [vmem:[%s8590_s1 + $0x800] ss:$16 sps:$4 sm:$0xff]  }
  0x68   :  { %3886 = vmatpush2.bf16.msra.mxu1 %v5557_v49  ;;  %3834 = vmatprep.subr.bf16.mxu0 %v5562_v50  ;;  %v5659_v49 = vld [vmem:[%s8590_s1 + $0xa00] ss:$16 sps:$4 sm:$0xff]   ;;  %v5664_v50 = vld [vmem:[%s8590_s1 + $0x9e4] ss:$16 sps:$4 sm:$0xff]  }
  0x69   :  { %3887 = vmatprep.subr.bf16.mxu1 %v5565_v51  ;;  %v5667_v51 = vld [vmem:[%s8590_s1 + $0xbe4] ss:$16 sps:$4 sm:$0xff]  }
  0x6b   :  { %3835 = vmatpush2.bf16.msra.mxu0 %v5560_v52  ;;  %v5662_v52 = vld [vmem:[%s8590_s1 + $0x9e0] ss:$16 sps:$4 sm:$0xff]  }
  0x6c   :  { %3888 = vmatpush2.bf16.msra.mxu1 %v5563_v53  ;;  %3836 = vmatprep.subr.bf16.mxu0 %v5568_v54  ;;  %v5665_v53 = vld [vmem:[%s8590_s1 + $0xbe0] ss:$16 sps:$4 sm:$0xff]   ;;  %v5670_v54 = vld [vmem:[%s8590_s1 + $0x9c4] ss:$16 sps:$4 sm:$0xff]  }
  0x6d   :  { %3889 = vmatprep.subr.bf16.mxu1 %v5571_v55  ;;  %v5673_v55 = vld [vmem:[%s8590_s1 + $0xbc4] ss:$16 sps:$4 sm:$0xff]  }
  0x6f   :  { %3837 = vmatpush2.bf16.msra.mxu0 %v5566_v56  ;;  %v5668_v56 = vld [vmem:[%s8590_s1 + $0x9c0] ss:$16 sps:$4 sm:$0xff]  }
  0x70   :  { %3890 = vmatpush2.bf16.msra.mxu1 %v5569_v57  ;;  %3838 = vmatprep.subr.bf16.mxu0 %v5574_v58  ;;  %v5671_v57 = vld [vmem:[%s8590_s1 + $0xbc0] ss:$16 sps:$4 sm:$0xff]   ;;  %v5676_v58 = vld [vmem:[%s8590_s1 + $0x9a4] ss:$16 sps:$4 sm:$0xff]  }
  0x71   :  { %3891 = vmatprep.subr.bf16.mxu1 %v5577_v59  ;;  %v5679_v59 = vld [vmem:[%s8590_s1 + $0xba4] ss:$16 sps:$4 sm:$0xff]  }
  0x73   :  { %3839 = vmatpush2.bf16.msra.mxu0 %v5572_v60  ;;  %v5674_v60 = vld [vmem:[%s8590_s1 + $0x9a0] ss:$16 sps:$4 sm:$0xff]  }
  0x74   :  { %3892 = vmatpush2.bf16.msra.mxu1 %v5575_v61  ;;  %3840 = vmatprep.subr.bf16.mxu0 %v5585_v62  ;;  %v5677_v61 = vld [vmem:[%s8590_s1 + $0xba0] ss:$16 sps:$4 sm:$0xff]   ;;  %v5682_v62 = vld [vmem:[%s8590_s1 + $0x984] ss:$16 sps:$4 sm:$0xff]  }
  0x75   :  { %3893 = vmatprep.subr.bf16.mxu1 %v5588_v63  ;;  %v5685_v63 = vld [vmem:[%s8590_s1 + $0xb84] ss:$16 sps:$4 sm:$0xff]  }
  0x77   :  { %3841 = vmatpush2.bf16.msra.mxu0 %v5583_v0  ;;  %v5680_v0 = vld [vmem:[%s8590_s1 + $0x980] ss:$16 sps:$4 sm:$0xff]  }
  0x78   :  { %3894 = vmatpush2.bf16.msra.mxu1 %v5586_v1  ;;  %3842 = vmatprep.subr.bf16.mxu0 %v5592_v2  ;;  %v5683_v1 = vld [vmem:[%s8590_s1 + $0xb80] ss:$16 sps:$4 sm:$0xff]   ;;  %v5688_v2 = vld [vmem:[%s8590_s1 + $0x964] ss:$16 sps:$4 sm:$0xff]  }
  0x79   :  { %3895 = vmatprep.subr.bf16.mxu1 %v5595_v3  ;;  %v5691_v3 = vld [vmem:[%s8590_s1 + $0xb64] ss:$16 sps:$4 sm:$0xff]  }
  0x7b   :  { %3843 = vmatpush2.bf16.msra.mxu0 %v5590_v4  ;;  %v5686_v4 = vld [vmem:[%s8590_s1 + $0x960] ss:$16 sps:$4 sm:$0xff]  }
  0x7c   :  { %3896 = vmatpush2.bf16.msra.mxu1 %v5593_v5  ;;  %3844 = vmatprep.subr.bf16.mxu0 %v5598_v6  ;;  %v5689_v5 = vld [vmem:[%s8590_s1 + $0xb60] ss:$16 sps:$4 sm:$0xff]   ;;  %v5694_v6 = vld [vmem:[%s8590_s1 + $0x944] ss:$16 sps:$4 sm:$0xff]  }
  0x7d   :  { %3897 = vmatprep.subr.bf16.mxu1 %v5601_v7  ;;  %v5697_v7 = vld [vmem:[%s8590_s1 + $0xb44] ss:$16 sps:$4 sm:$0xff]  }
  0x7f   :  { %3845 = vmatpush2.bf16.msra.mxu0 %v5596_v8  ;;  %v5692_v8 = vld [vmem:[%s8590_s1 + $0x940] ss:$16 sps:$4 sm:$0xff]  }
  0x80   :  { %3898 = vmatpush2.bf16.msra.mxu1 %v5599_v9  ;;  %3920 = vmatprep.subr.bf16.mxu0 %v5610_v10  ;;  %v5695_v9 = vld [vmem:[%s8590_s1 + $0xb40] ss:$16 sps:$4 sm:$0xff]   ;;  %v5700_v10 = vld [vmem:[%s8590_s1 + $0x924] ss:$16 sps:$4 sm:$0xff]  }
  0x81   :  { %3973 = vmatprep.subr.bf16.mxu1 %v5613_v11  ;;  %v5703_v11 = vld [vmem:[%s8590_s1 + $0xb24] ss:$16 sps:$4 sm:$0xff]  }
  0x82   :  { %3847 = vmatmul.mubr.bf16.vlgmr.msra.gmra.mxu0 %v5602_v12  ;;  %v5698_v12 = vld [vmem:[%s8590_s1 + $0x920] ss:$16 sps:$4 sm:$0xff]  }
  0x83   :  { %3900 = vmatmul.mubr.bf16.vlgmr.msra.gmra.mxu1 %v5605_v13  ;;  %3921 = vmatpush1.bf16.msra.mxu0 %v5608_v14  ;;  %v5701_v13 = vld [vmem:[%s8590_s1 + $0xb20] ss:$16 sps:$4 sm:$0xff]   ;;  %v5706_v14 = vld [vmem:[%s8590_s1 + $0x904] ss:$16 sps:$4 sm:$0xff]  }
  0x84   :  { %3974 = vmatpush1.bf16.msra.mxu1 %v5611_v15  ;;  %3922 = vmatprep.subr.bf16.mxu0 %v5616_v16  ;;  %v5709_v15 = vld [vmem:[%s8590_s1 + $0xb04] ss:$16 sps:$4 sm:$0xff]   ;;  %v5704_v16 = vld [vmem:[%s8590_s1 + $0x900] ss:$16 sps:$4 sm:$0xff]  }
  0x85   :  { %3975 = vmatprep.subr.bf16.mxu1 %v5619_v17  ;;  %3856 = vmatprep.mubr.bf16.mxu0 %v5620_v18  ;;  %v5707_v17 = vld [vmem:[%s8590_s1 + $0xb00] ss:$16 sps:$4 sm:$0xff]   ;;  %v5718_v18 = vld [vmem:[%s8590_s1 + $0xce4] ss:$16 sps:$4 sm:$0xff]  }
  0x86   :  { %3909 = vmatprep.mubr.bf16.mxu1 %v5629_v19  ;;  %v5721_v19 = vld [vmem:[%s8590_s1 + $0xee4] ss:$16 sps:$4 sm:$0xff]  }
  0x87   :  { %3923 = vmatpush1.bf16.msra.mxu0 %v5614_v20  ;;  %v5710_v20 = vld [vmem:[%s8591_s0 + $0x20] ss:$72 sps:$4 sm:$0xff]  }
  0x88   :  { %3976 = vmatpush1.bf16.msra.mxu1 %v5617_v21  ;;  %3924 = vmatprep.subr.bf16.mxu0 %v5625_v22  ;;  %v5713_v21 = vld [vmem:[%s8591_s0 + $0x28] ss:$72 sps:$4 sm:$0xff]  }
  0x89   :  { %3977 = vmatprep.subr.bf16.mxu1 %v5628_v23  ;;  %v5716_v22 = vld [vmem:[%s8590_s1 + $0xce0] ss:$16 sps:$4 sm:$0xff]  }
  0x8a   :  { %3857 = vmatmul.mubr.bf16.gmra.mxu0 %v5622_v24  ;;  %v5719_v23 = vld [vmem:[%s8590_s1 + $0xee0] ss:$16 sps:$4 sm:$0xff]   ;;  %v5724_v24 = vld [vmem:[%s8590_s1 + $0xcc4] ss:$16 sps:$4 sm:$0xff]  }
  0x8b   :  { %3910 = vmatmul.mubr.bf16.gmra.mxu1 %v5631_v27  ;;  %3925 = vmatpush1.bf16.msra.mxu0 %v5623_v25  ;;  %v5727_v25 = vld [vmem:[%s8590_s1 + $0xec4] ss:$16 sps:$4 sm:$0xff]  }
  0x8c   :  { %3978 = vmatpush1.bf16.msra.mxu1 %v5626_v26  ;;  %3926 = vmatprep.subr.bf16.mxu0 %v5634_v28  ;;  %v5728_v26 = vld [vmem:[%s8591_s0 + $0xb4] ss:$72 sps:$4 sm:$0xff]   ;;  %v5722_v28 = vld [vmem:[%s8590_s1 + $0xcc0] ss:$16 sps:$4 sm:$0xff]  }
  0x8d   :  { %3979 = vmatprep.subr.bf16.mxu1 %v5637_v29  ;;  %3952 = vmatprep.mubr.bf16.mxu0 %v5712_v33  ;;  %v5737_v27 = vld [vmem:[%s8591_s0 + $0xbc] ss:$72 sps:$4 sm:$0xff]   ;;  %v5725_v29 = vld [vmem:[%s8590_s1 + $0xec0] ss:$16 sps:$4 sm:$0xff]  }
  0x8e   :  { %4005 = vmatprep.mubr.bf16.mxu1 %v5715_v35  ;;  %v5731_v33 = vld [vmem:[%s8590_s1 + $0xca0] ss:$16 sps:$4 sm:$0xff]  }
  0x8f   :  { %3927 = vmatpush1.bf16.msra.mxu0 %v5632_v30  ;;  %v5733_v30 = vld [vmem:[%s8590_s1 + $0xca4] ss:$16 sps:$4 sm:$0xff]   ;;  %v5734_v35 = vld [vmem:[%s8590_s1 + $0xea0] ss:$16 sps:$4 sm:$0xff]  }
  0x90   :  { %3980 = vmatpush1.bf16.msra.mxu1 %v5635_v31  ;;  %3928 = vmatprep.subr.bf16.mxu0 %v5640_v32  ;;  %v5736_v31 = vld [vmem:[%s8590_s1 + $0xea4] ss:$16 sps:$4 sm:$0xff]   ;;  %v5730_v32 = vld [vmem:[%s8591_s0 + $0xb0] ss:$72 sps:$4 sm:$0xff]  }
  0x91   :  { %3981 = vmatprep.subr.bf16.mxu1 %v5643_v34  ;;  %v5739_v34 = vld [vmem:[%s8591_s0 + $0xb8] ss:$72 sps:$4 sm:$0xff]  }
  0x93   :  { %3929 = vmatpush1.bf16.msra.mxu0 %v5638_v36  ;;  %v5742_v36 = vld [vmem:[%s8590_s1 + $0xc84] ss:$16 sps:$4 sm:$0xff]  }
  0x94   :  { %3982 = vmatpush1.bf16.msra.mxu1 %v5641_v37  ;;  %3930 = vmatprep.subr.bf16.mxu0 %v5646_v38  ;;  %v5745_v37 = vld [vmem:[%s8590_s1 + $0xe84] ss:$16 sps:$4 sm:$0xff]  }
  0x95   :  { %3983 = vmatprep.subr.bf16.mxu1 %v5649_v39  ;;  %v5820_v38 = vld [vmem:[%s8591_s0 + $0x34] ss:$72 sps:$4 sm:$0xff]  }
  0x96   :  { %v5823_v39 = vld [vmem:[%s8591_s0 + $0x3c] ss:$72 sps:$4 sm:$0xff]  }
  0x97   :  { %3931 = vmatpush1.bf16.msra.mxu0 %v5644_v40  ;;  %v5740_v40 = vld [vmem:[%s8590_s1 + $0xc80] ss:$16 sps:$4 sm:$0xff]  }
  0x98   :  { %3984 = vmatpush1.bf16.msra.mxu1 %v5647_v41  ;;  %3932 = vmatprep.subr.bf16.mxu0 %v5652_v42  ;;  %v5743_v41 = vld [vmem:[%s8590_s1 + $0xe80] ss:$16 sps:$4 sm:$0xff]   ;;  %v5748_v42 = vld [vmem:[%s8590_s1 + $0xc64] ss:$16 sps:$4 sm:$0xff]  }
  0x99   :  { %3985 = vmatprep.subr.bf16.mxu1 %v5655_v43  ;;  %v5751_v43 = vld [vmem:[%s8590_s1 + $0xe64] ss:$16 sps:$4 sm:$0xff]  }
  0x9b   :  { %3933 = vmatpush1.bf16.msra.mxu0 %v5650_v44  ;;  %v5746_v44 = vld [vmem:[%s8590_s1 + $0xc60] ss:$16 sps:$4 sm:$0xff]  }
  0x9c   :  { %3986 = vmatpush1.bf16.msra.mxu1 %v5653_v45  ;;  %3934 = vmatprep.subr.bf16.mxu0 %v5658_v46  ;;  %v5749_v45 = vld [vmem:[%s8590_s1 + $0xe60] ss:$16 sps:$4 sm:$0xff]   ;;  %v5754_v46 = vld [vmem:[%s8590_s1 + $0xc44] ss:$16 sps:$4 sm:$0xff]  }
  0x9d   :  { %3987 = vmatprep.subr.bf16.mxu1 %v5661_v47  ;;  %v5757_v47 = vld [vmem:[%s8590_s1 + $0xe44] ss:$16 sps:$4 sm:$0xff]  }
  0x9f   :  { %3935 = vmatpush1.bf16.msra.mxu0 %v5656_v48  ;;  %v5752_v48 = vld [vmem:[%s8590_s1 + $0xc40] ss:$16 sps:$4 sm:$0xff]  }
  0xa0   :  { %3988 = vmatpush1.bf16.msra.mxu1 %v5659_v49  ;;  %3936 = vmatprep.subr.bf16.mxu0 %v5664_v50  ;;  %v5755_v49 = vld [vmem:[%s8590_s1 + $0xe40] ss:$16 sps:$4 sm:$0xff]   ;;  %v5760_v50 = vld [vmem:[%s8590_s1 + $0xc24] ss:$16 sps:$4 sm:$0xff]  }
  0xa1   :  { %3989 = vmatprep.subr.bf16.mxu1 %v5667_v51  ;;  %v5763_v51 = vld [vmem:[%s8590_s1 + $0xe24] ss:$16 sps:$4 sm:$0xff]  }
  0xa3   :  { %3937 = vmatpush2.bf16.msra.mxu0 %v5662_v52  ;;  %v5758_v52 = vld [vmem:[%s8590_s1 + $0xc20] ss:$16 sps:$4 sm:$0xff]  }
  0xa4   :  { %3990 = vmatpush2.bf16.msra.mxu1 %v5665_v53  ;;  %3938 = vmatprep.subr.bf16.mxu0 %v5670_v54  ;;  %v5761_v53 = vld [vmem:[%s8590_s1 + $0xe20] ss:$16 sps:$4 sm:$0xff]   ;;  %v5766_v54 = vld [vmem:[%s8590_s1 + $0xc04] ss:$16 sps:$4 sm:$0xff]  }
  0xa5   :  { %3991 = vmatprep.subr.bf16.mxu1 %v5673_v55  ;;  %v5769_v55 = vld [vmem:[%s8590_s1 + $0xe04] ss:$16 sps:$4 sm:$0xff]  }
  0xa7   :  { %3939 = vmatpush2.bf16.msra.mxu0 %v5668_v56  ;;  %v5764_v56 = vld [vmem:[%s8590_s1 + $0xc00] ss:$16 sps:$4 sm:$0xff]  }
  0xa8   :  { %3992 = vmatpush2.bf16.msra.mxu1 %v5671_v57  ;;  %3940 = vmatprep.subr.bf16.mxu0 %v5676_v58  ;;  %v5767_v57 = vld [vmem:[%s8590_s1 + $0xe00] ss:$16 sps:$4 sm:$0xff]   ;;  %v5772_v58 = vld [vmem:[%s8590_s1 + $0xde4] ss:$16 sps:$4 sm:$0xff]  }
  0xa9   :  { %3993 = vmatprep.subr.bf16.mxu1 %v5679_v59  ;;  %v5775_v59 = vld [vmem:[%s8590_s1 + $0xfe4] ss:$16 sps:$4 sm:$0xff]  }
  0xab   :  { %3941 = vmatpush2.bf16.msra.mxu0 %v5674_v60  ;;  %v5770_v60 = vld [vmem:[%s8590_s1 + $0xde0] ss:$16 sps:$4 sm:$0xff]  }
  0xac   :  { %3994 = vmatpush2.bf16.msra.mxu1 %v5677_v61  ;;  %3942 = vmatprep.subr.bf16.mxu0 %v5682_v62  ;;  %v5773_v61 = vld [vmem:[%s8590_s1 + $0xfe0] ss:$16 sps:$4 sm:$0xff]   ;;  %v5778_v62 = vld [vmem:[%s8590_s1 + $0xdc4] ss:$16 sps:$4 sm:$0xff]  }
  0xad   :  { %3995 = vmatprep.subr.bf16.mxu1 %v5685_v63  ;;  %v5781_v63 = vld [vmem:[%s8590_s1 + $0xfc4] ss:$16 sps:$4 sm:$0xff]  }
  0xaf   :  { %3943 = vmatpush2.bf16.msra.mxu0 %v5680_v0  ;;  %v5776_v0 = vld [vmem:[%s8590_s1 + $0xdc0] ss:$16 sps:$4 sm:$0xff]  }
  0xb0   :  { %3996 = vmatpush2.bf16.msra.mxu1 %v5683_v1  ;;  %3944 = vmatprep.subr.bf16.mxu0 %v5688_v2  ;;  %v5779_v1 = vld [vmem:[%s8590_s1 + $0xfc0] ss:$16 sps:$4 sm:$0xff]   ;;  %v5784_v2 = vld [vmem:[%s8590_s1 + $0xda4] ss:$16 sps:$4 sm:$0xff]  }
  0xb1   :  { %3997 = vmatprep.subr.bf16.mxu1 %v5691_v3  ;;  %v5787_v3 = vld [vmem:[%s8590_s1 + $0xfa4] ss:$16 sps:$4 sm:$0xff]  }
  0xb3   :  { %3945 = vmatpush2.bf16.msra.mxu0 %v5686_v4  ;;  %v5782_v4 = vld [vmem:[%s8590_s1 + $0xda0] ss:$16 sps:$4 sm:$0xff]  }
  0xb4   :  { %3998 = vmatpush2.bf16.msra.mxu1 %v5689_v5  ;;  %3946 = vmatprep.subr.bf16.mxu0 %v5694_v6  ;;  %v5785_v5 = vld [vmem:[%s8590_s1 + $0xfa0] ss:$16 sps:$4 sm:$0xff]   ;;  %v5790_v6 = vld [vmem:[%s8590_s1 + $0xd84] ss:$16 sps:$4 sm:$0xff]  }
  0xb5   :  { %3999 = vmatprep.subr.bf16.mxu1 %v5697_v7  ;;  %v5793_v7 = vld [vmem:[%s8590_s1 + $0xf84] ss:$16 sps:$4 sm:$0xff]  }
  0xb7   :  { %3947 = vmatpush2.bf16.msra.mxu0 %v5692_v8  ;;  %v5788_v8 = vld [vmem:[%s8590_s1 + $0xd80] ss:$16 sps:$4 sm:$0xff]  }
  0xb8   :  { %4000 = vmatpush2.bf16.msra.mxu1 %v5695_v9  ;;  %3948 = vmatprep.subr.bf16.mxu0 %v5700_v10  ;;  %v5791_v9 = vld [vmem:[%s8590_s1 + $0xf80] ss:$16 sps:$4 sm:$0xff]   ;;  %v5796_v10 = vld [vmem:[%s8590_s1 + $0xd64] ss:$16 sps:$4 sm:$0xff]  }
  0xb9   :  { %4001 = vmatprep.subr.bf16.mxu1 %v5703_v11  ;;  %v5799_v11 = vld [vmem:[%s8590_s1 + $0xf64] ss:$16 sps:$4 sm:$0xff]  }
  0xbb   :  { %3949 = vmatpush2.bf16.msra.mxu0 %v5698_v12  ;;  %v5794_v12 = vld [vmem:[%s8590_s1 + $0xd60] ss:$16 sps:$4 sm:$0xff]  }
  0xbc   :  { %4002 = vmatpush2.bf16.msra.mxu1 %v5701_v13  ;;  %3950 = vmatprep.subr.bf16.mxu0 %v5706_v14  ;;  %v5797_v13 = vld [vmem:[%s8590_s1 + $0xf60] ss:$16 sps:$4 sm:$0xff]   ;;  %v5802_v14 = vld [vmem:[%s8590_s1 + $0xd44] ss:$16 sps:$4 sm:$0xff]  }
  0xbd   :  { %4003 = vmatprep.subr.bf16.mxu1 %v5709_v15  ;;  %v5805_v15 = vld [vmem:[%s8590_s1 + $0xf44] ss:$16 sps:$4 sm:$0xff]  }
  0xbf   :  { %3951 = vmatpush2.bf16.msra.mxu0 %v5704_v16  ;;  %v5800_v16 = vld [vmem:[%s8590_s1 + $0xd40] ss:$16 sps:$4 sm:$0xff]  }
  0xc0   :  { %4004 = vmatpush2.bf16.msra.mxu1 %v5707_v17  ;;  %4026 = vmatprep.subr.bf16.mxu0 %v5718_v18  ;;  %v5803_v17 = vld [vmem:[%s8590_s1 + $0xf40] ss:$16 sps:$4 sm:$0xff]   ;;  %v5808_v18 = vld [vmem:[%s8590_s1 + $0xd24] ss:$16 sps:$4 sm:$0xff]  }
  0xc1   :  { %4079 = vmatprep.subr.bf16.mxu1 %v5721_v19  ;;  %v5811_v19 = vld [vmem:[%s8590_s1 + $0xf24] ss:$16 sps:$4 sm:$0xff]  }
  0xc2   :  { %3953 = vmatmul.mubr.bf16.vlgmr.msra.gmra.mxu0 %v5710_v20  ;;  %v5806_v20 = vld [vmem:[%s8590_s1 + $0xd20] ss:$16 sps:$4 sm:$0xff]  }
  0xc3   :  { %4006 = vmatmul.mubr.bf16.vlgmr.msra.gmra.mxu1 %v5713_v21  ;;  %4027 = vmatpush1.bf16.msra.mxu0 %v5716_v22  ;;  %v5809_v21 = vld [vmem:[%s8590_s1 + $0xf20] ss:$16 sps:$4 sm:$0xff]   ;;  %v5814_v22 = vld [vmem:[%s8590_s1 + $0xd04] ss:$16 sps:$4 sm:$0xff]  }
  0xc4   :  { %4080 = vmatpush1.bf16.msra.mxu1 %v5719_v23  ;;  %4028 = vmatprep.subr.bf16.mxu0 %v5724_v24  ;;  %v5817_v23 = vld [vmem:[%s8590_s1 + $0xf04] ss:$16 sps:$4 sm:$0xff]   ;;  %v5812_v24 = vld [vmem:[%s8590_s1 + $0xd00] ss:$16 sps:$4 sm:$0xff]  }
  0xc5   :  { %4081 = vmatprep.subr.bf16.mxu1 %v5727_v25  ;;  %3962 = vmatprep.mubr.bf16.mxu0 %v5728_v26  ;;  %v5815_v25 = vld [vmem:[%s8590_s1 + $0xf00] ss:$16 sps:$4 sm:$0xff]   ;;  %v5826_v26 = vld [vmem:[%s8590_s1 + $0x10e4] ss:$16 sps:$4 sm:$0xff]  }
  0xc6   :  { %4015 = vmatprep.mubr.bf16.mxu1 %v5737_v27  ;;  %v5829_v27 = vld [vmem:[%s8590_s1 + $0xec] ss:$16 sps:$4 sm:$0xff]  }
  0xc7   :  { %4029 = vmatpush1.bf16.msra.mxu0 %v5722_v28  ;;  %v5818_v28 = vld [vmem:[%s8591_s0 + $0x30] ss:$72 sps:$4 sm:$0xff]  }
  0xc8   :  { %4082 = vmatpush1.bf16.msra.mxu1 %v5725_v29  ;;  %4030 = vmatprep.subr.bf16.mxu0 %v5733_v30  ;;  %v5821_v29 = vld [vmem:[%s8591_s0 + $0x38] ss:$72 sps:$4 sm:$0xff]  }
  0xc9   :  { %4083 = vmatprep.subr.bf16.mxu1 %v5736_v31  ;;  %v5824_v30 = vld [vmem:[%s8590_s1 + $0x10e0] ss:$16 sps:$4 sm:$0xff]   ;;  %v5827_v31 = vld [vmem:[%s8590_s1 + $0xe8] ss:$16 sps:$4 sm:$0xff]  }
  0xca   :  { %3963 = vmatmul.mubr.bf16.gmra.mxu0 %v5730_v32  ;;  %v5832_v32 = vld [vmem:[%s8590_s1 + $0x10c4] ss:$16 sps:$4 sm:$0xff]  }
  0xcb   :  { %4016 = vmatmul.mubr.bf16.gmra.mxu1 %v5739_v34  ;;  %4031 = vmatpush1.bf16.msra.mxu0 %v5731_v33  ;;  %v5835_v33 = vld [vmem:[%s8590_s1 + $0xcc] ss:$16 sps:$4 sm:$0xff]  }
  0xcc   :  { %4084 = vmatpush1.bf16.msra.mxu1 %v5734_v35  ;;  %4032 = vmatprep.subr.bf16.mxu0 %v5742_v36  ;;  %v5836_v34 = vld [vmem:[%s8591_s0 + $0xc4] ss:$72 sps:$4 sm:$0xff]   ;;  %v5830_v36 = vld [vmem:[%s8590_s1 + $0x10c0] ss:$16 sps:$4 sm:$0xff]  }
  0xcd   :  { %4085 = vmatprep.subr.bf16.mxu1 %v5745_v37  ;;  %4058 = vmatprep.mubr.bf16.mxu0 %v5820_v38  ;;  %v5845_v35 = vld [vmem:[%s8591_s0 + $0xcc] ss:$72 sps:$4 sm:$0xff]   ;;  %v5833_v37 = vld [vmem:[%s8590_s1 + $0xc8] ss:$16 sps:$4 sm:$0xff]  }
  0xce   :  { %4111 = vmatprep.mubr.bf16.mxu1 %v5823_v39  ;;  %v5841_v38 = vld [vmem:[%s8590_s1 + $0x10a4] ss:$16 sps:$4 sm:$0xff]   ;;  %v5844_v39 = vld [vmem:[%s8590_s1 + $0xac] ss:$16 sps:$4 sm:$0xff]  }
  0xcf   :  { %4033 = vmatpush1.bf16.msra.mxu0 %v5740_v40  ;;  %v5838_v40 = vld [vmem:[%s8591_s0 + $0xc0] ss:$72 sps:$4 sm:$0xff]  }
  0xd0   :  { %4086 = vmatpush1.bf16.msra.mxu1 %v5743_v41  ;;  %4034 = vmatprep.subr.bf16.mxu0 %v5748_v42  ;;  %v5839_v41 = vld [vmem:[%s8590_s1 + $0x10a0] ss:$16 sps:$4 sm:$0xff]  }
  0xd1   :  { %4087 = vmatprep.subr.bf16.mxu1 %v5751_v43  ;;  %v5847_v42 = vld [vmem:[%s8591_s0 + $0xc8] ss:$72 sps:$4 sm:$0xff]  }
  0xd2   :  { %v5842_v43 = vld [vmem:[%s8590_s1 + $0xa8] ss:$16 sps:$4 sm:$0xff]  }
  0xd3   :  { %4035 = vmatpush1.bf16.msra.mxu0 %v5746_v44  ;;  %v5850_v44 = vld [vmem:[%s8590_s1 + $0x1084] ss:$16 sps:$4 sm:$0xff]  }
  0xd4   :  { %4088 = vmatpush1.bf16.msra.mxu1 %v5749_v45  ;;  %4036 = vmatprep.subr.bf16.mxu0 %v5754_v46  ;;  %v5853_v45 = vld [vmem:[%s8590_s1 + $0x8c] ss:$16 sps:$4 sm:$0xff]  }
  0xd5   :  { %4089 = vmatprep.subr.bf16.mxu1 %v5757_v47  ;;  %v5928_v46 = vld [vmem:[%s8591_s0 + $0x44] ss:$72 sps:$4 sm:$0xff]   ;;  %v5848_v47 = vld [vmem:[%s8590_s1 + $0x1080] ss:$16 sps:$4 sm:$0xff]  }
  0xd7   :  { %4037 = vmatpush1.bf16.msra.mxu0 %v5752_v48  ;;  %v5851_v48 = vld [vmem:[%s8590_s1 + $0x88] ss:$16 sps:$4 sm:$0xff]  }
  0xd8   :  { %4090 = vmatpush1.bf16.msra.mxu1 %v5755_v49  ;;  %4038 = vmatprep.subr.bf16.mxu0 %v5760_v50  ;;  %v5856_v49 = vld [vmem:[%s8590_s1 + $0x1064] ss:$16 sps:$4 sm:$0xff]   ;;  %v5859_v50 = vld [vmem:[%s8590_s1 + $0x6c] ss:$16 sps:$4 sm:$0xff]  }
  0xd9   :  { %4091 = vmatprep.subr.bf16.mxu1 %v5763_v51  ;;  %v6316_v51 = vld [vmem:[%s8591_s0 + $0x4] ss:$72 sps:$4 sm:$0xff]  }
  0xdb   :  { %4039 = vmatpush1.bf16.msra.mxu0 %v5758_v52  ;;  %v5854_v52 = vld [vmem:[%s8590_s1 + $0x1060] ss:$16 sps:$4 sm:$0xff]  }
  0xdc   :  { %4092 = vmatpush1.bf16.msra.mxu1 %v5761_v53  ;;  %4040 = vmatprep.subr.bf16.mxu0 %v5766_v54  ;;  %v5857_v53 = vld [vmem:[%s8590_s1 + $0x68] ss:$16 sps:$4 sm:$0xff]   ;;  %v5862_v54 = vld [vmem:[%s8590_s1 + $0x1044] ss:$16 sps:$4 sm:$0xff]  }
  0xdd   :  { %4093 = vmatprep.subr.bf16.mxu1 %v5769_v55  ;;  %v5865_v55 = vld [vmem:[%s8590_s1 + $0x4c] ss:$16 sps:$4 sm:$0xff]  }
  0xdf   :  { %4041 = vmatpush1.bf16.msra.mxu0 %v5764_v56  ;;  %v5860_v56 = vld [vmem:[%s8590_s1 + $0x1040] ss:$16 sps:$4 sm:$0xff]  }
  0xe0   :  { %4094 = vmatpush1.bf16.msra.mxu1 %v5767_v57  ;;  %4042 = vmatprep.subr.bf16.mxu0 %v5772_v58  ;;  %v5863_v57 = vld [vmem:[%s8590_s1 + $0x48] ss:$16 sps:$4 sm:$0xff]   ;;  %v5868_v58 = vld [vmem:[%s8590_s1 + $0x1024] ss:$16 sps:$4 sm:$0xff]  }
  0xe1   :  { %4095 = vmatprep.subr.bf16.mxu1 %v5775_v59  ;;  %v5871_v59 = vld [vmem:[%s8590_s1 + $0x2c] ss:$16 sps:$4 sm:$0xff]  }
  0xe3   :  { %4043 = vmatpush2.bf16.msra.mxu0 %v5770_v60  ;;  %v5866_v60 = vld [vmem:[%s8590_s1 + $0x1020] ss:$16 sps:$4 sm:$0xff]  }
  0xe4   :  { %4096 = vmatpush2.bf16.msra.mxu1 %v5773_v61  ;;  %4044 = vmatprep.subr.bf16.mxu0 %v5778_v62  ;;  %v5869_v61 = vld [vmem:[%s8590_s1 + $0x28] ss:$16 sps:$4 sm:$0xff]   ;;  %v5874_v62 = vld [vmem:[%s8590_s1 + $0x1004] ss:$16 sps:$4 sm:$0xff]  }
  0xe5   :  { %4097 = vmatprep.subr.bf16.mxu1 %v5781_v63  ;;  %v5877_v63 = vld [vmem:[%s8590_s1 + $0xc] ss:$16 sps:$4 sm:$0xff]  }
  0xe7   :  { %4045 = vmatpush2.bf16.msra.mxu0 %v5776_v0  ;;  %v5872_v0 = vld [vmem:[%s8590_s1 + $0x1000] ss:$16 sps:$4 sm:$0xff]  }
  0xe8   :  { %4098 = vmatpush2.bf16.msra.mxu1 %v5779_v1  ;;  %4046 = vmatprep.subr.bf16.mxu0 %v5784_v2  ;;  %v5875_v1 = vld [vmem:[%s8590_s1 + $0x8] ss:$16 sps:$4 sm:$0xff]   ;;  %v5880_v2 = vld [vmem:[%s8590_s1 + $0x11e4] ss:$16 sps:$4 sm:$0xff]  }
  0xe9   :  { %4099 = vmatprep.subr.bf16.mxu1 %v5787_v3  ;;  %v5883_v3 = vld [vmem:[%s8590_s1 + $0x1ec] ss:$16 sps:$4 sm:$0xff]  }
  0xeb   :  { %4047 = vmatpush2.bf16.msra.mxu0 %v5782_v4  ;;  %v5878_v4 = vld [vmem:[%s8590_s1 + $0x11e0] ss:$16 sps:$4 sm:$0xff]  }
  0xec   :  { %4100 = vmatpush2.bf16.msra.mxu1 %v5785_v5  ;;  %4048 = vmatprep.subr.bf16.mxu0 %v5790_v6  ;;  %v5881_v5 = vld [vmem:[%s8590_s1 + $0x1e8] ss:$16 sps:$4 sm:$0xff]   ;;  %v5886_v6 = vld [vmem:[%s8590_s1 + $0x11c4] ss:$16 sps:$4 sm:$0xff]  }
  0xed   :  { %4101 = vmatprep.subr.bf16.mxu1 %v5793_v7  ;;  %v5889_v7 = vld [vmem:[%s8590_s1 + $0x1cc] ss:$16 sps:$4 sm:$0xff]  }
  0xef   :  { %4049 = vmatpush2.bf16.msra.mxu0 %v5788_v8  ;;  %v5884_v8 = vld [vmem:[%s8590_s1 + $0x11c0] ss:$16 sps:$4 sm:$0xff]  }
  0xf0   :  { %4102 = vmatpush2.bf16.msra.mxu1 %v5791_v9  ;;  %4050 = vmatprep.subr.bf16.mxu0 %v5796_v10  ;;  %v5887_v9 = vld [vmem:[%s8590_s1 + $0x1c8] ss:$16 sps:$4 sm:$0xff]   ;;  %v5892_v10 = vld [vmem:[%s8590_s1 + $0x11a4] ss:$16 sps:$4 sm:$0xff]  }
  0xf1   :  { %4103 = vmatprep.subr.bf16.mxu1 %v5799_v11  ;;  %v5895_v11 = vld [vmem:[%s8590_s1 + $0x1ac] ss:$16 sps:$4 sm:$0xff]  }
  0xf3   :  { %4051 = vmatpush2.bf16.msra.mxu0 %v5794_v12  ;;  %v5890_v12 = vld [vmem:[%s8590_s1 + $0x11a0] ss:$16 sps:$4 sm:$0xff]  }
  0xf4   :  { %4104 = vmatpush2.bf16.msra.mxu1 %v5797_v13  ;;  %4052 = vmatprep.subr.bf16.mxu0 %v5802_v14  ;;  %v5893_v13 = vld [vmem:[%s8590_s1 + $0x1a8] ss:$16 sps:$4 sm:$0xff]   ;;  %v5898_v14 = vld [vmem:[%s8590_s1 + $0x1184] ss:$16 sps:$4 sm:$0xff]  }
  0xf5   :  { %4105 = vmatprep.subr.bf16.mxu1 %v5805_v15  ;;  %v5901_v15 = vld [vmem:[%s8590_s1 + $0x18c] ss:$16 sps:$4 sm:$0xff]  }
  0xf7   :  { %4053 = vmatpush2.bf16.msra.mxu0 %v5800_v16  ;;  %v5896_v16 = vld [vmem:[%s8590_s1 + $0x1180] ss:$16 sps:$4 sm:$0xff]  }
  0xf8   :  { %4106 = vmatpush2.bf16.msra.mxu1 %v5803_v17  ;;  %4054 = vmatprep.subr.bf16.mxu0 %v5808_v18  ;;  %v5899_v17 = vld [vmem:[%s8590_s1 + $0x188] ss:$16 sps:$4 sm:$0xff]   ;;  %v5904_v18 = vld [vmem:[%s8590_s1 + $0x1164] ss:$16 sps:$4 sm:$0xff]  }
  0xf9   :  { %4107 = vmatprep.subr.bf16.mxu1 %v5811_v19  ;;  %v5907_v19 = vld [vmem:[%s8590_s1 + $0x16c] ss:$16 sps:$4 sm:$0xff]  }
  0xfb   :  { %4055 = vmatpush2.bf16.msra.mxu0 %v5806_v20  ;;  %v5902_v20 = vld [vmem:[%s8590_s1 + $0x1160] ss:$16 sps:$4 sm:$0xff]  }
  0xfc   :  { %4108 = vmatpush2.bf16.msra.mxu1 %v5809_v21  ;;  %4056 = vmatprep.subr.bf16.mxu0 %v5814_v22  ;;  %v5905_v21 = vld [vmem:[%s8590_s1 + $0x168] ss:$16 sps:$4 sm:$0xff]   ;;  %v5910_v22 = vld [vmem:[%s8590_s1 + $0x1144] ss:$16 sps:$4 sm:$0xff]  }
  0xfd   :  { %4109 = vmatprep.subr.bf16.mxu1 %v5817_v23  ;;  %v5913_v23 = vld [vmem:[%s8590_s1 + $0x14c] ss:$16 sps:$4 sm:$0xff]  }
  0xff   :  { %4057 = vmatpush2.bf16.msra.mxu0 %v5812_v24  ;;  %v5908_v24 = vld [vmem:[%s8590_s1 + $0x1140] ss:$16 sps:$4 sm:$0xff]  }
 0x100   :  { %4110 = vmatpush2.bf16.msra.mxu1 %v5815_v25  ;;  %4132 = vmatprep.subr.bf16.mxu0 %v5826_v26  ;;  %v5911_v25 = vld [vmem:[%s8590_s1 + $0x148] ss:$16 sps:$4 sm:$0xff]   ;;  %v5916_v26 = vld [vmem:[%s8590_s1 + $0x1124] ss:$16 sps:$4 sm:$0xff]  }
 0x101   :  { %4185 = vmatprep.subr.bf16.mxu1 %v5829_v27  ;;  %v5919_v27 = vld [vmem:[%s8590_s1 + $0x12c] ss:$16 sps:$4 sm:$0xff]  }
 0x102   :  { %4059 = vmatmul.mubr.bf16.vlgmr.msra.gmra.mxu0 %v5818_v28  ;;  %v5914_v28 = vld [vmem:[%s8590_s1 + $0x1120] ss:$16 sps:$4 sm:$0xff]  }
 0x103   :  { %4112 = vmatmul.mubr.bf16.vlgmr.msra.gmra.mxu1 %v5821_v29  ;;  %4133 = vmatpush1.bf16.msra.mxu0 %v5824_v30  ;;  %v5917_v29 = vld [vmem:[%s8590_s1 + $0x128] ss:$16 sps:$4 sm:$0xff]   ;;  %v5922_v30 = vld [vmem:[%s8590_s1 + $0x1104] ss:$16 sps:$4 sm:$0xff]  }
 0x104   :  { %4186 = vmatpush1.bf16.msra.mxu1 %v5827_v31  ;;  %4134 = vmatprep.subr.bf16.mxu0 %v5832_v32  ;;  %v5925_v31 = vld [vmem:[%s8590_s1 + $0x10c] ss:$16 sps:$4 sm:$0xff]   ;;  %v5920_v32 = vld [vmem:[%s8590_s1 + $0x1100] ss:$16 sps:$4 sm:$0xff]  }
 0x105   :  { %4187 = vmatprep.subr.bf16.mxu1 %v5835_v33  ;;  %4068 = vmatprep.mubr.bf16.mxu0 %v5836_v34  ;;  %v5923_v33 = vld [vmem:[%s8590_s1 + $0x108] ss:$16 sps:$4 sm:$0xff]   ;;  %v5931_v34 = vld [vmem:[%s8590_s1 + $0x2ec] ss:$16 sps:$4 sm:$0xff]  }
 0x106   :  { %4121 = vmatprep.mubr.bf16.mxu1 %v5845_v35  ;;  %v5934_v35 = vld [vmem:[%s8590_s1 + $0x4ec] ss:$16 sps:$4 sm:$0xff]  }
 0x107   :  { %4135 = vmatpush1.bf16.msra.mxu0 %v5830_v36  ;;  %v5926_v36 = vld [vmem:[%s8591_s0 + $0x40] ss:$72 sps:$4 sm:$0xff]  }
 0x108   :  { %4188 = vmatpush1.bf16.msra.mxu1 %v5833_v37  ;;  %4136 = vmatprep.subr.bf16.mxu0 %v5841_v38  ;;  %v5929_v37 = vld [vmem:[%s8590_s1 + $0x2e8] ss:$16 sps:$4 sm:$0xff]  }
 0x109   :  { %4189 = vmatprep.subr.bf16.mxu1 %v5844_v39  ;;  %v5932_v38 = vld [vmem:[%s8590_s1 + $0x4e8] ss:$16 sps:$4 sm:$0xff]   ;;  %v5937_v39 = vld [vmem:[%s8590_s1 + $0x2cc] ss:$16 sps:$4 sm:$0xff]  }
 0x10a   :  { %4069 = vmatmul.mubr.bf16.gmra.mxu0 %v5838_v40  ;;  %v5940_v40 = vld [vmem:[%s8590_s1 + $0x4cc] ss:$16 sps:$4 sm:$0xff]  }
 0x10b   :  { %4122 = vmatmul.mubr.bf16.gmra.mxu1 %v5847_v42  ;;  %4137 = vmatpush1.bf16.msra.mxu0 %v5839_v41  ;;  %v5941_v41 = vld [vmem:[%s8591_s0 + $0xd4] ss:$72 sps:$4 sm:$0xff]   ;;  %v6317_v42 = vld [vmem:[%s8591_s0] ss:$72 sps:$4 sm:$0xff]  }
 0x10c   :  { %4190 = vmatpush1.bf16.msra.mxu1 %v5842_v43  ;;  %4138 = vmatprep.subr.bf16.mxu0 %v5850_v44  ;;  %v5935_v43 = vld [vmem:[%s8590_s1 + $0x2c8] ss:$16 sps:$4 sm:$0xff]  }
 0x10d   :  { %4191 = vmatprep.subr.bf16.mxu1 %v5853_v45  ;;  %4164 = vmatprep.mubr.bf16.mxu0 %v5928_v46  ;;  %v5938_v44 = vld [vmem:[%s8590_s1 + $0x4c8] ss:$16 sps:$4 sm:$0xff]   ;;  %v5946_v45 = vld [vmem:[%s8590_s1 + $0x2ac] ss:$16 sps:$4 sm:$0xff]  }
 0x10e   :  { %4217 = vmatprep.mubr.bf16.mxu1 %v6316_v51  ;;  %v5949_v46 = vld [vmem:[%s8590_s1 + $0x4ac] ss:$16 sps:$4 sm:$0xff]  }
 0x10f   :  { %4139 = vmatpush1.bf16.msra.mxu0 %v5848_v47  ;;  %v5943_v47 = vld [vmem:[%s8591_s0 + $0xd0] ss:$72 sps:$4 sm:$0xff]   ;;  %v5952_v51 = vld [vmem:[%s8590_s1 + $0x28c] ss:$16 sps:$4 sm:$0xff]  }
 0x110   :  { %4192 = vmatpush1.bf16.msra.mxu1 %v5851_v48  ;;  %4140 = vmatprep.subr.bf16.mxu0 %v5856_v49  ;;  %v5944_v48 = vld [vmem:[%s8590_s1 + $0x2a8] ss:$16 sps:$4 sm:$0xff]   ;;  %v6318_v49 = vld [vmem:[%s8591_s0 + $0x94] ss:$72 sps:$4 sm:$0xff]  }
 0x111   :  { %4193 = vmatprep.subr.bf16.mxu1 %v5859_v50  ;;  %v5947_v50 = vld [vmem:[%s8590_s1 + $0x4a8] ss:$16 sps:$4 sm:$0xff]  }
 0x113   :  { %4141 = vmatpush1.bf16.msra.mxu0 %v5854_v52  ;;  %v5955_v52 = vld [vmem:[%s8590_s1 + $0x48c] ss:$16 sps:$4 sm:$0xff]  }
 0x114   :  { %4194 = vmatpush1.bf16.msra.mxu1 %v5857_v53  ;;  %4142 = vmatprep.subr.bf16.mxu0 %v5862_v54  ;;  %v5950_v53 = vld [vmem:[%s8590_s1 + $0x288] ss:$16 sps:$4 sm:$0xff]  }
 0x115   :  { %4195 = vmatprep.subr.bf16.mxu1 %v5865_v55  ;;  %v5953_v54 = vld [vmem:[%s8590_s1 + $0x488] ss:$16 sps:$4 sm:$0xff]  }
 0x116   :  { %v6319_v55 = vld [vmem:[%s8591_s0 + $0x90] ss:$72 sps:$4 sm:$0xff]  }
 0x117   :  { %4143 = vmatpush1.bf16.msra.mxu0 %v5860_v56  ;;  %v5958_v56 = vld [vmem:[%s8590_s1 + $0x26c] ss:$16 sps:$4 sm:$0xff]  }
 0x118   :  { %4196 = vmatpush1.bf16.msra.mxu1 %v5863_v57  ;;  %4144 = vmatprep.subr.bf16.mxu0 %v5868_v58  ;;  %v5961_v57 = vld [vmem:[%s8590_s1 + $0x46c] ss:$16 sps:$4 sm:$0xff]   ;;  %v5956_v58 = vld [vmem:[%s8590_s1 + $0x268] ss:$16 sps:$4 sm:$0xff]  }
 0x119   :  { %4197 = vmatprep.subr.bf16.mxu1 %v5871_v59  ;;  %v5959_v59 = vld [vmem:[%s8590_s1 + $0x468] ss:$16 sps:$4 sm:$0xff]  }
 0x11b   :  { %4145 = vmatpush1.bf16.msra.mxu0 %v5866_v60  ;;  %v6320_v60 = vld [vmem:[%s8591_s0 + $0xc] ss:$72 sps:$4 sm:$0xff]  }
 0x11c   :  { %4198 = vmatpush1.bf16.msra.mxu1 %v5869_v61  ;;  %4146 = vmatprep.subr.bf16.mxu0 %v5874_v62  ;;  %v6321_v61 = vld [vmem:[%s8591_s0 + $0x14] ss:$72 sps:$4 sm:$0xff]  }
 0x11d   :  { %4199 = vmatprep.subr.bf16.mxu1 %v5877_v63  ;;  %v5964_v62 = vld [vmem:[%s8590_s1 + $0x24c] ss:$16 sps:$4 sm:$0xff]  }
 0x11e   :  { %v5967_v63 = vld [vmem:[%s8590_s1 + $0x44c] ss:$16 sps:$4 sm:$0xff]  }
 0x11f   :  { %4147 = vmatpush1.bf16.msra.mxu0 %v5872_v0  ;;  %v5962_v0 = vld [vmem:[%s8590_s1 + $0x248] ss:$16 sps:$4 sm:$0xff]  }
 0x120   :  { %4200 = vmatpush1.bf16.msra.mxu1 %v5875_v1  ;;  %4148 = vmatprep.subr.bf16.mxu0 %v5880_v2  ;;  %v5965_v1 = vld [vmem:[%s8590_s1 + $0x448] ss:$16 sps:$4 sm:$0xff]   ;;  %v5970_v2 = vld [vmem:[%s8590_s1 + $0x22c] ss:$16 sps:$4 sm:$0xff]  }
 0x121   :  { %4201 = vmatprep.subr.bf16.mxu1 %v5883_v3  ;;  %v5973_v3 = vld [vmem:[%s8590_s1 + $0x42c] ss:$16 sps:$4 sm:$0xff]  }
 0x123   :  { %4149 = vmatpush2.bf16.msra.mxu0 %v5878_v4  ;;  %v5968_v4 = vld [vmem:[%s8590_s1 + $0x228] ss:$16 sps:$4 sm:$0xff]  }
 0x124   :  { %4202 = vmatpush2.bf16.msra.mxu1 %v5881_v5  ;;  %4150 = vmatprep.subr.bf16.mxu0 %v5886_v6  ;;  %v5971_v5 = vld [vmem:[%s8590_s1 + $0x428] ss:$16 sps:$4 sm:$0xff]   ;;  %v5976_v6 = vld [vmem:[%s8590_s1 + $0x20c] ss:$16 sps:$4 sm:$0xff]  }
 0x125   :  { %4203 = vmatprep.subr.bf16.mxu1 %v5889_v7  ;;  %v5979_v7 = vld [vmem:[%s8590_s1 + $0x40c] ss:$16 sps:$4 sm:$0xff]  }
 0x127   :  { %4151 = vmatpush2.bf16.msra.mxu0 %v5884_v8  ;;  %v5974_v8 = vld [vmem:[%s8590_s1 + $0x208] ss:$16 sps:$4 sm:$0xff]  }
 0x128   :  { %4204 = vmatpush2.bf16.msra.mxu1 %v5887_v9  ;;  %4152 = vmatprep.subr.bf16.mxu0 %v5892_v10  ;;  %v5977_v9 = vld [vmem:[%s8590_s1 + $0x408] ss:$16 sps:$4 sm:$0xff]   ;;  %v5982_v10 = vld [vmem:[%s8590_s1 + $0x3ec] ss:$16 sps:$4 sm:$0xff]  }
 0x129   :  { %4205 = vmatprep.subr.bf16.mxu1 %v5895_v11  ;;  %v5985_v11 = vld [vmem:[%s8590_s1 + $0x5ec] ss:$16 sps:$4 sm:$0xff]  }
 0x12b   :  { %4153 = vmatpush2.bf16.msra.mxu0 %v5890_v12  ;;  %v5980_v12 = vld [vmem:[%s8590_s1 + $0x3e8] ss:$16 sps:$4 sm:$0xff]  }
 0x12c   :  { %4206 = vmatpush2.bf16.msra.mxu1 %v5893_v13  ;;  %4154 = vmatprep.subr.bf16.mxu0 %v5898_v14  ;;  %v5983_v13 = vld [vmem:[%s8590_s1 + $0x5e8] ss:$16 sps:$4 sm:$0xff]   ;;  %v5988_v14 = vld [vmem:[%s8590_s1 + $0x3cc] ss:$16 sps:$4 sm:$0xff]  }
 0x12d   :  { %4207 = vmatprep.subr.bf16.mxu1 %v5901_v15  ;;  %v5991_v15 = vld [vmem:[%s8590_s1 + $0x5cc] ss:$16 sps:$4 sm:$0xff]  }
 0x12f   :  { %4155 = vmatpush2.bf16.msra.mxu0 %v5896_v16  ;;  %v5986_v16 = vld [vmem:[%s8590_s1 + $0x3c8] ss:$16 sps:$4 sm:$0xff]  }
 0x130   :  { %4208 = vmatpush2.bf16.msra.mxu1 %v5899_v17  ;;  %4156 = vmatprep.subr.bf16.mxu0 %v5904_v18  ;;  %v5989_v17 = vld [vmem:[%s8590_s1 + $0x5c8] ss:$16 sps:$4 sm:$0xff]   ;;  %v5994_v18 = vld [vmem:[%s8590_s1 + $0x3ac] ss:$16 sps:$4 sm:$0xff]  }
 0x131   :  { %4209 = vmatprep.subr.bf16.mxu1 %v5907_v19  ;;  %v5997_v19 = vld [vmem:[%s8590_s1 + $0x5ac] ss:$16 sps:$4 sm:$0xff]  }
 0x133   :  { %4157 = vmatpush2.bf16.msra.mxu0 %v5902_v20  ;;  %v5992_v20 = vld [vmem:[%s8590_s1 + $0x3a8] ss:$16 sps:$4 sm:$0xff]  }
 0x134   :  { %4210 = vmatpush2.bf16.msra.mxu1 %v5905_v21  ;;  %4158 = vmatprep.subr.bf16.mxu0 %v5910_v22  ;;  %v5995_v21 = vld [vmem:[%s8590_s1 + $0x5a8] ss:$16 sps:$4 sm:$0xff]   ;;  %v6000_v22 = vld [vmem:[%s8590_s1 + $0x38c] ss:$16 sps:$4 sm:$0xff]  }
 0x135   :  { %4211 = vmatprep.subr.bf16.mxu1 %v5913_v23  ;;  %v6003_v23 = vld [vmem:[%s8590_s1 + $0x58c] ss:$16 sps:$4 sm:$0xff]  }
 0x137   :  { %4159 = vmatpush2.bf16.msra.mxu0 %v5908_v24  ;;  %v5998_v24 = vld [vmem:[%s8590_s1 + $0x388] ss:$16 sps:$4 sm:$0xff]  }
 0x138   :  { %4212 = vmatpush2.bf16.msra.mxu1 %v5911_v25  ;;  %4160 = vmatprep.subr.bf16.mxu0 %v5916_v26  ;;  %v6001_v25 = vld [vmem:[%s8590_s1 + $0x588] ss:$16 sps:$4 sm:$0xff]   ;;  %v6006_v26 = vld [vmem:[%s8590_s1 + $0x36c] ss:$16 sps:$4 sm:$0xff]  }
 0x139   :  { %4213 = vmatprep.subr.bf16.mxu1 %v5919_v27  ;;  %v6009_v27 = vld [vmem:[%s8590_s1 + $0x56c] ss:$16 sps:$4 sm:$0xff]  }
 0x13b   :  { %4161 = vmatpush2.bf16.msra.mxu0 %v5914_v28  ;;  %v6004_v28 = vld [vmem:[%s8590_s1 + $0x368] ss:$16 sps:$4 sm:$0xff]  }
 0x13c   :  { %4214 = vmatpush2.bf16.msra.mxu1 %v5917_v29  ;;  %4162 = vmatprep.subr.bf16.mxu0 %v5922_v30  ;;  %v6007_v29 = vld [vmem:[%s8590_s1 + $0x568] ss:$16 sps:$4 sm:$0xff]   ;;  %v6012_v30 = vld [vmem:[%s8590_s1 + $0x34c] ss:$16 sps:$4 sm:$0xff]  }
 0x13d   :  { %4215 = vmatprep.subr.bf16.mxu1 %v5925_v31  ;;  %v6015_v31 = vld [vmem:[%s8590_s1 + $0x54c] ss:$16 sps:$4 sm:$0xff]  }
 0x13f   :  { %4163 = vmatpush2.bf16.msra.mxu0 %v5920_v32  ;;  %v6010_v32 = vld [vmem:[%s8590_s1 + $0x348] ss:$16 sps:$4 sm:$0xff]  }
 0x140   :  { %4216 = vmatpush2.bf16.msra.mxu1 %v5923_v33  ;;  %4238 = vmatprep.subr.bf16.mxu0 %v5931_v34  ;;  %v6013_v33 = vld [vmem:[%s8590_s1 + $0x548] ss:$16 sps:$4 sm:$0xff]   ;;  %v6018_v34 = vld [vmem:[%s8590_s1 + $0x32c] ss:$16 sps:$4 sm:$0xff]  }
 0x141   :  { %4291 = vmatprep.subr.bf16.mxu1 %v5934_v35  ;;  %v6021_v35 = vld [vmem:[%s8590_s1 + $0x52c] ss:$16 sps:$4 sm:$0xff]  }
 0x142   :  { %4165 = vmatmul.mubr.bf16.vlgmr.msra.gmra.mxu0 %v5926_v36  ;;  %v6016_v36 = vld [vmem:[%s8590_s1 + $0x328] ss:$16 sps:$4 sm:$0xff]  }
 0x143   :  { %4218 = vmatmul.mubr.bf16.vlgmr.msra.gmra.mxu1 %v6317_v42  ;;  %4239 = vmatpush1.bf16.msra.mxu0 %v5929_v37  ;;  %v6019_v37 = vld [vmem:[%s8590_s1 + $0x528] ss:$16 sps:$4 sm:$0xff]   ;;  %v6030_v42 = vld [vmem:[%s8590_s1 + $0x6ec] ss:$16 sps:$4 sm:$0xff]  }
 0x144   :  { %4292 = vmatpush1.bf16.msra.mxu1 %v5932_v38  ;;  %4240 = vmatprep.subr.bf16.mxu0 %v5937_v39  ;;  %v6024_v38 = vld [vmem:[%s8590_s1 + $0x30c] ss:$16 sps:$4 sm:$0xff]  }
 0x145   :  { %4293 = vmatprep.subr.bf16.mxu1 %v5940_v40  ;;  %4174 = vmatprep.mubr.bf16.mxu0 %v5941_v41  ;;  %v6027_v39 = vld [vmem:[%s8590_s1 + $0x50c] ss:$16 sps:$4 sm:$0xff]   ;;  %v6022_v40 = vld [vmem:[%s8590_s1 + $0x308] ss:$16 sps:$4 sm:$0xff]  }
 0x146   :  { %4227 = vmatprep.mubr.bf16.mxu1 %v6318_v49  ;;  %v6025_v41 = vld [vmem:[%s8590_s1 + $0x508] ss:$16 sps:$4 sm:$0xff]  }
 0x147   :  { %4241 = vmatpush1.bf16.msra.mxu0 %v5935_v43  ;;  %v6033_v43 = vld [vmem:[%s8590_s1 + $0x8ec] ss:$16 sps:$4 sm:$0xff]   ;;  %v6323_v49 = vld [vmem:[%s8591_s0 + $0x10] ss:$72 sps:$4 sm:$0xff]  }
 0x148   :  { %4294 = vmatpush1.bf16.msra.mxu1 %v5938_v44  ;;  %4242 = vmatprep.subr.bf16.mxu0 %v5946_v45  ;;  %v6028_v44 = vld [vmem:[%s8590_s1 + $0x6e8] ss:$16 sps:$4 sm:$0xff]  }
 0x149   :  { %4295 = vmatprep.subr.bf16.mxu1 %v5949_v46  ;;  %v6031_v45 = vld [vmem:[%s8590_s1 + $0x8e8] ss:$16 sps:$4 sm:$0xff]   ;;  %v6036_v46 = vld [vmem:[%s8590_s1 + $0x6cc] ss:$16 sps:$4 sm:$0xff]  }
 0x14a   :  { %4175 = vmatmul.mubr.bf16.gmra.mxu0 %v5943_v47  ;;  %v6039_v47 = vld [vmem:[%s8590_s1 + $0x8cc] ss:$16 sps:$4 sm:$0xff]  }
 0x14b   :  { %4228 = vmatmul.mubr.bf16.gmra.mxu1 %v6319_v55  ;;  %4243 = vmatpush1.bf16.msra.mxu0 %v5944_v48  ;;  %v6322_v48 = vld [vmem:[%s8591_s0 + $0x8] ss:$72 sps:$4 sm:$0xff]   ;;  %v6325_v55 = vld [vmem:[%s8591_s0 + $0xa4] ss:$72 sps:$4 sm:$0xff]  }
 0x14c   :  { %4296 = vmatpush1.bf16.msra.mxu1 %v5947_v50  ;;  %4244 = vmatprep.subr.bf16.mxu0 %v5952_v51  ;;  %v6034_v50 = vld [vmem:[%s8590_s1 + $0x6c8] ss:$16 sps:$4 sm:$0xff]  }
 0x14d   :  { %4297 = vmatprep.subr.bf16.mxu1 %v5955_v52  ;;  %4270 = vmatprep.mubr.bf16.mxu0 %v6320_v60  ;;  %v6037_v51 = vld [vmem:[%s8590_s1 + $0x8c8] ss:$16 sps:$4 sm:$0xff]   ;;  %v6042_v52 = vld [vmem:[%s8590_s1 + $0x6ac] ss:$16 sps:$4 sm:$0xff]  }
 0x14e   :  { %4323 = vmatprep.mubr.bf16.mxu1 %v6321_v61  ;;  %v6326_v60 = vld [vmem:[%s8591_s0 + $0x98] ss:$72 sps:$4 sm:$0xff]  }
 0x14f   :  { %4245 = vmatpush1.bf16.msra.mxu0 %v5950_v53  ;;  %v6045_v53 = vld [vmem:[%s8590_s1 + $0x8ac] ss:$16 sps:$4 sm:$0xff]   ;;  %v6327_v61 = vld [vmem:[%s8591_s0 + $0xa0] ss:$72 sps:$4 sm:$0xff]  }
 0x150   :  { %4298 = vmatpush1.bf16.msra.mxu1 %v5953_v54  ;;  %4246 = vmatprep.subr.bf16.mxu0 %v5958_v56  ;;  %v6324_v54 = vld [vmem:[%s8591_s0 + $0x9c] ss:$72 sps:$4 sm:$0xff]   ;;  %v6040_v56 = vld [vmem:[%s8590_s1 + $0x6a8] ss:$16 sps:$4 sm:$0xff]  }
 0x151   :  { %4299 = vmatprep.subr.bf16.mxu1 %v5961_v57  ;;  %v6043_v57 = vld [vmem:[%s8590_s1 + $0x8a8] ss:$16 sps:$4 sm:$0xff]  }
 0x153   :  { %4247 = vmatpush1.bf16.msra.mxu0 %v5956_v58  ;;  %v6048_v58 = vld [vmem:[%s8590_s1 + $0x68c] ss:$16 sps:$4 sm:$0xff]  }
 0x154   :  { %4300 = vmatpush1.bf16.msra.mxu1 %v5959_v59  ;;  %4248 = vmatprep.subr.bf16.mxu0 %v5964_v62  ;;  %v6051_v59 = vld [vmem:[%s8590_s1 + $0x88c] ss:$16 sps:$4 sm:$0xff]   ;;  %v6046_v62 = vld [vmem:[%s8590_s1 + $0x688] ss:$16 sps:$4 sm:$0xff]  }
 0x155   :  { %4301 = vmatprep.subr.bf16.mxu1 %v5967_v63  ;;  %v6049_v63 = vld [vmem:[%s8590_s1 + $0x888] ss:$16 sps:$4 sm:$0xff]  }
 0x157   :  { %4249 = vmatpush1.bf16.msra.mxu0 %v5962_v0  ;;  %v7716_v0 = vpop.f32.mrf.mxu0 }
 0x158   :  { %4302 = vmatpush1.bf16.msra.mxu1 %v5965_v1  ;;  %4250 = vmatprep.subr.bf16.mxu0 %v5970_v2  ;;  %v6054_v1 = vld [vmem:[%s8590_s1 + $0x66c] ss:$16 sps:$4 sm:$0xff]  }
 0x159   :  { %4303 = vmatprep.subr.bf16.mxu1 %v5973_v3  ;;  %v6057_v2 = vld [vmem:[%s8590_s1 + $0x86c] ss:$16 sps:$4 sm:$0xff]  }
 0x15a   :  { %v6328_v3 = vld [vmem:[%s8591_s0 + $0x1c] ss:$72 sps:$4 sm:$0xff]  }
 0x15b   :  { %4251 = vmatpush1.bf16.msra.mxu0 %v5968_v4  ;;  %v6329_v4 = vld [vmem:[%s8591_s0 + $0x24] ss:$72 sps:$4 sm:$0xff]  }
 0x15c   :  { %4304 = vmatpush1.bf16.msra.mxu1 %v5971_v5  ;;  %4252 = vmatprep.subr.bf16.mxu0 %v5976_v6  ;;  %v6052_v5 = vld [vmem:[%s8590_s1 + $0x668] ss:$16 sps:$4 sm:$0xff]  }
 0x15d   :  { %4305 = vmatprep.subr.bf16.mxu1 %v5979_v7  ;;  %v6055_v6 = vld [vmem:[%s8590_s1 + $0x868] ss:$16 sps:$4 sm:$0xff]   ;;  %v7736_v7 = vpop.f32.mrf.mxu0 }
 0x15f   :  { %4253 = vmatpush1.bf16.msra.mxu0 %v5974_v8  ;;  %v6060_v8 = vld [vmem:[%s8590_s1 + $0x64c] ss:$16 sps:$4 sm:$0xff]  }
 0x160   :  { %4306 = vmatpush1.bf16.msra.mxu1 %v5977_v9  ;;  %4254 = vmatprep.subr.bf16.mxu0 %v5982_v10  ;;  %v6063_v9 = vld [vmem:[%s8590_s1 + $0x84c] ss:$16 sps:$4 sm:$0xff]   ;;  %v6058_v10 = vld [vmem:[%s8590_s1 + $0x648] ss:$16 sps:$4 sm:$0xff]  }
 0x161   :  { %4307 = vmatprep.subr.bf16.mxu1 %v5985_v11  ;;  %v6061_v11 = vld [vmem:[%s8590_s1 + $0x848] ss:$16 sps:$4 sm:$0xff]  }
 0x163   :  { %4255 = vmatpush2.bf16.msra.mxu0 %v5980_v12  ;;  %v7750_v12 = vpop.f32.mrf.mxu0 }
 0x164   :  { %4308 = vmatpush2.bf16.msra.mxu1 %v5983_v13  ;;  %4256 = vmatprep.subr.bf16.mxu0 %v5988_v14  ;;  %v6066_v13 = vld [vmem:[%s8590_s1 + $0x62c] ss:$16 sps:$4 sm:$0xff]  }
 0x165   :  { %4309 = vmatprep.subr.bf16.mxu1 %v5991_v15  ;;  %v6069_v14 = vld [vmem:[%s8590_s1 + $0x82c] ss:$16 sps:$4 sm:$0xff]   ;;  %v6064_v15 = vld [vmem:[%s8590_s1 + $0x628] ss:$16 sps:$4 sm:$0xff]  }
 0x167   :  { %4257 = vmatpush2.bf16.msra.mxu0 %v5986_v16  ;;  %v6067_v16 = vld [vmem:[%s8590_s1 + $0x828] ss:$16 sps:$4 sm:$0xff]  }
 0x168   :  { %4310 = vmatpush2.bf16.msra.mxu1 %v5989_v17  ;;  %4258 = vmatprep.subr.bf16.mxu0 %v5994_v18  ;;  %v7764_v17 = vpop.f32.mrf.mxu0  ;;  %v6072_v18 = vld [vmem:[%s8590_s1 + $0x60c] ss:$16 sps:$4 sm:$0xff]  }
 0x169   :  { %4311 = vmatprep.subr.bf16.mxu1 %v5997_v19  ;;  %v6075_v19 = vld [vmem:[%s8590_s1 + $0x80c] ss:$16 sps:$4 sm:$0xff]  }
 0x16b   :  { %4259 = vmatpush2.bf16.msra.mxu0 %v5992_v20  ;;  %v7772_v20 = vpop.f32.mrf.mxu0 }
 0x16c   :  { %4312 = vmatpush2.bf16.msra.mxu1 %v5995_v21  ;;  %4260 = vmatprep.subr.bf16.mxu0 %v6000_v22  ;;  %v6070_v21 = vld [vmem:[%s8590_s1 + $0x608] ss:$16 sps:$4 sm:$0xff]  }
 0x16d   :  { %4313 = vmatprep.subr.bf16.mxu1 %v6003_v23  ;;  %v6073_v22 = vld [vmem:[%s8590_s1 + $0x808] ss:$16 sps:$4 sm:$0xff]   ;;  %v6078_v23 = vld [vmem:[%s8590_s1 + $0x7ec] ss:$16 sps:$4 sm:$0xff]  }
 0x16f   :  { %4261 = vmatpush2.bf16.msra.mxu0 %v5998_v24  ;;  %v6081_v24 = vld [vmem:[%s8590_s1 + $0x9ec] ss:$16 sps:$4 sm:$0xff]  }
 0x170   :  { %4314 = vmatpush2.bf16.msra.mxu1 %v6001_v25  ;;  %4262 = vmatprep.subr.bf16.mxu0 %v6006_v26  ;;  %v7786_v25 = vpop.f32.mrf.mxu1  ;;  %v7788_v26 = vpop.f32.mrf.mxu0 }
 0x171   :  { %4315 = vmatprep.subr.bf16.mxu1 %v6009_v27  ;;  %v6076_v27 = vld [vmem:[%s8590_s1 + $0x7e8] ss:$16 sps:$4 sm:$0xff]  }
 0x173   :  { %4263 = vmatpush2.bf16.msra.mxu0 %v6004_v28  ;;  %v6079_v28 = vld [vmem:[%s8590_s1 + $0x9e8] ss:$16 sps:$4 sm:$0xff]  }
 0x174   :  { %4316 = vmatpush2.bf16.msra.mxu1 %v6007_v29  ;;  %4264 = vmatprep.subr.bf16.mxu0 %v6012_v30  ;;  %v6084_v29 = vld [vmem:[%s8590_s1 + $0x7cc] ss:$16 sps:$4 sm:$0xff]  }
 0x175   :  { %4317 = vmatprep.subr.bf16.mxu1 %v6015_v31  ;;  %v6087_v30 = vld [vmem:[%s8590_s1 + $0x9cc] ss:$16 sps:$4 sm:$0xff]   ;;  %v7802_v31 = vpop.f32.mrf.mxu1 }
 0x177   :  { %4265 = vmatpush2.bf16.msra.mxu0 %v6010_v32  ;;  %v7804_v32 = vpop.f32.mrf.mxu0 }
 0x178   :  { %4318 = vmatpush2.bf16.msra.mxu1 %v6013_v33  ;;  %4266 = vmatprep.subr.bf16.mxu0 %v6018_v34  ;;  %v6082_v33 = vld [vmem:[%s8590_s1 + $0x7c8] ss:$16 sps:$4 sm:$0xff]  }
 0x179   :  { %4319 = vmatprep.subr.bf16.mxu1 %v6021_v35  ;;  %v6085_v34 = vld [vmem:[%s8590_s1 + $0x9c8] ss:$16 sps:$4 sm:$0xff]   ;;  %v6090_v35 = vld [vmem:[%s8590_s1 + $0x7ac] ss:$16 sps:$4 sm:$0xff]  }
 0x17b   :  { %4267 = vmatpush2.bf16.msra.mxu0 %v6016_v36  ;;  %v6093_v36 = vld [vmem:[%s8590_s1 + $0x9ac] ss:$16 sps:$4 sm:$0xff]  }
 0x17c   :  { %4320 = vmatpush2.bf16.msra.mxu1 %v6019_v37  ;;  %4268 = vmatprep.subr.bf16.mxu0 %v6024_v38  ;;  %v7818_v37 = vpop.f32.mrf.mxu1  ;;  %v7820_v38 = vpop.f32.mrf.mxu0 }
 0x17d   :  { %4321 = vmatprep.subr.bf16.mxu1 %v6027_v39  ;;  %v6088_v39 = vld [vmem:[%s8590_s1 + $0x7a8] ss:$16 sps:$4 sm:$0xff]  }
 0x17f   :  { %4269 = vmatpush2.bf16.msra.mxu0 %v6022_v40  ;;  %v6091_v40 = vld [vmem:[%s8590_s1 + $0x9a8] ss:$16 sps:$4 sm:$0xff]  }
 0x180   :  { %4322 = vmatpush2.bf16.msra.mxu1 %v6025_v41  ;;  %4344 = vmatprep.subr.bf16.mxu0 %v6030_v42  ;;  %v7828_v41 = vpop.f32.mrf.mxu0  ;;  %v6096_v42 = vld [vmem:[%s8590_s1 + $0x78c] ss:$16 sps:$4 sm:$0xff]  }
 0x181   :  { %4397 = vmatprep.subr.bf16.mxu1 %v6033_v43  ;;  %v6099_v43 = vld [vmem:[%s8590_s1 + $0x98c] ss:$16 sps:$4 sm:$0xff]  }
 0x182   :  { %4271 = vmatmul.mubr.bf16.vlgmr.msra.gmra.mxu0 %v6322_v48  ;;  %v7846_v48 = vpop.f32.mrf.mxu0 }
 0x183   :  { %4324 = vmatmul.mubr.bf16.vlgmr.msra.gmra.mxu1 %v6323_v49  ;;  %4345 = vmatpush1.bf16.msra.mxu0 %v6028_v44  ;;  %v7836_v44 = vpop.f32.mrf.mxu1  ;;  %v6102_v49 = vld [vmem:[%s8590_s1 + $0x76c] ss:$16 sps:$4 sm:$0xff]  }
 0x184   :  { %4398 = vmatpush1.bf16.msra.mxu1 %v6031_v45  ;;  %4346 = vmatprep.subr.bf16.mxu0 %v6036_v46  ;;  %v6094_v45 = vld [vmem:[%s8590_s1 + $0x788] ss:$16 sps:$4 sm:$0xff]  }
 0x185   :  { %4399 = vmatprep.subr.bf16.mxu1 %v6039_v47  ;;  %4280 = vmatprep.mubr.bf16.mxu0 %v6324_v54  ;;  %v6097_v46 = vld [vmem:[%s8590_s1 + $0x988] ss:$16 sps:$4 sm:$0xff]   ;;  %v7844_v47 = vpop.f32.mrf.mxu1  ;;  %v7862_v54 = vpop.f32.mrf.mxu0 }
 0x186   :  { %4333 = vmatprep.mubr.bf16.mxu1 %v6325_v55  ;;  %v6108_v55 = vld [vmem:[%s8590_s1 + $0x74c] ss:$16 sps:$4 sm:$0xff]  }
 0x187   :  { %4347 = vmatpush1.bf16.msra.mxu0 %v6034_v50  ;;  %v6105_v50 = vld [vmem:[%s8590_s1 + $0x96c] ss:$16 sps:$4 sm:$0xff]  }
 0x188   :  { %4400 = vmatpush1.bf16.msra.mxu1 %v6037_v51  ;;  %4348 = vmatprep.subr.bf16.mxu0 %v6042_v52  ;;  %v6100_v51 = vld [vmem:[%s8590_s1 + $0x768] ss:$16 sps:$4 sm:$0xff]  }
 0x189   :  { %4401 = vmatprep.subr.bf16.mxu1 %v6045_v53  ;;  %v6103_v52 = vld [vmem:[%s8590_s1 + $0x968] ss:$16 sps:$4 sm:$0xff]   ;;  %v7860_v53 = vpop.f32.mrf.mxu1 }
 0x18a   :  { %4281 = vmatmul.mubr.bf16.gmra.mxu0 %v6326_v60  ;;  %v7878_v60 = vpop.f32.mrf.mxu0 }
 0x18b   :  { %4334 = vmatmul.mubr.bf16.gmra.mxu1 %v6327_v61  ;;  %4349 = vmatpush1.bf16.msra.mxu0 %v6040_v56  ;;  %v6111_v56 = vld [vmem:[%s8590_s1 + $0x94c] ss:$16 sps:$4 sm:$0xff]  }
 0x18c   :  { %4402 = vmatpush1.bf16.msra.mxu1 %v6043_v57  ;;  %4350 = vmatprep.subr.bf16.mxu0 %v6048_v58  ;;  %v6106_v57 = vld [vmem:[%s8590_s1 + $0x748] ss:$16 sps:$4 sm:$0xff]   ;;  %v6114_v61 = vld [vmem:[%s8590_s1 + $0x72c] ss:$16 sps:$4 sm:$0xff]  }
 0x18d   :  { %4403 = vmatprep.subr.bf16.mxu1 %v6051_v59  ;;  %4376 = vmatprep.mubr.bf16.mxu0 %v6328_v3  ;;  %v6109_v58 = vld [vmem:[%s8590_s1 + $0x948] ss:$16 sps:$4 sm:$0xff]   ;;  %v7876_v59 = vpop.f32.mrf.mxu1  ;;  %v7894_v3 = vpop.f32.mrf.mxu0 }
 0x18e   :  { %4429 = vmatprep.mubr.bf16.mxu1 %v6329_v4  ;;  %v6120_v4 = vld [vmem:[%s8590_s1 + $0x70c] ss:$16 sps:$4 sm:$0xff]  }
 0x18f   :  { %4351 = vmatpush1.bf16.msra.mxu0 %v6046_v62  ;;  %v6117_v62 = vld [vmem:[%s8590_s1 + $0x92c] ss:$16 sps:$4 sm:$0xff]  }
 0x190   :  { %4404 = vmatpush1.bf16.msra.mxu1 %v6049_v63  ;;  %4352 = vmatprep.subr.bf16.mxu0 %v6054_v1  ;;  %v6112_v63 = vld [vmem:[%s8590_s1 + $0x728] ss:$16 sps:$4 sm:$0xff]  }
 0x191   :  { %4405 = vmatprep.subr.bf16.mxu1 %v6057_v2  ;;  %v6115_v1 = vld [vmem:[%s8590_s1 + $0x928] ss:$16 sps:$4 sm:$0xff]   ;;  %v7892_v2 = vpop.f32.mrf.mxu1 }
 0x193   :  { %4353 = vmatpush1.bf16.msra.mxu0 %v6052_v5  ;;  %v6123_v5 = vld [vmem:[%s8590_s1 + $0x90c] ss:$16 sps:$4 sm:$0xff]  }
 0x194   :  { %4406 = vmatpush1.bf16.msra.mxu1 %v6055_v6  ;;  %4354 = vmatprep.subr.bf16.mxu0 %v6060_v8  ;;  %v7902_v6 = vpop.f32.mrf.mxu1  ;;  %v6118_v8 = vld [vmem:[%s8590_s1 + $0x708] ss:$16 sps:$4 sm:$0xff]  }
 0x195   :  { %4407 = vmatprep.subr.bf16.mxu1 %v6063_v9  ;;  %v6121_v9 = vld [vmem:[%s8590_s1 + $0x908] ss:$16 sps:$4 sm:$0xff]  }
 0x197   :  { %4355 = vmatpush1.bf16.msra.mxu0 %v6058_v10  ;;  %v7910_v10 = vpop.f32.mrf.mxu0 }
 0x198   :  { %4408 = vmatpush1.bf16.msra.mxu1 %v6061_v11  ;;  %4356 = vmatprep.subr.bf16.mxu0 %v6066_v13  ;;  %v6126_v11 = vld [vmem:[%s8590_s1 + $0xaec] ss:$16 sps:$4 sm:$0xff]  }
 0x199   :  { %4409 = vmatprep.subr.bf16.mxu1 %v6069_v14  ;;  %v6129_v13 = vld [vmem:[%s8590_s1 + $0xcec] ss:$16 sps:$4 sm:$0xff]   ;;  %v7918_v14 = vpop.f32.mrf.mxu1 }
 0x19b   :  { %4357 = vmatpush1.bf16.msra.mxu0 %v6064_v15  ;;  %v6124_v15 = vld [vmem:[%s8590_s1 + $0xae8] ss:$16 sps:$4 sm:$0xff]  }
 0x19c   :  { %4410 = vmatpush1.bf16.msra.mxu1 %v6067_v16  ;;  %4358 = vmatprep.subr.bf16.mxu0 %v6072_v18  ;;  %v6127_v16 = vld [vmem:[%s8590_s1 + $0xce8] ss:$16 sps:$4 sm:$0xff]   ;;  %v7926_v18 = vpop.f32.mrf.mxu0 }
 0x19d   :  { %4411 = vmatprep.subr.bf16.mxu1 %v6075_v19  ;;  %v6132_v19 = vld [vmem:[%s8590_s1 + $0xacc] ss:$16 sps:$4 sm:$0xff]  }
 0x19f   :  { %4359 = vmatpush1.bf16.msra.mxu0 %v6070_v21  ;;  %v6135_v21 = vld [vmem:[%s8590_s1 + $0xccc] ss:$16 sps:$4 sm:$0xff]  }
 0x1a0   :  { %4412 = vmatpush1.bf16.msra.mxu1 %v6073_v22  ;;  %4360 = vmatprep.subr.bf16.mxu0 %v6078_v23  ;;  %v7934_v22 = vpop.f32.mrf.mxu1  ;;  %v6330_v23 = vld [vmem:[%s8591_s0 + $0x18] ss:$72 sps:$4 sm:$0xff]  }
 0x1a1   :  { %4413 = vmatprep.subr.bf16.mxu1 %v6081_v24  ;;  %v6331_v24 = vld [vmem:[%s8591_s0 + $0x20] ss:$72 sps:$4 sm:$0xff]  }
 0x1a3   :  { %4361 = vmatpush2.bf16.msra.mxu0 %v6076_v27  ;;  %v6130_v27 = vld [vmem:[%s8590_s1 + $0xac8] ss:$16 sps:$4 sm:$0xff]  }
 0x1a4   :  { %4414 = vmatpush2.bf16.msra.mxu1 %v6079_v28  ;;  %4362 = vmatprep.subr.bf16.mxu0 %v6084_v29  ;;  %v6133_v28 = vld [vmem:[%s8590_s1 + $0xcc8] ss:$16 sps:$4 sm:$0xff]   ;;  %v7948_v29 = vpop.f32.mrf.mxu0 }
 0x1a5   :  { %4415 = vmatprep.subr.bf16.mxu1 %v6087_v30  ;;  %v6138_v30 = vld [vmem:[%s8590_s1 + $0xaac] ss:$16 sps:$4 sm:$0xff]  }
 0x1a7   :  { %4363 = vmatpush2.bf16.msra.mxu0 %v6082_v33  ;;  %v6141_v33 = vld [vmem:[%s8590_s1 + $0xcac] ss:$16 sps:$4 sm:$0xff]  }
 0x1a8   :  { %4416 = vmatpush2.bf16.msra.mxu1 %v6085_v34  ;;  %4364 = vmatprep.subr.bf16.mxu0 %v6090_v35  ;;  %v6332_v34 = vld [vmem:[%s8591_s0 + $0xac] ss:$72 sps:$4 sm:$0xff]  }
 0x1a9   :  { %4417 = vmatprep.subr.bf16.mxu1 %v6093_v36  ;;  %v6333_v35 = vld [vmem:[%s8591_s0 + $0xb4] ss:$72 sps:$4 sm:$0xff]   ;;  %v7962_v36 = vpop.f32.mrf.mxu1 }
 0x1ab   :  { %4365 = vmatpush2.bf16.msra.mxu0 %v6088_v39  ;;  %v7964_v39 = vpop.f32.mrf.mxu0 }
 0x1ac   :  { %4418 = vmatpush2.bf16.msra.mxu1 %v6091_v40  ;;  %4366 = vmatprep.subr.bf16.mxu0 %v6096_v42  ;;  %v6136_v40 = vld [vmem:[%s8590_s1 + $0xaa8] ss:$16 sps:$4 sm:$0xff]  }
 0x1ad   :  { %4419 = vmatprep.subr.bf16.mxu1 %v6099_v43  ;;  %v6139_v42 = vld [vmem:[%s8590_s1 + $0xca8] ss:$16 sps:$4 sm:$0xff]   ;;  %v7972_v43 = vpop.f32.mrf.mxu1 }
 0x1af   :  { %4367 = vmatpush2.bf16.msra.mxu0 %v6094_v45  ;;  %v6144_v45 = vld [vmem:[%s8590_s1 + $0xa8c] ss:$16 sps:$4 sm:$0xff]  }
 0x1b0   :  { %4420 = vmatpush2.bf16.msra.mxu1 %v6097_v46  ;;  %4368 = vmatprep.subr.bf16.mxu0 %v6102_v49  ;;  %v6147_v46 = vld [vmem:[%s8590_s1 + $0xc8c] ss:$16 sps:$4 sm:$0xff]   ;;  %v7980_v49 = vpop.f32.mrf.mxu0 }
 0x1b1   :  { %4421 = vmatprep.subr.bf16.mxu1 %v6105_v50  ;;  %v6334_v50 = vld [vmem:[%s8591_s0 + $0xa8] ss:$72 sps:$4 sm:$0xff]  }
 0x1b3   :  { %4369 = vmatpush2.bf16.msra.mxu0 %v6100_v51  ;;  %v6335_v51 = vld [vmem:[%s8591_s0 + $0xb0] ss:$72 sps:$4 sm:$0xff]  }
 0x1b4   :  { %4422 = vmatpush2.bf16.msra.mxu1 %v6103_v52  ;;  %4370 = vmatprep.subr.bf16.mxu0 %v6108_v55  ;;  %v6142_v52 = vld [vmem:[%s8590_s1 + $0xa88] ss:$16 sps:$4 sm:$0xff]  }
 0x1b5   :  { %4423 = vmatprep.subr.bf16.mxu1 %v6111_v56  ;;  %v6145_v55 = vld [vmem:[%s8590_s1 + $0xc88] ss:$16 sps:$4 sm:$0xff]   ;;  %v7994_v56 = vpop.f32.mrf.mxu1 }
 0x1b7   :  { %4371 = vmatpush2.bf16.msra.mxu0 %v6106_v57  ;;  %v6150_v57 = vld [vmem:[%s8590_s1 + $0xa6c] ss:$16 sps:$4 sm:$0xff]  }
 0x1b8   :  { %4424 = vmatpush2.bf16.msra.mxu1 %v6109_v58  ;;  %4372 = vmatprep.subr.bf16.mxu0 %v6114_v61  ;;  %v6153_v58 = vld [vmem:[%s8590_s1 + $0xc6c] ss:$16 sps:$4 sm:$0xff]  }
 0x1b9   :  { %4425 = vmatprep.subr.bf16.mxu1 %v6117_v62  ;;  %v6336_v61 = vld [vmem:[%s8591_s0 + $0x2c] ss:$72 sps:$4 sm:$0xff]  }
 0x1ba   :  { %v6337_v62 = vld [vmem:[%s8591_s0 + $0x34] ss:$72 sps:$4 sm:$0xff]  }
 0x1bb   :  { %4373 = vmatpush2.bf16.msra.mxu0 %v6112_v63  ;;  %v8008_v63 = vpop.f32.mrf.mxu0 }
 0x1bc   :  { %4426 = vmatpush2.bf16.msra.mxu1 %v6115_v1  ;;  %4374 = vmatprep.subr.bf16.mxu0 %v6120_v4  ;;  %v6148_v1 = vld [vmem:[%s8590_s1 + $0xa68] ss:$16 sps:$4 sm:$0xff]  }
 0x1bd   :  { %4427 = vmatprep.subr.bf16.mxu1 %v6123_v5  ;;  %v6151_v4 = vld [vmem:[%s8590_s1 + $0xc68] ss:$16 sps:$4 sm:$0xff]   ;;  %v8016_v5 = vpop.f32.mrf.mxu1 }
 0x1bf   :  { %4375 = vmatpush2.bf16.msra.mxu0 %v6118_v8  ;;  %v6156_v8 = vld [vmem:[%s8590_s1 + $0xa4c] ss:$16 sps:$4 sm:$0xff]  }
 0x1c0   :  { %4428 = vmatpush2.bf16.msra.mxu1 %v6121_v9  ;;  %4450 = vmatprep.subr.bf16.mxu0 %v6126_v11  ;;  %v6159_v9 = vld [vmem:[%s8590_s1 + $0xc4c] ss:$16 sps:$4 sm:$0xff]   ;;  %v8024_v11 = vpop.f32.mrf.mxu0 }
 0x1c1   :  { %4503 = vmatprep.subr.bf16.mxu1 %v6129_v13  ;;  %v6154_v13 = vld [vmem:[%s8590_s1 + $0xa48] ss:$16 sps:$4 sm:$0xff]  }
 0x1c2   :  { %4377 = vmatmul.mubr.bf16.vlgmr.msra.gmra.mxu0 %v6330_v23 }
 0x1c3   :  { %4430 = vmatmul.mubr.bf16.vlgmr.msra.gmra.mxu1 %v6331_v24  ;;  %4451 = vmatpush1.bf16.msra.mxu0 %v6124_v15  ;;  %v6157_v15 = vld [vmem:[%s8590_s1 + $0xc48] ss:$16 sps:$4 sm:$0xff]   ;;  %v8042_v24 = vpop.f32.mrf.mxu0 }
 0x1c4   :  { %4504 = vmatpush1.bf16.msra.mxu1 %v6127_v16  ;;  %4452 = vmatprep.subr.bf16.mxu0 %v6132_v19  ;;  %v8032_v16 = vpop.f32.mrf.mxu1  ;;  %v6162_v19 = vld [vmem:[%s8590_s1 + $0xa2c] ss:$16 sps:$4 sm:$0xff]  }
 0x1c5   :  { %4505 = vmatprep.subr.bf16.mxu1 %v6135_v21  ;;  %4386 = vmatprep.mubr.bf16.mxu0 %v6332_v34  ;;  %v6165_v21 = vld [vmem:[%s8590_s1 + $0xc2c] ss:$16 sps:$4 sm:$0xff]  }
 0x1c6   :  { %4439 = vmatprep.mubr.bf16.mxu1 %v6333_v35  ;;  %v8040_v23 = vpop.f32.mrf.mxu1  ;;  %v8058_v35 = vpop.f32.mrf.mxu0 }
 0x1c7   :  { %4453 = vmatpush1.bf16.msra.mxu0 %v6130_v27  ;;  %v6160_v27 = vld [vmem:[%s8590_s1 + $0xa28] ss:$16 sps:$4 sm:$0xff]  }
 0x1c8   :  { %4506 = vmatpush1.bf16.msra.mxu1 %v6133_v28  ;;  %4454 = vmatprep.subr.bf16.mxu0 %v6138_v30  ;;  %v6163_v28 = vld [vmem:[%s8590_s1 + $0xc28] ss:$16 sps:$4 sm:$0xff]   ;;  %v6168_v30 = vld [vmem:[%s8590_s1 + $0xa0c] ss:$16 sps:$4 sm:$0xff]   ;;  %v8056_v34 = vpop.f32.mrf.mxu1 }
 0x1c9   :  { %4507 = vmatprep.subr.bf16.mxu1 %v6141_v33  ;;  %v6171_v33 = vld [vmem:[%s8590_s1 + $0xc0c] ss:$16 sps:$4 sm:$0xff]  }
 0x1ca   :  { %4387 = vmatmul.mubr.bf16.gmra.mxu0 %v6334_v50  ;;  %v6177_v50 = vld [vmem:[%s8590_s1 + $0xdec] ss:$16 sps:$4 sm:$0xff]  }
 0x1cb   :  { %4440 = vmatmul.mubr.bf16.gmra.mxu1 %v6335_v51  ;;  %4455 = vmatpush1.bf16.msra.mxu0 %v6136_v40  ;;  %v628_v40 = vlaneseq  ;;  %v8072_v51 = vpop.f32.mrf.mxu1 }
 0x1cc   :  { %4508 = vmatpush1.bf16.msra.mxu1 %v6139_v42  ;;  %4456 = vmatprep.subr.bf16.mxu0 %v6144_v45  ;;  %v6166_v42 = vld [vmem:[%s8590_s1 + $0xa08] ss:$16 sps:$4 sm:$0xff]  }
 0x1cd   :  { %4509 = vmatprep.subr.bf16.mxu1 %v6147_v46  ;;  %4482 = vmatprep.mubr.bf16.mxu0 %v6336_v61  ;;  %v6169_v45 = vld [vmem:[%s8590_s1 + $0xc08] ss:$16 sps:$4 sm:$0xff]   ;;  %v6174_v46 = vld [vmem:[%s8590_s1 + $0xbec] ss:$16 sps:$4 sm:$0xff]  }
 0x1ce   :  { %4535 = vmatprep.mubr.bf16.mxu1 %v6337_v62  ;;  %v6180_v61 = vld [vmem:[%s8590_s1 + $0xbcc] ss:$16 sps:$4 sm:$0xff]  }
 0x1cf   :  { %4457 = vmatpush1.bf16.msra.mxu0 %v6142_v52  ;;  %v8074_v52 = vpop.f32.mrf.mxu0  ;;  %v6183_v62 = vld [vmem:[%s8590_s1 + $0xdcc] ss:$16 sps:$4 sm:$0xff]  }
 0x1d0   :  { %4510 = vmatpush1.bf16.msra.mxu1 %v6145_v55  ;;  %4458 = vmatprep.subr.bf16.mxu0 %v6150_v57  ;;  %v8076_v55 = vshrl.u32 %v628_v40, 7  ;;  %v6172_v57 = vld [vmem:[%s8590_s1 + $0xbe8] ss:$16 sps:$4 sm:$0xff]  }
 0x1d1   :  { %4511 = vmatprep.subr.bf16.mxu1 %v6153_v58  ;;  %v6175_v58 = vld [vmem:[%s8590_s1 + $0xde8] ss:$16 sps:$4 sm:$0xff]  }
 0x1d2   :  { %8598 = vst [vmem:[#allocation2_spill] sm:$0xff] %v8076_v55  ;;  %v6184_v40 = vld [vmem:[%s8590_s1 + $0xba8] ss:$16 sps:$4 sm:$0xff]  }
 0x1d3   :  { %4459 = vmatpush1.bf16.msra.mxu0 %v6148_v1  ;;  %v8090_v1 = vpop.f32.mrf.mxu1 }
 0x1d4   :  { %4512 = vmatpush1.bf16.msra.mxu1 %v6151_v4  ;;  %4460 = vmatprep.subr.bf16.mxu0 %v6156_v8  ;;  %v8092_v4 = vpop.f32.mrf.mxu0  ;;  %v630_v8 = vsub.s32 0, %v8076_v55 }
 0x1d5   :  { %4513 = vmatprep.subr.bf16.mxu1 %v6159_v9  ;;  %v6178_v9 = vld [vmem:[%s8590_s1 + $0xbc8] ss:$16 sps:$4 sm:$0xff]  }
 0x1d7   :  { %4461 = vmatpush1.bf16.msra.mxu0 %v6154_v13  ;;  %v6181_v13 = vld [vmem:[%s8590_s1 + $0xdc8] ss:$16 sps:$4 sm:$0xff]  }
 0x1d8   :  { %4514 = vmatpush1.bf16.msra.mxu1 %v6157_v15  ;;  %4462 = vmatprep.subr.bf16.mxu0 %v6162_v19  ;;  %v8104_v15 = vld [vmem:[%s8592_s2] sm:$0xf]  ;;  %v8106_v19 = vpop.f32.mrf.mxu1 }
 0x1d9   :  { %4515 = vmatprep.subr.bf16.mxu1 %v6165_v21  ;;  %8599 = vst [vmem:[#allocation3_spill] sm:$0xff] %v8104_v15  ;;  %v8108_v21 = vpop.f32.mrf.mxu0 }
 0x1db   :  { %4463 = vmatpush1.bf16.msra.mxu0 %v6160_v27  ;;  %v6186_v27 = vld [vmem:[%s8590_s1 + $0xbac] ss:$16 sps:$4 sm:$0xff]  }
 0x1dc   :  { %4516 = vmatpush1.bf16.msra.mxu1 %v6163_v28  ;;  %4464 = vmatprep.subr.bf16.mxu0 %v6168_v30  ;;  %v6189_v28 = vld [vmem:[%s8590_s1 + $0xdac] ss:$16 sps:$4 sm:$0xff]   ;;  %v634_v30 = vsub.s32 1, %v8076_v55 }
 0x1dd   :  { %4517 = vmatprep.subr.bf16.mxu1 %v6171_v33  ;;  %v631_v33 = vrot.slane %v8104_v15, %v630_v8  ;;  %v6193_v8 = vld [vmem:[%s8590_s1 + $0xd88] ss:$16 sps:$4 sm:$0xff]  }
 0x1df   :  { %4465 = vmatpush1.bf16.msra.mxu0 %v6166_v42  ;;  %v6187_v42 = vld [vmem:[%s8590_s1 + $0xda8] ss:$16 sps:$4 sm:$0xff]  }
 0x1e0   :  { %4518 = vmatpush1.bf16.msra.mxu1 %v6169_v45  ;;  %4466 = vmatprep.subr.bf16.mxu0 %v6174_v46  ;;  %v8124_v45 = vpop.f32.mrf.mxu1  ;;  %v8126_v46 = vpop.f32.mrf.mxu0 }
 0x1e1   :  { %4519 = vmatprep.subr.bf16.mxu1 %v6177_v50  ;;  %v6192_v50 = vld [vmem:[%s8590_s1 + $0xb8c] ss:$16 sps:$4 sm:$0xff]  }
 0x1e3   :  { %4467 = vmatpush2.bf16.msra.mxu0 %v6172_v57  ;;  %v6195_v57 = vld [vmem:[%s8590_s1 + $0xd8c] ss:$16 sps:$4 sm:$0xff]  }
 0x1e4   :  { %4520 = vmatpush2.bf16.msra.mxu1 %v6175_v58  ;;  %4468 = vmatprep.subr.bf16.mxu0 %v6180_v61  ;;  %v635_v58 = vrot.slane %v8104_v15, %v634_v30  ;;  %v3743_v61 = vadd.f32 %v7716_v0, %v631_v33  ;;  %v6198_v0 = vld [vmem:[%s8590_s1 + $0xb6c] ss:$16 sps:$4 sm:$0xff]  }
 0x1e5   :  { %4521 = vmatprep.subr.bf16.mxu1 %v6183_v62  ;;  %v6190_v62 = vld [vmem:[%s8590_s1 + $0xb88] ss:$16 sps:$4 sm:$0xff]  }
 0x1e6   :  { %v3796_v30 = vadd.f32 %v7786_v25, %v3743_v61  ;;  %v3749_v61 = vadd.f32 %v7764_v17, %v635_v58  ;;  %v6205_v17 = vld [vmem:[%s8590_s1 + $0xd48] ss:$16 sps:$4 sm:$0xff]  }
 0x1e7   :  { %4469 = vmatpush2.bf16.msra.mxu0 %v6178_v9  ;;  %v8142_v9 = vpop.f32.mrf.mxu1 }
 0x1e8   :  { %4522 = vmatpush2.bf16.msra.mxu1 %v6181_v13  ;;  %4470 = vmatprep.subr.bf16.mxu0 %v6186_v27  ;;  %v8144_v13 = vpop.f32.mrf.mxu0  ;;  %v6201_v27 = vld [vmem:[%s8590_s1 + $0xd6c] ss:$16 sps:$4 sm:$0xff]  }
 0x1e9   :  { %4523 = vmatprep.subr.bf16.mxu1 %v6189_v28  ;;  %v3745_v28 = vadd.f32 %v7736_v7, %v635_v58  ;;  %v6204_v7 = vld [vmem:[%s8590_s1 + $0xb4c] ss:$16 sps:$4 sm:$0xff]  }
 0x1ea   :  { %v8163_v15 = vpop.f32.mrf.mxu0 }
 0x1eb   :  { %4471 = vmatpush2.bf16.msra.mxu0 %v6184_v40  ;;  %v3747_v40 = vadd.f32 %v7750_v12, %v631_v33  ;;  %v6207_v12 = vld [vmem:[%s8590_s1 + $0xd4c] ss:$16 sps:$4 sm:$0xff]   ;;  %v3798_v25 = vadd.f32 %v7802_v31, %v3745_v28  ;;  %v3755_v31 = vadd.f32 %v7788_v26, %v635_v58 }
 0x1ec   :  { %4524 = vmatpush2.bf16.msra.mxu1 %v6187_v42  ;;  %4472 = vmatprep.subr.bf16.mxu0 %v6192_v50  ;;  %v6196_v42 = vld [vmem:[%s8590_s1 + $0xb68] ss:$16 sps:$4 sm:$0xff]  }
 0x1ed   :  { %4525 = vmatprep.subr.bf16.mxu1 %v6195_v57  ;;  %v6199_v50 = vld [vmem:[%s8590_s1 + $0xd68] ss:$16 sps:$4 sm:$0xff]   ;;  %v8161_v57 = vpop.f32.mrf.mxu1 }
 0x1ee   :  { %8600 = vst [vmem:[#allocation4_spill] sm:$0xff] %v8161_v57  ;;  %v6202_v57 = vld [vmem:[%s8590_s1 + $0xb48] ss:$16 sps:$4 sm:$0xff]  }
 0x1ef   :  { %4473 = vmatpush2.bf16.msra.mxu0 %v6190_v62  ;;  %v3849_v62 = vadd.f32 %v7828_v41, %v3796_v30  ;;  %v8175_v55 = vpop.f32.mrf.mxu1  ;;  %v8186_v41 = vpop.f32.mrf.mxu0 }
 0x1f0   :  { %4526 = vmatpush2.bf16.msra.mxu1 %v6193_v8  ;;  %4474 = vmatprep.subr.bf16.mxu0 %v6198_v0  ;;  %v3753_v8 = vadd.f32 %v7772_v20, %v631_v33  ;;  %v3800_v0 = vadd.f32 %v7818_v37, %v3747_v40  ;;  %v6210_v20 = vld [vmem:[%s8590_s1 + $0xb2c] ss:$16 sps:$4 sm:$0xff]   ;;  %v3757_v40 = vadd.f32 %v7804_v32, %v631_v33 }
 0x1f1   :  { %4527 = vmatprep.subr.bf16.mxu1 %v6201_v27  ;;  %v3851_v27 = vadd.f32 %v7846_v48, %v3798_v25  ;;  %v6213_v37 = vld [vmem:[%s8590_s1 + $0xd2c] ss:$16 sps:$4 sm:$0xff]   ;;  %v3802_v48 = vadd.f32 %v7836_v44, %v3749_v61  ;;  %v3902_v28 = vadd.f32 %v7902_v6, %v3849_v62  ;;  %v6208_v44 = vld [vmem:[%s8590_s1 + $0xb28] ss:$16 sps:$4 sm:$0xff]   ;;  %v3808_v32 = vadd.f32 %v7860_v53, %v3755_v31 }
 0x1f2   :  { %v3853_v30 = vadd.f32 %v7862_v54, %v3800_v0  ;;  %v3806_v26 = vadd.f32 %v7844_v47, %v3753_v8  ;;  %v6211_v47 = vld [vmem:[%s8590_s1 + $0xd28] ss:$16 sps:$4 sm:$0xff]   ;;  %v3759_v54 = vadd.f32 %v7820_v38, %v635_v58  ;;  %v3810_v38 = vadd.f32 %v7876_v59, %v3757_v40 }
 0x1f3   :  { %4475 = vmatpush2.bf16.msra.mxu0 %v6196_v42  ;;  %v8199_v42 = vpop.f32.mrf.mxu1  ;;  %v6217_v59 = vld [vmem:[%s8590_s1 + $0xd08] ss:$16 sps:$4 sm:$0xff]  }
 0x1f4   :  { %4528 = vmatpush2.bf16.msra.mxu1 %v6199_v50  ;;  %4476 = vmatprep.subr.bf16.mxu0 %v6204_v7  ;;  %v3904_v50 = vadd.f32 %v7918_v14, %v3851_v27  ;;  %v3855_v7 = vadd.f32 %v7878_v60, %v3802_v48  ;;  %v3859_v6 = vadd.f32 %v7894_v3, %v3806_v26  ;;  %v8213_v14 = vpop.f32.mrf.mxu0  ;;  %v6216_v60 = vld [vmem:[%s8590_s1 + $0xb0c] ss:$16 sps:$4 sm:$0xff]   ;;  %v6338_v40 = vld [vmem:[%s8591_s0 + $0x28] ss:$72 sps:$4 sm:$0xff]  }
 0x1f5   :  { %4529 = vmatprep.subr.bf16.mxu1 %v6207_v12  ;;  %v3955_v12 = vadd.f32 %v7964_v39, %v3902_v28  ;;  %v6219_v39 = vld [vmem:[%s8590_s1 + $0xd0c] ss:$16 sps:$4 sm:$0xff]   ;;  %v3906_v33 = vadd.f32 %v7934_v22, %v3853_v30  ;;  %v3861_v3 = vadd.f32 %v7910_v10, %v3808_v32  ;;  %v8225_v58 = vpop.f32.mrf.mxu1  ;;  %v6214_v22 = vld [vmem:[%s8590_s1 + $0xb08] ss:$16 sps:$4 sm:$0xff]   ;;  %v3812_v10 = vadd.f32 %v7892_v2, %v3759_v54 }
 0x1f6   :  { %v3957_v53 = vadd.f32 %v7980_v49, %v3904_v50  ;;  %v3912_v49 = vadd.f32 %v7972_v43, %v3859_v6  ;;  %v8239_v62 = vpop.f32.mrf.mxu0 }
 0x1f7   :  { %4477 = vmatpush2.bf16.msra.mxu0 %v6202_v57  ;;  %v3908_v57 = vadd.f32 %v7962_v36, %v3855_v7  ;;  %v4008_v25 = vadd.f32 %v8040_v23, %v3955_v12  ;;  %v3959_v61 = vadd.f32 %v8008_v63, %v3906_v33  ;;  %v3863_v36 = vadd.f32 %v7926_v18, %v3810_v38  ;;  %v6222_v63 = vld [vmem:[%s8590_s1 + $0xeec] ss:$16 sps:$4 sm:$0xff]   ;;  %v6232_v33 = vld [vmem:[%s8590_s1 + $0xea8] ss:$16 sps:$4 sm:$0xff]  }
 0x1f8   :  { %4530 = vmatpush2.bf16.msra.mxu1 %v6205_v17  ;;  %4478 = vmatprep.subr.bf16.mxu0 %v6210_v20  ;;  %v6225_v23 = vld [vmem:[%s8590_s1 + $0x10ec] ss:$16 sps:$4 sm:$0xff]   ;;  %v4010_v8 = vadd.f32 %v8056_v34, %v3957_v53  ;;  %v3914_v18 = vadd.f32 %v7994_v56, %v3861_v3  ;;  %v3865_v0 = vadd.f32 %v7948_v29, %v3812_v10  ;;  %v4119_v17 = vpop.f32.mrf.mxu1  ;;  %v6220_v34 = vld [vmem:[%s8590_s1 + $0xee8] ss:$16 sps:$4 sm:$0xff]  }
 0x1f9   :  { %4531 = vmatprep.subr.bf16.mxu1 %v6213_v37  ;;  %v3961_v2 = vadd.f32 %v8024_v11, %v3908_v57  ;;  %v4061_v43 = vadd.f32 %v8108_v21, %v4008_v25  ;;  %v3965_v27 = vadd.f32 %v8042_v24, %v3912_v49  ;;  %v4012_v31 = vadd.f32 %v8072_v51, %v3959_v61  ;;  %v6223_v11 = vld [vmem:[%s8590_s1 + $0x10e8] ss:$16 sps:$4 sm:$0xff]   ;;  %v8263_v21 = vpop.f32.mrf.mxu0  ;;  %v6228_v51 = vld [vmem:[%s8590_s1 + $0xecc] ss:$16 sps:$4 sm:$0xff]   ;;  %v8601_v57 = vld [vmem:[#allocation4_spill] sm:$0xff] }
 0x1fa   :  { %v4063_v20 = vadd.f32 %v8126_v46, %v4010_v8  ;;  %v3916_v56 = vadd.f32 %v8016_v5, %v3863_v36  ;;  %v3967_v29 = vadd.f32 %v8058_v35, %v3914_v18  ;;  %v4123_v24 = vpop.f32.mrf.mxu1  ;;  %v6231_v46 = vld [vmem:[%s8590_s1 + $0x10cc] ss:$16 sps:$4 sm:$0xff]   ;;  %v3918_v35 = vadd.f32 %v8032_v16, %v3865_v0  ;;  %v6343_v18 = vld [vmem:[%s8591_s0 + $0xc0] ss:$72 sps:$4 sm:$0xff]  }
 0x1fb   :  { %4479 = vmatpush2.bf16.msra.mxu0 %v6208_v44  ;;  %v4014_v37 = vadd.f32 %v8090_v1, %v3961_v2  ;;  %v4114_v48 = vadd.f32 %v8175_v55, %v4061_v43  ;;  %v4065_v5 = vadd.f32 %v8144_v13, %v4012_v31  ;;  %v4018_v28 = vadd.f32 %v8106_v19, %v3965_v27  ;;  %v6339_v1 = vld [vmem:[%s8591_s0 + $0x30] ss:$72 sps:$4 sm:$0xff]   ;;  %v6243_v10 = vld [vmem:[%s8590_s1 + $0x108c] ss:$16 sps:$4 sm:$0xff]  }
 0x1fc   :  { %4532 = vmatpush2.bf16.msra.mxu1 %v6211_v47  ;;  %4480 = vmatprep.subr.bf16.mxu0 %v6216_v60  ;;  %v3969_v30 = vadd.f32 %v8074_v52, %v3916_v56  ;;  %v4116_v55 = vadd.f32 %v8199_v42, %v4063_v20  ;;  %v6226_v52 = vld [vmem:[%s8590_s1 + $0xec8] ss:$16 sps:$4 sm:$0xff]   ;;  %v4020_v50 = vadd.f32 %v8124_v45, %v3967_v29  ;;  %v4125_v42 = vpop.f32.mrf.mxu1  ;;  %v6237_v47 = vld [vmem:[%s8590_s1 + $0x10ac] ss:$16 sps:$4 sm:$0xff]  }
 0x1fd   :  { %4533 = vmatprep.subr.bf16.mxu1 %v6219_v39  ;;  %v4067_v13 = vadd.f32 %v8163_v15, %v4014_v37  ;;  %v6229_v19 = vld [vmem:[%s8590_s1 + $0x10c8] ss:$16 sps:$4 sm:$0xff]   ;;  %v3971_v7 = vadd.f32 %v8092_v4, %v3918_v35  ;;  %v4071_v12 = vadd.f32 %v8186_v41, %v4018_v28  ;;  %v6234_v15 = vld [vmem:[%s8590_s1 + $0xeac] ss:$16 sps:$4 sm:$0xff]   ;;  %v4118_v32 = vadd.f32 %v8225_v58, %v4065_v5 }
 0x1fe   :  { %v6340_v4 = vld [vmem:[%s8591_s0 + $0xbc] ss:$72 sps:$4 sm:$0xff]   ;;  %v4022_v6 = vadd.f32 %v8142_v9, %v3969_v30  ;;  %v4073_v60 = vadd.f32 %v8213_v14, %v4020_v50  ;;  %v6235_v58 = vld [vmem:[%s8590_s1 + $0x10a8] ss:$16 sps:$4 sm:$0xff]   ;;  %v4127_v61 = vpop.f32.mrf.mxu1 }
 0x1ff   :  { %4481 = vmatpush2.bf16.msra.mxu0 %v6214_v22  ;;  %v6341_v41 = vld [vmem:[%s8591_s0 + $0xc4] ss:$72 sps:$4 sm:$0xff]   ;;  %v4120_v53 = vadd.f32 %v4119_v17, %v4067_v13  ;;  %v4024_v9 = vadd.f32 %v8601_v57, %v3971_v7  ;;  %v4124_v25 = vadd.f32 %v4123_v24, %v4071_v12  ;;  %v6342_v43 = vld [vmem:[%s8591_s0 + $0xb8] ss:$72 sps:$4 sm:$0xff]  }
 0x200   :  { %4534 = vmatpush2.bf16.msra.mxu1 %v6217_v59  ;;  %4556 = vmatprep.subr.bf16.mxu0 %v6222_v63  ;;  %v4075_v14 = vadd.f32 %v8239_v62, %v4022_v6  ;;  %v6240_v59 = vld [vmem:[%s8590_s1 + $0xe8c] ss:$16 sps:$4 sm:$0xff]   ;;  %v4126_v8 = vadd.f32 %v4125_v42, %v4073_v60  ;;  %v6238_v0 = vld [vmem:[%s8590_s1 + $0xe88] ss:$16 sps:$4 sm:$0xff]  }
 0x201   :  { %4609 = vmatprep.subr.bf16.mxu1 %v6225_v23  ;;  %v4077_v27 = vadd.f32 %v8263_v21, %v4024_v9  ;;  %v6241_v20 = vld [vmem:[%s8590_s1 + $0x1088] ss:$16 sps:$4 sm:$0xff]   ;;  %v6246_v29 = vld [vmem:[%s8590_s1 + $0xe6c] ss:$16 sps:$4 sm:$0xff]  }
 0x202   :  { %v4166_v26 = vpop.f32.mrf.mxu0  ;;  %4483 = vmatmul.mubr.bf16.vlgmr.msra.gmra.mxu0 %v6338_v40  ;;  %v6249_v24 = vld [vmem:[%s8590_s1 + $0x106c] ss:$16 sps:$4 sm:$0xff]   ;;  %v6244_v30 = vld [vmem:[%s8590_s1 + $0xe68] ss:$16 sps:$4 sm:$0xff]  }
 0x203   :  { %4536 = vmatmul.mubr.bf16.vlgmr.msra.gmra.mxu1 %v6339_v1  ;;  %v4167_v16 = vadd.f32 %v4166_v26, %v4114_v48  ;;  %4557 = vmatpush1.bf16.msra.mxu0 %v6220_v34  ;;  %v4128_v34 = vadd.f32 %v4127_v61, %v4075_v14  ;;  %v6344_v48 = vld [vmem:[%s8591_s0 + $0x3c] ss:$72 sps:$4 sm:$0xff]   ;;  %v6256_v6 = vld [vmem:[%s8590_s1 + $0xe28] ss:$16 sps:$4 sm:$0xff]  }
 0x204   :  { %4610 = vmatpush1.bf16.msra.mxu1 %v6223_v11  ;;  %v4168_v44 = vpop.f32.mrf.mxu0  ;;  %4558 = vmatprep.subr.bf16.mxu0 %v6228_v51  ;;  %v4129_v11 = vpop.f32.mrf.mxu1  ;;  %v6345_v5 = vld [vmem:[%s8591_s0 + $0x44] ss:$72 sps:$4 sm:$0xff]   ;;  %v6259_v60 = vld [vmem:[%s8590_s1 + $0x1028] ss:$16 sps:$4 sm:$0xff]  }
 0x205   :  { %4611 = vmatprep.subr.bf16.mxu1 %v6231_v46  ;;  %v4678_v54 = vmul.f32 0.2, %v4167_v16  ;;  %v4169_v45 = vadd.f32 %v4168_v44, %v4116_v55  ;;  %4492 = vmatprep.mubr.bf16.mxu0 %v6340_v4  ;;  %vm4662_vm0 = vcmp.ge.f32.partialorder %v4167_v16, 0.0  ;;  %v4130_v26 = vadd.f32 %v4129_v11, %v4077_v27  ;;  %v6247_v55 = vld [vmem:[%s8590_s1 + $0x1068] ss:$16 sps:$4 sm:$0xff]  }
 0x206   :  { %4545 = vmatprep.mubr.bf16.mxu1 %v6341_v41  ;;  %v4170_v39 = vpop.f32.mrf.mxu0  ;;  %v6250_v44 = vld [vmem:[%s8590_s1 + $0xe48] ss:$16 sps:$4 sm:$0xff]   ;;  %v6279_v14 = vld [vmem:[%s8590_s1 + $0x11cc] ss:$16 sps:$4 sm:$0xff]  }
 0x207   :  { %vm4663_vm1 = vcmp.ge.f32.partialorder %v4169_v45, 0.0  ;;  %v4679_v38 = vmul.f32 0.2, %v4169_v45  ;;  %v4171_v3 = vadd.f32 %v4170_v39, %v4118_v32  ;;  %4559 = vmatpush1.bf16.msra.mxu0 %v6226_v52  ;;  %v4694_v49 = vsel %vm4662_vm0, %v4167_v16, %v4678_v54  ;;  %v6252_v16 = vld [vmem:[%s8590_s1 + $0xe4c] ss:$16 sps:$4 sm:$0xff]  }
 0x208   :  { %4612 = vmatpush1.bf16.msra.mxu1 %v6229_v19  ;;  %v4172_v22 = vpop.f32.mrf.mxu0  ;;  %4560 = vmatprep.subr.bf16.mxu0 %v6234_v15  ;;  %v6255_v52 = vld [vmem:[%s8590_s1 + $0x104c] ss:$16 sps:$4 sm:$0xff]   ;;  %v6268_v57 = vld [vmem:[%s8590_s1 + $0xfe8] ss:$16 sps:$4 sm:$0xff]  }
 0x209   :  { %4613 = vmatprep.subr.bf16.mxu1 %v6237_v47  ;;  %v4695_v36 = vsel %vm4663_vm1, %v4169_v45, %v4679_v38  ;;  %v4682_v63 = vmul.f32 0.2, %v4171_v3  ;;  %v4173_v23 = vadd.f32 %v4172_v22, %v4120_v53  ;;  %vm4666_vm2 = vcmp.ge.f32.partialorder %v4171_v3, 0.0  ;;  %v6253_v47 = vld [vmem:[%s8590_s1 + $0x1048] ss:$16 sps:$4 sm:$0xff]  }
 0x20a   :  { %v5390_v62 = vpack.c.bf16 %v4695_v36, %v4694_v49  ;;  %v4176_v2 = vpop.f32.mrf.mxu0  ;;  %4493 = vmatmul.mubr.bf16.gmra.mxu0 %v6342_v43  ;;  %v6258_v32 = vld [vmem:[%s8590_s1 + $0xe2c] ss:$16 sps:$4 sm:$0xff]   ;;  %v6262_v53 = vld [vmem:[%s8590_s1 + $0xe08] ss:$16 sps:$4 sm:$0xff]  }
 0x20b   :  { %4546 = vmatmul.mubr.bf16.gmra.mxu1 %v6343_v18  ;;  %vm4667_vm3 = vcmp.ge.f32.partialorder %v4173_v23, 0.0  ;;  %v4683_v17 = vmul.f32 0.2, %v4173_v23  ;;  %v4177_v31 = vadd.f32 %v4176_v2, %v4124_v25  ;;  %4561 = vmatpush1.bf16.msra.mxu0 %v6232_v33  ;;  %v4698_v21 = vsel %vm4666_vm2, %v4171_v3, %v4682_v63  ;;  %v6261_v54 = vld [vmem:[%s8590_s1 + $0x102c] ss:$16 sps:$4 sm:$0xff]  }
 0x20c   :  { %4614 = vmatpush1.bf16.msra.mxu1 %v6235_v58  ;;  %4758 = vst [vmem:[%s8593_s3] sm:$0xff] %v5390_v62  ;;  %v4178_v56 = vpop.f32.mrf.mxu0  ;;  %4562 = vmatprep.subr.bf16.mxu0 %v6240_v59  ;;  %v6264_v39 = vld [vmem:[%s8590_s1 + $0xe0c] ss:$16 sps:$4 sm:$0xff]   ;;  %v6265_v38 = vld [vmem:[%s8590_s1 + $0x1008] ss:$16 sps:$4 sm:$0xff]  }
 0x20d   :  { %4615 = vmatprep.subr.bf16.mxu1 %v6243_v10  ;;  %v4699_v51 = vsel %vm4667_vm3, %v4173_v23, %v4683_v17  ;;  %v4686_v46 = vmul.f32 0.2, %v4177_v31  ;;  %v4179_v37 = vadd.f32 %v4178_v56, %v4126_v8  ;;  %4588 = vmatprep.mubr.bf16.mxu0 %v6344_v48  ;;  %vm4670_vm4 = vcmp.ge.f32.partialorder %v4177_v31, 0.0  ;;  %v6267_v33 = vld [vmem:[%s8590_s1 + $0x100c] ss:$16 sps:$4 sm:$0xff]  }
 0x20e   :  { %4641 = vmatprep.mubr.bf16.mxu1 %v6345_v5  ;;  %v5392_v35 = vpack.c.bf16 %v4699_v51, %v4698_v21  ;;  %v4180_v28 = vpop.f32.mrf.mxu0  ;;  %v6270_v3 = vld [vmem:[%s8590_s1 + $0xfec] ss:$16 sps:$4 sm:$0xff]   ;;  %v6271_v9 = vld [vmem:[%s8590_s1 + $0x11e8] ss:$16 sps:$4 sm:$0xff]  }
 0x20f   :  { %vm4671_vm5 = vcmp.ge.f32.partialorder %v4179_v37, 0.0  ;;  %v4687_v40 = vmul.f32 0.2, %v4179_v37  ;;  %v4181_v1 = vadd.f32 %v4180_v28, %v4128_v34  ;;  %4563 = vmatpush1.bf16.msra.mxu0 %v6238_v0  ;;  %v4702_v19 = vsel %vm4670_vm4, %v4177_v31, %v4686_v46  ;;  %v6273_v58 = vld [vmem:[%s8590_s1 + $0x11ec] ss:$16 sps:$4 sm:$0xff]  }
 0x210   :  { %4616 = vmatpush1.bf16.msra.mxu1 %v6241_v20  ;;  %4760 = vst [vmem:[%s8593_s3 + $0x10] sm:$0xff] %v5392_v35  ;;  %v4182_v13 = vpop.f32.mrf.mxu0  ;;  %4564 = vmatprep.subr.bf16.mxu0 %v6246_v29  ;;  %v6276_v25 = vld [vmem:[%s8590_s1 + $0xfcc] ss:$16 sps:$4 sm:$0xff]   ;;  %v6274_v61 = vld [vmem:[%s8590_s1 + $0xfc8] ss:$16 sps:$4 sm:$0xff]  }
 0x211   :  { %4617 = vmatprep.subr.bf16.mxu1 %v6249_v24  ;;  %v4703_v50 = vsel %vm4671_vm5, %v4179_v37, %v4687_v40  ;;  %v4690_v7 = vmul.f32 0.2, %v4181_v1  ;;  %v4183_v12 = vadd.f32 %v4182_v13, %v4130_v26  ;;  %vm4674_vm6 = vcmp.ge.f32.partialorder %v4181_v1, 0.0  ;;  %v6277_v22 = vld [vmem:[%s8590_s1 + $0x11c8] ss:$16 sps:$4 sm:$0xff]   ;;  %v4219_v26 = vpop.f32.mrf.mxu1 }
 0x212   :  { %v5394_v42 = vpack.c.bf16 %v4703_v50, %v4702_v19  ;;  %v6282_v59 = vld [vmem:[%s8590_s1 + $0xfac] ss:$16 sps:$4 sm:$0xff]   ;;  %v6280_v49 = vld [vmem:[%s8590_s1 + $0xfa8] ss:$16 sps:$4 sm:$0xff]  }
 0x213   :  { %vm4675_vm7 = vcmp.ge.f32.partialorder %v4183_v12, 0.0  ;;  %v4691_v15 = vmul.f32 0.2, %v4183_v12  ;;  %4565 = vmatpush1.bf16.msra.mxu0 %v6244_v30  ;;  %v4706_v45 = vsel %vm4674_vm6, %v4181_v1, %v4690_v7  ;;  %v6285_v10 = vld [vmem:[%s8590_s1 + $0x11ac] ss:$16 sps:$4 sm:$0xff]   ;;  %v4221_v40 = vpop.f32.mrf.mxu1 }
 0x214   :  { %4618 = vmatpush1.bf16.msra.mxu1 %v6247_v55  ;;  %4762 = vst [vmem:[%s8593_s3 + $0x20] sm:$0xff] %v5394_v42  ;;  %4566 = vmatprep.subr.bf16.mxu0 %v6252_v16  ;;  %v6283_v36 = vld [vmem:[%s8590_s1 + $0x11a8] ss:$16 sps:$4 sm:$0xff]   ;;  %v6288_v63 = vld [vmem:[%s8590_s1 + $0xf8c] ss:$16 sps:$4 sm:$0xff]  }
 0x215   :  { %4619 = vmatprep.subr.bf16.mxu1 %v6255_v52  ;;  %v4707_v4 = vsel %vm4675_vm7, %v4183_v12, %v4691_v15  ;;  %v6291_v23 = vld [vmem:[%s8590_s1 + $0x118c] ss:$16 sps:$4 sm:$0xff]   ;;  %v6286_v8 = vld [vmem:[%s8590_s1 + $0xf88] ss:$16 sps:$4 sm:$0xff]   ;;  %v4223_v1 = vpop.f32.mrf.mxu1 }
 0x216   :  { %v5396_v41 = vpack.c.bf16 %v4707_v4, %v4706_v45  ;;  %v6289_v62 = vld [vmem:[%s8590_s1 + $0x1188] ss:$16 sps:$4 sm:$0xff]   ;;  %v6294_v2 = vld [vmem:[%s8590_s1 + $0xf6c] ss:$16 sps:$4 sm:$0xff]  }
 0x217   :  { %4567 = vmatpush1.bf16.msra.mxu0 %v6250_v44  ;;  %v6297_v43 = vld [vmem:[%s8590_s1 + $0x116c] ss:$16 sps:$4 sm:$0xff]   ;;  %v6292_v18 = vld [vmem:[%s8590_s1 + $0xf68] ss:$16 sps:$4 sm:$0xff]   ;;  %v4225_v55 = vpop.f32.mrf.mxu1 }
 0x218   :  { %4620 = vmatpush1.bf16.msra.mxu1 %v6253_v47  ;;  %4764 = vst [vmem:[%s8593_s3 + $0x30] sm:$0xff] %v5396_v41  ;;  %4568 = vmatprep.subr.bf16.mxu0 %v6258_v32  ;;  %v6295_v0 = vld [vmem:[%s8590_s1 + $0x1168] ss:$16 sps:$4 sm:$0xff]   ;;  %v6300_v27 = vld [vmem:[%s8590_s1 + $0xf4c] ss:$16 sps:$4 sm:$0xff]  }
 0x219   :  { %4621 = vmatprep.subr.bf16.mxu1 %v6261_v54  ;;  %v6303_v17 = vld [vmem:[%s8590_s1 + $0x114c] ss:$16 sps:$4 sm:$0xff]   ;;  %v6298_v31 = vld [vmem:[%s8590_s1 + $0xf48] ss:$16 sps:$4 sm:$0xff]   ;;  %v4229_v13 = vpop.f32.mrf.mxu1 }
 0x21a   :  { %v6301_v20 = vld [vmem:[%s8590_s1 + $0x1148] ss:$16 sps:$4 sm:$0xff]   ;;  %v6306_v34 = vld [vmem:[%s8590_s1 + $0xf2c] ss:$16 sps:$4 sm:$0xff]  }
 0x21b   :  { %4569 = vmatpush1.bf16.msra.mxu0 %v6256_v6  ;;  %v6309_v11 = vld [vmem:[%s8590_s1 + $0x112c] ss:$16 sps:$4 sm:$0xff]   ;;  %v6304_v56 = vld [vmem:[%s8590_s1 + $0xf28] ss:$16 sps:$4 sm:$0xff]   ;;  %v8520_v16 = vpop.f32.mrf.mxu1 }
 0x21c   :  { %4622 = vmatpush1.bf16.msra.mxu1 %v6259_v60  ;;  %4570 = vmatprep.subr.bf16.mxu0 %v6264_v39  ;;  %v6307_v29 = vld [vmem:[%s8590_s1 + $0x1128] ss:$16 sps:$4 sm:$0xff]   ;;  %v6312_v24 = vld [vmem:[%s8590_s1 + $0xf0c] ss:$16 sps:$4 sm:$0xff]  }
 0x21d   :  { %4623 = vmatprep.subr.bf16.mxu1 %v6267_v33  ;;  %v6315_v21 = vld [vmem:[%s8590_s1 + $0x110c] ss:$16 sps:$4 sm:$0xff]   ;;  %v6310_v51 = vld [vmem:[%s8590_s1 + $0xf08] ss:$16 sps:$4 sm:$0xff]   ;;  %v8522_v52 = vpop.f32.mrf.mxu1 }
 0x21e   :  { %v6313_v46 = vld [vmem:[%s8590_s1 + $0x1108] ss:$16 sps:$4 sm:$0xff]   ;;  %v6348_v5 = vld [vmem:[%s8591_s0 + $0xcc] ss:$72 sps:$4 sm:$0xff]  }
 0x21f   :  { %4571 = vmatpush1.bf16.msra.mxu0 %v6262_v53  ;;  %v6346_v37 = vld [vmem:[%s8591_s0 + $0x38] ss:$72 sps:$4 sm:$0xff]   ;;  %v6349_v35 = vld [vmem:[%s8591_s0 + $0xd4] ss:$72 sps:$4 sm:$0xff]   ;;  %v6350_v28 = vld [vmem:[%s8591_s0 + $0xc8] ss:$72 sps:$4 sm:$0xff]   ;;  %v8524_v50 = vpop.f32.mrf.mxu1 }
 0x220   :  { %4624 = vmatpush1.bf16.msra.mxu1 %v6265_v38  ;;  %4572 = vmatprep.subr.bf16.mxu0 %v6270_v3  ;;  %v6347_v48 = vld [vmem:[%s8591_s0 + $0x40] ss:$72 sps:$4 sm:$0xff]   ;;  %v6351_v30 = vld [vmem:[%s8591_s0 + $0xd0] ss:$72 sps:$4 sm:$0xff]  }
 0x221   :  { %4625 = vmatprep.subr.bf16.mxu1 %v6273_v58 }
 0x223   :  { %4573 = vmatpush2.bf16.msra.mxu0 %v6268_v57 }
 0x224   :  { %4626 = vmatpush2.bf16.msra.mxu1 %v6271_v9  ;;  %4574 = vmatprep.subr.bf16.mxu0 %v6276_v25 }
 0x225   :  { %4627 = vmatprep.subr.bf16.mxu1 %v6279_v14 }
 0x227   :  { %4575 = vmatpush2.bf16.msra.mxu0 %v6274_v61 }
 0x228   :  { %4628 = vmatpush2.bf16.msra.mxu1 %v6277_v22  ;;  %4576 = vmatprep.subr.bf16.mxu0 %v6282_v59 }
 0x229   :  { %4629 = vmatprep.subr.bf16.mxu1 %v6285_v10 }
 0x22b   :  { %4577 = vmatpush2.bf16.msra.mxu0 %v6280_v49 }
 0x22c   :  { %4630 = vmatpush2.bf16.msra.mxu1 %v6283_v36  ;;  %4578 = vmatprep.subr.bf16.mxu0 %v6288_v63 }
 0x22d   :  { %4631 = vmatprep.subr.bf16.mxu1 %v6291_v23 }
 0x22f   :  { %4579 = vmatpush2.bf16.msra.mxu0 %v6286_v8 }
 0x230   :  { %4632 = vmatpush2.bf16.msra.mxu1 %v6289_v62  ;;  %4580 = vmatprep.subr.bf16.mxu0 %v6294_v2  ;;  %v8604_v2 = vld [vmem:[#allocation2_spill] sm:$0xff] }
 0x231   :  { %4633 = vmatprep.subr.bf16.mxu1 %v6297_v43  ;;  %v638_v43 = vsub.s32 2, %v8604_v2 }
 0x233   :  { %4581 = vmatpush2.bf16.msra.mxu0 %v6292_v18 }
 0x234   :  { %4634 = vmatpush2.bf16.msra.mxu1 %v6295_v0  ;;  %4582 = vmatprep.subr.bf16.mxu0 %v6300_v27  ;;  %v642_v0 = vsub.s32 3, %v8604_v2 }
 0x235   :  { %4635 = vmatprep.subr.bf16.mxu1 %v6303_v17  ;;  %v8605_v17 = vld [vmem:[#allocation3_spill] sm:$0xff] }
 0x237   :  { %4583 = vmatpush2.bf16.msra.mxu0 %v6298_v31  ;;  %v639_v31 = vrot.slane %v8605_v17, %v638_v43 }
 0x238   :  { %4636 = vmatpush2.bf16.msra.mxu1 %v6301_v20  ;;  %4584 = vmatprep.subr.bf16.mxu0 %v6306_v34  ;;  %v643_v34 = vrot.slane %v8605_v17, %v642_v0 }
 0x239   :  { %4637 = vmatprep.subr.bf16.mxu1 %v6309_v11  ;;  %v4230_v2 = vadd.f32 %v4229_v13, %v639_v31 }
 0x23b   :  { %4585 = vmatpush2.bf16.msra.mxu0 %v6304_v56  ;;  %v4220_v56 = vadd.f32 %v4219_v26, %v639_v31 }
 0x23c   :  { %4638 = vmatpush2.bf16.msra.mxu1 %v6307_v29  ;;  %4586 = vmatprep.subr.bf16.mxu0 %v6312_v24  ;;  %v4222_v24 = vadd.f32 %v4221_v40, %v643_v34  ;;  %v4232_v40 = vadd.f32 %v8520_v16, %v643_v34 }
 0x23d   :  { %4639 = vmatprep.subr.bf16.mxu1 %v6315_v21 }
 0x23f   :  { %4587 = vmatpush2.bf16.msra.mxu0 %v6310_v51 }
 0x240   :  { %4640 = vmatpush2.bf16.msra.mxu1 %v6313_v46  ;;  %v4224_v46 = vadd.f32 %v4223_v1, %v639_v31  ;;  %v4234_v1 = vadd.f32 %v8522_v52, %v639_v31 }
 0x242   :  { %4589 = vmatmul.mubr.bf16.vlgmr.msra.gmra.mxu0 %v6346_v37  ;;  %v4272_v19 = vpop.f32.mrf.mxu0 }
 0x243   :  { %4642 = vmatmul.mubr.bf16.vlgmr.msra.gmra.mxu1 %v6347_v48  ;;  %4598 = vmatprep.mubr.bf16.mxu0 %v6348_v5  ;;  %v4325_v12 = vpop.f32.mrf.mxu1  ;;  %v4273_v21 = vadd.f32 %v4272_v19, %v4220_v56 }
 0x244   :  { %4651 = vmatprep.mubr.bf16.mxu1 %v6349_v35  ;;  %v4274_v7 = vpop.f32.mrf.mxu0 }
 0x245   :  { %v4327_v44 = vpop.f32.mrf.mxu1  ;;  %v4275_v37 = vadd.f32 %v4274_v7, %v4222_v24  ;;  %v4326_v35 = vadd.f32 %v4325_v12, %v4273_v21 }
 0x246   :  { %v4276_v42 = vpop.f32.mrf.mxu0 }
 0x247   :  { %v4329_v47 = vpop.f32.mrf.mxu1  ;;  %v4328_v43 = vadd.f32 %v4327_v44, %v4275_v37 }
 0x248   :  { %v4278_v15 = vpop.f32.mrf.mxu0 }
 0x249   :  { %v4331_v54 = vpop.f32.mrf.mxu1 }
 0x24a   :  { %4599 = vmatmul.mubr.bf16.gmra.mxu0 %v6350_v28  ;;  %v4282_v32 = vpop.f32.mrf.mxu0  ;;  %v4277_v28 = vadd.f32 %v4276_v42, %v4224_v46 }
 0x24b   :  { %4652 = vmatmul.mubr.bf16.gmra.mxu1 %v6351_v30  ;;  %v4335_v4 = vpop.f32.mrf.mxu1  ;;  %v4226_v30 = vadd.f32 %v4225_v55, %v643_v34  ;;  %v4283_v0 = vadd.f32 %v4282_v32, %v4230_v2 }
 0x24c   :  { %v4284_v45 = vpop.f32.mrf.mxu0  ;;  %v4330_v19 = vadd.f32 %v4329_v47, %v4277_v28 }
 0x24d   :  { %v8526_v6 = vpop.f32.mrf.mxu1  ;;  %v4285_v7 = vadd.f32 %v4284_v45, %v4232_v40  ;;  %v4336_v42 = vadd.f32 %v4335_v4, %v4283_v0 }
 0x24e   :  { %v4286_v41 = vpop.f32.mrf.mxu0 }
 0x24f   :  { %v8530_v39 = vpop.f32.mrf.mxu1  ;;  %v4287_v55 = vadd.f32 %v4286_v41, %v4234_v1  ;;  %v4338_v16 = vadd.f32 %v8526_v6, %v4285_v7 }
 0x250   :  { %v8528_v60 = vpop.f32.mrf.mxu0 }
 0x251   :  { %v8532_v53 = vpop.f32.mrf.mxu1  ;;  %v4340_v45 = vadd.f32 %v8530_v39, %v4287_v55 }
 0x282   :  { %v4378_v33 = vpop.f32.mrf.mxu0 }
 0x283   :  { %v4431_v38 = vpop.f32.mrf.mxu1 }
 0x284   :  { %v4380_v3 = vpop.f32.mrf.mxu0 }
 0x285   :  { %v4433_v58 = vpop.f32.mrf.mxu1  ;;  %v4381_v56 = vadd.f32 %v4380_v3, %v4328_v43 }
 0x286   :  { %v4382_v57 = vpop.f32.mrf.mxu0 }
 0x287   :  { %v4435_v9 = vpop.f32.mrf.mxu1 }
 0x288   :  { %v4384_v25 = vpop.f32.mrf.mxu0 }
 0x289   :  { %v8534_v14 = vpop.f32.mrf.mxu1 }
 0x28a   :  { %v4388_v61 = vpop.f32.mrf.mxu0 }
 0x28b   :  { %v8536_v22 = vpop.f32.mrf.mxu1  ;;  %v4389_v46 = vadd.f32 %v4388_v61, %v4336_v42 }
 0x28c   :  { %v4390_v59 = vpop.f32.mrf.mxu0 }
 0x28d   :  { %v8538_v10 = vpop.f32.mrf.mxu1  ;;  %v4391_v41 = vadd.f32 %v4390_v59, %v4338_v16 }
 0x28e   :  { %v4392_v49 = vpop.f32.mrf.mxu0 }
 0x28f   :  { %v8540_v36 = vpop.f32.mrf.mxu1  ;;  %v4444_v31 = vadd.f32 %v8538_v10, %v4391_v41 }
 0x290   :  { %8602 = vst [vmem:[#allocation4_spill] sm:$0xff] %v8540_v36  ;;  %v8542_v63 = vpop.f32.mrf.mxu0  ;;  %v4279_v36 = vadd.f32 %v4278_v15, %v4226_v30  ;;  %v4434_v15 = vadd.f32 %v4433_v58, %v4381_v56 }
 0x291   :  { %v8544_v23 = vpop.f32.mrf.mxu1 }
 0x292   :  { %8603 = vst [vmem:[#allocation5_spill] sm:$0xff] %v8544_v23  ;;  %v4379_v23 = vadd.f32 %v4378_v33, %v4326_v35  ;;  %v4332_v12 = vadd.f32 %v4331_v54, %v4279_v36  ;;  %v4236_v33 = vadd.f32 %v8524_v50, %v643_v34  ;;  %v4442_v50 = vadd.f32 %v8536_v22, %v4389_v46 }
 0x294   :  { %v4432_v24 = vadd.f32 %v4431_v38, %v4379_v23  ;;  %v4385_v21 = vadd.f32 %v4384_v25, %v4332_v12  ;;  %v4289_v52 = vadd.f32 %v8528_v60, %v4236_v33  ;;  %v4393_v25 = vadd.f32 %v4392_v49, %v4340_v45 }
 0x296   :  { %v4438_v58 = vadd.f32 %v8534_v14, %v4385_v21  ;;  %v4342_v23 = vadd.f32 %v8532_v53, %v4289_v52 }
 0x297   :  { %v8607_v34 = vld [vmem:[#allocation4_spill] sm:$0xff] }
 0x298   :  { %v4395_v14 = vadd.f32 %v8542_v63, %v4342_v23  ;;  %v4446_v22 = vadd.f32 %v8607_v34, %v4393_v25 }
 0x299   :  { %v8609_v63 = vld [vmem:[#allocation5_spill] sm:$0xff] }
 0x29a   :  { %v4448_v0 = vadd.f32 %v8609_v63, %v4395_v14 }
 0x2c2   :  { %v4484_v8 = vpop.f32.mrf.mxu0 }
 0x2c3   :  { %v4537_v62 = vpop.f32.mrf.mxu1  ;;  %v4485_v32 = vadd.f32 %v4484_v8, %v4432_v24 }
 0x2c4   :  { %v4486_v18 = vpop.f32.mrf.mxu0 }
 0x2c5   :  { %v4539_v27 = vpop.f32.mrf.mxu1  ;;  %v4487_v3 = vadd.f32 %v4486_v18, %v4434_v15  ;;  %v4538_v38 = vadd.f32 %v4537_v62, %v4485_v32 }
 0x2c6   :  { %v4488_v20 = vpop.f32.mrf.mxu0 }
 0x2c7   :  { %v4541_v11 = vpop.f32.mrf.mxu1  ;;  %v4540_v6 = vadd.f32 %v4539_v27, %v4487_v3 }
 0x2c8   :  { %v4490_v29 = vpop.f32.mrf.mxu0 }
 0x2c9   :  { %v8550_v51 = vpop.f32.mrf.mxu1  ;;  %v4491_v60 = vadd.f32 %v4490_v29, %v4438_v58 }
 0x2ca   :  { %v4494_v48 = vpop.f32.mrf.mxu0 }
 0x2cb   :  { %v8552_v5 = vpop.f32.mrf.mxu1  ;;  %v4495_v8 = vadd.f32 %v4494_v48, %v4442_v50  ;;  %v4544_v53 = vadd.f32 %v8550_v51, %v4491_v60 }
 0x2cc   :  { %8606 = vst [vmem:[#allocation2_spill] sm:$0xff] %v8552_v5  ;;  %v4496_v17 = vpop.f32.mrf.mxu0  ;;  %v4383_v5 = vadd.f32 %v4382_v57, %v4330_v19 }
 0x2cd   :  { %v8554_v26 = vpop.f32.mrf.mxu1 }
 0x2ce   :  { %v4498_v13 = vpop.f32.mrf.mxu0  ;;  %v4436_v47 = vadd.f32 %v4435_v9, %v4383_v5  ;;  %v4497_v5 = vadd.f32 %v4496_v17, %v4444_v31 }
 0x2cf   :  { %v8558_v44 = vpop.f32.mrf.mxu1 }
 0x2d0   :  { %v4500_v54 = vpop.f32.mrf.mxu0  ;;  %v4489_v57 = vadd.f32 %v4488_v20, %v4436_v47  ;;  %v4550_v17 = vadd.f32 %v8554_v26, %v4497_v5 }
 0x2d1   :  { %v8564_v4 = vpop.f32.mrf.mxu1  ;;  %v4501_v51 = vadd.f32 %v4500_v54, %v4448_v0 }
 0x2d2   :  { %v4542_v59 = vadd.f32 %v4541_v11, %v4489_v57  ;;  %v4499_v11 = vadd.f32 %v4498_v13, %v4446_v22 }
 0x2d3   :  { %v8608_v29 = vld [vmem:[#allocation2_spill] sm:$0xff]  ;;  %v4554_v45 = vadd.f32 %v8564_v4, %v4501_v51 }
 0x2d4   :  { %v4548_v48 = vadd.f32 %v8608_v29, %v4495_v8  ;;  %v4552_v13 = vadd.f32 %v8558_v44, %v4499_v11 }
 0x302   :  { %v4590_v61 = vpop.f32.mrf.mxu0 }
 0x303   :  { %v4643_v36 = vpop.f32.mrf.mxu1  ;;  %v4591_v9 = vadd.f32 %v4590_v61, %v4538_v38 }
 0x304   :  { %v4592_v39 = vpop.f32.mrf.mxu0 }
 0x305   :  { %v4645_v18 = vpop.f32.mrf.mxu1  ;;  %v4644_v62 = vadd.f32 %v4643_v36, %v4591_v9  ;;  %v4593_v20 = vadd.f32 %v4592_v39, %v4540_v6 }
 0x306   :  { %v4594_v49 = vpop.f32.mrf.mxu0 }
 0x307   :  { %v4647_v37 = vpop.f32.mrf.mxu1  ;;  %v4680_v27 = vmul.f32 0.2, %v4644_v62  ;;  %v4646_v35 = vadd.f32 %v4645_v18, %v4593_v20  ;;  %v4595_v28 = vadd.f32 %v4594_v49, %v4542_v59  ;;  %vm4664_vm8 = vcmp.ge.f32.partialorder %v4644_v62, 0.0 }
 0x308   :  { %v4596_v30 = vpop.f32.mrf.mxu0 }
 0x309   :  { %v4649_v10 = vpop.f32.mrf.mxu1  ;;  %vm4665_vm9 = vcmp.ge.f32.partialorder %v4646_v35, 0.0  ;;  %v4681_v2 = vmul.f32 0.2, %v4646_v35  ;;  %v4648_v43 = vadd.f32 %v4647_v37, %v4595_v28  ;;  %v4597_v40 = vadd.f32 %v4596_v30, %v4544_v53 }
 0x30a   :  { %v4600_v19 = vpop.f32.mrf.mxu0  ;;  %v4696_v1 = vsel %vm4664_vm8, %v4644_v62, %v4680_v27 }
 0x30b   :  { %v4653_v56 = vpop.f32.mrf.mxu1  ;;  %v4697_v7 = vsel %vm4665_vm9, %v4646_v35, %v4681_v2  ;;  %v4601_v24 = vadd.f32 %v4600_v19, %v4548_v48  ;;  %v4684_v42 = vmul.f32 0.2, %v4648_v43  ;;  %v4650_v55 = vadd.f32 %v4649_v10, %v4597_v40 }
 0x30c   :  { %v5391_v12 = vpack.c.bf16 %v4697_v7, %v4696_v1  ;;  %v4602_v15 = vpop.f32.mrf.mxu0  ;;  %vm4668_vm10 = vcmp.ge.f32.partialorder %v4648_v43, 0.0 }
 0x30d   :  { %v4655_v32 = vpop.f32.mrf.mxu1  ;;  %v4654_v33 = vadd.f32 %v4653_v56, %v4601_v24  ;;  %v4603_v21 = vadd.f32 %v4602_v15, %v4550_v17  ;;  %vm4669_vm11 = vcmp.ge.f32.partialorder %v4650_v55, 0.0  ;;  %v4685_v26 = vmul.f32 0.2, %v4650_v55 }
 0x30e   :  { %4759 = vst [vmem:[%s8593_s3 + $0x8] sm:$0xff] %v5391_v12  ;;  %v4604_v46 = vpop.f32.mrf.mxu0  ;;  %v4700_v54 = vsel %vm4668_vm10, %v4648_v43, %v4684_v42 }
 0x30f   :  { %v4688_v16 = vmul.f32 0.2, %v4654_v33  ;;  %v4656_v47 = vadd.f32 %v4655_v32, %v4603_v21  ;;  %v4605_v3 = vadd.f32 %v4604_v46, %v4552_v13  ;;  %v4657_v52 = vpop.f32.mrf.mxu1  ;;  %v4701_v41 = vsel %vm4669_vm11, %v4650_v55, %v4685_v26 }
 0x310   :  { %vm4672_vm12 = vcmp.ge.f32.partialorder %v4654_v33, 0.0  ;;  %v4606_v44 = vpop.f32.mrf.mxu0  ;;  %v5393_v38 = vpack.c.bf16 %v4701_v41, %v4700_v54 }
 0x311   :  { %vm4673_vm13 = vcmp.ge.f32.partialorder %v4656_v47, 0.0  ;;  %v4689_v57 = vmul.f32 0.2, %v4656_v47  ;;  %v4658_v58 = vadd.f32 %v4657_v52, %v4605_v3  ;;  %v4607_v50 = vadd.f32 %v4606_v44, %v4554_v45  ;;  %v4659_v36 = vpop.f32.mrf.mxu1 }
 0x312   :  { %4761 = vst [vmem:[%s8593_s3 + $0x18] sm:$0xff] %v5393_v38  ;;  %v4704_v25 = vsel %vm4672_vm12, %v4654_v33, %v4688_v16 }
 0x313   :  { %v4705_v61 = vsel %vm4673_vm13, %v4656_v47, %v4689_v57  ;;  %v4692_v9 = vmul.f32 0.2, %v4658_v58  ;;  %v4660_v23 = vadd.f32 %v4659_v36, %v4607_v50  ;;  %vm4676_vm14 = vcmp.ge.f32.partialorder %v4658_v58, 0.0 }
 0x314   :  { %v5395_v6 = vpack.c.bf16 %v4705_v61, %v4704_v25 }
 0x315   :  { %vm4677_vm15 = vcmp.ge.f32.partialorder %v4660_v23, 0.0  ;;  %v4693_v4 = vmul.f32 0.2, %v4660_v23  ;;  %v4708_v60 = vsel %vm4676_vm14, %v4658_v58, %v4692_v9 }
 0x316   :  { %4763 = vst [vmem:[%s8593_s3 + $0x28] sm:$0xff] %v5395_v6 }
 0x317   :  { %v4709_v8 = vsel %vm4677_vm15, %v4660_v23, %v4693_v4 }
 0x318   :  { %v5397_v39 = vpack.c.bf16 %v4709_v8, %v4708_v60 }
 0x31a   :  { %4765 = vst [vmem:[%s8593_s3 + $0x38] sm:$0xff] %v5397_v39 }

// kernel: discriminator_forward.13
= control target key start
LH: loop header
LB: loop body
LE: loop exit
PB: predicated region body
PF: predicated region fallthrough
CT: control target
= control target key end

     0   :  { %v7614_v22 = vmov 1966171168   ;;  %v1056_v24 = vlaneseq  ;;  %vm5866_vm0 = vcmask 1024   ;;  %s9307_s1 = inlined_call_operand.vmem [shape: bf16[8192,1], index: 1, kind: input, shape index: {}]   ;;  %s9308_s0 = inlined_call_operand.vmem [shape: bf16[2,8192], index: 0, kind: input, shape index: {}]   ;;  %s9309_s2 = inlined_call_operand.vmem [shape: f32[2,1], index: 2, kind: output, shape index: {}]  }
   0x1   :  { %v7090_v0 = vld [vmem:[%s9307_s1 + $0x78] sm:$0xff]   ;;  %v7094_v4 = vld [vmem:[%s9307_s1 + $0x70] sm:$0xff]   ;;  %v7098_v8 = vld [vmem:[%s9307_s1 + $0x68] sm:$0xff]   ;;  %v1054_v23 = vunpack.c.l.s4 %v7614_v22 }
   0x2   :  { %v7091_v1 = vld [vmem:[%s9307_s1 + $0xf8] sm:$0xff]   ;;  %6385 = vmatprep.subr.bf16.mxu0 %v7090_v0  ;;  %v7095_v5 = vld [vmem:[%s9307_s1 + $0xf0] sm:$0xff]   ;;  %v7099_v9 = vld [vmem:[%s9307_s1 + $0xe8] sm:$0xff]   ;;  %v1057_v30 = vshrl.u32 %v1056_v24, 7 }
   0x3   :  { %v7092_v2 = vld [vmem:[%s9307_s1 + $0x38] sm:$0xff]   ;;  %6407 = vmatprep.subr.bf16.mxu1 %v7091_v1  ;;  %v7096_v6 = vld [vmem:[%s9307_s1 + $0x30] sm:$0xff]   ;;  %v7100_v10 = vld [vmem:[%s9307_s1 + $0x28] sm:$0xff]   ;;  %v1055_v29 = vunpack.c.0.s8 %v1054_v23 }
   0x4   :  { %v7093_v3 = vld [vmem:[%s9307_s1 + $0xb8] sm:$0xff]   ;;  %6386 = vmatpush3.bf16.msra.mxu0 %v7092_v2  ;;  %v7097_v7 = vld [vmem:[%s9307_s1 + $0xb0] sm:$0xff]   ;;  %v7101_v11 = vld [vmem:[%s9307_s1 + $0xa8] sm:$0xff]  }
   0x5   :  { %6408 = vmatpush3.bf16.msra.mxu1 %v7093_v3  ;;  %6387 = vmatprep.subr.bf16.mxu0 %v7094_v4  ;;  %v7102_v12 = vld [vmem:[%s9307_s1 + $0x60] sm:$0xff]   ;;  %v7106_v16 = vld [vmem:[%s9307_s1 + $0x58] sm:$0xff]   ;;  %v7110_v20 = vld [vmem:[%s9307_s1 + $0x50] sm:$0xff]   ;;  %v7720_v35 = vsub.s32 %v1055_v29, %v1057_v30 }
   0x6   :  { %6409 = vmatprep.subr.bf16.mxu1 %v7095_v5  ;;  %v7103_v13 = vld [vmem:[%s9307_s1 + $0xe0] sm:$0xff]   ;;  %v7107_v17 = vld [vmem:[%s9307_s1 + $0xd8] sm:$0xff]   ;;  %v7111_v21 = vld [vmem:[%s9307_s1 + $0xd0] sm:$0xff]  }
   0x7   :  { %v7104_v14 = vld [vmem:[%s9307_s1 + $0x20] sm:$0xff]   ;;  %v7108_v18 = vld [vmem:[%s9307_s1 + $0x18] sm:$0xff]   ;;  %v7112_v25 = vld [vmem:[%s9307_s1 + $0x10] sm:$0xff]  }
   0x8   :  { %6388 = vmatpush3.bf16.msra.mxu0 %v7096_v6  ;;  %v7105_v15 = vld [vmem:[%s9307_s1 + $0xa0] sm:$0xff]   ;;  %v7109_v19 = vld [vmem:[%s9307_s1 + $0x98] sm:$0xff]   ;;  %v7113_v26 = vld [vmem:[%s9307_s1 + $0x90] sm:$0xff]  }
   0x9   :  { %6410 = vmatpush3.bf16.msra.mxu1 %v7097_v7  ;;  %6389 = vmatprep.subr.bf16.mxu0 %v7098_v8  ;;  %v7114_v27 = vld [vmem:[%s9307_s1 + $0x48] sm:$0xff]   ;;  %v7118_v33 = vld [vmem:[%s9307_s1 + $0x40] sm:$0xff]   ;;  %v7123_v41 = vld [vmem:[%s9307_s1 + $0x178] sm:$0xff]  }
   0xa   :  { %6411 = vmatprep.subr.bf16.mxu1 %v7099_v9  ;;  %v7115_v28 = vld [vmem:[%s9307_s1 + $0xc8] sm:$0xff]   ;;  %v7119_v34 = vld [vmem:[%s9307_s1 + $0xc0] sm:$0xff]   ;;  %v7124_v42 = vld [vmem:[%s9307_s1 + $0x1f8] sm:$0xff]  }
   0xb   :  { %v7116_v31 = vld [vmem:[%s9307_s1 + $0x8] sm:$0xff]   ;;  %v7120_v36 = vld [vmem:[%s9307_s1] sm:$0xff]   ;;  %v7125_v46 = vld [vmem:[%s9307_s1 + $0x138] sm:$0xff]  }
   0xc   :  { %6390 = vmatpush3.bf16.msra.mxu0 %v7100_v10  ;;  %v7117_v32 = vld [vmem:[%s9307_s1 + $0x88] sm:$0xff]   ;;  %v7121_v37 = vld [vmem:[%s9307_s1 + $0x80] sm:$0xff]   ;;  %v7126_v48 = vld [vmem:[%s9307_s1 + $0x1b8] sm:$0xff]  }
   0xd   :  { %6412 = vmatpush3.bf16.msra.mxu1 %v7101_v11  ;;  %6391 = vmatprep.subr.bf16.mxu0 %v7102_v12  ;;  %v12_v38 = vld [vmem:[%s9308_s0] sm:$0xff]  ;;  %v7127_v51 = vld [vmem:[%s9307_s1 + $0x170] sm:$0xff]   ;;  %v7131_v58 = vld [vmem:[%s9307_s1 + $0x168] sm:$0xff]  }
   0xe   :  { %6413 = vmatprep.subr.bf16.mxu1 %v7103_v13  ;;  %v1052_v39 = vcombine.high %v12_v38, %v12_v38  ;;  %v1059_v40 = vrot.slane %v12_v38, %v7720_v35  ;;  %v7128_v53 = vld [vmem:[%s9307_s1 + $0x1f0] sm:$0xff]   ;;  %v7132_v59 = vld [vmem:[%s9307_s1 + $0x1e8] sm:$0xff]   ;;  %v7135_v62 = vld [vmem:[%s9307_s1 + $0x160] sm:$0xff]  }
   0xf   :  { %v7129_v55 = vld [vmem:[%s9307_s1 + $0x130] sm:$0xff]   ;;  %v7133_v60 = vld [vmem:[%s9307_s1 + $0x128] sm:$0xff]   ;;  %v7136_v63 = vld [vmem:[%s9307_s1 + $0x1e0] sm:$0xff]  }
  0x10   :  { %6392 = vmatpush3.bf16.msra.mxu0 %v7104_v14  ;;  %v1067_v43 = vcombine.high %v1059_v40, %v1059_v40  ;;  %v1075_v44 = vrot.slane %v1059_v40, %v7720_v35  ;;  %v7740_v45 = vrot.slane %v1052_v39, %v7720_v35  ;;  %v7130_v56 = vld [vmem:[%s9307_s1 + $0x1b0] sm:$0xff]   ;;  %v7134_v61 = vld [vmem:[%s9307_s1 + $0x1a8] sm:$0xff]   ;;  %v7137_v0 = vld [vmem:[%s9307_s1 + $0x120] sm:$0xff]  }
  0x11   :  { %6414 = vmatpush3.bf16.msra.mxu1 %v7105_v15  ;;  %6393 = vmatprep.subr.bf16.mxu0 %v7106_v16  ;;  %v7138_v1 = vld [vmem:[%s9307_s1 + $0x1a0] sm:$0xff]   ;;  %v7139_v2 = vld [vmem:[%s9307_s1 + $0x158] sm:$0xff]   ;;  %v7143_v6 = vld [vmem:[%s9307_s1 + $0x150] sm:$0xff]  }
  0x12   :  { %6415 = vmatprep.subr.bf16.mxu1 %v7107_v17  ;;  %v1089_v47 = vrot.slane %v1067_v43, %v7720_v35  ;;  %v1068_v49 = vcombine.high %v7740_v45, %v7740_v45  ;;  %v1097_v50 = vcombine.high %v1075_v44, %v1075_v44  ;;  %v7140_v3 = vld [vmem:[%s9307_s1 + $0x1d8] sm:$0xff]   ;;  %v7144_v7 = vld [vmem:[%s9307_s1 + $0x1d0] sm:$0xff]   ;;  %v7147_v10 = vld [vmem:[%s9307_s1 + $0x148] sm:$0xff]  }
  0x13   :  { %v7141_v4 = vld [vmem:[%s9307_s1 + $0x118] sm:$0xff]   ;;  %v7145_v8 = vld [vmem:[%s9307_s1 + $0x110] sm:$0xff]   ;;  %v7148_v11 = vld [vmem:[%s9307_s1 + $0x1c8] sm:$0xff]  }
  0x14   :  { %6394 = vmatpush3.bf16.msra.mxu0 %v7108_v18  ;;  %4612 = vmatprep.mubr.bf16.mxu0 %v1089_v47  ;;  %v1099_v52 = vcombine.high %v1089_v47, %v1089_v47  ;;  %v1096_v54 = vrot.slane %v1068_v49, %v7720_v35  ;;  %v7142_v5 = vld [vmem:[%s9307_s1 + $0x198] sm:$0xff]   ;;  %v7146_v9 = vld [vmem:[%s9307_s1 + $0x190] sm:$0xff]   ;;  %v7149_v12 = vld [vmem:[%s9307_s1 + $0x108] sm:$0xff]   ;;  %v1082_v18 = vrot.slane %v7740_v45, %v7720_v35 }
  0x15   :  { %6416 = vmatpush3.bf16.msra.mxu1 %v7109_v19  ;;  %6395 = vmatprep.subr.bf16.mxu0 %v7110_v20  ;;  %v7150_v13 = vld [vmem:[%s9307_s1 + $0x188] sm:$0xff]   ;;  %v7151_v14 = vld [vmem:[%s9307_s1 + $0x140] sm:$0xff]   ;;  %v7155_v19 = vld [vmem:[%s9307_s1 + $0x278] sm:$0xff]  }
  0x16   :  { %6417 = vmatprep.subr.bf16.mxu1 %v7111_v21  ;;  %4652 = vmatprep.mubr.bf16.mxu1 %v1099_v52  ;;  %v1100_v57 = vcombine.high %v1096_v54, %v1096_v54  ;;  %v7152_v15 = vld [vmem:[%s9307_s1 + $0x1c0] sm:$0xff]   ;;  %v7156_v20 = vld [vmem:[%s9307_s1 + $0x2f8] sm:$0xff]   ;;  %v1098_v23 = vcombine.high %v1082_v18, %v1082_v18  ;;  %v7159_v24 = vld [vmem:[%s9307_s1 + $0x270] sm:$0xff]  }
  0x17   :  { %v7153_v16 = vld [vmem:[%s9307_s1 + $0x100] sm:$0xff]   ;;  %v7157_v21 = vld [vmem:[%s9307_s1 + $0x238] sm:$0xff]   ;;  %v7164_v29 = vld [vmem:[%s9307_s1 + $0x2e8] sm:$0xff]  }
  0x18   :  { %6396 = vmatpush3.bf16.msra.mxu0 %v7112_v25  ;;  %v7154_v17 = vld [vmem:[%s9307_s1 + $0x180] sm:$0xff]   ;;  %v7158_v22 = vld [vmem:[%s9307_s1 + $0x2b8] sm:$0xff]   ;;  %v7160_v25 = vld [vmem:[%s9307_s1 + $0x2f0] sm:$0xff]  }
  0x19   :  { %6418 = vmatpush3.bf16.msra.mxu1 %v7113_v26  ;;  %6397 = vmatprep.subr.bf16.mxu0 %v7114_v27  ;;  %v7161_v26 = vld [vmem:[%s9307_s1 + $0x230] sm:$0xff]   ;;  %v7165_v30 = vld [vmem:[%s9307_s1 + $0x228] sm:$0xff]   ;;  %v7172_v38 = vld [vmem:[%s9307_s1 + $0x2d8] sm:$0xff]  }
  0x1a   :  { %6419 = vmatprep.subr.bf16.mxu1 %v7115_v28  ;;  %v7162_v27 = vld [vmem:[%s9307_s1 + $0x2b0] sm:$0xff]   ;;  %v7163_v28 = vld [vmem:[%s9307_s1 + $0x268] sm:$0xff]   ;;  %v7173_v39 = vld [vmem:[%s9307_s1 + $0x218] sm:$0xff]  }
  0x1b   :  { %v7174_v40 = vld [vmem:[%s9307_s1 + $0x298] sm:$0xff]   ;;  %v7177_v43 = vld [vmem:[%s9307_s1 + $0x210] sm:$0xff]   ;;  %v7179_v45 = vld [vmem:[%s9307_s1 + $0x248] sm:$0xff]  }
  0x1c   :  { %6398 = vmatpush3.bf16.msra.mxu0 %v7116_v31  ;;  %v7166_v31 = vld [vmem:[%s9307_s1 + $0x2a8] sm:$0xff]   ;;  %v7183_v49 = vld [vmem:[%s9307_s1 + $0x240] sm:$0xff]  }
  0x1d   :  { %6420 = vmatpush3.bf16.msra.mxu1 %v7117_v32  ;;  %6399 = vmatprep.subr.bf16.mxu0 %v7118_v33  ;;  %v7167_v32 = vld [vmem:[%s9307_s1 + $0x260] sm:$0xff]   ;;  %v7181_v47 = vld [vmem:[%s9307_s1 + $0x208] sm:$0xff]  }
  0x1e   :  { %6421 = vmatprep.subr.bf16.mxu1 %v7119_v34  ;;  %v7168_v33 = vld [vmem:[%s9307_s1 + $0x2e0] sm:$0xff]   ;;  %v13_v52 = vld [vmem:[%s9308_s0 + $0x8] sm:$0xff] }
  0x1f   :  { %v7169_v34 = vld [vmem:[%s9307_s1 + $0x220] sm:$0xff]  }
  0x20   :  { %6400 = vmatpush3.bf16.msra.mxu0 %v7120_v36  ;;  %v7170_v36 = vld [vmem:[%s9307_s1 + $0x2a0] sm:$0xff]  }
  0x21   :  { %6422 = vmatpush3.bf16.msra.mxu1 %v7121_v37  ;;  %6429 = vmatprep.subr.bf16.mxu0 %v7123_v41  ;;  %v7171_v37 = vld [vmem:[%s9307_s1 + $0x258] sm:$0xff]   ;;  %v7175_v41 = vld [vmem:[%s9307_s1 + $0x250] sm:$0xff]  }
  0x22   :  { %6451 = vmatprep.subr.bf16.mxu1 %v7124_v42  ;;  %v7176_v42 = vld [vmem:[%s9307_s1 + $0x2d0] sm:$0xff]  }
  0x23   :  { %4613 = vmatmul.mubr.bf16.vlgmr.msra.gmra.mxu0 %v1075_v44  ;;  %v7178_v44 = vld [vmem:[%s9307_s1 + $0x290] sm:$0xff]  }
  0x24   :  { %6430 = vmatpush3.bf16.msra.mxu0 %v7125_v46  ;;  %4653 = vmatmul.mubr.bf16.vlgmr.msra.gmra.mxu1 %v1097_v50  ;;  %v7180_v46 = vld [vmem:[%s9307_s1 + $0x2c8] sm:$0xff]   ;;  %v7184_v50 = vld [vmem:[%s9307_s1 + $0x2c0] sm:$0xff]  }
  0x25   :  { %6431 = vmatprep.subr.bf16.mxu0 %v7127_v51  ;;  %6452 = vmatpush3.bf16.msra.mxu1 %v7126_v48  ;;  %v7182_v48 = vld [vmem:[%s9307_s1 + $0x288] sm:$0xff]   ;;  %v7185_v51 = vld [vmem:[%s9307_s1 + $0x200] sm:$0xff]  }
  0x26   :  { %4692 = vmatprep.mubr.bf16.mxu0 %v1096_v54  ;;  %6453 = vmatprep.subr.bf16.mxu1 %v7128_v53  ;;  %v7186_v53 = vld [vmem:[%s9307_s1 + $0x280] sm:$0xff]   ;;  %v1108_v54 = vrot.slane %v13_v52, %v7720_v35 }
  0x27   :  { %4732 = vmatprep.mubr.bf16.mxu1 %v1100_v57 }
  0x28   :  { %6432 = vmatpush3.bf16.msra.mxu0 %v7129_v55  ;;  %v1101_v55 = vcombine.high %v13_v52, %v13_v52  ;;  %v1116_v57 = vcombine.high %v1108_v54, %v1108_v54  ;;  %v7236_v52 = vld [vmem:[%s9307_s1 + $0x458] sm:$0xff]  }
  0x29   :  { %6433 = vmatprep.subr.bf16.mxu0 %v7131_v58  ;;  %6454 = vmatpush3.bf16.msra.mxu1 %v7130_v56  ;;  %v7187_v56 = vld [vmem:[%s9307_s1 + $0x378] sm:$0xff]   ;;  %v1124_v58 = vrot.slane %v1108_v54, %v7720_v35 }
  0x2a   :  { %6455 = vmatprep.subr.bf16.mxu1 %v7132_v59  ;;  %v7188_v59 = vld [vmem:[%s9307_s1 + $0x3f8] sm:$0xff]  }
  0x2b   :  { %v7238_v54 = vld [vmem:[%s9307_s1 + $0x418] sm:$0xff]  }
  0x2c   :  { %6434 = vmatpush3.bf16.msra.mxu0 %v7133_v60  ;;  %v7946_v60 = vrot.slane %v1101_v55, %v7720_v35  ;;  %v7239_v55 = vld [vmem:[%s9307_s1 + $0x498] sm:$0xff]  }
  0x2d   :  { %6435 = vmatprep.subr.bf16.mxu0 %v7135_v62  ;;  %6456 = vmatpush3.bf16.msra.mxu1 %v7134_v61  ;;  %v7189_v61 = vld [vmem:[%s9307_s1 + $0x338] sm:$0xff]   ;;  %v1138_v62 = vrot.slane %v1116_v57, %v7720_v35  ;;  %v7241_v57 = vld [vmem:[%s9307_s1 + $0x4d0] sm:$0xff]  }
  0x2e   :  { %6457 = vmatprep.subr.bf16.mxu1 %v7136_v63  ;;  %v7190_v63 = vld [vmem:[%s9307_s1 + $0x3b8] sm:$0xff]  }
  0x30   :  { %6436 = vmatpush3.bf16.msra.mxu0 %v7137_v0  ;;  %v1117_v0 = vcombine.high %v7946_v60, %v7946_v60 }
  0x31   :  { %6437 = vmatprep.subr.bf16.mxu0 %v7139_v2  ;;  %6458 = vmatpush3.bf16.msra.mxu1 %v7138_v1  ;;  %v1146_v1 = vcombine.high %v1124_v58, %v1124_v58  ;;  %v7191_v2 = vld [vmem:[%s9307_s1 + $0x370] sm:$0xff]  }
  0x32   :  { %6459 = vmatprep.subr.bf16.mxu1 %v7140_v3  ;;  %v1148_v3 = vcombine.high %v1138_v62, %v1138_v62 }
  0x34   :  { %6438 = vmatpush3.bf16.msra.mxu0 %v7141_v4  ;;  %v7192_v4 = vld [vmem:[%s9307_s1 + $0x3f0] sm:$0xff]  }
  0x35   :  { %6439 = vmatprep.subr.bf16.mxu0 %v7143_v6  ;;  %6460 = vmatpush3.bf16.msra.mxu1 %v7142_v5  ;;  %v1145_v5 = vrot.slane %v1117_v0, %v7720_v35  ;;  %v7193_v6 = vld [vmem:[%s9307_s1 + $0x330] sm:$0xff]   ;;  %v7248_v0 = vld [vmem:[%s9307_s1 + $0x440] sm:$0xff]  }
  0x36   :  { %6461 = vmatprep.subr.bf16.mxu1 %v7144_v7  ;;  %v7194_v7 = vld [vmem:[%s9307_s1 + $0x3b0] sm:$0xff]  }
  0x38   :  { %6440 = vmatpush3.bf16.msra.mxu0 %v7145_v8  ;;  %v1149_v8 = vcombine.high %v1145_v5, %v1145_v5 }
  0x39   :  { %6441 = vmatprep.subr.bf16.mxu0 %v7147_v10  ;;  %6462 = vmatpush3.bf16.msra.mxu1 %v7146_v9  ;;  %v7195_v9 = vld [vmem:[%s9307_s1 + $0x368] sm:$0xff]  }
  0x3a   :  { %6463 = vmatprep.subr.bf16.mxu1 %v7148_v11  ;;  %v7196_v10 = vld [vmem:[%s9307_s1 + $0x3e8] sm:$0xff]  }
  0x3b   :  { %v7197_v11 = vld [vmem:[%s9307_s1 + $0x328] sm:$0xff]  }
  0x3c   :  { %6442 = vmatpush3.bf16.msra.mxu0 %v7149_v12  ;;  %v7198_v12 = vld [vmem:[%s9307_s1 + $0x3a8] sm:$0xff]  }
  0x3d   :  { %6443 = vmatprep.subr.bf16.mxu0 %v7151_v14  ;;  %6464 = vmatpush3.bf16.msra.mxu1 %v7150_v13  ;;  %v7199_v13 = vld [vmem:[%s9307_s1 + $0x360] sm:$0xff]  }
  0x3e   :  { %6465 = vmatprep.subr.bf16.mxu1 %v7152_v15  ;;  %v7200_v14 = vld [vmem:[%s9307_s1 + $0x3e0] sm:$0xff]  }
  0x3f   :  { %v7201_v15 = vld [vmem:[%s9307_s1 + $0x320] sm:$0xff]  }
  0x40   :  { %6444 = vmatpush3.bf16.msra.mxu0 %v7153_v16  ;;  %v7202_v16 = vld [vmem:[%s9307_s1 + $0x3a0] sm:$0xff]  }
  0x41   :  { %6473 = vmatprep.subr.bf16.mxu0 %v7155_v19  ;;  %6466 = vmatpush3.bf16.msra.mxu1 %v7154_v17  ;;  %v7203_v17 = vld [vmem:[%s9307_s1 + $0x358] sm:$0xff]  }
  0x42   :  { %6495 = vmatprep.subr.bf16.mxu1 %v7156_v20  ;;  %v7205_v19 = vld [vmem:[%s9307_s1 + $0x318] sm:$0xff]  }
  0x43   :  { %4693 = vmatmul.mubr.bf16.vlgmr.msra.gmra.mxu0 %v1082_v18  ;;  %v7204_v18 = vld [vmem:[%s9307_s1 + $0x3d8] sm:$0xff]  }
  0x44   :  { %6474 = vmatpush3.bf16.msra.mxu0 %v7157_v21  ;;  %4733 = vmatmul.mubr.bf16.vlgmr.msra.gmra.mxu1 %v1098_v23  ;;  %v7206_v20 = vld [vmem:[%s9307_s1 + $0x398] sm:$0xff]   ;;  %v7207_v21 = vld [vmem:[%s9307_s1 + $0x350] sm:$0xff]  }
  0x45   :  { %6475 = vmatprep.subr.bf16.mxu0 %v7159_v24  ;;  %6496 = vmatpush3.bf16.msra.mxu1 %v7158_v22  ;;  %v7208_v22 = vld [vmem:[%s9307_s1 + $0x3d0] sm:$0xff]  }
  0x46   :  { %6497 = vmatprep.subr.bf16.mxu1 %v7160_v25  ;;  %4772 = vmatprep.mubr.bf16.mxu0 %v1138_v62  ;;  %v7209_v23 = vld [vmem:[%s9307_s1 + $0x310] sm:$0xff]   ;;  %v7211_v25 = vld [vmem:[%s9307_s1 + $0x348] sm:$0xff]  }
  0x47   :  { %4812 = vmatprep.mubr.bf16.mxu1 %v1148_v3  ;;  %v7210_v24 = vld [vmem:[%s9307_s1 + $0x390] sm:$0xff]   ;;  %v7246_v62 = vld [vmem:[%s9307_s1 + $0x408] sm:$0xff]  }
  0x48   :  { %6476 = vmatpush3.bf16.msra.mxu0 %v7161_v26  ;;  %v7212_v26 = vld [vmem:[%s9307_s1 + $0x3c8] sm:$0xff]   ;;  %v14_v3 = vld [vmem:[%s9308_s0 + $0x10] sm:$0xff] }
  0x49   :  { %6477 = vmatprep.subr.bf16.mxu0 %v7163_v28  ;;  %6498 = vmatpush3.bf16.msra.mxu1 %v7162_v27  ;;  %v7213_v27 = vld [vmem:[%s9307_s1 + $0x308] sm:$0xff]  }
  0x4a   :  { %6499 = vmatprep.subr.bf16.mxu1 %v7164_v29  ;;  %v7214_v28 = vld [vmem:[%s9307_s1 + $0x388] sm:$0xff]   ;;  %v7215_v29 = vld [vmem:[%s9307_s1 + $0x340] sm:$0xff]  }
  0x4c   :  { %6478 = vmatpush3.bf16.msra.mxu0 %v7165_v30  ;;  %v7216_v30 = vld [vmem:[%s9307_s1 + $0x3c0] sm:$0xff]  }
  0x4d   :  { %6479 = vmatprep.subr.bf16.mxu0 %v7167_v32  ;;  %6500 = vmatpush3.bf16.msra.mxu1 %v7166_v31  ;;  %v7217_v31 = vld [vmem:[%s9307_s1 + $0x300] sm:$0xff]  }
  0x4e   :  { %6501 = vmatprep.subr.bf16.mxu1 %v7168_v33  ;;  %v7218_v32 = vld [vmem:[%s9307_s1 + $0x380] sm:$0xff]   ;;  %v1131_v33 = vrot.slane %v7946_v60, %v7720_v35  ;;  %v7244_v60 = vld [vmem:[%s9307_s1 + $0x448] sm:$0xff]  }
  0x50   :  { %6480 = vmatpush3.bf16.msra.mxu0 %v7169_v34  ;;  %v7220_v34 = vld [vmem:[%s9307_s1 + $0x478] sm:$0xff]  }
  0x51   :  { %6481 = vmatprep.subr.bf16.mxu0 %v7171_v37  ;;  %6502 = vmatpush3.bf16.msra.mxu1 %v7170_v36  ;;  %v7221_v36 = vld [vmem:[%s9307_s1 + $0x4f8] sm:$0xff]  }
  0x52   :  { %6503 = vmatprep.subr.bf16.mxu1 %v7172_v38  ;;  %v7222_v37 = vld [vmem:[%s9307_s1 + $0x438] sm:$0xff]  }
  0x53   :  { %v7223_v38 = vld [vmem:[%s9307_s1 + $0x4b8] sm:$0xff]  }
  0x54   :  { %6482 = vmatpush3.bf16.msra.mxu0 %v7173_v39  ;;  %v1147_v39 = vcombine.high %v1131_v33, %v1131_v33 }
  0x55   :  { %6483 = vmatprep.subr.bf16.mxu0 %v7175_v41  ;;  %6504 = vmatpush3.bf16.msra.mxu1 %v7174_v40  ;;  %v7224_v40 = vld [vmem:[%s9307_s1 + $0x470] sm:$0xff]  }
  0x56   :  { %6505 = vmatprep.subr.bf16.mxu1 %v7176_v42  ;;  %v7225_v41 = vld [vmem:[%s9307_s1 + $0x4f0] sm:$0xff]  }
  0x57   :  { %v7226_v42 = vld [vmem:[%s9307_s1 + $0x430] sm:$0xff]  }
  0x58   :  { %6484 = vmatpush3.bf16.msra.mxu0 %v7177_v43  ;;  %v7227_v43 = vld [vmem:[%s9307_s1 + $0x4b0] sm:$0xff]  }
  0x59   :  { %6485 = vmatprep.subr.bf16.mxu0 %v7179_v45  ;;  %6506 = vmatpush3.bf16.msra.mxu1 %v7178_v44  ;;  %v7228_v44 = vld [vmem:[%s9307_s1 + $0x468] sm:$0xff]  }
  0x5a   :  { %6507 = vmatprep.subr.bf16.mxu1 %v7180_v46  ;;  %v7229_v45 = vld [vmem:[%s9307_s1 + $0x4e8] sm:$0xff]  }
  0x5b   :  { %v7230_v46 = vld [vmem:[%s9307_s1 + $0x428] sm:$0xff]  }
  0x5c   :  { %6486 = vmatpush3.bf16.msra.mxu0 %v7181_v47  ;;  %v7231_v47 = vld [vmem:[%s9307_s1 + $0x4a8] sm:$0xff]  }
  0x5d   :  { %6487 = vmatprep.subr.bf16.mxu0 %v7183_v49  ;;  %6508 = vmatpush3.bf16.msra.mxu1 %v7182_v48  ;;  %v7232_v48 = vld [vmem:[%s9307_s1 + $0x460] sm:$0xff]  }
  0x5e   :  { %6509 = vmatprep.subr.bf16.mxu1 %v7184_v50  ;;  %v7233_v49 = vld [vmem:[%s9307_s1 + $0x4e0] sm:$0xff]  }
  0x5f   :  { %v7234_v50 = vld [vmem:[%s9307_s1 + $0x420] sm:$0xff]  }
  0x60   :  { %6488 = vmatpush3.bf16.msra.mxu0 %v7185_v51  ;;  %v7235_v51 = vld [vmem:[%s9307_s1 + $0x4a0] sm:$0xff]  }
  0x61   :  { %6517 = vmatprep.subr.bf16.mxu0 %v7187_v56  ;;  %6510 = vmatpush3.bf16.msra.mxu1 %v7186_v53  ;;  %v7237_v53 = vld [vmem:[%s9307_s1 + $0x4d8] sm:$0xff]   ;;  %v7240_v56 = vld [vmem:[%s9307_s1 + $0x450] sm:$0xff]  }
  0x62   :  { %6539 = vmatprep.subr.bf16.mxu1 %v7188_v59  ;;  %v7243_v59 = vld [vmem:[%s9307_s1 + $0x490] sm:$0xff]  }
  0x63   :  { %4773 = vmatmul.mubr.bf16.vlgmr.msra.gmra.mxu0 %v1124_v58  ;;  %v7242_v58 = vld [vmem:[%s9307_s1 + $0x410] sm:$0xff]  }
  0x64   :  { %6518 = vmatpush3.bf16.msra.mxu0 %v7189_v61  ;;  %4813 = vmatmul.mubr.bf16.vlgmr.msra.gmra.mxu1 %v1146_v1  ;;  %v7245_v61 = vld [vmem:[%s9307_s1 + $0x4c8] sm:$0xff]   ;;  %v7249_v1 = vld [vmem:[%s9307_s1 + $0x4c0] sm:$0xff]  }
  0x65   :  { %6519 = vmatprep.subr.bf16.mxu0 %v7191_v2  ;;  %6540 = vmatpush3.bf16.msra.mxu1 %v7190_v63  ;;  %v7247_v63 = vld [vmem:[%s9307_s1 + $0x488] sm:$0xff]   ;;  %v7250_v2 = vld [vmem:[%s9307_s1 + $0x400] sm:$0xff]  }
  0x66   :  { %4852 = vmatprep.mubr.bf16.mxu0 %v1145_v5  ;;  %6541 = vmatprep.subr.bf16.mxu1 %v7192_v4  ;;  %v7251_v4 = vld [vmem:[%s9307_s1 + $0x480] sm:$0xff]   ;;  %v1157_v5 = vrot.slane %v14_v3, %v7720_v35 }
  0x67   :  { %4892 = vmatprep.mubr.bf16.mxu1 %v1149_v8 }
  0x68   :  { %6520 = vmatpush3.bf16.msra.mxu0 %v7193_v6  ;;  %v1150_v6 = vcombine.high %v14_v3, %v14_v3  ;;  %v1165_v8 = vcombine.high %v1157_v5, %v1157_v5  ;;  %v7301_v3 = vld [vmem:[%s9307_s1 + $0x658] sm:$0xff]  }
  0x69   :  { %6521 = vmatprep.subr.bf16.mxu0 %v7195_v9  ;;  %6542 = vmatpush3.bf16.msra.mxu1 %v7194_v7  ;;  %v7252_v7 = vld [vmem:[%s9307_s1 + $0x578] sm:$0xff]   ;;  %v1173_v9 = vrot.slane %v1157_v5, %v7720_v35 }
  0x6a   :  { %6543 = vmatprep.subr.bf16.mxu1 %v7196_v10  ;;  %v7253_v10 = vld [vmem:[%s9307_s1 + $0x5f8] sm:$0xff]  }
  0x6b   :  { %v7303_v5 = vld [vmem:[%s9307_s1 + $0x618] sm:$0xff]  }
  0x6c   :  { %6522 = vmatpush3.bf16.msra.mxu0 %v7197_v11  ;;  %v8152_v11 = vrot.slane %v1150_v6, %v7720_v35  ;;  %v7304_v6 = vld [vmem:[%s9307_s1 + $0x698] sm:$0xff]  }
  0x6d   :  { %6523 = vmatprep.subr.bf16.mxu0 %v7199_v13  ;;  %6544 = vmatpush3.bf16.msra.mxu1 %v7198_v12  ;;  %v7254_v12 = vld [vmem:[%s9307_s1 + $0x538] sm:$0xff]   ;;  %v1187_v13 = vrot.slane %v1165_v8, %v7720_v35  ;;  %v7306_v8 = vld [vmem:[%s9307_s1 + $0x6d0] sm:$0xff]  }
  0x6e   :  { %6545 = vmatprep.subr.bf16.mxu1 %v7200_v14  ;;  %v7255_v14 = vld [vmem:[%s9307_s1 + $0x5b8] sm:$0xff]  }
  0x70   :  { %6524 = vmatpush3.bf16.msra.mxu0 %v7201_v15  ;;  %v1166_v15 = vcombine.high %v8152_v11, %v8152_v11 }
  0x71   :  { %6525 = vmatprep.subr.bf16.mxu0 %v7203_v17  ;;  %6546 = vmatpush3.bf16.msra.mxu1 %v7202_v16  ;;  %v1195_v16 = vcombine.high %v1173_v9, %v1173_v9  ;;  %v7256_v17 = vld [vmem:[%s9307_s1 + $0x570] sm:$0xff]  }
  0x72   :  { %6547 = vmatprep.subr.bf16.mxu1 %v7204_v18  ;;  %v1197_v18 = vcombine.high %v1187_v13, %v1187_v13 }
  0x74   :  { %6526 = vmatpush3.bf16.msra.mxu0 %v7205_v19  ;;  %v7257_v19 = vld [vmem:[%s9307_s1 + $0x5f0] sm:$0xff]  }
  0x75   :  { %6527 = vmatprep.subr.bf16.mxu0 %v7207_v21  ;;  %6548 = vmatpush3.bf16.msra.mxu1 %v7206_v20  ;;  %v1194_v20 = vrot.slane %v1166_v15, %v7720_v35  ;;  %v7258_v21 = vld [vmem:[%s9307_s1 + $0x530] sm:$0xff]   ;;  %v7313_v15 = vld [vmem:[%s9307_s1 + $0x640] sm:$0xff]  }
  0x76   :  { %6549 = vmatprep.subr.bf16.mxu1 %v7208_v22  ;;  %v7259_v22 = vld [vmem:[%s9307_s1 + $0x5b0] sm:$0xff]  }
  0x78   :  { %6528 = vmatpush3.bf16.msra.mxu0 %v7209_v23  ;;  %v1198_v23 = vcombine.high %v1194_v20, %v1194_v20 }
  0x79   :  { %6529 = vmatprep.subr.bf16.mxu0 %v7211_v25  ;;  %6550 = vmatpush3.bf16.msra.mxu1 %v7210_v24  ;;  %v7260_v24 = vld [vmem:[%s9307_s1 + $0x568] sm:$0xff]  }
  0x7a   :  { %6551 = vmatprep.subr.bf16.mxu1 %v7212_v26  ;;  %v7261_v25 = vld [vmem:[%s9307_s1 + $0x5e8] sm:$0xff]  }
  0x7b   :  { %v7262_v26 = vld [vmem:[%s9307_s1 + $0x528] sm:$0xff]  }
  0x7c   :  { %6530 = vmatpush3.bf16.msra.mxu0 %v7213_v27  ;;  %v7263_v27 = vld [vmem:[%s9307_s1 + $0x5a8] sm:$0xff]  }
  0x7d   :  { %6531 = vmatprep.subr.bf16.mxu0 %v7215_v29  ;;  %6552 = vmatpush3.bf16.msra.mxu1 %v7214_v28  ;;  %v7264_v28 = vld [vmem:[%s9307_s1 + $0x560] sm:$0xff]  }
  0x7e   :  { %6553 = vmatprep.subr.bf16.mxu1 %v7216_v30  ;;  %v7265_v29 = vld [vmem:[%s9307_s1 + $0x5e0] sm:$0xff]  }
  0x7f   :  { %v7266_v30 = vld [vmem:[%s9307_s1 + $0x520] sm:$0xff]  }
  0x80   :  { %6532 = vmatpush3.bf16.msra.mxu0 %v7217_v31  ;;  %v7267_v31 = vld [vmem:[%s9307_s1 + $0x5a0] sm:$0xff]  }
  0x81   :  { %6561 = vmatprep.subr.bf16.mxu0 %v7220_v34  ;;  %6554 = vmatpush3.bf16.msra.mxu1 %v7218_v32  ;;  %v7268_v32 = vld [vmem:[%s9307_s1 + $0x558] sm:$0xff]  }
  0x82   :  { %6583 = vmatprep.subr.bf16.mxu1 %v7221_v36  ;;  %v7270_v34 = vld [vmem:[%s9307_s1 + $0x518] sm:$0xff]  }
  0x83   :  { %4853 = vmatmul.mubr.bf16.vlgmr.msra.gmra.mxu0 %v1131_v33  ;;  %v7269_v33 = vld [vmem:[%s9307_s1 + $0x5d8] sm:$0xff]  }
  0x84   :  { %6562 = vmatpush3.bf16.msra.mxu0 %v7222_v37  ;;  %4893 = vmatmul.mubr.bf16.vlgmr.msra.gmra.mxu1 %v1147_v39  ;;  %v7271_v36 = vld [vmem:[%s9307_s1 + $0x598] sm:$0xff]   ;;  %v7272_v37 = vld [vmem:[%s9307_s1 + $0x550] sm:$0xff]  }
  0x85   :  { %6563 = vmatprep.subr.bf16.mxu0 %v7224_v40  ;;  %6584 = vmatpush3.bf16.msra.mxu1 %v7223_v38  ;;  %v7273_v38 = vld [vmem:[%s9307_s1 + $0x5d0] sm:$0xff]  }
  0x86   :  { %6585 = vmatprep.subr.bf16.mxu1 %v7225_v41  ;;  %4932 = vmatprep.mubr.bf16.mxu0 %v1187_v13  ;;  %v7274_v39 = vld [vmem:[%s9307_s1 + $0x510] sm:$0xff]   ;;  %v7276_v41 = vld [vmem:[%s9307_s1 + $0x548] sm:$0xff]  }
  0x87   :  { %4972 = vmatprep.mubr.bf16.mxu1 %v1197_v18  ;;  %v7275_v40 = vld [vmem:[%s9307_s1 + $0x590] sm:$0xff]   ;;  %v7311_v13 = vld [vmem:[%s9307_s1 + $0x608] sm:$0xff]   ;;  %v15_v18 = vld [vmem:[%s9308_s0 + $0x18] sm:$0xff] }
  0x88   :  { %6564 = vmatpush3.bf16.msra.mxu0 %v7226_v42  ;;  %v7277_v42 = vld [vmem:[%s9307_s1 + $0x5c8] sm:$0xff]  }
  0x89   :  { %6565 = vmatprep.subr.bf16.mxu0 %v7228_v44  ;;  %6586 = vmatpush3.bf16.msra.mxu1 %v7227_v43  ;;  %v7278_v43 = vld [vmem:[%s9307_s1 + $0x508] sm:$0xff]  }
  0x8a   :  { %6587 = vmatprep.subr.bf16.mxu1 %v7229_v45  ;;  %v7279_v44 = vld [vmem:[%s9307_s1 + $0x588] sm:$0xff]   ;;  %v7280_v45 = vld [vmem:[%s9307_s1 + $0x540] sm:$0xff]  }
  0x8c   :  { %6566 = vmatpush3.bf16.msra.mxu0 %v7230_v46  ;;  %v7281_v46 = vld [vmem:[%s9307_s1 + $0x5c0] sm:$0xff]  }
  0x8d   :  { %6567 = vmatprep.subr.bf16.mxu0 %v7232_v48  ;;  %6588 = vmatpush3.bf16.msra.mxu1 %v7231_v47  ;;  %v7282_v47 = vld [vmem:[%s9307_s1 + $0x500] sm:$0xff]  }
  0x8e   :  { %6589 = vmatprep.subr.bf16.mxu1 %v7233_v49  ;;  %v7283_v48 = vld [vmem:[%s9307_s1 + $0x580] sm:$0xff]   ;;  %v1180_v49 = vrot.slane %v8152_v11, %v7720_v35  ;;  %v7309_v11 = vld [vmem:[%s9307_s1 + $0x648] sm:$0xff]  }
  0x90   :  { %6568 = vmatpush3.bf16.msra.mxu0 %v7234_v50  ;;  %v7285_v50 = vld [vmem:[%s9307_s1 + $0x678] sm:$0xff]  }
  0x91   :  { %6569 = vmatprep.subr.bf16.mxu0 %v7236_v52  ;;  %6590 = vmatpush3.bf16.msra.mxu1 %v7235_v51  ;;  %v7286_v51 = vld [vmem:[%s9307_s1 + $0x6f8] sm:$0xff]  }
  0x92   :  { %6591 = vmatprep.subr.bf16.mxu1 %v7237_v53  ;;  %v7287_v52 = vld [vmem:[%s9307_s1 + $0x638] sm:$0xff]  }
  0x93   :  { %v7288_v53 = vld [vmem:[%s9307_s1 + $0x6b8] sm:$0xff]  }
  0x94   :  { %6570 = vmatpush3.bf16.msra.mxu0 %v7238_v54  ;;  %v1196_v54 = vcombine.high %v1180_v49, %v1180_v49 }
  0x95   :  { %6571 = vmatprep.subr.bf16.mxu0 %v7240_v56  ;;  %6592 = vmatpush3.bf16.msra.mxu1 %v7239_v55  ;;  %v7289_v55 = vld [vmem:[%s9307_s1 + $0x670] sm:$0xff]  }
  0x96   :  { %6593 = vmatprep.subr.bf16.mxu1 %v7241_v57  ;;  %v7290_v56 = vld [vmem:[%s9307_s1 + $0x6f0] sm:$0xff]  }
  0x97   :  { %v7291_v57 = vld [vmem:[%s9307_s1 + $0x630] sm:$0xff]  }
  0x98   :  { %6572 = vmatpush3.bf16.msra.mxu0 %v7242_v58  ;;  %v7292_v58 = vld [vmem:[%s9307_s1 + $0x6b0] sm:$0xff]  }
  0x99   :  { %6573 = vmatprep.subr.bf16.mxu0 %v7244_v60  ;;  %6594 = vmatpush3.bf16.msra.mxu1 %v7243_v59  ;;  %v7293_v59 = vld [vmem:[%s9307_s1 + $0x668] sm:$0xff]  }
  0x9a   :  { %6595 = vmatprep.subr.bf16.mxu1 %v7245_v61  ;;  %v7294_v60 = vld [vmem:[%s9307_s1 + $0x6e8] sm:$0xff]  }
  0x9b   :  { %v7295_v61 = vld [vmem:[%s9307_s1 + $0x628] sm:$0xff]  }
  0x9c   :  { %6574 = vmatpush3.bf16.msra.mxu0 %v7246_v62  ;;  %v7296_v62 = vld [vmem:[%s9307_s1 + $0x6a8] sm:$0xff]  }
  0x9d   :  { %6575 = vmatprep.subr.bf16.mxu0 %v7248_v0  ;;  %6596 = vmatpush3.bf16.msra.mxu1 %v7247_v63  ;;  %v7297_v63 = vld [vmem:[%s9307_s1 + $0x660] sm:$0xff]  }
  0x9e   :  { %6597 = vmatprep.subr.bf16.mxu1 %v7249_v1  ;;  %v7298_v0 = vld [vmem:[%s9307_s1 + $0x6e0] sm:$0xff]  }
  0x9f   :  { %v7299_v1 = vld [vmem:[%s9307_s1 + $0x620] sm:$0xff]  }
  0xa0   :  { %6576 = vmatpush3.bf16.msra.mxu0 %v7250_v2  ;;  %v7300_v2 = vld [vmem:[%s9307_s1 + $0x6a0] sm:$0xff]  }
  0xa1   :  { %6605 = vmatprep.subr.bf16.mxu0 %v7252_v7  ;;  %6598 = vmatpush3.bf16.msra.mxu1 %v7251_v4  ;;  %v7302_v4 = vld [vmem:[%s9307_s1 + $0x6d8] sm:$0xff]   ;;  %v7305_v7 = vld [vmem:[%s9307_s1 + $0x650] sm:$0xff]  }
  0xa2   :  { %6627 = vmatprep.subr.bf16.mxu1 %v7253_v10  ;;  %v7308_v10 = vld [vmem:[%s9307_s1 + $0x690] sm:$0xff]  }
  0xa3   :  { %4933 = vmatmul.mubr.bf16.vlgmr.msra.gmra.mxu0 %v1173_v9  ;;  %v7307_v9 = vld [vmem:[%s9307_s1 + $0x610] sm:$0xff]  }
  0xa4   :  { %6606 = vmatpush3.bf16.msra.mxu0 %v7254_v12  ;;  %4973 = vmatmul.mubr.bf16.vlgmr.msra.gmra.mxu1 %v1195_v16  ;;  %v7310_v12 = vld [vmem:[%s9307_s1 + $0x6c8] sm:$0xff]   ;;  %v7314_v16 = vld [vmem:[%s9307_s1 + $0x6c0] sm:$0xff]  }
  0xa5   :  { %6607 = vmatprep.subr.bf16.mxu0 %v7256_v17  ;;  %6628 = vmatpush3.bf16.msra.mxu1 %v7255_v14  ;;  %v7312_v14 = vld [vmem:[%s9307_s1 + $0x688] sm:$0xff]   ;;  %v7315_v17 = vld [vmem:[%s9307_s1 + $0x600] sm:$0xff]  }
  0xa6   :  { %5012 = vmatprep.mubr.bf16.mxu0 %v1194_v20  ;;  %6629 = vmatprep.subr.bf16.mxu1 %v7257_v19  ;;  %v1206_v19 = vrot.slane %v15_v18, %v7720_v35  ;;  %v7317_v20 = vld [vmem:[%s9307_s1 + $0x778] sm:$0xff]  }
  0xa7   :  { %5052 = vmatprep.mubr.bf16.mxu1 %v1198_v23 }
  0xa8   :  { %6608 = vmatpush3.bf16.msra.mxu0 %v7258_v21  ;;  %v1199_v21 = vcombine.high %v15_v18, %v15_v18  ;;  %v1214_v23 = vcombine.high %v1206_v19, %v1206_v19 }
  0xa9   :  { %6609 = vmatprep.subr.bf16.mxu0 %v7260_v24  ;;  %6630 = vmatpush3.bf16.msra.mxu1 %v7259_v22  ;;  %v7316_v22 = vld [vmem:[%s9307_s1 + $0x680] sm:$0xff]   ;;  %v1222_v24 = vrot.slane %v1206_v19, %v7720_v35  ;;  %v7355_v19 = vld [vmem:[%s9307_s1 + $0x8f0] sm:$0xff]  }
  0xaa   :  { %6631 = vmatprep.subr.bf16.mxu1 %v7261_v25  ;;  %v7318_v25 = vld [vmem:[%s9307_s1 + $0x7f8] sm:$0xff]  }
  0xac   :  { %6610 = vmatpush3.bf16.msra.mxu0 %v7262_v26  ;;  %v8358_v26 = vrot.slane %v1199_v21, %v7720_v35 }
  0xad   :  { %6611 = vmatprep.subr.bf16.mxu0 %v7264_v28  ;;  %6632 = vmatpush3.bf16.msra.mxu1 %v7263_v27  ;;  %v7319_v27 = vld [vmem:[%s9307_s1 + $0x738] sm:$0xff]   ;;  %v1236_v28 = vrot.slane %v1214_v23, %v7720_v35  ;;  %v7357_v23 = vld [vmem:[%s9307_s1 + $0x8b0] sm:$0xff]  }
  0xae   :  { %6633 = vmatprep.subr.bf16.mxu1 %v7265_v29  ;;  %v7320_v29 = vld [vmem:[%s9307_s1 + $0x7b8] sm:$0xff]  }
  0xb0   :  { %6612 = vmatpush3.bf16.msra.mxu0 %v7266_v30  ;;  %v1215_v30 = vcombine.high %v8358_v26, %v8358_v26 }
  0xb1   :  { %6613 = vmatprep.subr.bf16.mxu0 %v7268_v32  ;;  %6634 = vmatpush3.bf16.msra.mxu1 %v7267_v31  ;;  %v1244_v31 = vcombine.high %v1222_v24, %v1222_v24  ;;  %v7321_v32 = vld [vmem:[%s9307_s1 + $0x770] sm:$0xff]  }
  0xb2   :  { %6635 = vmatprep.subr.bf16.mxu1 %v7269_v33  ;;  %v1246_v33 = vcombine.high %v1236_v28, %v1236_v28 }
  0xb4   :  { %6614 = vmatpush3.bf16.msra.mxu0 %v7270_v34 }
  0xb5   :  { %6615 = vmatprep.subr.bf16.mxu0 %v7272_v37  ;;  %6636 = vmatpush3.bf16.msra.mxu1 %v7271_v36  ;;  %v7322_v36 = vld [vmem:[%s9307_s1 + $0x7f0] sm:$0xff]   ;;  %v1243_v37 = vrot.slane %v1215_v30, %v7720_v35 }
  0xb6   :  { %6637 = vmatprep.subr.bf16.mxu1 %v7273_v38  ;;  %v7323_v38 = vld [vmem:[%s9307_s1 + $0x730] sm:$0xff]  }
  0xb8   :  { %6616 = vmatpush3.bf16.msra.mxu0 %v7274_v39 }
  0xb9   :  { %6617 = vmatprep.subr.bf16.mxu0 %v7276_v41  ;;  %6638 = vmatpush3.bf16.msra.mxu1 %v7275_v40  ;;  %v7324_v41 = vld [vmem:[%s9307_s1 + $0x7b0] sm:$0xff]  }
  0xba   :  { %6639 = vmatprep.subr.bf16.mxu1 %v7277_v42  ;;  %v1247_v42 = vcombine.high %v1243_v37, %v1243_v37 }
  0xbc   :  { %6618 = vmatpush3.bf16.msra.mxu0 %v7278_v43 }
  0xbd   :  { %6619 = vmatprep.subr.bf16.mxu0 %v7280_v45  ;;  %6640 = vmatpush3.bf16.msra.mxu1 %v7279_v44  ;;  %v7325_v44 = vld [vmem:[%s9307_s1 + $0x768] sm:$0xff]  }
  0xbe   :  { %6641 = vmatprep.subr.bf16.mxu1 %v7281_v46 }
  0xc0   :  { %6620 = vmatpush3.bf16.msra.mxu0 %v7282_v47  ;;  %v7326_v47 = vld [vmem:[%s9307_s1 + $0x7e8] sm:$0xff]  }
  0xc1   :  { %6649 = vmatprep.subr.bf16.mxu0 %v7285_v50  ;;  %6642 = vmatpush3.bf16.msra.mxu1 %v7283_v48 }
  0xc2   :  { %6671 = vmatprep.subr.bf16.mxu1 %v7286_v51 }
  0xc3   :  { %5013 = vmatmul.mubr.bf16.vlgmr.msra.gmra.mxu0 %v1180_v49  ;;  %v7327_v49 = vld [vmem:[%s9307_s1 + $0x728] sm:$0xff]  }
  0xc4   :  { %6650 = vmatpush3.bf16.msra.mxu0 %v7287_v52  ;;  %5053 = vmatmul.mubr.bf16.vlgmr.msra.gmra.mxu1 %v1196_v54  ;;  %v7328_v52 = vld [vmem:[%s9307_s1 + $0x7a8] sm:$0xff]   ;;  %v7329_v54 = vld [vmem:[%s9307_s1 + $0x760] sm:$0xff]  }
  0xc5   :  { %6651 = vmatprep.subr.bf16.mxu0 %v7289_v55  ;;  %6672 = vmatpush3.bf16.msra.mxu1 %v7288_v53 }
  0xc6   :  { %6673 = vmatprep.subr.bf16.mxu1 %v7290_v56  ;;  %5092 = vmatprep.mubr.bf16.mxu0 %v1236_v28  ;;  %v7330_v56 = vld [vmem:[%s9307_s1 + $0x7e0] sm:$0xff]   ;;  %v7359_v28 = vld [vmem:[%s9307_s1 + $0x8e8] sm:$0xff]  }
  0xc7   :  { %5132 = vmatprep.mubr.bf16.mxu1 %v1246_v33 }
  0xc8   :  { %6652 = vmatpush3.bf16.msra.mxu0 %v7291_v57  ;;  %v7331_v57 = vld [vmem:[%s9307_s1 + $0x720] sm:$0xff]  }
  0xc9   :  { %6653 = vmatprep.subr.bf16.mxu0 %v7293_v59  ;;  %6674 = vmatpush3.bf16.msra.mxu1 %v7292_v58  ;;  %v7332_v58 = vld [vmem:[%s9307_s1 + $0x7a0] sm:$0xff]   ;;  %v7333_v59 = vld [vmem:[%s9307_s1 + $0x758] sm:$0xff]  }
  0xca   :  { %6675 = vmatprep.subr.bf16.mxu1 %v7294_v60  ;;  %v7334_v60 = vld [vmem:[%s9307_s1 + $0x7d8] sm:$0xff]  }
  0xcc   :  { %6654 = vmatpush3.bf16.msra.mxu0 %v7295_v61  ;;  %v7335_v61 = vld [vmem:[%s9307_s1 + $0x718] sm:$0xff]  }
  0xcd   :  { %6655 = vmatprep.subr.bf16.mxu0 %v7297_v63  ;;  %6676 = vmatpush3.bf16.msra.mxu1 %v7296_v62  ;;  %v7336_v62 = vld [vmem:[%s9307_s1 + $0x798] sm:$0xff]   ;;  %v7337_v63 = vld [vmem:[%s9307_s1 + $0x750] sm:$0xff]  }
  0xce   :  { %6677 = vmatprep.subr.bf16.mxu1 %v7298_v0  ;;  %v7338_v0 = vld [vmem:[%s9307_s1 + $0x7d0] sm:$0xff]  }
  0xd0   :  { %6656 = vmatpush3.bf16.msra.mxu0 %v7299_v1  ;;  %v7339_v1 = vld [vmem:[%s9307_s1 + $0x710] sm:$0xff]  }
  0xd1   :  { %6657 = vmatprep.subr.bf16.mxu0 %v7301_v3  ;;  %6678 = vmatpush3.bf16.msra.mxu1 %v7300_v2  ;;  %v7340_v2 = vld [vmem:[%s9307_s1 + $0x790] sm:$0xff]   ;;  %v7341_v3 = vld [vmem:[%s9307_s1 + $0x748] sm:$0xff]  }
  0xd2   :  { %6679 = vmatprep.subr.bf16.mxu1 %v7302_v4  ;;  %v7342_v4 = vld [vmem:[%s9307_s1 + $0x7c8] sm:$0xff]  }
  0xd4   :  { %6658 = vmatpush3.bf16.msra.mxu0 %v7303_v5  ;;  %v7343_v5 = vld [vmem:[%s9307_s1 + $0x708] sm:$0xff]  }
  0xd5   :  { %6659 = vmatprep.subr.bf16.mxu0 %v7305_v7  ;;  %6680 = vmatpush3.bf16.msra.mxu1 %v7304_v6  ;;  %v7344_v6 = vld [vmem:[%s9307_s1 + $0x788] sm:$0xff]   ;;  %v7345_v7 = vld [vmem:[%s9307_s1 + $0x740] sm:$0xff]  }
  0xd6   :  { %6681 = vmatprep.subr.bf16.mxu1 %v7306_v8  ;;  %v7346_v8 = vld [vmem:[%s9307_s1 + $0x7c0] sm:$0xff]  }
  0xd8   :  { %6660 = vmatpush3.bf16.msra.mxu0 %v7307_v9  ;;  %v7347_v9 = vld [vmem:[%s9307_s1 + $0x700] sm:$0xff]  }
  0xd9   :  { %6661 = vmatprep.subr.bf16.mxu0 %v7309_v11  ;;  %6682 = vmatpush3.bf16.msra.mxu1 %v7308_v10  ;;  %v7348_v10 = vld [vmem:[%s9307_s1 + $0x780] sm:$0xff]   ;;  %v1229_v11 = vrot.slane %v8358_v26, %v7720_v35 }
  0xda   :  { %6683 = vmatprep.subr.bf16.mxu1 %v7310_v12  ;;  %v7350_v12 = vld [vmem:[%s9307_s1 + $0x878] sm:$0xff]  }
  0xdc   :  { %6662 = vmatpush3.bf16.msra.mxu0 %v7311_v13  ;;  %v7351_v13 = vld [vmem:[%s9307_s1 + $0x8f8] sm:$0xff]  }
  0xdd   :  { %6663 = vmatprep.subr.bf16.mxu0 %v7313_v15  ;;  %6684 = vmatpush3.bf16.msra.mxu1 %v7312_v14  ;;  %v7352_v14 = vld [vmem:[%s9307_s1 + $0x838] sm:$0xff]  }
  0xde   :  { %6685 = vmatprep.subr.bf16.mxu1 %v7314_v16  ;;  %v7353_v15 = vld [vmem:[%s9307_s1 + $0x8b8] sm:$0xff]   ;;  %v1245_v16 = vcombine.high %v1229_v11, %v1229_v11 }
  0xe0   :  { %6664 = vmatpush3.bf16.msra.mxu0 %v7315_v17  ;;  %v7354_v17 = vld [vmem:[%s9307_s1 + $0x870] sm:$0xff]  }
  0xe1   :  { %6693 = vmatprep.subr.bf16.mxu0 %v7317_v20  ;;  %6686 = vmatpush3.bf16.msra.mxu1 %v7316_v22  ;;  %v7356_v20 = vld [vmem:[%s9307_s1 + $0x830] sm:$0xff]  }
  0xe2   :  { %6715 = vmatprep.subr.bf16.mxu1 %v7318_v25  ;;  %v7358_v25 = vld [vmem:[%s9307_s1 + $0x868] sm:$0xff]  }
  0xe3   :  { %v6401_v34 = vpop.f32.mrf.mxu0  ;;  %5093 = vmatmul.mubr.bf16.vlgmr.msra.gmra.mxu0 %v1222_v24 }
  0xe4   :  { %v6423_v39 = vpop.f32.mrf.mxu1  ;;  %6694 = vmatpush3.bf16.msra.mxu0 %v7319_v27  ;;  %5133 = vmatmul.mubr.bf16.vlgmr.msra.gmra.mxu1 %v1244_v31  ;;  %v7360_v31 = vld [vmem:[%s9307_s1 + $0x828] sm:$0xff]  }
  0xe5   :  { %v6402_v40 = vpop.f32.mrf.mxu0  ;;  %6695 = vmatprep.subr.bf16.mxu0 %v7321_v32  ;;  %6716 = vmatpush3.bf16.msra.mxu1 %v7320_v29 }
  0xe6   :  { %v6403_v43 = vadd.f32 %v6402_v40, %v6401_v34  ;;  %v6424_v45 = vpop.f32.mrf.mxu1  ;;  %5172 = vmatprep.mubr.bf16.mxu0 %v1243_v37  ;;  %6717 = vmatprep.subr.bf16.mxu1 %v7322_v36  ;;  %v7361_v34 = vld [vmem:[%s9307_s1 + $0x8a8] sm:$0xff]   ;;  %v7362_v37 = vld [vmem:[%s9307_s1 + $0x860] sm:$0xff]  }
  0xe7   :  { %v6404_v46 = vpop.f32.mrf.mxu0  ;;  %v6425_v48 = vadd.f32 %v6424_v45, %v6423_v39  ;;  %5212 = vmatprep.mubr.bf16.mxu1 %v1247_v42  ;;  %v7363_v39 = vld [vmem:[%s9307_s1 + $0x8e0] sm:$0xff]   ;;  %v7366_v42 = vld [vmem:[%s9307_s1 + $0x858] sm:$0xff]  }
  0xe8   :  { %v6426_v50 = vpop.f32.mrf.mxu1  ;;  %6696 = vmatpush3.bf16.msra.mxu0 %v7323_v38  ;;  %v7364_v40 = vld [vmem:[%s9307_s1 + $0x820] sm:$0xff]   ;;  %v7369_v45 = vld [vmem:[%s9307_s1 + $0x898] sm:$0xff]   ;;  %v7370_v46 = vld [vmem:[%s9307_s1 + $0x850] sm:$0xff]  }
  0xe9   :  { %v6405_v51 = vpop.f32.mrf.mxu0  ;;  %v8394_v53 = vadd.f32 %v6425_v48, %v6403_v43  ;;  %6697 = vmatprep.subr.bf16.mxu0 %v7325_v44  ;;  %6718 = vmatpush3.bf16.msra.mxu1 %v7324_v41  ;;  %v7365_v41 = vld [vmem:[%s9307_s1 + $0x8a0] sm:$0xff]   ;;  %v7367_v43 = vld [vmem:[%s9307_s1 + $0x8d8] sm:$0xff]   ;;  %v7372_v48 = vld [vmem:[%s9307_s1 + $0x810] sm:$0xff]  }
  0xea   :  { %v6427_v55 = vpop.f32.mrf.mxu1  ;;  %6719 = vmatprep.subr.bf16.mxu1 %v7326_v47  ;;  %v7368_v44 = vld [vmem:[%s9307_s1 + $0x818] sm:$0xff]   ;;  %v7371_v47 = vld [vmem:[%s9307_s1 + $0x8d0] sm:$0xff]   ;;  %v7374_v50 = vld [vmem:[%s9307_s1 + $0x848] sm:$0xff]  }
  0xeb   :  { %v7375_v51 = vld [vmem:[%s9307_s1 + $0x8c8] sm:$0xff]   ;;  %v7379_v55 = vld [vmem:[%s9307_s1 + $0x8c0] sm:$0xff]  }
  0xec   :  { %6698 = vmatpush3.bf16.msra.mxu0 %v7327_v49  ;;  %v7373_v49 = vld [vmem:[%s9307_s1 + $0x890] sm:$0xff]  }
  0xed   :  { %6699 = vmatprep.subr.bf16.mxu0 %v7329_v54  ;;  %6720 = vmatpush3.bf16.msra.mxu1 %v7328_v52  ;;  %v7376_v52 = vld [vmem:[%s9307_s1 + $0x808] sm:$0xff]   ;;  %v7378_v54 = vld [vmem:[%s9307_s1 + $0x840] sm:$0xff]  }
  0xee   :  { %6721 = vmatprep.subr.bf16.mxu1 %v7330_v56  ;;  %v7380_v56 = vld [vmem:[%s9307_s1 + $0x800] sm:$0xff]  }
  0xf0   :  { %6700 = vmatpush3.bf16.msra.mxu0 %v7331_v57  ;;  %v16_v57 = vld [vmem:[%s9308_s0 + $0x20] sm:$0xff] }
  0xf1   :  { %6701 = vmatprep.subr.bf16.mxu0 %v7333_v59  ;;  %6722 = vmatpush3.bf16.msra.mxu1 %v7332_v58  ;;  %v7381_v58 = vld [vmem:[%s9307_s1 + $0x880] sm:$0xff]   ;;  %v1255_v59 = vrot.slane %v16_v57, %v7720_v35 }
  0xf2   :  { %6723 = vmatprep.subr.bf16.mxu1 %v7334_v60  ;;  %v1248_v60 = vcombine.high %v16_v57, %v16_v57  ;;  %v7419_v57 = vld [vmem:[%s9307_s1 + $0xa70] sm:$0xff]  }
  0xf4   :  { %6702 = vmatpush3.bf16.msra.mxu0 %v7335_v61  ;;  %v7382_v61 = vld [vmem:[%s9307_s1 + $0x978] sm:$0xff]  }
  0xf5   :  { %6703 = vmatprep.subr.bf16.mxu0 %v7337_v63  ;;  %6724 = vmatpush3.bf16.msra.mxu1 %v7336_v62  ;;  %v1263_v62 = vcombine.high %v1255_v59, %v1255_v59  ;;  %v1271_v63 = vrot.slane %v1255_v59, %v7720_v35  ;;  %v7420_v59 = vld [vmem:[%s9307_s1 + $0xaf0] sm:$0xff]  }
  0xf6   :  { %6725 = vmatprep.subr.bf16.mxu1 %v7338_v0  ;;  %v7383_v0 = vld [vmem:[%s9307_s1 + $0x9f8] sm:$0xff]  }
  0xf8   :  { %6704 = vmatpush3.bf16.msra.mxu0 %v7339_v1  ;;  %v8569_v1 = vrot.slane %v1248_v60, %v7720_v35  ;;  %v7421_v60 = vld [vmem:[%s9307_s1 + $0xa30] sm:$0xff]  }
  0xf9   :  { %6705 = vmatprep.subr.bf16.mxu0 %v7341_v3  ;;  %6726 = vmatpush3.bf16.msra.mxu1 %v7340_v2  ;;  %v7384_v2 = vld [vmem:[%s9307_s1 + $0x938] sm:$0xff]   ;;  %v1285_v3 = vrot.slane %v1263_v62, %v7720_v35 }
  0xfa   :  { %6727 = vmatprep.subr.bf16.mxu1 %v7342_v4  ;;  %v7385_v4 = vld [vmem:[%s9307_s1 + $0x9b8] sm:$0xff]  }
  0xfc   :  { %6706 = vmatpush3.bf16.msra.mxu0 %v7343_v5  ;;  %v1264_v5 = vcombine.high %v8569_v1, %v8569_v1 }
  0xfd   :  { %6707 = vmatprep.subr.bf16.mxu0 %v7345_v7  ;;  %6728 = vmatpush3.bf16.msra.mxu1 %v7344_v6  ;;  %v1293_v6 = vcombine.high %v1271_v63, %v1271_v63  ;;  %v7386_v7 = vld [vmem:[%s9307_s1 + $0x970] sm:$0xff]  }
  0xfe   :  { %6729 = vmatprep.subr.bf16.mxu1 %v7346_v8  ;;  %v1295_v8 = vcombine.high %v1285_v3, %v1285_v3 }
 0x100   :  { %6708 = vmatpush3.bf16.msra.mxu0 %v7347_v9 }
 0x101   :  { %6737 = vmatprep.subr.bf16.mxu0 %v7350_v12  ;;  %6730 = vmatpush3.bf16.msra.mxu1 %v7348_v10  ;;  %v7387_v10 = vld [vmem:[%s9307_s1 + $0x9f0] sm:$0xff]  }
 0x102   :  { %6759 = vmatprep.subr.bf16.mxu1 %v7351_v13  ;;  %v7388_v12 = vld [vmem:[%s9307_s1 + $0x930] sm:$0xff]  }
 0x103   :  { %v6445_v18 = vpop.f32.mrf.mxu0  ;;  %5173 = vmatmul.mubr.bf16.vlgmr.msra.gmra.mxu0 %v1229_v11  ;;  %v1292_v11 = vrot.slane %v1264_v5, %v7720_v35 }
 0x104   :  { %v6467_v21 = vpop.f32.mrf.mxu1  ;;  %6738 = vmatpush3.bf16.msra.mxu0 %v7352_v14  ;;  %5213 = vmatmul.mubr.bf16.vlgmr.msra.gmra.mxu1 %v1245_v16 }
 0x105   :  { %v6446_v22 = vpop.f32.mrf.mxu0  ;;  %6739 = vmatprep.subr.bf16.mxu0 %v7354_v17  ;;  %6760 = vmatpush3.bf16.msra.mxu1 %v7353_v15  ;;  %v7389_v15 = vld [vmem:[%s9307_s1 + $0x9b0] sm:$0xff]   ;;  %v1296_v16 = vcombine.high %v1292_v11, %v1292_v11 }
 0x106   :  { %v6447_v24 = vadd.f32 %v6446_v22, %v6445_v18  ;;  %v6468_v26 = vpop.f32.mrf.mxu1  ;;  %6761 = vmatprep.subr.bf16.mxu1 %v7355_v19  ;;  %5252 = vmatprep.mubr.bf16.mxu0 %v1285_v3  ;;  %v7390_v18 = vld [vmem:[%s9307_s1 + $0x968] sm:$0xff]  }
 0x107   :  { %v6448_v27 = vpop.f32.mrf.mxu0  ;;  %v6469_v30 = vadd.f32 %v6468_v26, %v6467_v21  ;;  %5292 = vmatprep.mubr.bf16.mxu1 %v1295_v8  ;;  %v7391_v21 = vld [vmem:[%s9307_s1 + $0x9e8] sm:$0xff]  }
 0x108   :  { %v4695_v29 = vadd.f32 %v6447_v24, %v8394_v53  ;;  %v6470_v32 = vpop.f32.mrf.mxu1  ;;  %6740 = vmatpush3.bf16.msra.mxu0 %v7356_v20  ;;  %v7377_v53 = vld [vmem:[%s9307_s1 + $0x888] sm:$0xff]  }
 0x109   :  { %v6449_v33 = vpop.f32.mrf.mxu0  ;;  %6741 = vmatprep.subr.bf16.mxu0 %v7358_v25  ;;  %6762 = vmatpush3.bf16.msra.mxu1 %v7357_v23  ;;  %v7392_v24 = vld [vmem:[%s9307_s1 + $0x928] sm:$0xff]   ;;  %v7396_v32 = vld [vmem:[%s9307_s1 + $0x920] sm:$0xff]  }
 0x10a   :  { %v8495_v36 = vadd.f32 %v6469_v30, %v4695_v29  ;;  %v6471_v38 = vpop.f32.mrf.mxu1  ;;  %6763 = vmatprep.subr.bf16.mxu1 %v7359_v28  ;;  %v7393_v27 = vld [vmem:[%s9307_s1 + $0x9a8] sm:$0xff]   ;;  %v7394_v29 = vld [vmem:[%s9307_s1 + $0x960] sm:$0xff]  }
 0x10b   :  { %v7397_v33 = vld [vmem:[%s9307_s1 + $0x9a0] sm:$0xff]   ;;  %v7401_v38 = vld [vmem:[%s9307_s1 + $0x998] sm:$0xff]  }
 0x10c   :  { %6742 = vmatpush3.bf16.msra.mxu0 %v7360_v31  ;;  %v7395_v31 = vld [vmem:[%s9307_s1 + $0x9e0] sm:$0xff]  }
 0x10d   :  { %6743 = vmatprep.subr.bf16.mxu0 %v7362_v37  ;;  %6764 = vmatpush3.bf16.msra.mxu1 %v7361_v34  ;;  %v7398_v34 = vld [vmem:[%s9307_s1 + $0x958] sm:$0xff]  }
 0x10e   :  { %6765 = vmatprep.subr.bf16.mxu1 %v7363_v39  ;;  %v7400_v37 = vld [vmem:[%s9307_s1 + $0x918] sm:$0xff]   ;;  %v7402_v39 = vld [vmem:[%s9307_s1 + $0x950] sm:$0xff]  }
 0x110   :  { %6744 = vmatpush3.bf16.msra.mxu0 %v7364_v40  ;;  %v7403_v40 = vld [vmem:[%s9307_s1 + $0x9d0] sm:$0xff]  }
 0x111   :  { %6745 = vmatprep.subr.bf16.mxu0 %v7366_v42  ;;  %6766 = vmatpush3.bf16.msra.mxu1 %v7365_v41  ;;  %v7404_v41 = vld [vmem:[%s9307_s1 + $0x910] sm:$0xff]  }
 0x112   :  { %6767 = vmatprep.subr.bf16.mxu1 %v7367_v43  ;;  %v7405_v42 = vld [vmem:[%s9307_s1 + $0x990] sm:$0xff]   ;;  %v7406_v43 = vld [vmem:[%s9307_s1 + $0x948] sm:$0xff]  }
 0x114   :  { %6746 = vmatpush3.bf16.msra.mxu0 %v7368_v44  ;;  %v7407_v44 = vld [vmem:[%s9307_s1 + $0x9c8] sm:$0xff]  }
 0x115   :  { %6747 = vmatprep.subr.bf16.mxu0 %v7370_v46  ;;  %6768 = vmatpush3.bf16.msra.mxu1 %v7369_v45  ;;  %v7408_v45 = vld [vmem:[%s9307_s1 + $0x908] sm:$0xff]  }
 0x116   :  { %6769 = vmatprep.subr.bf16.mxu1 %v7371_v47  ;;  %v7409_v46 = vld [vmem:[%s9307_s1 + $0x988] sm:$0xff]   ;;  %v7410_v47 = vld [vmem:[%s9307_s1 + $0x940] sm:$0xff]  }
 0x118   :  { %6748 = vmatpush3.bf16.msra.mxu0 %v7372_v48  ;;  %v7411_v48 = vld [vmem:[%s9307_s1 + $0x9c0] sm:$0xff]  }
 0x119   :  { %6749 = vmatprep.subr.bf16.mxu0 %v7374_v50  ;;  %6770 = vmatpush3.bf16.msra.mxu1 %v7373_v49  ;;  %v7412_v49 = vld [vmem:[%s9307_s1 + $0x900] sm:$0xff]  }
 0x11a   :  { %6771 = vmatprep.subr.bf16.mxu1 %v7375_v51  ;;  %v7413_v50 = vld [vmem:[%s9307_s1 + $0x980] sm:$0xff]   ;;  %v1278_v51 = vrot.slane %v8569_v1, %v7720_v35  ;;  %v7423_v1 = vld [vmem:[%s9307_s1 + $0xa68] sm:$0xff]  }
 0x11c   :  { %6750 = vmatpush3.bf16.msra.mxu0 %v7376_v52  ;;  %v7415_v52 = vld [vmem:[%s9307_s1 + $0xa78] sm:$0xff]  }
 0x11d   :  { %6751 = vmatprep.subr.bf16.mxu0 %v7378_v54  ;;  %6772 = vmatpush3.bf16.msra.mxu1 %v7377_v53  ;;  %v7416_v53 = vld [vmem:[%s9307_s1 + $0xaf8] sm:$0xff]  }
 0x11e   :  { %6773 = vmatprep.subr.bf16.mxu1 %v7379_v55  ;;  %v7417_v54 = vld [vmem:[%s9307_s1 + $0xa38] sm:$0xff]  }
 0x11f   :  { %v7418_v55 = vld [vmem:[%s9307_s1 + $0xab8] sm:$0xff]  }
 0x120   :  { %6752 = vmatpush3.bf16.msra.mxu0 %v7380_v56  ;;  %v1294_v56 = vcombine.high %v1278_v51, %v1278_v51 }
 0x121   :  { %6781 = vmatprep.subr.bf16.mxu0 %v7382_v61  ;;  %6774 = vmatpush3.bf16.msra.mxu1 %v7381_v58 }
 0x122   :  { %6803 = vmatprep.subr.bf16.mxu1 %v7383_v0 }
 0x123   :  { %v6489_v9 = vpop.f32.mrf.mxu0  ;;  %5253 = vmatmul.mubr.bf16.vlgmr.msra.gmra.mxu0 %v1271_v63  ;;  %v7422_v63 = vld [vmem:[%s9307_s1 + $0xab0] sm:$0xff]  }
 0x124   :  { %v6511_v13 = vpop.f32.mrf.mxu1  ;;  %6782 = vmatpush3.bf16.msra.mxu0 %v7384_v2  ;;  %5293 = vmatmul.mubr.bf16.vlgmr.msra.gmra.mxu1 %v1293_v6 }
 0x125   :  { %v6490_v14 = vpop.f32.mrf.mxu0  ;;  %6783 = vmatprep.subr.bf16.mxu0 %v7386_v7  ;;  %6804 = vmatpush3.bf16.msra.mxu1 %v7385_v4  ;;  %v7424_v4 = vld [vmem:[%s9307_s1 + $0xae8] sm:$0xff]  }
 0x126   :  { %v6491_v17 = vadd.f32 %v6490_v14, %v6489_v9  ;;  %v6512_v19 = vpop.f32.mrf.mxu1  ;;  %5332 = vmatprep.mubr.bf16.mxu0 %v1292_v11  ;;  %6805 = vmatprep.subr.bf16.mxu1 %v7387_v10  ;;  %v7425_v7 = vld [vmem:[%s9307_s1 + $0xa28] sm:$0xff]   ;;  %v7428_v14 = vld [vmem:[%s9307_s1 + $0xae0] sm:$0xff]  }
 0x127   :  { %v6492_v20 = vpop.f32.mrf.mxu0  ;;  %v6513_v23 = vadd.f32 %v6512_v19, %v6511_v13  ;;  %5372 = vmatprep.mubr.bf16.mxu1 %v1296_v16  ;;  %v7426_v10 = vld [vmem:[%s9307_s1 + $0xaa8] sm:$0xff]   ;;  %v7430_v16 = vld [vmem:[%s9307_s1 + $0xaa0] sm:$0xff]   ;;  %v7433_v19 = vld [vmem:[%s9307_s1 + $0xa18] sm:$0xff]  }
 0x128   :  { %v4775_v22 = vadd.f32 %v6491_v17, %v8495_v36  ;;  %v6514_v25 = vpop.f32.mrf.mxu1  ;;  %6784 = vmatpush3.bf16.msra.mxu0 %v7388_v12  ;;  %v7399_v36 = vld [vmem:[%s9307_s1 + $0x9d8] sm:$0xff]   ;;  %v7427_v12 = vld [vmem:[%s9307_s1 + $0xa60] sm:$0xff]  }
 0x129   :  { %v6493_v26 = vpop.f32.mrf.mxu0  ;;  %6785 = vmatprep.subr.bf16.mxu0 %v7390_v18  ;;  %6806 = vmatpush3.bf16.msra.mxu1 %v7389_v15  ;;  %v7429_v15 = vld [vmem:[%s9307_s1 + $0xa20] sm:$0xff]   ;;  %v7431_v17 = vld [vmem:[%s9307_s1 + $0xa58] sm:$0xff]   ;;  %v7439_v25 = vld [vmem:[%s9307_s1 + $0xa48] sm:$0xff]  }
 0x12a   :  { %v8606_v28 = vadd.f32 %v6513_v23, %v4775_v22  ;;  %v6515_v30 = vpop.f32.mrf.mxu1  ;;  %6807 = vmatprep.subr.bf16.mxu1 %v7391_v21  ;;  %v7432_v18 = vld [vmem:[%s9307_s1 + $0xad8] sm:$0xff]   ;;  %v7435_v21 = vld [vmem:[%s9307_s1 + $0xa50] sm:$0xff]   ;;  %v7440_v26 = vld [vmem:[%s9307_s1 + $0xac8] sm:$0xff]  }
 0x12b   :  { %v7434_v20 = vld [vmem:[%s9307_s1 + $0xa98] sm:$0xff]   ;;  %v7436_v22 = vld [vmem:[%s9307_s1 + $0xad0] sm:$0xff]   ;;  %v7444_v30 = vld [vmem:[%s9307_s1 + $0xac0] sm:$0xff]  }
 0x12c   :  { %6786 = vmatpush3.bf16.msra.mxu0 %v7392_v24  ;;  %v7437_v23 = vld [vmem:[%s9307_s1 + $0xa10] sm:$0xff]  }
 0x12d   :  { %6787 = vmatprep.subr.bf16.mxu0 %v7394_v29  ;;  %6808 = vmatpush3.bf16.msra.mxu1 %v7393_v27  ;;  %v7438_v24 = vld [vmem:[%s9307_s1 + $0xa90] sm:$0xff]   ;;  %v7441_v27 = vld [vmem:[%s9307_s1 + $0xa08] sm:$0xff]   ;;  %v7443_v29 = vld [vmem:[%s9307_s1 + $0xa40] sm:$0xff]  }
 0x12e   :  { %6809 = vmatprep.subr.bf16.mxu1 %v7395_v31  ;;  %v7445_v31 = vld [vmem:[%s9307_s1 + $0xa00] sm:$0xff]  }
 0x130   :  { %6788 = vmatpush3.bf16.msra.mxu0 %v7396_v32  ;;  %v17_v32 = vld [vmem:[%s9308_s0 + $0x28] sm:$0xff] }
 0x131   :  { %6789 = vmatprep.subr.bf16.mxu0 %v7398_v34  ;;  %6810 = vmatpush3.bf16.msra.mxu1 %v7397_v33  ;;  %v7446_v33 = vld [vmem:[%s9307_s1 + $0xa80] sm:$0xff]   ;;  %v1304_v34 = vrot.slane %v17_v32, %v7720_v35 }
 0x132   :  { %6811 = vmatprep.subr.bf16.mxu1 %v7399_v36  ;;  %v1297_v36 = vcombine.high %v17_v32, %v17_v32  ;;  %v7484_v32 = vld [vmem:[%s9307_s1 + $0xc70] sm:$0xff]  }
 0x134   :  { %6790 = vmatpush3.bf16.msra.mxu0 %v7400_v37  ;;  %v7447_v37 = vld [vmem:[%s9307_s1 + $0xb78] sm:$0xff]  }
 0x135   :  { %6791 = vmatprep.subr.bf16.mxu0 %v7402_v39  ;;  %6812 = vmatpush3.bf16.msra.mxu1 %v7401_v38  ;;  %v1312_v38 = vcombine.high %v1304_v34, %v1304_v34  ;;  %v1320_v39 = vrot.slane %v1304_v34, %v7720_v35  ;;  %v7485_v34 = vld [vmem:[%s9307_s1 + $0xcf0] sm:$0xff]  }
 0x136   :  { %6813 = vmatprep.subr.bf16.mxu1 %v7403_v40  ;;  %v7448_v40 = vld [vmem:[%s9307_s1 + $0xbf8] sm:$0xff]  }
 0x138   :  { %6792 = vmatpush3.bf16.msra.mxu0 %v7404_v41  ;;  %v8781_v41 = vrot.slane %v1297_v36, %v7720_v35  ;;  %v7486_v36 = vld [vmem:[%s9307_s1 + $0xc30] sm:$0xff]  }
 0x139   :  { %6793 = vmatprep.subr.bf16.mxu0 %v7406_v43  ;;  %6814 = vmatpush3.bf16.msra.mxu1 %v7405_v42  ;;  %v7449_v42 = vld [vmem:[%s9307_s1 + $0xb38] sm:$0xff]   ;;  %v1334_v43 = vrot.slane %v1312_v38, %v7720_v35 }
 0x13a   :  { %6815 = vmatprep.subr.bf16.mxu1 %v7407_v44  ;;  %v7450_v44 = vld [vmem:[%s9307_s1 + $0xbb8] sm:$0xff]  }
 0x13c   :  { %6794 = vmatpush3.bf16.msra.mxu0 %v7408_v45  ;;  %v1313_v45 = vcombine.high %v8781_v41, %v8781_v41 }
 0x13d   :  { %6795 = vmatprep.subr.bf16.mxu0 %v7410_v47  ;;  %6816 = vmatpush3.bf16.msra.mxu1 %v7409_v46  ;;  %v1342_v46 = vcombine.high %v1320_v39, %v1320_v39  ;;  %v7451_v47 = vld [vmem:[%s9307_s1 + $0xb70] sm:$0xff]  }
 0x13e   :  { %6817 = vmatprep.subr.bf16.mxu1 %v7411_v48  ;;  %v1344_v48 = vcombine.high %v1334_v43, %v1334_v43 }
 0x140   :  { %6796 = vmatpush3.bf16.msra.mxu0 %v7412_v49 }
 0x141   :  { %6825 = vmatprep.subr.bf16.mxu0 %v7415_v52  ;;  %6818 = vmatpush3.bf16.msra.mxu1 %v7413_v50  ;;  %v7452_v50 = vld [vmem:[%s9307_s1 + $0xbf0] sm:$0xff]  }
 0x142   :  { %6847 = vmatprep.subr.bf16.mxu1 %v7416_v53  ;;  %v7453_v52 = vld [vmem:[%s9307_s1 + $0xb30] sm:$0xff]  }
 0x143   :  { %v6533_v58 = vpop.f32.mrf.mxu0  ;;  %5333 = vmatmul.mubr.bf16.vlgmr.msra.gmra.mxu0 %v1278_v51  ;;  %v1341_v51 = vrot.slane %v1313_v45, %v7720_v35 }
 0x144   :  { %v6555_v61 = vpop.f32.mrf.mxu1  ;;  %6826 = vmatpush3.bf16.msra.mxu0 %v7417_v54  ;;  %5373 = vmatmul.mubr.bf16.vlgmr.msra.gmra.mxu1 %v1294_v56 }
 0x145   :  { %v6534_v62 = vpop.f32.mrf.mxu0  ;;  %6827 = vmatprep.subr.bf16.mxu0 %v7419_v57  ;;  %6848 = vmatpush3.bf16.msra.mxu1 %v7418_v55  ;;  %v7454_v55 = vld [vmem:[%s9307_s1 + $0xbb0] sm:$0xff]   ;;  %v1345_v56 = vcombine.high %v1341_v51, %v1341_v51 }
 0x146   :  { %v6535_v0 = vadd.f32 %v6534_v62, %v6533_v58  ;;  %v6556_v2 = vpop.f32.mrf.mxu1  ;;  %6849 = vmatprep.subr.bf16.mxu1 %v7420_v59  ;;  %5412 = vmatprep.mubr.bf16.mxu0 %v1334_v43  ;;  %v7455_v58 = vld [vmem:[%s9307_s1 + $0xb68] sm:$0xff]  }
 0x147   :  { %v6536_v3 = vpop.f32.mrf.mxu0  ;;  %v6557_v6 = vadd.f32 %v6556_v2, %v6555_v61  ;;  %5452 = vmatprep.mubr.bf16.mxu1 %v1344_v48  ;;  %v7456_v61 = vld [vmem:[%s9307_s1 + $0xbe8] sm:$0xff]  }
 0x148   :  { %v4855_v5 = vadd.f32 %v6535_v0, %v8606_v28  ;;  %v6558_v8 = vpop.f32.mrf.mxu1  ;;  %6828 = vmatpush3.bf16.msra.mxu0 %v7421_v60  ;;  %v7442_v28 = vld [vmem:[%s9307_s1 + $0xa88] sm:$0xff]  }
 0x149   :  { %v6537_v9 = vpop.f32.mrf.mxu0  ;;  %6829 = vmatprep.subr.bf16.mxu0 %v7423_v1  ;;  %6850 = vmatpush3.bf16.msra.mxu1 %v7422_v63  ;;  %v7457_v0 = vld [vmem:[%s9307_s1 + $0xb28] sm:$0xff]   ;;  %v7461_v8 = vld [vmem:[%s9307_s1 + $0xb20] sm:$0xff]  }
 0x14a   :  { %v8707_v11 = vadd.f32 %v6557_v6, %v4855_v5  ;;  %v6559_v13 = vpop.f32.mrf.mxu1  ;;  %6851 = vmatprep.subr.bf16.mxu1 %v7424_v4  ;;  %v7458_v3 = vld [vmem:[%s9307_s1 + $0xba8] sm:$0xff]   ;;  %v7459_v5 = vld [vmem:[%s9307_s1 + $0xb60] sm:$0xff]  }
 0x14b   :  { %v7462_v9 = vld [vmem:[%s9307_s1 + $0xba0] sm:$0xff]   ;;  %v7466_v13 = vld [vmem:[%s9307_s1 + $0xb98] sm:$0xff]  }
 0x14c   :  { %6830 = vmatpush3.bf16.msra.mxu0 %v7425_v7  ;;  %v7460_v7 = vld [vmem:[%s9307_s1 + $0xbe0] sm:$0xff]  }
 0x14d   :  { %6831 = vmatprep.subr.bf16.mxu0 %v7427_v12  ;;  %6852 = vmatpush3.bf16.msra.mxu1 %v7426_v10  ;;  %v7463_v10 = vld [vmem:[%s9307_s1 + $0xb58] sm:$0xff]  }
 0x14e   :  { %6853 = vmatprep.subr.bf16.mxu1 %v7428_v14  ;;  %v7465_v12 = vld [vmem:[%s9307_s1 + $0xb18] sm:$0xff]   ;;  %v7467_v14 = vld [vmem:[%s9307_s1 + $0xb50] sm:$0xff]  }
 0x150   :  { %6832 = vmatpush3.bf16.msra.mxu0 %v7429_v15  ;;  %v7468_v15 = vld [vmem:[%s9307_s1 + $0xbd0] sm:$0xff]  }
 0x151   :  { %6833 = vmatprep.subr.bf16.mxu0 %v7431_v17  ;;  %6854 = vmatpush3.bf16.msra.mxu1 %v7430_v16  ;;  %v7469_v16 = vld [vmem:[%s9307_s1 + $0xb10] sm:$0xff]  }
 0x152   :  { %6855 = vmatprep.subr.bf16.mxu1 %v7432_v18  ;;  %v7470_v17 = vld [vmem:[%s9307_s1 + $0xb90] sm:$0xff]   ;;  %v7471_v18 = vld [vmem:[%s9307_s1 + $0xb48] sm:$0xff]  }
 0x154   :  { %6834 = vmatpush3.bf16.msra.mxu0 %v7433_v19  ;;  %v7472_v19 = vld [vmem:[%s9307_s1 + $0xbc8] sm:$0xff]  }
 0x155   :  { %6835 = vmatprep.subr.bf16.mxu0 %v7435_v21  ;;  %6856 = vmatpush3.bf16.msra.mxu1 %v7434_v20  ;;  %v7473_v20 = vld [vmem:[%s9307_s1 + $0xb08] sm:$0xff]  }
 0x156   :  { %6857 = vmatprep.subr.bf16.mxu1 %v7436_v22  ;;  %v7474_v21 = vld [vmem:[%s9307_s1 + $0xb88] sm:$0xff]   ;;  %v7475_v22 = vld [vmem:[%s9307_s1 + $0xb40] sm:$0xff]  }
 0x158   :  { %6836 = vmatpush3.bf16.msra.mxu0 %v7437_v23  ;;  %v7476_v23 = vld [vmem:[%s9307_s1 + $0xbc0] sm:$0xff]  }
 0x159   :  { %6837 = vmatprep.subr.bf16.mxu0 %v7439_v25  ;;  %6858 = vmatpush3.bf16.msra.mxu1 %v7438_v24  ;;  %v7477_v24 = vld [vmem:[%s9307_s1 + $0xb00] sm:$0xff]  }
 0x15a   :  { %6859 = vmatprep.subr.bf16.mxu1 %v7440_v26  ;;  %v7478_v25 = vld [vmem:[%s9307_s1 + $0xb80] sm:$0xff]   ;;  %v1327_v26 = vrot.slane %v8781_v41, %v7720_v35  ;;  %v7488_v41 = vld [vmem:[%s9307_s1 + $0xc68] sm:$0xff]  }
 0x15c   :  { %6838 = vmatpush3.bf16.msra.mxu0 %v7441_v27  ;;  %v7480_v27 = vld [vmem:[%s9307_s1 + $0xc78] sm:$0xff]  }
 0x15d   :  { %6839 = vmatprep.subr.bf16.mxu0 %v7443_v29  ;;  %6860 = vmatpush3.bf16.msra.mxu1 %v7442_v28  ;;  %v7481_v28 = vld [vmem:[%s9307_s1 + $0xcf8] sm:$0xff]  }
 0x15e   :  { %6861 = vmatprep.subr.bf16.mxu1 %v7444_v30  ;;  %v7482_v29 = vld [vmem:[%s9307_s1 + $0xc38] sm:$0xff]  }
 0x15f   :  { %v7483_v30 = vld [vmem:[%s9307_s1 + $0xcb8] sm:$0xff]  }
 0x160   :  { %6840 = vmatpush3.bf16.msra.mxu0 %v7445_v31  ;;  %v1343_v31 = vcombine.high %v1327_v26, %v1327_v26 }
 0x161   :  { %6869 = vmatprep.subr.bf16.mxu0 %v7447_v37  ;;  %6862 = vmatpush3.bf16.msra.mxu1 %v7446_v33 }
 0x162   :  { %6891 = vmatprep.subr.bf16.mxu1 %v7448_v40 }
 0x163   :  { %v6577_v49 = vpop.f32.mrf.mxu0  ;;  %5413 = vmatmul.mubr.bf16.vlgmr.msra.gmra.mxu0 %v1320_v39  ;;  %v7487_v39 = vld [vmem:[%s9307_s1 + $0xcb0] sm:$0xff]  }
 0x164   :  { %v6599_v53 = vpop.f32.mrf.mxu1  ;;  %6870 = vmatpush3.bf16.msra.mxu0 %v7449_v42  ;;  %5453 = vmatmul.mubr.bf16.vlgmr.msra.gmra.mxu1 %v1342_v46 }
 0x165   :  { %v6578_v54 = vpop.f32.mrf.mxu0  ;;  %6871 = vmatprep.subr.bf16.mxu0 %v7451_v47  ;;  %6892 = vmatpush3.bf16.msra.mxu1 %v7450_v44  ;;  %v7489_v44 = vld [vmem:[%s9307_s1 + $0xce8] sm:$0xff]  }
 0x166   :  { %v6579_v57 = vadd.f32 %v6578_v54, %v6577_v49  ;;  %v6600_v59 = vpop.f32.mrf.mxu1  ;;  %5492 = vmatprep.mubr.bf16.mxu0 %v1341_v51  ;;  %6893 = vmatprep.subr.bf16.mxu1 %v7452_v50  ;;  %v7490_v47 = vld [vmem:[%s9307_s1 + $0xc28] sm:$0xff]   ;;  %v7493_v54 = vld [vmem:[%s9307_s1 + $0xce0] sm:$0xff]  }
 0x167   :  { %v6580_v60 = vpop.f32.mrf.mxu0  ;;  %v6601_v63 = vadd.f32 %v6600_v59, %v6599_v53  ;;  %5532 = vmatprep.mubr.bf16.mxu1 %v1345_v56  ;;  %v7491_v50 = vld [vmem:[%s9307_s1 + $0xca8] sm:$0xff]   ;;  %v7495_v56 = vld [vmem:[%s9307_s1 + $0xca0] sm:$0xff]   ;;  %v7498_v59 = vld [vmem:[%s9307_s1 + $0xc18] sm:$0xff]  }
 0x168   :  { %v4935_v62 = vadd.f32 %v6579_v57, %v8707_v11  ;;  %v6602_v1 = vpop.f32.mrf.mxu1  ;;  %6872 = vmatpush3.bf16.msra.mxu0 %v7453_v52  ;;  %v7464_v11 = vld [vmem:[%s9307_s1 + $0xbd8] sm:$0xff]   ;;  %v7492_v52 = vld [vmem:[%s9307_s1 + $0xc60] sm:$0xff]  }
 0x169   :  { %v6581_v2 = vpop.f32.mrf.mxu0  ;;  %6873 = vmatprep.subr.bf16.mxu0 %v7455_v58  ;;  %6894 = vmatpush3.bf16.msra.mxu1 %v7454_v55  ;;  %v7494_v55 = vld [vmem:[%s9307_s1 + $0xc20] sm:$0xff]   ;;  %v7496_v57 = vld [vmem:[%s9307_s1 + $0xc58] sm:$0xff]   ;;  %v7504_v1 = vld [vmem:[%s9307_s1 + $0xc48] sm:$0xff]  }
 0x16a   :  { %v8818_v4 = vadd.f32 %v6601_v63, %v4935_v62  ;;  %v6603_v6 = vpop.f32.mrf.mxu1  ;;  %6895 = vmatprep.subr.bf16.mxu1 %v7456_v61  ;;  %v7497_v58 = vld [vmem:[%s9307_s1 + $0xcd8] sm:$0xff]   ;;  %v7500_v61 = vld [vmem:[%s9307_s1 + $0xc50] sm:$0xff]   ;;  %v7505_v2 = vld [vmem:[%s9307_s1 + $0xcc8] sm:$0xff]  }
 0x16b   :  { %v7499_v60 = vld [vmem:[%s9307_s1 + $0xc98] sm:$0xff]   ;;  %v7501_v62 = vld [vmem:[%s9307_s1 + $0xcd0] sm:$0xff]   ;;  %v7509_v6 = vld [vmem:[%s9307_s1 + $0xcc0] sm:$0xff]  }
 0x16c   :  { %6874 = vmatpush3.bf16.msra.mxu0 %v7457_v0  ;;  %v7502_v63 = vld [vmem:[%s9307_s1 + $0xc10] sm:$0xff]  }
 0x16d   :  { %6875 = vmatprep.subr.bf16.mxu0 %v7459_v5  ;;  %6896 = vmatpush3.bf16.msra.mxu1 %v7458_v3  ;;  %v7503_v0 = vld [vmem:[%s9307_s1 + $0xc90] sm:$0xff]   ;;  %v7506_v3 = vld [vmem:[%s9307_s1 + $0xc08] sm:$0xff]   ;;  %v7508_v5 = vld [vmem:[%s9307_s1 + $0xc40] sm:$0xff]  }
 0x16e   :  { %6897 = vmatprep.subr.bf16.mxu1 %v7460_v7  ;;  %v7510_v7 = vld [vmem:[%s9307_s1 + $0xc00] sm:$0xff]  }
 0x170   :  { %6876 = vmatpush3.bf16.msra.mxu0 %v7461_v8  ;;  %v18_v8 = vld [vmem:[%s9308_s0 + $0x30] sm:$0xff] }
 0x171   :  { %6877 = vmatprep.subr.bf16.mxu0 %v7463_v10  ;;  %6898 = vmatpush3.bf16.msra.mxu1 %v7462_v9  ;;  %v1353_v9 = vrot.slane %v18_v8, %v7720_v35  ;;  %v7512_v10 = vld [vmem:[%s9307_s1 + $0xd78] sm:$0xff]  }
 0x172   :  { %6899 = vmatprep.subr.bf16.mxu1 %v7464_v11  ;;  %v1346_v11 = vcombine.high %v18_v8, %v18_v8 }
 0x174   :  { %6878 = vmatpush3.bf16.msra.mxu0 %v7465_v12  ;;  %v7511_v12 = vld [vmem:[%s9307_s1 + $0xc80] sm:$0xff]  }
 0x175   :  { %6879 = vmatprep.subr.bf16.mxu0 %v7467_v14  ;;  %6900 = vmatpush3.bf16.msra.mxu1 %v7466_v13  ;;  %v1361_v13 = vcombine.high %v1353_v9, %v1353_v9  ;;  %v1369_v14 = vrot.slane %v1353_v9, %v7720_v35  ;;  %v7548_v9 = vld [vmem:[%s9307_s1 + $0xeb8] sm:$0xff]  }
 0x176   :  { %6901 = vmatprep.subr.bf16.mxu1 %v7468_v15  ;;  %v7513_v15 = vld [vmem:[%s9307_s1 + $0xdf8] sm:$0xff]  }
 0x178   :  { %6880 = vmatpush3.bf16.msra.mxu0 %v7469_v16  ;;  %v8993_v16 = vrot.slane %v1346_v11, %v7720_v35 }
 0x179   :  { %6881 = vmatprep.subr.bf16.mxu0 %v7471_v18  ;;  %6902 = vmatpush3.bf16.msra.mxu1 %v7470_v17  ;;  %v1383_v17 = vrot.slane %v1361_v13, %v7720_v35  ;;  %v7514_v18 = vld [vmem:[%s9307_s1 + $0xd38] sm:$0xff]   ;;  %v7551_v13 = vld [vmem:[%s9307_s1 + $0xe30] sm:$0xff]  }
 0x17a   :  { %6903 = vmatprep.subr.bf16.mxu1 %v7472_v19  ;;  %v1362_v19 = vcombine.high %v8993_v16, %v8993_v16 }
 0x17c   :  { %6882 = vmatpush3.bf16.msra.mxu0 %v7473_v20  ;;  %v1391_v20 = vcombine.high %v1369_v14, %v1369_v14 }
 0x17d   :  { %6883 = vmatprep.subr.bf16.mxu0 %v7475_v22  ;;  %6904 = vmatpush3.bf16.msra.mxu1 %v7474_v21  ;;  %v7516_v21 = vld [vmem:[%s9307_s1 + $0xd70] sm:$0xff]   ;;  %v1393_v22 = vcombine.high %v1383_v17, %v1383_v17 }
 0x17e   :  { %6905 = vmatprep.subr.bf16.mxu1 %v7476_v23 }
 0x180   :  { %6884 = vmatpush3.bf16.msra.mxu0 %v7477_v24  ;;  %v7515_v24 = vld [vmem:[%s9307_s1 + $0xdb8] sm:$0xff]  }
 0x181   :  { %6913 = vmatprep.subr.bf16.mxu0 %v7480_v27  ;;  %6906 = vmatpush3.bf16.msra.mxu1 %v7478_v25  ;;  %v1390_v25 = vrot.slane %v1362_v19, %v7720_v35 }
 0x182   :  { %6935 = vmatprep.subr.bf16.mxu1 %v7481_v28 }
 0x183   :  { %v6621_v33 = vpop.f32.mrf.mxu0  ;;  %5493 = vmatmul.mubr.bf16.vlgmr.msra.gmra.mxu0 %v1327_v26  ;;  %v7517_v26 = vld [vmem:[%s9307_s1 + $0xdf0] sm:$0xff]  }
 0x184   :  { %v6643_v37 = vpop.f32.mrf.mxu1  ;;  %6914 = vmatpush3.bf16.msra.mxu0 %v7482_v29  ;;  %5533 = vmatmul.mubr.bf16.vlgmr.msra.gmra.mxu1 %v1343_v31  ;;  %v7518_v29 = vld [vmem:[%s9307_s1 + $0xd30] sm:$0xff]  }
 0x185   :  { %v6622_v38 = vpop.f32.mrf.mxu0  ;;  %6915 = vmatprep.subr.bf16.mxu0 %v7484_v32  ;;  %6936 = vmatpush3.bf16.msra.mxu1 %v7483_v30  ;;  %v1394_v30 = vcombine.high %v1390_v25, %v1390_v25  ;;  %v7520_v32 = vld [vmem:[%s9307_s1 + $0xd68] sm:$0xff]  }
 0x186   :  { %v6623_v40 = vadd.f32 %v6622_v38, %v6621_v33  ;;  %v6644_v42 = vpop.f32.mrf.mxu1  ;;  %6937 = vmatprep.subr.bf16.mxu1 %v7485_v34  ;;  %5572 = vmatprep.mubr.bf16.mxu0 %v1383_v17 }
 0x187   :  { %v6624_v43 = vpop.f32.mrf.mxu0  ;;  %v6645_v46 = vadd.f32 %v6644_v42, %v6643_v37  ;;  %5612 = vmatprep.mubr.bf16.mxu1 %v1393_v22  ;;  %v7522_v42 = vld [vmem:[%s9307_s1 + $0xd28] sm:$0xff]  }
 0x188   :  { %v5015_v45 = vadd.f32 %v6623_v40, %v8818_v4  ;;  %v6646_v48 = vpop.f32.mrf.mxu1  ;;  %6916 = vmatpush3.bf16.msra.mxu0 %v7486_v36  ;;  %v7507_v4 = vld [vmem:[%s9307_s1 + $0xc88] sm:$0xff]   ;;  %v7519_v36 = vld [vmem:[%s9307_s1 + $0xdb0] sm:$0xff]  }
 0x189   :  { %v6625_v49 = vpop.f32.mrf.mxu0  ;;  %6917 = vmatprep.subr.bf16.mxu0 %v7488_v41  ;;  %6938 = vmatpush3.bf16.msra.mxu1 %v7487_v39  ;;  %v7521_v39 = vld [vmem:[%s9307_s1 + $0xde8] sm:$0xff]   ;;  %v7526_v48 = vld [vmem:[%s9307_s1 + $0xd20] sm:$0xff]  }
 0x18a   :  { %v8919_v51 = vadd.f32 %v6645_v46, %v5015_v45  ;;  %v6647_v53 = vpop.f32.mrf.mxu1  ;;  %6939 = vmatprep.subr.bf16.mxu1 %v7489_v44  ;;  %v7524_v44 = vld [vmem:[%s9307_s1 + $0xd60] sm:$0xff]   ;;  %v7523_v46 = vld [vmem:[%s9307_s1 + $0xda8] sm:$0xff]   ;;  %v7528_v49 = vld [vmem:[%s9307_s1 + $0xd58] sm:$0xff]  }
 0x18b   :  { %v7532_v53 = vld [vmem:[%s9307_s1 + $0xd50] sm:$0xff]  }
 0x18c   :  { %6918 = vmatpush3.bf16.msra.mxu0 %v7490_v47  ;;  %v7525_v47 = vld [vmem:[%s9307_s1 + $0xde0] sm:$0xff]  }
 0x18d   :  { %6919 = vmatprep.subr.bf16.mxu0 %v7492_v52  ;;  %6940 = vmatpush3.bf16.msra.mxu1 %v7491_v50  ;;  %v7527_v50 = vld [vmem:[%s9307_s1 + $0xda0] sm:$0xff]   ;;  %v7530_v52 = vld [vmem:[%s9307_s1 + $0xd18] sm:$0xff]  }
 0x18e   :  { %6941 = vmatprep.subr.bf16.mxu1 %v7493_v54  ;;  %v7531_v54 = vld [vmem:[%s9307_s1 + $0xd98] sm:$0xff]  }
 0x190   :  { %6920 = vmatpush3.bf16.msra.mxu0 %v7494_v55  ;;  %v7533_v55 = vld [vmem:[%s9307_s1 + $0xdd0] sm:$0xff]  }
 0x191   :  { %6921 = vmatprep.subr.bf16.mxu0 %v7496_v57  ;;  %6942 = vmatpush3.bf16.msra.mxu1 %v7495_v56  ;;  %v7534_v56 = vld [vmem:[%s9307_s1 + $0xd10] sm:$0xff]   ;;  %v7536_v57 = vld [vmem:[%s9307_s1 + $0xd48] sm:$0xff]  }
 0x192   :  { %6943 = vmatprep.subr.bf16.mxu1 %v7497_v58  ;;  %v7535_v58 = vld [vmem:[%s9307_s1 + $0xd90] sm:$0xff]  }
 0x194   :  { %6922 = vmatpush3.bf16.msra.mxu0 %v7498_v59  ;;  %v7537_v59 = vld [vmem:[%s9307_s1 + $0xdc8] sm:$0xff]  }
 0x195   :  { %6923 = vmatprep.subr.bf16.mxu0 %v7500_v61  ;;  %6944 = vmatpush3.bf16.msra.mxu1 %v7499_v60  ;;  %v7538_v60 = vld [vmem:[%s9307_s1 + $0xd08] sm:$0xff]   ;;  %v7540_v61 = vld [vmem:[%s9307_s1 + $0xd40] sm:$0xff]  }
 0x196   :  { %6945 = vmatprep.subr.bf16.mxu1 %v7501_v62  ;;  %v7539_v62 = vld [vmem:[%s9307_s1 + $0xd88] sm:$0xff]  }
 0x198   :  { %6924 = vmatpush3.bf16.msra.mxu0 %v7502_v63  ;;  %v7541_v63 = vld [vmem:[%s9307_s1 + $0xdc0] sm:$0xff]  }
 0x199   :  { %6925 = vmatprep.subr.bf16.mxu0 %v7504_v1  ;;  %6946 = vmatpush3.bf16.msra.mxu1 %v7503_v0  ;;  %v7542_v0 = vld [vmem:[%s9307_s1 + $0xd00] sm:$0xff]   ;;  %v1376_v1 = vrot.slane %v8993_v16, %v7720_v35 }
 0x19a   :  { %6947 = vmatprep.subr.bf16.mxu1 %v7505_v2  ;;  %v7545_v2 = vld [vmem:[%s9307_s1 + $0xe78] sm:$0xff]  }
 0x19c   :  { %6926 = vmatpush3.bf16.msra.mxu0 %v7506_v3  ;;  %v7543_v3 = vld [vmem:[%s9307_s1 + $0xd80] sm:$0xff]  }
 0x19d   :  { %6927 = vmatprep.subr.bf16.mxu0 %v7508_v5  ;;  %6948 = vmatpush3.bf16.msra.mxu1 %v7507_v4  ;;  %v7546_v4 = vld [vmem:[%s9307_s1 + $0xef8] sm:$0xff]  }
 0x19e   :  { %6949 = vmatprep.subr.bf16.mxu1 %v7509_v6  ;;  %v7547_v5 = vld [vmem:[%s9307_s1 + $0xe38] sm:$0xff]   ;;  %v1392_v6 = vcombine.high %v1376_v1, %v1376_v1 }
 0x1a0   :  { %6928 = vmatpush3.bf16.msra.mxu0 %v7510_v7  ;;  %v7549_v7 = vld [vmem:[%s9307_s1 + $0xe70] sm:$0xff]  }
 0x1a1   :  { %6957 = vmatprep.subr.bf16.mxu0 %v7512_v10  ;;  %6950 = vmatpush3.bf16.msra.mxu1 %v7511_v12  ;;  %v7550_v10 = vld [vmem:[%s9307_s1 + $0xef0] sm:$0xff]  }
 0x1a2   :  { %6979 = vmatprep.subr.bf16.mxu1 %v7513_v15  ;;  %v7553_v15 = vld [vmem:[%s9307_s1 + $0xe68] sm:$0xff]  }
 0x1a3   :  { %v6665_v23 = vpop.f32.mrf.mxu0  ;;  %5573 = vmatmul.mubr.bf16.vlgmr.msra.gmra.mxu0 %v1369_v14 }
 0x1a4   :  { %v6687_v27 = vpop.f32.mrf.mxu1  ;;  %6958 = vmatpush3.bf16.msra.mxu0 %v7514_v18  ;;  %5613 = vmatmul.mubr.bf16.vlgmr.msra.gmra.mxu1 %v1391_v20  ;;  %v7552_v18 = vld [vmem:[%s9307_s1 + $0xeb0] sm:$0xff]  }
 0x1a5   :  { %v6666_v28 = vpop.f32.mrf.mxu0  ;;  %6959 = vmatprep.subr.bf16.mxu0 %v7516_v21  ;;  %6980 = vmatpush3.bf16.msra.mxu1 %v7515_v24  ;;  %v7554_v21 = vld [vmem:[%s9307_s1 + $0xee8] sm:$0xff]  }
 0x1a6   :  { %v6667_v31 = vadd.f32 %v6666_v28, %v6665_v23  ;;  %v6688_v33 = vpop.f32.mrf.mxu1  ;;  %5652 = vmatprep.mubr.bf16.mxu0 %v1390_v25  ;;  %6981 = vmatprep.subr.bf16.mxu1 %v7517_v26  ;;  %v7555_v24 = vld [vmem:[%s9307_s1 + $0xe28] sm:$0xff]   ;;  %v7557_v26 = vld [vmem:[%s9307_s1 + $0xe60] sm:$0xff]  }
 0x1a7   :  { %v6668_v34 = vpop.f32.mrf.mxu0  ;;  %v6689_v38 = vadd.f32 %v6688_v33, %v6687_v27  ;;  %5692 = vmatprep.mubr.bf16.mxu1 %v1394_v30  ;;  %v7556_v28 = vld [vmem:[%s9307_s1 + $0xea8] sm:$0xff]   ;;  %v7559_v30 = vld [vmem:[%s9307_s1 + $0xe20] sm:$0xff]   ;;  %v7562_v33 = vld [vmem:[%s9307_s1 + $0xed8] sm:$0xff]  }
 0x1a8   :  { %v5095_v37 = vadd.f32 %v6667_v31, %v8919_v51  ;;  %v6690_v40 = vpop.f32.mrf.mxu1  ;;  %6960 = vmatpush3.bf16.msra.mxu0 %v7518_v29  ;;  %v7529_v51 = vld [vmem:[%s9307_s1 + $0xdd8] sm:$0xff]   ;;  %v7558_v29 = vld [vmem:[%s9307_s1 + $0xee0] sm:$0xff]  }
 0x1a9   :  { %v6669_v41 = vpop.f32.mrf.mxu0  ;;  %6961 = vmatprep.subr.bf16.mxu0 %v7520_v32  ;;  %6982 = vmatpush3.bf16.msra.mxu1 %v7519_v36  ;;  %v7561_v31 = vld [vmem:[%s9307_s1 + $0xe58] sm:$0xff]   ;;  %v7560_v32 = vld [vmem:[%s9307_s1 + $0xea0] sm:$0xff]   ;;  %v7565_v36 = vld [vmem:[%s9307_s1 + $0xe50] sm:$0xff]  }
 0x1aa   :  { %v9027_v43 = vadd.f32 %v6689_v38, %v5095_v37  ;;  %v6691_v45 = vpop.f32.mrf.mxu1  ;;  %6983 = vmatprep.subr.bf16.mxu1 %v7521_v39  ;;  %v7563_v34 = vld [vmem:[%s9307_s1 + $0xe18] sm:$0xff]   ;;  %v7566_v38 = vld [vmem:[%s9307_s1 + $0xed0] sm:$0xff]   ;;  %v7569_v40 = vld [vmem:[%s9307_s1 + $0xe48] sm:$0xff]  }
 0x1ab   :  { %v7564_v37 = vld [vmem:[%s9307_s1 + $0xe98] sm:$0xff]   ;;  %v7567_v39 = vld [vmem:[%s9307_s1 + $0xe10] sm:$0xff]   ;;  %v7572_v45 = vld [vmem:[%s9307_s1 + $0xe88] sm:$0xff]  }
 0x1ac   :  { %6962 = vmatpush3.bf16.msra.mxu0 %v7522_v42  ;;  %v7568_v41 = vld [vmem:[%s9307_s1 + $0xe90] sm:$0xff]   ;;  %v7570_v42 = vld [vmem:[%s9307_s1 + $0xec8] sm:$0xff]  }
 0x1ad   :  { %6963 = vmatprep.subr.bf16.mxu0 %v7524_v44  ;;  %6984 = vmatpush3.bf16.msra.mxu1 %v7523_v46  ;;  %v7573_v44 = vld [vmem:[%s9307_s1 + $0xe40] sm:$0xff]  }
 0x1ae   :  { %6985 = vmatprep.subr.bf16.mxu1 %v7525_v47  ;;  %v7574_v46 = vld [vmem:[%s9307_s1 + $0xec0] sm:$0xff]   ;;  %v19_v47 = vld [vmem:[%s9308_s0 + $0x38] sm:$0xff] }
 0x1b0   :  { %6964 = vmatpush3.bf16.msra.mxu0 %v7526_v48  ;;  %v7575_v48 = vld [vmem:[%s9307_s1 + $0xe00] sm:$0xff]  }
 0x1b1   :  { %6965 = vmatprep.subr.bf16.mxu0 %v7528_v49  ;;  %6986 = vmatpush3.bf16.msra.mxu1 %v7527_v50  ;;  %v1402_v49 = vrot.slane %v19_v47, %v7720_v35  ;;  %v1395_v50 = vcombine.high %v19_v47, %v19_v47 }
 0x1b2   :  { %6987 = vmatprep.subr.bf16.mxu1 %v7529_v51  ;;  %v7577_v51 = vld [vmem:[%s9307_s1 + $0xf78] sm:$0xff]  }
 0x1b4   :  { %6966 = vmatpush3.bf16.msra.mxu0 %v7530_v52  ;;  %v7576_v52 = vld [vmem:[%s9307_s1 + $0xe80] sm:$0xff]  }
 0x1b5   :  { %6967 = vmatprep.subr.bf16.mxu0 %v7532_v53  ;;  %6988 = vmatpush3.bf16.msra.mxu1 %v7531_v54  ;;  %v1410_v53 = vcombine.high %v1402_v49, %v1402_v49  ;;  %v1418_v54 = vrot.slane %v1402_v49, %v7720_v35 }
 0x1b6   :  { %6989 = vmatprep.subr.bf16.mxu1 %v7533_v55  ;;  %v9202_v55 = vrot.slane %v1395_v50, %v7720_v35 }
 0x1b8   :  { %6968 = vmatpush3.bf16.msra.mxu0 %v7534_v56  ;;  %v7578_v56 = vld [vmem:[%s9307_s1 + $0xff8] sm:$0xff]  }
 0x1b9   :  { %6969 = vmatprep.subr.bf16.mxu0 %v7536_v57  ;;  %6990 = vmatpush3.bf16.msra.mxu1 %v7535_v58  ;;  %v1432_v57 = vrot.slane %v1410_v53, %v7720_v35  ;;  %v7579_v58 = vld [vmem:[%s9307_s1 + $0xf38] sm:$0xff]  }
 0x1ba   :  { %6991 = vmatprep.subr.bf16.mxu1 %v7537_v59  ;;  %v1411_v59 = vcombine.high %v9202_v55, %v9202_v55 }
 0x1bc   :  { %6970 = vmatpush3.bf16.msra.mxu0 %v7538_v60  ;;  %v1440_v60 = vcombine.high %v1418_v54, %v1418_v54 }
 0x1bd   :  { %6971 = vmatprep.subr.bf16.mxu0 %v7540_v61  ;;  %6992 = vmatpush3.bf16.msra.mxu1 %v7539_v62  ;;  %v7581_v61 = vld [vmem:[%s9307_s1 + $0xf70] sm:$0xff]   ;;  %v1442_v62 = vcombine.high %v1432_v57, %v1432_v57 }
 0x1be   :  { %6993 = vmatprep.subr.bf16.mxu1 %v7541_v63 }
 0x1c0   :  { %6972 = vmatpush3.bf16.msra.mxu0 %v7542_v0  ;;  %v7580_v0 = vld [vmem:[%s9307_s1 + $0xfb8] sm:$0xff]  }
 0x1c1   :  { %7001 = vmatprep.subr.bf16.mxu0 %v7545_v2  ;;  %6994 = vmatpush3.bf16.msra.mxu1 %v7543_v3  ;;  %v7582_v2 = vld [vmem:[%s9307_s1 + $0xff0] sm:$0xff]  }
 0x1c2   :  { %7023 = vmatprep.subr.bf16.mxu1 %v7546_v4 }
 0x1c3   :  { %v6709_v8 = vpop.f32.mrf.mxu0  ;;  %5653 = vmatmul.mubr.bf16.vlgmr.msra.gmra.mxu0 %v1376_v1  ;;  %v1439_v1 = vrot.slane %v1411_v59, %v7720_v35 }
 0x1c4   :  { %v6731_v11 = vpop.f32.mrf.mxu1  ;;  %7002 = vmatpush3.bf16.msra.mxu0 %v7547_v5  ;;  %5693 = vmatmul.mubr.bf16.vlgmr.msra.gmra.mxu1 %v1392_v6  ;;  %v7583_v5 = vld [vmem:[%s9307_s1 + $0xf30] sm:$0xff]  }
 0x1c5   :  { %v6710_v12 = vpop.f32.mrf.mxu0  ;;  %7003 = vmatprep.subr.bf16.mxu0 %v7549_v7  ;;  %7024 = vmatpush3.bf16.msra.mxu1 %v7548_v9  ;;  %v1443_v6 = vcombine.high %v1439_v1, %v1439_v1 }
 0x1c6   :  { %v6711_v14 = vadd.f32 %v6710_v12, %v6709_v8  ;;  %v6732_v16 = vpop.f32.mrf.mxu1  ;;  %7025 = vmatprep.subr.bf16.mxu1 %v7550_v10  ;;  %5732 = vmatprep.mubr.bf16.mxu0 %v1432_v57  ;;  %v7585_v8 = vld [vmem:[%s9307_s1 + $0xf68] sm:$0xff]  }
 0x1c7   :  { %v6712_v17 = vpop.f32.mrf.mxu0  ;;  %v6733_v20 = vadd.f32 %v6732_v16, %v6731_v11  ;;  %5772 = vmatprep.mubr.bf16.mxu1 %v1442_v62  ;;  %v7584_v11 = vld [vmem:[%s9307_s1 + $0xfb0] sm:$0xff]  }
 0x1c8   :  { %v5175_v19 = vadd.f32 %v6711_v14, %v9027_v43  ;;  %v6734_v22 = vpop.f32.mrf.mxu1  ;;  %7004 = vmatpush3.bf16.msra.mxu0 %v7551_v13  ;;  %v7571_v43 = vld [vmem:[%s9307_s1 + $0xe08] sm:$0xff]  }
 0x1c9   :  { %v6713_v23 = vpop.f32.mrf.mxu0  ;;  %7005 = vmatprep.subr.bf16.mxu0 %v7553_v15  ;;  %7026 = vmatpush3.bf16.msra.mxu1 %v7552_v18  ;;  %v7586_v14 = vld [vmem:[%s9307_s1 + $0xfe8] sm:$0xff]   ;;  %v7590_v22 = vld [vmem:[%s9307_s1 + $0xfe0] sm:$0xff]  }
 0x1ca   :  { %v9128_v25 = vadd.f32 %v6733_v20, %v5175_v19  ;;  %v6735_v27 = vpop.f32.mrf.mxu1  ;;  %7027 = vmatprep.subr.bf16.mxu1 %v7554_v21  ;;  %v7587_v17 = vld [vmem:[%s9307_s1 + $0xf28] sm:$0xff]   ;;  %v7589_v19 = vld [vmem:[%s9307_s1 + $0xf60] sm:$0xff]  }
 0x1cb   :  { %v7588_v21 = vld [vmem:[%s9307_s1 + $0xfa8] sm:$0xff]   ;;  %v7591_v23 = vld [vmem:[%s9307_s1 + $0xf20] sm:$0xff]   ;;  %v7595_v27 = vld [vmem:[%s9307_s1 + $0xf18] sm:$0xff]  }
 0x1cc   :  { %7006 = vmatpush3.bf16.msra.mxu0 %v7555_v24  ;;  %v7593_v24 = vld [vmem:[%s9307_s1 + $0xf58] sm:$0xff]  }
 0x1cd   :  { %7007 = vmatprep.subr.bf16.mxu0 %v7557_v26  ;;  %7028 = vmatpush3.bf16.msra.mxu1 %v7556_v28  ;;  %v7594_v26 = vld [vmem:[%s9307_s1 + $0xfd8] sm:$0xff]   ;;  %v7597_v28 = vld [vmem:[%s9307_s1 + $0xf50] sm:$0xff]  }
 0x1ce   :  { %7029 = vmatprep.subr.bf16.mxu1 %v7558_v29  ;;  %v7596_v29 = vld [vmem:[%s9307_s1 + $0xf98] sm:$0xff]  }
 0x1d0   :  { %7008 = vmatpush3.bf16.msra.mxu0 %v7559_v30  ;;  %v7598_v30 = vld [vmem:[%s9307_s1 + $0xfd0] sm:$0xff]  }
 0x1d1   :  { %7009 = vmatprep.subr.bf16.mxu0 %v7561_v31  ;;  %7030 = vmatpush3.bf16.msra.mxu1 %v7560_v32  ;;  %v7599_v31 = vld [vmem:[%s9307_s1 + $0xf10] sm:$0xff]   ;;  %v7601_v32 = vld [vmem:[%s9307_s1 + $0xf48] sm:$0xff]  }
 0x1d2   :  { %7031 = vmatprep.subr.bf16.mxu1 %v7562_v33  ;;  %v7600_v33 = vld [vmem:[%s9307_s1 + $0xf90] sm:$0xff]  }
 0x1d4   :  { %7010 = vmatpush3.bf16.msra.mxu0 %v7563_v34  ;;  %v7602_v34 = vld [vmem:[%s9307_s1 + $0xfc8] sm:$0xff]  }
 0x1d5   :  { %7011 = vmatprep.subr.bf16.mxu0 %v7565_v36  ;;  %7032 = vmatpush3.bf16.msra.mxu1 %v7564_v37  ;;  %v7603_v36 = vld [vmem:[%s9307_s1 + $0xf08] sm:$0xff]   ;;  %v7605_v37 = vld [vmem:[%s9307_s1 + $0xf40] sm:$0xff]  }
 0x1d6   :  { %7033 = vmatprep.subr.bf16.mxu1 %v7566_v38  ;;  %v7604_v38 = vld [vmem:[%s9307_s1 + $0xf88] sm:$0xff]  }
 0x1d8   :  { %7012 = vmatpush3.bf16.msra.mxu0 %v7567_v39  ;;  %v7606_v39 = vld [vmem:[%s9307_s1 + $0xfc0] sm:$0xff]  }
 0x1d9   :  { %7013 = vmatprep.subr.bf16.mxu0 %v7569_v40  ;;  %7034 = vmatpush3.bf16.msra.mxu1 %v7568_v41  ;;  %v7607_v40 = vld [vmem:[%s9307_s1 + $0xf00] sm:$0xff]   ;;  %v1425_v41 = vrot.slane %v9202_v55, %v7720_v35 }
 0x1da   :  { %7035 = vmatprep.subr.bf16.mxu1 %v7570_v42  ;;  %v7608_v42 = vld [vmem:[%s9307_s1 + $0xf80] sm:$0xff]  }
 0x1dc   :  { %7014 = vmatpush3.bf16.msra.mxu0 %v7571_v43  ;;  %v1441_v43 = vcombine.high %v1425_v41, %v1425_v41 }
 0x1dd   :  { %7015 = vmatprep.subr.bf16.mxu0 %v7573_v44  ;;  %7036 = vmatpush3.bf16.msra.mxu1 %v7572_v45 }
 0x1de   :  { %7037 = vmatprep.subr.bf16.mxu1 %v7574_v46 }
 0x1e0   :  { %7016 = vmatpush3.bf16.msra.mxu0 %v7575_v48 }
 0x1e1   :  { %7045 = vmatprep.subr.bf16.mxu0 %v7577_v51  ;;  %7038 = vmatpush3.bf16.msra.mxu1 %v7576_v52 }
 0x1e2   :  { %7067 = vmatprep.subr.bf16.mxu1 %v7578_v56 }
 0x1e3   :  { %v6753_v63 = vpop.f32.mrf.mxu0  ;;  %5733 = vmatmul.mubr.bf16.vlgmr.msra.gmra.mxu0 %v1418_v54 }
 0x1e4   :  { %v6775_v3 = vpop.f32.mrf.mxu1  ;;  %7046 = vmatpush3.bf16.msra.mxu0 %v7579_v58  ;;  %5773 = vmatmul.mubr.bf16.vlgmr.msra.gmra.mxu1 %v1440_v60 }
 0x1e5   :  { %v6754_v4 = vpop.f32.mrf.mxu0  ;;  %7047 = vmatprep.subr.bf16.mxu0 %v7581_v61  ;;  %7068 = vmatpush3.bf16.msra.mxu1 %v7580_v0 }
 0x1e6   :  { %v6755_v7 = vadd.f32 %v6754_v4, %v6753_v63  ;;  %v6776_v9 = vpop.f32.mrf.mxu1  ;;  %5812 = vmatprep.mubr.bf16.mxu0 %v1439_v1  ;;  %7069 = vmatprep.subr.bf16.mxu1 %v7582_v2 }
 0x1e7   :  { %v6756_v10 = vpop.f32.mrf.mxu0  ;;  %v6777_v13 = vadd.f32 %v6776_v9, %v6775_v3  ;;  %5852 = vmatprep.mubr.bf16.mxu1 %v1443_v6 }
 0x1e8   :  { %v5255_v12 = vadd.f32 %v6755_v7, %v9128_v25  ;;  %v6778_v15 = vpop.f32.mrf.mxu1  ;;  %7048 = vmatpush3.bf16.msra.mxu0 %v7583_v5  ;;  %v7592_v25 = vld [vmem:[%s9307_s1 + $0xfa0] sm:$0xff]  }
 0x1e9   :  { %v6757_v16 = vpop.f32.mrf.mxu0  ;;  %7049 = vmatprep.subr.bf16.mxu0 %v7585_v8  ;;  %7070 = vmatpush3.bf16.msra.mxu1 %v7584_v11 }
 0x1ea   :  { %v5295_v18 = vadd.f32 %v6777_v13, %v5255_v12  ;;  %v6779_v20 = vpop.f32.mrf.mxu1  ;;  %7071 = vmatprep.subr.bf16.mxu1 %v7586_v14 }
 0x1ec   :  { %7050 = vmatpush3.bf16.msra.mxu0 %v7587_v17 }
 0x1ed   :  { %7051 = vmatprep.subr.bf16.mxu0 %v7589_v19  ;;  %7072 = vmatpush3.bf16.msra.mxu1 %v7588_v21 }
 0x1ee   :  { %7073 = vmatprep.subr.bf16.mxu1 %v7590_v22 }
 0x1f0   :  { %7052 = vmatpush3.bf16.msra.mxu0 %v7591_v23 }
 0x1f1   :  { %7053 = vmatprep.subr.bf16.mxu0 %v7593_v24  ;;  %7074 = vmatpush3.bf16.msra.mxu1 %v7592_v25 }
 0x1f2   :  { %7075 = vmatprep.subr.bf16.mxu1 %v7594_v26 }
 0x1f4   :  { %7054 = vmatpush3.bf16.msra.mxu0 %v7595_v27 }
 0x1f5   :  { %7055 = vmatprep.subr.bf16.mxu0 %v7597_v28  ;;  %7076 = vmatpush3.bf16.msra.mxu1 %v7596_v29 }
 0x1f6   :  { %7077 = vmatprep.subr.bf16.mxu1 %v7598_v30 }
 0x1f8   :  { %7056 = vmatpush3.bf16.msra.mxu0 %v7599_v31 }
 0x1f9   :  { %7057 = vmatprep.subr.bf16.mxu0 %v7601_v32  ;;  %7078 = vmatpush3.bf16.msra.mxu1 %v7600_v33 }
 0x1fa   :  { %7079 = vmatprep.subr.bf16.mxu1 %v7602_v34 }
 0x1fc   :  { %7058 = vmatpush3.bf16.msra.mxu0 %v7603_v36 }
 0x1fd   :  { %7059 = vmatprep.subr.bf16.mxu0 %v7605_v37  ;;  %7080 = vmatpush3.bf16.msra.mxu1 %v7604_v38 }
 0x1fe   :  { %7081 = vmatprep.subr.bf16.mxu1 %v7606_v39 }
 0x200   :  { %7060 = vmatpush3.bf16.msra.mxu0 %v7607_v40 }
 0x201   :  { %7082 = vmatpush3.bf16.msra.mxu1 %v7608_v42 }
 0x203   :  { %v6797_v44 = vpop.f32.mrf.mxu0  ;;  %5813 = vmatmul.mubr.bf16.vlgmr.msra.gmra.mxu0 %v1425_v41 }
 0x204   :  { %v6819_v45 = vpop.f32.mrf.mxu1  ;;  %5853 = vmatmul.mubr.bf16.vlgmr.msra.gmra.mxu1 %v1441_v43 }
 0x205   :  { %v6798_v46 = vpop.f32.mrf.mxu0 }
 0x206   :  { %v6799_v47 = vadd.f32 %v6798_v46, %v6797_v44  ;;  %v6820_v48 = vpop.f32.mrf.mxu1 }
 0x207   :  { %v6800_v49 = vpop.f32.mrf.mxu0  ;;  %v6821_v51 = vadd.f32 %v6820_v48, %v6819_v45 }
 0x208   :  { %v5335_v50 = vadd.f32 %v6799_v47, %v5295_v18  ;;  %v6822_v35 = vpop.f32.mrf.mxu1 }
 0x209   :  { %v6801_v52 = vpop.f32.mrf.mxu0 }
 0x20a   :  { %v5375_v53 = vadd.f32 %v6821_v51, %v5335_v50  ;;  %v6823_v54 = vpop.f32.mrf.mxu1 }
 0x223   :  { %v6841_v55 = vpop.f32.mrf.mxu0 }
 0x224   :  { %v6863_v56 = vpop.f32.mrf.mxu1 }
 0x225   :  { %v6842_v57 = vpop.f32.mrf.mxu0 }
 0x226   :  { %v6843_v58 = vadd.f32 %v6842_v57, %v6841_v55  ;;  %v6864_v59 = vpop.f32.mrf.mxu1 }
 0x227   :  { %v6844_v60 = vpop.f32.mrf.mxu0  ;;  %v6865_v62 = vadd.f32 %v6864_v59, %v6863_v56 }
 0x228   :  { %v5415_v61 = vadd.f32 %v6843_v58, %v5375_v53  ;;  %v6866_v63 = vpop.f32.mrf.mxu1 }
 0x229   :  { %v6845_v0 = vpop.f32.mrf.mxu0 }
 0x22a   :  { %v5455_v1 = vadd.f32 %v6865_v62, %v5415_v61  ;;  %v6867_v2 = vpop.f32.mrf.mxu1 }
 0x243   :  { %v6885_v3 = vpop.f32.mrf.mxu0 }
 0x244   :  { %v6907_v4 = vpop.f32.mrf.mxu1 }
 0x245   :  { %v6886_v5 = vpop.f32.mrf.mxu0 }
 0x246   :  { %v6887_v6 = vadd.f32 %v6886_v5, %v6885_v3  ;;  %v6908_v7 = vpop.f32.mrf.mxu1 }
 0x247   :  { %v6888_v8 = vpop.f32.mrf.mxu0  ;;  %v6909_v10 = vadd.f32 %v6908_v7, %v6907_v4 }
 0x248   :  { %v5495_v9 = vadd.f32 %v6887_v6, %v5455_v1  ;;  %v6910_v11 = vpop.f32.mrf.mxu1 }
 0x249   :  { %v6889_v12 = vpop.f32.mrf.mxu0 }
 0x24a   :  { %v5535_v13 = vadd.f32 %v6909_v10, %v5495_v9  ;;  %v6911_v14 = vpop.f32.mrf.mxu1 }
 0x263   :  { %v6929_v15 = vpop.f32.mrf.mxu0 }
 0x264   :  { %v6951_v16 = vpop.f32.mrf.mxu1 }
 0x265   :  { %v6930_v17 = vpop.f32.mrf.mxu0 }
 0x266   :  { %v6931_v18 = vadd.f32 %v6930_v17, %v6929_v15  ;;  %v6952_v19 = vpop.f32.mrf.mxu1 }
 0x267   :  { %v6932_v20 = vpop.f32.mrf.mxu0  ;;  %v6953_v22 = vadd.f32 %v6952_v19, %v6951_v16 }
 0x268   :  { %v5575_v21 = vadd.f32 %v6931_v18, %v5535_v13  ;;  %v6954_v23 = vpop.f32.mrf.mxu1 }
 0x269   :  { %v6933_v24 = vpop.f32.mrf.mxu0 }
 0x26a   :  { %v5615_v25 = vadd.f32 %v6953_v22, %v5575_v21  ;;  %v6955_v26 = vpop.f32.mrf.mxu1 }
 0x283   :  { %v6973_v27 = vpop.f32.mrf.mxu0 }
 0x284   :  { %v6995_v28 = vpop.f32.mrf.mxu1 }
 0x285   :  { %v6974_v29 = vpop.f32.mrf.mxu0 }
 0x286   :  { %v6996_v30 = vpop.f32.mrf.mxu1  ;;  %v6975_v44 = vadd.f32 %v6974_v29, %v6973_v27 }
 0x287   :  { %v6976_v31 = vpop.f32.mrf.mxu0  ;;  %v6997_v46 = vadd.f32 %v6996_v30, %v6995_v28 }
 0x288   :  { %v6998_v32 = vpop.f32.mrf.mxu1  ;;  %v5655_v45 = vadd.f32 %v6975_v44, %v5615_v25 }
 0x289   :  { %v6977_v33 = vpop.f32.mrf.mxu0 }
 0x28a   :  { %v6999_v34 = vpop.f32.mrf.mxu1  ;;  %v5695_v48 = vadd.f32 %v6997_v46, %v5655_v45 }
 0x2a3   :  { %v7017_v36 = vpop.f32.mrf.mxu0 }
 0x2a4   :  { %v7039_v37 = vpop.f32.mrf.mxu1 }
 0x2a5   :  { %v7018_v38 = vpop.f32.mrf.mxu0 }
 0x2a6   :  { %v7040_v39 = vpop.f32.mrf.mxu1  ;;  %v7019_v47 = vadd.f32 %v7018_v38, %v7017_v36 }
 0x2a7   :  { %v7020_v40 = vpop.f32.mrf.mxu0  ;;  %v7041_v50 = vadd.f32 %v7040_v39, %v7039_v37 }
 0x2a8   :  { %v7042_v41 = vpop.f32.mrf.mxu1  ;;  %v5735_v49 = vadd.f32 %v7019_v47, %v5695_v48 }
 0x2a9   :  { %v7021_v42 = vpop.f32.mrf.mxu0 }
 0x2aa   :  { %v7043_v43 = vpop.f32.mrf.mxu1  ;;  %v5775_v53 = vadd.f32 %v7041_v50, %v5735_v49 }
 0x2c3   :  { %v7061_v51 = vpop.f32.mrf.mxu0 }
 0x2c4   :  { %v7083_v35 = vpop.f32.mrf.mxu1 }
 0x2c5   :  { %v7062_v52 = vpop.f32.mrf.mxu0 }
 0x2c6   :  { %v7063_v54 = vadd.f32 %v7062_v52, %v7061_v51  ;;  %v7084_v55 = vpop.f32.mrf.mxu1 }
 0x2c7   :  { %v7064_v56 = vpop.f32.mrf.mxu0  ;;  %v7085_v58 = vadd.f32 %v7084_v55, %v7083_v35 }
 0x2c8   :  { %v5815_v57 = vadd.f32 %v7063_v54, %v5775_v53  ;;  %v7086_v59 = vpop.f32.mrf.mxu1 }
 0x2c9   :  { %v7065_v60 = vpop.f32.mrf.mxu0 }
 0x2ca   :  { %v5855_v61 = vadd.f32 %v7085_v58, %v5815_v57  ;;  %v7087_v62 = vpop.f32.mrf.mxu1 }
 0x2cc   :  { %v6384_v63 = vmul.f32 -1.442695, %v5855_v61 }
 0x2ce   :  { %7610 = vpow2.f32 %v6384_v63 }
 0x2db   :  { %v7611_v0 = vpop.eup %7610 }
 0x2dc   :  { %v5863_v1 = vadd.f32 1.0, %v7611_v0 }
 0x2de   :  { %7612 = vrcp.f32 %v5863_v1 }
 0x2eb   :  { %v7613_v2 = vpop.eup %7612 }
 0x2ec   :  { %5867 = vst.msk [vmem:[%s9309_s2] sm:$0x3] %vm5866_vm0, %v7613_v2 }

</bundles_post_ra>
